<compile_context>
chip_gen: v6e
topology: v6e:2x2x1
jax: 0.10.0
libtpu: 0.0.40
codegen_flags: <defaults>
</compile_context>

<pallas_src>
import functools
import math

import jax
import jax.numpy as jnp
from jax import lax
from jax.experimental import pallas as pl
from jax.experimental.pallas import tpu as pltpu

GAMMA = 2.2
_LANE = 128
_MAX_TILE_R = 2048            # ray-block cap (multiple of 128); keeps v7x 2-TC balance easy
_STEP_BUDGET = 6 * 2**20      # per-step input bytes target (double-buffered by the pipeline)


def _cdiv(a, b):
    return -(-a // b)


def _round_up(x, m):
    return _cdiv(x, m) * m


def _rgb_render_kernel(rgb_ref, w_ref, p_ref, e_ref, out_ref, *,
                       bg_mode, num_samples, mxu_precision):
    # rgb_ref: (tile_r, 3S) channel-interleaved lanes; w_ref: (tile_r, S)
    # p_ref:   (S, 3S) 0/1 repeat matrix; e_ref: (3S, 128) 0/1 channel selector
    # out_ref: (3, tile_r) lane-dense
    S = num_samples
    rgb = rgb_ref[...].astype(jnp.float32)
    w = w_ref[...].astype(jnp.float32)

    if bg_mode == "last_sample":
        # Fold the background blend into the per-sample weights:
        #   comp + rgb_last*(1-acc) == sum_s (w_s + (1-acc)*[s==S-1]) * rgb_{s,c}
        acc = jnp.sum(w, axis=1, keepdims=True)                              # (tile_r, 1)
        last = (lax.broadcasted_iota(jnp.int32, (1, S), 1) == S - 1).astype(jnp.float32)
        w = w + (1.0 - acc) * last

    # Expand weights across interleaved channels on the MXU: w_rep[r, 3s+c] = w[r, s].
    w_rep = jnp.dot(w, p_ref[...], precision=mxu_precision,
                    preferred_element_type=jnp.float32)                      # (tile_r, 3S)
    weighted = w_rep * rgb                                                   # VPU
    if bg_mode == "white":
        # White bg: comp + 1*(1-acc). Since sum_k w_rep[r,k]*E[k,c] == acc, subtract w_rep
        # before the reduce and add the constant 1 after the transpose/slice.
        weighted = weighted - w_rep

    # De-interleave + reduce over samples on the MXU; cols 0..2 hold r,g,b sums, 3..127 are zero.
    comp128 = jnp.dot(weighted, e_ref[...], precision=mxu_precision,
                      preferred_element_type=jnp.float32)                    # (tile_r, 128)

    comp = jnp.transpose(comp128, (1, 0))[0:3, :]                            # (3, tile_r)
    if bg_mode == "white":
        comp = comp + 1.0

    # apply_gamma_correction(gamma=2.2): clamp then x**(1/gamma); guard x==0 explicitly so the
    # exp(log(x)) lowering cannot produce surprises for fully transparent rays.
    comp = jnp.clip(comp, 0.0, 1.0)
    g = jnp.exp(jnp.log(jnp.maximum(comp, 1e-30)) * jnp.float32(1.0 / GAMMA))
    comp = jnp.where(comp > 0.0, g, 0.0)
    out_ref[...] = comp.astype(out_ref.dtype)


@functools.partial(jax.jit, static_argnames=("background_color", "tile_r"))
def rgb_renderer_forward(rgb, weights, background_color="random", tile_r=None):
    """rgb: (*bs, S, 3), weights: (*bs, S, 1) -> (*bs, 3) in rgb.dtype.

    Emulates RGBRenderer.forward with training=True (no nan_to_num / final clamp),
    per-sample (non-packed) inputs, and string background colors.
    """
    # TODO(synk): packed-sample path (ray_indices / nerfacc.accumulate_along_rays) is a
    # data-dependent scatter and is not implemented; tensor-valued background colors and
    # BACKGROUND_COLOR_OVERRIDE are likewise not supported.
    if background_color not in ("random", "black", "white", "last_sample"):
        raise ValueError(f"unsupported background_color: {background_color}")

    bs = rgb.shape[:-2]
    S = rgb.shape[-2]
    assert rgb.shape[-1] == 3 and weights.shape[-1] == 1 and weights.shape[-2] == S
    R = int(math.prod(bs)) if bs else 1
    out_dtype = rgb.dtype
    itemsize = max(jnp.dtype(rgb.dtype).itemsize, jnp.dtype(weights.dtype).itemsize)

    # Native layout, free trailing-dim merges (no HBM copy, no transpose pre-pass).
    rgb2 = rgb.reshape(R, 3 * S)
    w2 = weights.reshape(R, S)

    # Tiny constant 0/1 matrices driving the MXU (resident in VMEM: constant index_map).
    # TODO(synk): num_samples beyond ~1500 would want an S-chunked variant (P grows as 3*S^2).
    k = jnp.arange(3 * S)
    p_mat = (k[None, :] // 3 == jnp.arange(S)[:, None]).astype(jnp.float32)       # (S, 3S)
    e_mat = (k[:, None] % 3 == jnp.arange(_LANE)[None, :]).astype(jnp.float32)    # (3S, 128)
    const_bytes = (S * 3 * S + 3 * S * _LANE) * 4

    if tile_r is None:
        bytes_per_ray = 4 * S * itemsize                      # rgb (3S) + weights (S)
        budget = max(2 * 2**20, _STEP_BUDGET - const_bytes)
        tile_r = max(_LANE, min(_MAX_TILE_R,
                                (budget // bytes_per_ray) // _LANE * _LANE,
                                _round_up(R, _LANE)))
        n = _cdiv(R, tile_r)
        if n > 1 and n % 2 == 1:
            # Prefer an even number of parallel ray blocks (v7x 2-TC balance); harmless on 1-TC chips.
            alt = _round_up(_cdiv(R, n + 1), _LANE)
            if alt >= _LANE and _cdiv(R, alt) % 2 == 0:
                tile_r = alt
    n_blocks = _cdiv(R, tile_r)
    R_out = n_blocks * tile_r                                  # padded only in the fresh output

    # VMEM: double-buffered inputs + f32 temporaries + constants; floor 32 MiB, cap 48 MiB.
    in_bytes = tile_r * 4 * S * itemsize
    temp_bytes = (2 * tile_r * 3 * S + 2 * tile_r * _LANE) * 4
    out_bytes = 2 * 3 * tile_r * jnp.dtype(out_dtype).itemsize
    vmem_need = 2 * in_bytes + 2 * const_bytes + temp_bytes + out_bytes + (2 << 20)
    vmem_limit = int(min(48 * 2**20, max(32 * 2**20, vmem_need)))

    # HIGHEST keeps f32 inputs bit-accurate through the MXU passes; bf16 inputs ride DEFAULT.
    mxu_precision = (jax.lax.Precision.DEFAULT
                     if (rgb.dtype == jnp.bfloat16 and weights.dtype == jnp.bfloat16)
                     else jax.lax.Precision.HIGHEST)

    out_t = pl.pallas_call(
        functools.partial(_rgb_render_kernel, bg_mode=background_color,
                          num_samples=S, mxu_precision=mxu_precision),
        out_shape=jax.ShapeDtypeStruct((3, R_out), out_dtype),
        grid=(n_blocks,),
        in_specs=[
            pl.BlockSpec((tile_r, 3 * S), lambda i: (i, 0)),   # rgb  (contiguous HBM block)
            pl.BlockSpec((tile_r, S), lambda i: (i, 0)),       # weights
            pl.BlockSpec((S, 3 * S), lambda i: (0, 0)),        # P (resident)
            pl.BlockSpec((3 * S, _LANE), lambda i: (0, 0)),    # E (resident)
        ],
        out_specs=pl.BlockSpec((3, tile_r), lambda i: (0, i)),
        compiler_params=pltpu.CompilerParams(
            dimension_semantics=("parallel",),
            vmem_limit_bytes=vmem_limit,
        ),
    )(rgb2, w2, p_mat, e_mat)

    out = jnp.transpose(out_t[:, :R], (1, 0))                  # tiny (3,R) -> (R,3)
    return out.reshape(*bs, 3)


def _reference_forward(rgb, weights, background_color="random"):
    comp = jnp.sum(weights * rgb, axis=-2)
    if background_color != "random":
        acc = jnp.sum(weights, axis=-2)
        if background_color == "last_sample":
            bg = rgb[..., -1, :]
        elif background_color == "white":
            bg = jnp.ones_like(comp)
        elif background_color == "black":
            bg = jnp.zeros_like(comp)
        else:
            raise ValueError(f"unsupported background_color: {background_color}")
        comp = comp + bg * (1.0 - acc)
    comp = jnp.clip(comp, 0.0, 1.0)
    return comp ** (1.0 / GAMMA)


if __name__ == "__main__":
    key = jax.random.PRNGKey(0)
    k1, k2, k3, k4 = jax.random.split(key, 4)

    ok = True

    # Primary shapes: 260 rays (exercises the partial edge ray block), 48 samples.
    num_rays, num_samples = 260, 48
    rgb = jax.random.uniform(k1, (num_rays, num_samples, 3), dtype=jnp.float32)
    raw_w = jax.random.uniform(k2, (num_rays, num_samples, 1), dtype=jnp.float32)
    weights = raw_w / (jnp.sum(raw_w, axis=-2, keepdims=True) + 1.0)   # weights sum < 1

    for bg in ("random", "black", "white", "last_sample"):
        ref = _reference_forward(rgb, weights, background_color=bg)

        out = jax.block_until_ready(rgb_renderer_forward(rgb, weights, background_color=bg))
        ok &= out.shape == (num_rays, 3)
        ok &= bool(jnp.allclose(out, ref, atol=1e-4, rtol=1e-4))

        # Forced small ray tile: multi-block grid including a partial last block.
        out2 = jax.block_until_ready(
            rgb_renderer_forward(rgb, weights, background_color=bg, tile_r=128))
        ok &= bool(jnp.allclose(out2, ref, atol=1e-4, rtol=1e-4))

    # Multi-dim batch shape.
    rgb_b = jax.random.uniform(k3, (2, 70, 32, 3), dtype=jnp.float32)
    w_b = jax.random.uniform(k4, (2, 70, 32, 1), dtype=jnp.float32)
    w_b = w_b / (jnp.sum(w_b, axis=-2, keepdims=True) + 1.0)
    ref_b = _reference_forward(rgb_b, w_b, background_color="last_sample")
    out_b = jax.block_until_ready(
        rgb_renderer_forward(rgb_b, w_b, background_color="last_sample"))
    ok &= out_b.shape == (2, 70, 3)
    ok &= bool(jnp.allclose(out_b, ref_b, atol=1e-4, rtol=1e-4))

    # bf16 inputs ride the halved-DMA path (upcast inside the kernel, bf16 output).
    rgb_bf = rgb.astype(jnp.bfloat16)
    w_bf = weights.astype(jnp.bfloat16)
    out_bf = jax.block_until_ready(
        rgb_renderer_forward(rgb_bf, w_bf, background_color="white"))
    ref_bf = _reference_forward(rgb_bf.astype(jnp.float32), w_bf.astype(jnp.float32),
                                background_color="white")
    ok &= out_bf.dtype == jnp.bfloat16
    ok &= bool(jnp.allclose(out_bf.astype(jnp.float32), ref_bf, atol=2e-2, rtol=2e-2))

    if ok:
        print("KERNEL_OK")
</pallas_src>

<mosaic_0001>
module attributes {stable_mosaic.version = 11 : i64} {
  func.func @_rgb_render_kernel(%arg0: i32, %arg1: memref<384x144xf32, #tpu.memory_space<vmem>>, %arg2: memref<384x48xf32, #tpu.memory_space<vmem>>, %arg3: memref<48x144xf32, #tpu.memory_space<vmem>>, %arg4: memref<144x128xf32, #tpu.memory_space<vmem>>, %arg5: memref<3x384xf32, #tpu.memory_space<vmem>>) attributes {dimension_semantics = [#tpu.dimension_semantics<parallel>], iteration_bounds = array<i64: 1>, scalar_prefetch = 0 : i64, scratch_operands = 0 : i64, tpu.core_type = #tpu.core_type<tc>, window_params = [{transform_indices = @transform_0, window_bounds = array<i64: 384, 144>}, {transform_indices = @transform_1, window_bounds = array<i64: 384, 48>}, {pipeline_mode = #tpu.pipeline_mode<synchronous>, transform_indices = @transform_2, window_bounds = array<i64: 48, 144>}, {pipeline_mode = #tpu.pipeline_mode<synchronous>, transform_indices = @transform_3, window_bounds = array<i64: 144, 128>}, {transform_indices = @transform_4, window_bounds = array<i64: 3, 384>}]} {
    %c0 = arith.constant 0 : index
    %c0_0 = arith.constant 0 : index
    %0 = vector.load %arg1[%c0, %c0_0] : memref<384x144xf32, #tpu.memory_space<vmem>>, vector<384x144xf32>
    %c0_1 = arith.constant 0 : index
    %c0_2 = arith.constant 0 : index
    %1 = vector.load %arg2[%c0_1, %c0_2] : memref<384x48xf32, #tpu.memory_space<vmem>>, vector<384x48xf32>
    %c0_3 = arith.constant 0 : index
    %c0_4 = arith.constant 0 : index
    %2 = vector.load %arg3[%c0_3, %c0_4] : memref<48x144xf32, #tpu.memory_space<vmem>>, vector<48x144xf32>
    %cst = arith.constant dense<0.000000e+00> : vector<384x144xf32>
    %3 = tpu.matmul %1, %2, %cst {dimension_numbers = #tpu.dot_dimension_numbers<[1], [0], [0], [1], [0, 0, 1, 1], [], []>, precision = #tpu.contract_precision<fp32>} : vector<384x48xf32>, vector<48x144xf32>, vector<384x144xf32> -> vector<384x144xf32>
    %4 = arith.mulf %3, %0 : vector<384x144xf32>
    %c0_5 = arith.constant 0 : index
    %c0_6 = arith.constant 0 : index
    %5 = vector.load %arg4[%c0_5, %c0_6] : memref<144x128xf32, #tpu.memory_space<vmem>>, vector<144x128xf32>
    %cst_7 = arith.constant dense<0.000000e+00> : vector<384x128xf32>
    %6 = tpu.matmul %4, %5, %cst_7 {dimension_numbers = #tpu.dot_dimension_numbers<[1], [0], [0], [1], [0, 0, 1, 1], [], []>, precision = #tpu.contract_precision<fp32>} : vector<384x144xf32>, vector<144x128xf32>, vector<384x128xf32> -> vector<384x128xf32>
    %7 = tpu.transpose %6, [1, 0] : vector<384x128xf32> -> vector<128x384xf32>
    %8 = vector.extract_strided_slice %7 {offsets = [0, 0], sizes = [3, 384], strides = [1, 1]} : vector<128x384xf32> to vector<3x384xf32>
    %cst_8 = arith.constant 0.000000e+00 : f32
    %cst_9 = arith.constant 1.000000e+00 : f32
    %9 = vector.broadcast %cst_8 : f32 to vector<3x384xf32>
    %10 = arith.maximumf %9, %8 : vector<3x384xf32>
    %11 = vector.broadcast %cst_9 : f32 to vector<3x384xf32>
    %12 = arith.minimumf %11, %10 : vector<3x384xf32>
    %cst_10 = arith.constant 1.000000e-30 : f32
    %13 = vector.broadcast %cst_10 : f32 to vector<3x384xf32>
    %14 = arith.maximumf %12, %13 : vector<3x384xf32>
    %15 = math.log %14 : vector<3x384xf32>
    %cst_11 = arith.constant 0.454545468 : f32
    %16 = vector.broadcast %cst_11 : f32 to vector<3x384xf32>
    %17 = arith.mulf %15, %16 : vector<3x384xf32>
    %18 = math.exp %17 : vector<3x384xf32>
    %cst_12 = arith.constant 0.000000e+00 : f32
    %19 = vector.broadcast %cst_12 : f32 to vector<3x384xf32>
    %20 = arith.cmpf ogt, %12, %19 : vector<3x384xf32>
    %cst_13 = arith.constant 0.000000e+00 : f32
    %21 = vector.broadcast %cst_13 : f32 to vector<3x384xf32>
    %22 = arith.select %20, %18, %21 : vector<3x384xi1>, vector<3x384xf32>
    %c0_14 = arith.constant 0 : index
    %c0_15 = arith.constant 0 : index
    %23 = vector.load %arg5[%c0_14, %c0_15] : memref<3x384xf32, #tpu.memory_space<vmem>>, vector<3x384xf32>
    tpu.vector_store %arg5[%c0_14, %c0_15], %22 {strides = array<i32>} : memref<3x384xf32, #tpu.memory_space<vmem>>, vector<3x384xf32>,
    return
  }
  func.func @transform_0(%arg0: i32) -> (i32, i32) {
    %c0_i32 = arith.constant 0 : i32
    %c0_i32_0 = arith.constant 0 : i32
    return %arg0, %c0_i32 : i32, i32
  }
  func.func @transform_1(%arg0: i32) -> (i32, i32) {
    %c0_i32 = arith.constant 0 : i32
    %c0_i32_0 = arith.constant 0 : i32
    return %arg0, %c0_i32 : i32, i32
  }
  func.func @transform_2(%arg0: i32) -> (i32, i32) {
    %c0_i32 = arith.constant 0 : i32
    %c0_i32_0 = arith.constant 0 : i32
    %c0_i32_1 = arith.constant 0 : i32
    return %c0_i32, %c0_i32_0 : i32, i32
  }
  func.func @transform_3(%arg0: i32) -> (i32, i32) {
    %c0_i32 = arith.constant 0 : i32
    %c0_i32_0 = arith.constant 0 : i32
    %c0_i32_1 = arith.constant 0 : i32
    return %c0_i32, %c0_i32_0 : i32, i32
  }
  func.func @transform_4(%arg0: i32) -> (i32, i32) {
    %c0_i32 = arith.constant 0 : i32
    %c0_i32_0 = arith.constant 0 : i32
    return %c0_i32, %arg0 : i32, i32
  }
}

</mosaic_0001>

<bundles_post_ra>
// kernel: rgb_renderer_forward.1
= control target key start
LH: loop header
LB: loop body
LE: loop exit
PB: predicated region body
PF: predicated region fallthrough
CT: control target
= control target key end

     0   :  { %v11750_v3 = vmov 0.0   ;;  %vm173_vm0 = vcmask 392192   ;;  %vm3330_vm1 = vcmask 130048   ;;  %s11477_s2 = inlined_call_operand.vmem [shape: f32[48,144], index: 2, kind: input, shape index: {}]   ;;  %s11478_s1 = inlined_call_operand.vmem [shape: f32[260,48], index: 1, kind: input, shape index: {}]   ;;  %s11479_s3 = inlined_call_operand.vmem [shape: f32[144,128], index: 3, kind: input, shape index: {}]   ;;  %s11480_s0 = inlined_call_operand.vmem [shape: f32[260,144], index: 0, kind: input, shape index: {}]   ;;  %s11481_s4 = inlined_call_operand.vmem [shape: f32[3,384], index: 4, kind: output, shape index: {}]  }
   0x1   :  { %v172_v0 = vld [vmem:[%s11477_s2 + $0x58] sm:$0xff]  ;;  %v171_v1 = vld [vmem:[%s11477_s2 + $0x50] sm:$0xff]  ;;  %v170_v2 = vld [vmem:[%s11477_s2 + $0x48] sm:$0xff]  ;;  %394 = vmatprep.mubr.f32.mxu0 %v11750_v3  ;;  %1047 = vmatprep.mubr.f32.mxu1 %v11750_v3 }
   0x2   :  { %v6973_v4 = vand.u32 4294901760, %v172_v0  ;;  %v6975_v5 = vand.u32 4294901760, %v171_v1  ;;  %v6977_v6 = vand.u32 4294901760, %v170_v2  ;;  %v169_v7 = vld [vmem:[%s11477_s2 + $0x40] sm:$0xff]  ;;  %v168_v8 = vld [vmem:[%s11477_s2 + $0x38] sm:$0xff]  ;;  %v167_v9 = vld [vmem:[%s11477_s2 + $0x30] sm:$0xff] }
   0x3   :  { %v6988_v10 = vand.u32 4294901760, %v169_v7  ;;  %v6990_v11 = vand.u32 4294901760, %v168_v8  ;;  %v6992_v12 = vand.u32 4294901760, %v167_v9  ;;  %v166_v13 = vld [vmem:[%s11477_s2 + $0x28] sm:$0xff]  ;;  %v165_v14 = vld [vmem:[%s11477_s2 + $0x20] sm:$0xff]  ;;  %v164_v15 = vld [vmem:[%s11477_s2 + $0x18] sm:$0xff] }
   0x4   :  { %339 = vmatprep.subr.mxu0 %v6973_v4  ;;  %v7004_v16 = vand.u32 4294901760, %v166_v13  ;;  %v7006_v17 = vand.u32 4294901760, %v165_v14  ;;  %v7008_v18 = vand.u32 4294901760, %v164_v15  ;;  %v7011_v19 = vsub.f32 %v172_v0, %v6973_v4  ;;  %v7016_v20 = vld [vmem:[%s11477_s2 + $0x10] sm:$0xff]  ;;  %v7021_v21 = vld [vmem:[%s11477_s2 + $0x8] sm:$0xff]  ;;  %v7026_v22 = vld [vmem:[%s11477_s2] sm:$0xff] }
   0x5   :  { %341 = vmatpush1.msra.mxu0 %v6975_v5  ;;  %v7030_v23 = vand.u32 4294901760, %v7016_v20  ;;  %v7033_v24 = vsub.f32 %v171_v1, %v6975_v5  ;;  %v7036_v25 = vand.u32 4294901760, %v7021_v21  ;;  %v7039_v26 = vsub.f32 %v170_v2, %v6977_v6  ;;  %v113_v27 = vld [vmem:[%s11478_s1] sm:$0xff]  ;;  %v114_v48 = vld [vmem:[%s11478_s1 + $0x8] sm:$0xff]  ;;  %v115_v61 = vld [vmem:[%s11478_s1 + $0x10] sm:$0xff] }
   0x6   :  { %343 = vmatprep.subr.mxu0 %v6977_v6  ;;  %v945_v28 = vand.u32 4294901760, %v7011_v19  ;;  %v7047_v29 = vand.u32 4294901760, %v7026_v22  ;;  %v7050_v30 = vsub.f32 %v169_v7, %v6988_v10  ;;  %v175_v31 = vsel %vm173_vm0, %v113_v27, 0 }
   0x7   :  { %345 = vmatpush1.msra.mxu0 %v6988_v10  ;;  %v11504_v32 = vand.u32 4294901760, %v7033_v24  ;;  %v11502_v33 = vand.u32 4294901760, %v7039_v26  ;;  %v7056_v34 = vand.u32 4294901760, %v175_v31  ;;  %v7059_v35 = vsub.f32 %v168_v8, %v6990_v11 }
   0x8   :  { %347 = vmatprep.subr.mxu0 %v6990_v11  ;;  %v946_v36 = vsub.f32 %v7011_v19, %v945_v28  ;;  %v11501_v37 = vand.u32 4294901760, %v7050_v30  ;;  %v7067_v38 = vsub.f32 %v167_v9, %v6992_v12  ;;  %v7070_v39 = vsub.f32 %v166_v13, %v7004_v16  ;;  %v116_v13 = vld [vmem:[%s11478_s1 + $0x18] sm:$0xff] }
   0x9   :  { %12104 = vst [vmem:[#allocation2_spill] sm:$0xff] %v7056_v34  ;;  %349 = vmatpush1.msra.mxu0 %v6992_v12  ;;  %v952_v40 = vsub.f32 %v7033_v24, %v11504_v32  ;;  %v958_v41 = vsub.f32 %v7039_v26, %v11502_v33  ;;  %v7080_v42 = vsub.f32 %v175_v31, %v7056_v34  ;;  %v11499_v43 = vand.u32 4294901760, %v7059_v35  ;;  %v129_v33 = vld [vmem:[%s11478_s1 + $0x80] sm:$0xff] }
   0xa   :  { %351 = vmatprep.subr.mxu0 %v7004_v16  ;;  %v947_v44 = vand.u32 4294901760, %v946_v36  ;;  %v964_v45 = vsub.f32 %v7050_v30, %v11501_v37  ;;  %v11498_v46 = vand.u32 4294901760, %v7067_v38  ;;  %v11494_v47 = vand.u32 4294901760, %v7070_v39 }
   0xb   :  { %353 = vmatpush1.msra.mxu0 %v7006_v17  ;;  %v953_v49 = vand.u32 4294901760, %v952_v40  ;;  %v959_v50 = vand.u32 4294901760, %v958_v41  ;;  %v11495_v51 = vand.u32 4294901760, %v7080_v42  ;;  %v970_v52 = vsub.f32 %v7059_v35, %v11499_v43  ;;  %v117_v41 = vld [vmem:[%s11478_s1 + $0x20] sm:$0xff] }
   0xc   :  { %355 = vmatprep.subr.mxu0 %v7008_v18  ;;  %948 = vmatprep.subr.mxu1 %v947_v44  ;;  %v965_v53 = vand.u32 4294901760, %v964_v45  ;;  %v976_v54 = vsub.f32 %v7067_v38, %v11498_v46  ;;  %v982_v55 = vsub.f32 %v7070_v39, %v11494_v47  ;;  %v7105_v56 = vsub.f32 %v165_v14, %v7006_v17 }
   0xd   :  { %357 = vmatpush1.msra.mxu0 %v7030_v23  ;;  %954 = vmatpush1.msra.mxu1 %v953_v49  ;;  %v398_v57 = vsub.f32 %v7080_v42, %v11495_v51  ;;  %v971_v58 = vand.u32 4294901760, %v970_v52  ;;  %v178_v59 = vsel %vm173_vm0, %v114_v48, 0  ;;  %v7113_v60 = vsub.f32 %v164_v15, %v7008_v18 }
   0xe   :  { %359 = vmatprep.subr.mxu0 %v7036_v25  ;;  %960 = vmatprep.subr.mxu1 %v959_v50  ;;  %v977_v62 = vand.u32 4294901760, %v976_v54  ;;  %v983_v63 = vand.u32 4294901760, %v982_v55  ;;  %v11491_v0 = vand.u32 4294901760, %v7105_v56  ;;  %v7120_v1 = vand.u32 4294901760, %v178_v59  ;;  %v118_v54 = vld [vmem:[%s11478_s1 + $0x28] sm:$0xff] }
   0xf   :  { %361 = vmatpush1.msra.mxu0 %v7047_v29  ;;  %966 = vmatpush1.msra.mxu1 %v965_v53  ;;  %v399_v2 = vand.u32 4294901760, %v398_v57  ;;  %v11488_v7 = vand.u32 4294901760, %v7113_v60  ;;  %v7126_v8 = vsub.f32 %v7016_v20, %v7030_v23  ;;  %v7130_v9 = vsub.f32 %v7021_v21, %v7036_v25 }
  0x10   :  { %12105 = vst [vmem:[#allocation3_spill] sm:$0xff] %v7120_v1  ;;  %972 = vmatprep.subr.mxu1 %v971_v58  ;;  %v988_v14 = vsub.f32 %v7105_v56, %v11491_v0  ;;  %v7139_v15 = vsub.f32 %v178_v59, %v7120_v1  ;;  %1406 = vmatprep.subr.mxu0 %v7011_v19  ;;  %v181_v21 = vsel %vm173_vm0, %v115_v61, 0  ;;  %v184_v48 = vsel %vm173_vm0, %v116_v13, 0  ;;  %v119_v61 = vld [vmem:[%s11478_s1 + $0x30] sm:$0xff] }
  0x11   :  { %v7144_v20 = vsub.f32 %v7026_v22, %v7047_v29  ;;  %400 = vmatmul.mubr.f32.vlgmr.msra.gmra.mxu0 %v399_v2  ;;  %978 = vmatpush1.msra.mxu1 %v977_v62  ;;  %v994_v27 = vsub.f32 %v7113_v60, %v11488_v7  ;;  %v11486_v31 = vand.u32 4294901760, %v7126_v8  ;;  %v11483_v36 = vand.u32 4294901760, %v7130_v9 }
  0x12   :  { %v7152_v40 = vand.u32 4294901760, %v181_v21  ;;  %984 = vmatprep.subr.mxu1 %v983_v63  ;;  %405 = vmatprep.mubr.f32.mxu0 %v11750_v3  ;;  %v989_v22 = vand.u32 4294901760, %v988_v14  ;;  %v11492_v44 = vand.u32 4294901760, %v7139_v15  ;;  %v7180_v58 = vand.u32 4294901760, %v184_v48  ;;  %v120_v14 = vld [vmem:[%s11478_s1 + $0x38] sm:$0xff] }
  0x13   :  { %v11482_v45 = vand.u32 4294901760, %v7144_v20  ;;  %v995_v49 = vand.u32 4294901760, %v994_v27  ;;  %v1000_v50 = vsub.f32 %v7126_v8, %v11486_v31  ;;  %v1006_v52 = vsub.f32 %v7130_v9, %v11483_v36  ;;  %1409 = vmatpush1.msra.mxu0 %v7033_v24 }
  0x14   :  { %12106 = vst [vmem:[#allocation4_spill] sm:$0xff] %v7152_v40  ;;  %v7169_v53 = vsub.f32 %v181_v21, %v7152_v40  ;;  %990 = vmatpush1.msra.mxu1 %v989_v22  ;;  %v409_v55 = vsub.f32 %v7139_v15, %v11492_v44  ;;  %12107 = vst [vmem:[#allocation5_spill] sm:$0xff] %v7180_v58  ;;  %v187_v59 = vsel %vm173_vm0, %v117_v41, 0  ;;  %1412 = vmatprep.subr.mxu0 %v7039_v26 }
  0x15   :  { %v1012_v57 = vsub.f32 %v7144_v20, %v11482_v45  ;;  %996 = vmatprep.subr.mxu1 %v995_v49  ;;  %v1001_v62 = vand.u32 4294901760, %v1000_v50  ;;  %v1007_v63 = vand.u32 4294901760, %v1006_v52  ;;  %v7188_v13 = vand.u32 4294901760, %v187_v59  ;;  %1415 = vmatpush1.msra.mxu0 %v7050_v30 }
  0x16   :  { %v11489_v2 = vand.u32 4294901760, %v7169_v53  ;;  %v410_v21 = vand.u32 4294901760, %v409_v55  ;;  %v7195_v41 = vsub.f32 %v184_v48, %v7180_v58  ;;  %v190_v22 = vsel %vm173_vm0, %v118_v54, 0  ;;  %1418 = vmatprep.subr.mxu0 %v7059_v35 }
  0x17   :  { %12108 = vst [vmem:[#allocation6_spill] sm:$0xff] %v7188_v13  ;;  %v1013_v27 = vand.u32 4294901760, %v1012_v57  ;;  %1002 = vmatpush1.msra.mxu1 %v1001_v62  ;;  %v7203_v50 = vsub.f32 %v187_v59, %v7188_v13  ;;  %v7205_v52 = vand.u32 4294901760, %v190_v22  ;;  %v193_v55 = vsel %vm173_vm0, %v119_v61, 0  ;;  %1421 = vmatpush1.msra.mxu0 %v7067_v38  ;;  %v121_v62 = vld [vmem:[%s11478_s1 + $0x40] sm:$0xff] }
  0x18   :  { %v420_v49 = vsub.f32 %v7169_v53, %v11489_v2  ;;  %411 = vmatmul.mubr.f32.gmra.mxu0 %v410_v21  ;;  %1008 = vmatprep.subr.mxu1 %v1007_v63  ;;  %v11484_v48 = vand.u32 4294901760, %v7195_v41  ;;  %v7210_v54 = vand.u32 4294901760, %v193_v55  ;;  %v196_v57 = vsel %vm173_vm0, %v120_v14, 0 }
  0x19   :  { %12109 = vst [vmem:[#allocation7_spill] sm:$0xff] %v7205_v52  ;;  %416 = vmatprep.mubr.f32.mxu0 %v11750_v3  ;;  %1014 = vmatpush1.msra.mxu1 %v1013_v27  ;;  %v11485_v61 = vand.u32 4294901760, %v7203_v50  ;;  %v7219_v45 = vsub.f32 %v190_v22, %v7205_v52  ;;  %v7228_v14 = vand.u32 4294901760, %v196_v57  ;;  %v199_v21 = vsel %vm173_vm0, %v121_v62, 0 }
  0x1a   :  { %12110 = vst [vmem:[#allocation8_spill] sm:$0xff] %v7210_v54  ;;  %v421_v59 = vand.u32 4294901760, %v420_v49  ;;  %1049 = vmatmul.mubr.f32.vlgmr.msra.gmra.mxu1 %v7056_v34  ;;  %1878 = vmatprep.subr.mxu1 %v6973_v4  ;;  %v431_v63 = vsub.f32 %v7195_v41, %v11484_v48  ;;  %v7236_v36 = vsub.f32 %v193_v55, %v7210_v54  ;;  %v122_v48 = vld [vmem:[%s11478_s1 + $0x48] sm:$0xff]  ;;  %v7247_v62 = vand.u32 4294901760, %v199_v21 }
  0x1b   :  { %1880 = vmatpush1.msra.mxu1 %v6975_v5  ;;  %1054 = vmatprep.mubr.f32.mxu1 %v11750_v3  ;;  %12111 = vst [vmem:[#allocation9_spill] sm:$0xff] %v7228_v14  ;;  %v442_v22 = vsub.f32 %v7203_v50, %v11485_v61  ;;  %v11487_v49 = vand.u32 4294901760, %v7219_v45  ;;  %v202_v55 = vsel %vm173_vm0, %v122_v48, 0  ;;  %v7256_v31 = vsub.f32 %v196_v57, %v7228_v14  ;;  %v123_v48 = vld [vmem:[%s11478_s1 + $0x50] sm:$0xff] }
  0x1c   :  { %422 = vmatmul.mubr.f32.gmra.mxu0 %v421_v59  ;;  %v432_v27 = vand.u32 4294901760, %v431_v63  ;;  %1882 = vmatprep.subr.mxu1 %v6977_v6  ;;  %12112 = vst [vmem:[#allocation10_spill] sm:$0xff] %v7247_v62  ;;  %v11490_v61 = vand.u32 4294901760, %v7236_v36  ;;  %v7275_v7 = vsub.f32 %v199_v21, %v7247_v62  ;;  %v205_v2 = vsel %vm173_vm0, %v123_v48, 0 }
  0x1d   :  { %427 = vmatprep.mubr.f32.mxu0 %v11750_v3  ;;  %1884 = vmatpush1.msra.mxu1 %v6988_v10  ;;  %v443_v59 = vand.u32 4294901760, %v442_v22  ;;  %v453_v63 = vsub.f32 %v7219_v45, %v11487_v49  ;;  %v11493_v49 = vand.u32 4294901760, %v7256_v31  ;;  %v7295_v0 = vand.u32 4294901760, %v205_v2 }
  0x1e   :  { %1056 = vmatmul.mubr.f32.gmra.mxu1 %v7120_v1  ;;  %1886 = vmatprep.subr.mxu1 %v6990_v11  ;;  %v464_v22 = vsub.f32 %v7236_v36, %v11490_v61  ;;  %v11496_v61 = vand.u32 4294901760, %v7275_v7 }
  0x1f   :  { %1061 = vmatprep.mubr.f32.mxu1 %v11750_v3  ;;  %1888 = vmatpush1.msra.mxu1 %v6992_v12  ;;  %v454_v57 = vand.u32 4294901760, %v453_v63  ;;  %v475_v48 = vsub.f32 %v7256_v31, %v11493_v49  ;;  %12114 = vst [vmem:[#allocation12_spill] sm:$0xff] %v7295_v0  ;;  %v7313_v49 = vsub.f32 %v205_v2, %v7295_v0 }
  0x20   :  { %433 = vmatmul.mubr.f32.gmra.mxu0 %v432_v27  ;;  %1424 = vmatprep.subr.mxu0 %v7070_v39  ;;  %v7267_v27 = vand.u32 4294901760, %v202_v55  ;;  %v465_v63 = vand.u32 4294901760, %v464_v22 }
  0x21   :  { %438 = vmatprep.mubr.f32.mxu0 %v11750_v3  ;;  %1427 = vmatpush1.msra.mxu0 %v7105_v56  ;;  %v476_v22 = vand.u32 4294901760, %v475_v48 }
  0x22   :  { %1063 = vmatmul.mubr.f32.gmra.mxu1 %v7152_v40  ;;  %1890 = vmatprep.subr.mxu1 %v7004_v16  ;;  %12113 = vst [vmem:[#allocation11_spill] sm:$0xff] %v7267_v27  ;;  %v7288_v21 = vsub.f32 %v202_v55, %v7267_v27  ;;  %v125_v55 = vld [vmem:[%s11478_s1 + $0x60] sm:$0xff] }
  0x23   :  { %1068 = vmatprep.mubr.f32.mxu1 %v11750_v3  ;;  %1892 = vmatpush1.msra.mxu1 %v7006_v17  ;;  %v211_v51 = vsel %vm173_vm0, %v125_v55, 0  ;;  %v127_v55 = vld [vmem:[%s11478_s1 + $0x70] sm:$0xff] }
  0x24   :  { %444 = vmatmul.mubr.f32.gmra.mxu0 %v443_v59  ;;  %1430 = vmatprep.subr.mxu0 %v7113_v60  ;;  %v124_v59 = vld [vmem:[%s11478_s1 + $0x58] sm:$0xff] }
  0x25   :  { %449 = vmatprep.mubr.f32.mxu0 %v11750_v3  ;;  %1433 = vmatpush1.msra.mxu0 %v7126_v8  ;;  %v208_v44 = vsel %vm173_vm0, %v124_v59, 0  ;;  %v486_v59 = vsub.f32 %v7275_v7, %v11496_v61 }
  0x26   :  { %1070 = vmatmul.mubr.f32.gmra.mxu1 %v7180_v58  ;;  %1894 = vmatprep.subr.mxu1 %v7008_v18  ;;  %v7315_v47 = vand.u32 4294901760, %v208_v44 }
  0x27   :  { %1075 = vmatprep.mubr.f32.mxu1 %v11750_v3  ;;  %1896 = vmatpush1.msra.mxu1 %v7030_v23  ;;  %v487_v19 = vand.u32 4294901760, %v486_v59  ;;  %v217_v59 = vsel %vm173_vm0, %v127_v55, 0 }
  0x28   :  { %455 = vmatmul.mubr.f32.gmra.mxu0 %v454_v57  ;;  %1436 = vmatprep.subr.mxu0 %v7130_v9  ;;  %v11497_v57 = vand.u32 4294901760, %v7288_v21  ;;  %12115 = vst [vmem:[#allocation13_spill] sm:$0xff] %v7315_v47  ;;  %v7332_v48 = vsub.f32 %v208_v44, %v7315_v47 }
  0x29   :  { %460 = vmatprep.mubr.f32.mxu0 %v11750_v3  ;;  %1439 = vmatpush1.msra.mxu0 %v7144_v20 }
  0x2a   :  { %1077 = vmatmul.mubr.f32.gmra.mxu1 %v7188_v13  ;;  %1898 = vmatprep.subr.mxu1 %v7036_v25  ;;  %v497_v2 = vsub.f32 %v7288_v21, %v11497_v57  ;;  %v11503_v57 = vand.u32 4294901760, %v7332_v48 }
  0x2b   :  { %1082 = vmatprep.mubr.f32.mxu1 %v11750_v3  ;;  %1900 = vmatpush1.msra.mxu1 %v7047_v29 }
  0x2c   :  { %466 = vmatmul.mubr.f32.gmra.mxu0 %v465_v63  ;;  %2389 = vmatprep.subr.mxu0 %v945_v28  ;;  %v126_v63 = vld [vmem:[%s11478_s1 + $0x68] sm:$0xff]  ;;  %v11500_v28 = vand.u32 4294901760, %v7313_v49 }
  0x2d   :  { %471 = vmatprep.mubr.f32.mxu0 %v11750_v3  ;;  %2824 = vmatprep.subr.mxu1 %v6973_v4  ;;  %v7334_v4 = vand.u32 4294901760, %v211_v51  ;;  %v214_v61 = vsel %vm173_vm0, %v126_v63, 0  ;;  %v128_v63 = vld [vmem:[%s11478_s1 + $0x78] sm:$0xff] }
  0x2e   :  { %1084 = vmatmul.mubr.f32.gmra.mxu1 %v7205_v52  ;;  %v508_v44 = vsub.f32 %v7313_v49, %v11500_v28  ;;  %v7351_v43 = vand.u32 4294901760, %v214_v61 }
  0x2f   :  { %1089 = vmatprep.mubr.f32.mxu1 %v11750_v3  ;;  %12116 = vst [vmem:[#allocation14_spill] sm:$0xff] %v7334_v4  ;;  %v7349_v46 = vsub.f32 %v211_v51, %v7334_v4  ;;  %v519_v51 = vsub.f32 %v7332_v48, %v11503_v57 }
  0x30   :  { %477 = vmatmul.mubr.f32.gmra.mxu0 %v476_v22  ;;  %v498_v22 = vand.u32 4294901760, %v497_v2  ;;  %12117 = vst [vmem:[#allocation15_spill] sm:$0xff] %v7351_v43  ;;  %v7359_v2 = vand.u32 4294901760, %v217_v59  ;;  %v509_v55 = vand.u32 4294901760, %v508_v44  ;;  %v7367_v37 = vsub.f32 %v214_v61, %v7351_v43 }
  0x31   :  { %482 = vmatprep.mubr.f32.mxu0 %v11750_v3  ;;  %v11507_v28 = vand.u32 4294901760, %v7349_v46  ;;  %v223_v44 = vsel %vm173_vm0, %v129_v33, 0 }
  0x32   :  { %1091 = vmatmul.mubr.f32.gmra.mxu1 %v7210_v54  ;;  %12118 = vst [vmem:[#allocation16_spill] sm:$0xff] %v7359_v2  ;;  %v11512_v57 = vand.u32 4294901760, %v7367_v37  ;;  %v7383_v32 = vsub.f32 %v217_v59, %v7359_v2  ;;  %v7391_v33 = vand.u32 4294901760, %v223_v44 }
  0x33   :  { %1096 = vmatprep.mubr.f32.mxu1 %v11750_v3  ;;  %v530_v61 = vsub.f32 %v7349_v46, %v11507_v28 }
  0x34   :  { %488 = vmatmul.mubr.f32.gmra.mxu0 %v487_v19  ;;  %v220_v19 = vsel %vm173_vm0, %v128_v63, 0  ;;  %v520_v63 = vand.u32 4294901760, %v519_v51  ;;  %12120 = vst [vmem:[#allocation18_spill] sm:$0xff] %v7391_v33  ;;  %v541_v59 = vsub.f32 %v7367_v37, %v11512_v57  ;;  %v11515_v28 = vand.u32 4294901760, %v7383_v32 }
  0x35   :  { %493 = vmatprep.mubr.f32.mxu0 %v11750_v3  ;;  %v531_v51 = vand.u32 4294901760, %v530_v61 }
  0x36   :  { %1098 = vmatmul.mubr.f32.gmra.mxu1 %v7228_v14  ;;  %v542_v61 = vand.u32 4294901760, %v541_v59 }
  0x37   :  { %1103 = vmatprep.mubr.f32.mxu1 %v11750_v3 }
  0x38   :  { %499 = vmatmul.mubr.f32.gmra.mxu0 %v498_v22  ;;  %v7375_v22 = vand.u32 4294901760, %v220_v19 }
  0x39   :  { %504 = vmatprep.mubr.f32.mxu0 %v11750_v3 }
  0x3a   :  { %1105 = vmatmul.mubr.f32.gmra.mxu1 %v7247_v62  ;;  %12119 = vst [vmem:[#allocation17_spill] sm:$0xff] %v7375_v22  ;;  %v130_v62 = vld [vmem:[%s11478_s1 + $0x88] sm:$0xff]  ;;  %v7399_v14 = vsub.f32 %v220_v19, %v7375_v22  ;;  %v552_v19 = vsub.f32 %v7383_v32, %v11515_v28 }
  0x3b   :  { %1110 = vmatprep.mubr.f32.mxu1 %v11750_v3 }
  0x3c   :  { %510 = vmatmul.mubr.f32.gmra.mxu0 %v509_v55  ;;  %v226_v55 = vsel %vm173_vm0, %v130_v62, 0  ;;  %v7408_v62 = vsub.f32 %v223_v44, %v7391_v33  ;;  %v11520_v57 = vand.u32 4294901760, %v7399_v14  ;;  %v132_v44 = vld [vmem:[%s11478_s1 + $0x98] sm:$0xff]  ;;  %v553_v59 = vand.u32 4294901760, %v552_v19 }
  0x3d   :  { %515 = vmatprep.mubr.f32.mxu0 %v11750_v3 }
  0x3e   :  { %1112 = vmatmul.mubr.f32.gmra.mxu1 %v7267_v27  ;;  %v131_v27 = vld [vmem:[%s11478_s1 + $0x90] sm:$0xff]  ;;  %v563_v28 = vsub.f32 %v7399_v14, %v11520_v57 }
  0x3f   :  { %1117 = vmatprep.mubr.f32.mxu1 %v11750_v3  ;;  %v229_v54 = vsel %vm173_vm0, %v131_v27, 0  ;;  %v11525_v27 = vand.u32 4294901760, %v7408_v62 }
  0x40   :  { %521 = vmatmul.mubr.f32.gmra.mxu0 %v520_v63  ;;  %v7410_v63 = vand.u32 4294901760, %v226_v55  ;;  %v564_v57 = vand.u32 4294901760, %v563_v28 }
  0x41   :  { %526 = vmatprep.mubr.f32.mxu0 %v11750_v3 }
  0x42   :  { %1119 = vmatmul.mubr.f32.gmra.mxu1 %v7295_v0  ;;  %12121 = vst [vmem:[#allocation19_spill] sm:$0xff] %v7410_v63  ;;  %v7430_v0 = vsub.f32 %v226_v55, %v7410_v63  ;;  %v574_v55 = vsub.f32 %v7408_v62, %v11525_v27 }
  0x43   :  { %1124 = vmatprep.mubr.f32.mxu1 %v11750_v3 }
  0x44   :  { %532 = vmatmul.mubr.f32.gmra.mxu0 %v531_v51  ;;  %v7423_v51 = vand.u32 4294901760, %v229_v54  ;;  %v11532_v52 = vand.u32 4294901760, %v7430_v0 }
  0x45   :  { %537 = vmatprep.mubr.f32.mxu0 %v11750_v3 }
  0x46   :  { %1126 = vmatmul.mubr.f32.gmra.mxu1 %v7315_v47  ;;  %12122 = vst [vmem:[#allocation20_spill] sm:$0xff] %v7423_v51  ;;  %v232_v47 = vsel %vm173_vm0, %v132_v44, 0  ;;  %v7440_v19 = vsub.f32 %v229_v54, %v7423_v51  ;;  %v134_v54 = vld [vmem:[%s11478_s1 + $0xa8] sm:$0xff]  ;;  %v585_v27 = vsub.f32 %v7430_v0, %v11532_v52 }
  0x47   :  { %1131 = vmatprep.mubr.f32.mxu1 %v11750_v3  ;;  %v7446_v44 = vand.u32 4294901760, %v232_v47  ;;  %v238_v58 = vsel %vm173_vm0, %v134_v54, 0  ;;  %v136_v54 = vld [vmem:[%s11478_s1 + $0xb8] sm:$0xff] }
  0x48   :  { %543 = vmatmul.mubr.f32.gmra.mxu0 %v542_v61  ;;  %v133_v61 = vld [vmem:[%s11478_s1 + $0xa0] sm:$0xff]  ;;  %v11537_v28 = vand.u32 4294901760, %v7440_v19  ;;  %v7479_v1 = vand.u32 4294901760, %v238_v58 }
  0x49   :  { %548 = vmatprep.mubr.f32.mxu0 %v11750_v3  ;;  %12123 = vst [vmem:[#allocation21_spill] sm:$0xff] %v7446_v44  ;;  %v7460_v13 = vsub.f32 %v232_v47, %v7446_v44 }
  0x4a   :  { %1133 = vmatmul.mubr.f32.gmra.mxu1 %v7334_v4  ;;  %v235_v4 = vsel %vm173_vm0, %v133_v61, 0  ;;  %12127 = vst [vmem:[#allocation25_spill] sm:$0xff] %v7479_v1 }
  0x4b   :  { %1138 = vmatprep.mubr.f32.mxu1 %v11750_v3  ;;  %12124 = vst [vmem:[#allocation22_spill] sm:$0xff] %v7460_v13  ;;  %v7462_v61 = vand.u32 4294901760, %v235_v4  ;;  %v11542_v52 = vand.u32 4294901760, %v7460_v13 }
  0x4c   :  { %554 = vmatmul.mubr.f32.gmra.mxu0 %v553_v59  ;;  %v575_v59 = vand.u32 4294901760, %v574_v55  ;;  %v586_v55 = vand.u32 4294901760, %v585_v27 }
  0x4d   :  { %559 = vmatprep.mubr.f32.mxu0 %v11750_v3  ;;  %12125 = vst [vmem:[#allocation23_spill] sm:$0xff] %v7462_v61  ;;  %v7477_v40 = vsub.f32 %v235_v4, %v7462_v61  ;;  %v607_v4 = vsub.f32 %v7460_v13, %v11542_v52 }
  0x4e   :  { %1140 = vmatmul.mubr.f32.gmra.mxu1 %v7351_v43  ;;  %v135_v43 = vld [vmem:[%s11478_s1 + $0xb0] sm:$0xff] }
  0x4f   :  { %1145 = vmatprep.mubr.f32.mxu1 %v11750_v3  ;;  %v241_v47 = vsel %vm173_vm0, %v135_v43, 0  ;;  %12126 = vst [vmem:[#allocation24_spill] sm:$0xff] %v7477_v40 }
  0x50   :  { %565 = vmatmul.mubr.f32.gmra.mxu0 %v564_v57  ;;  %v596_v57 = vsub.f32 %v7440_v19, %v11537_v28  ;;  %v7487_v43 = vand.u32 4294901760, %v241_v47  ;;  %v7494_v28 = vsub.f32 %v238_v58, %v7479_v1  ;;  %v608_v58 = vand.u32 4294901760, %v607_v4 }
  0x51   :  { %570 = vmatprep.mubr.f32.mxu0 %v11750_v3 }
  0x52   :  { %1147 = vmatmul.mubr.f32.gmra.mxu1 %v7359_v2  ;;  %12128 = vst [vmem:[#allocation26_spill] sm:$0xff] %v7487_v43  ;;  %v597_v27 = vand.u32 4294901760, %v596_v57  ;;  %12129 = vst [vmem:[#allocation27_spill] sm:$0xff] %v7494_v28  ;;  %v244_v2 = vsel %vm173_vm0, %v136_v54, 0  ;;  %v7504_v57 = vsub.f32 %v241_v47, %v7487_v43  ;;  %v11552_v34 = vand.u32 4294901760, %v7494_v28  ;;  %v138_v54 = vld [vmem:[%s11478_s1 + $0xc8] sm:$0xff] }
  0x53   :  { %1152 = vmatprep.mubr.f32.mxu1 %v11750_v3  ;;  %v7511_v13 = vand.u32 4294901760, %v244_v2  ;;  %v250_v47 = vsel %vm173_vm0, %v138_v54, 0 }
  0x54   :  { %576 = vmatmul.mubr.f32.gmra.mxu0 %v575_v59  ;;  %v11547_v59 = vand.u32 4294901760, %v7477_v40  ;;  %12130 = vst [vmem:[#allocation28_spill] sm:$0xff] %v7504_v57  ;;  %v629_v4 = vsub.f32 %v7494_v28, %v11552_v34 }
  0x55   :  { %581 = vmatprep.mubr.f32.mxu0 %v11750_v3  ;;  %12131 = vst [vmem:[#allocation29_spill] sm:$0xff] %v7511_v13 }
  0x56   :  { %1154 = vmatmul.mubr.f32.gmra.mxu1 %v7375_v22  ;;  %v137_v22 = vld [vmem:[%s11478_s1 + $0xc0] sm:$0xff]  ;;  %v618_v52 = vsub.f32 %v7477_v40, %v11547_v59  ;;  %v11555_v59 = vand.u32 4294901760, %v7504_v57 }
  0x57   :  { %1159 = vmatprep.mubr.f32.mxu1 %v11750_v3 }
  0x58   :  { %587 = vmatmul.mubr.f32.gmra.mxu0 %v586_v55  ;;  %v247_v55 = vsel %vm173_vm0, %v137_v22, 0  ;;  %v640_v54 = vsub.f32 %v7504_v57, %v11555_v59 }
  0x59   :  { %592 = vmatprep.mubr.f32.mxu0 %v11750_v3  ;;  %v7519_v22 = vand.u32 4294901760, %v247_v55 }
  0x5a   :  { %1161 = vmatmul.mubr.f32.gmra.mxu1 %v7391_v33  ;;  %v7527_v33 = vsub.f32 %v244_v2, %v7511_v13  ;;  %v641_v59 = vand.u32 4294901760, %v640_v54 }
  0x5b   :  { %1166 = vmatprep.mubr.f32.mxu1 %v11750_v3  ;;  %12132 = vst [vmem:[#allocation30_spill] sm:$0xff] %v7519_v22  ;;  %v7542_v34 = vsub.f32 %v247_v55, %v7519_v22 }
  0x5c   :  { %598 = vmatmul.mubr.f32.gmra.mxu0 %v597_v27  ;;  %v619_v27 = vand.u32 4294901760, %v618_v52  ;;  %12133 = vst [vmem:[#allocation31_spill] sm:$0xff] %v7527_v33  ;;  %v7535_v52 = vand.u32 4294901760, %v250_v47  ;;  %v11560_v2 = vand.u32 4294901760, %v7527_v33 }
  0x5d   :  { %603 = vmatprep.mubr.f32.mxu0 %v11750_v3  ;;  %12135 = vst [vmem:[#allocation33_spill] sm:$0xff] %v7542_v34  ;;  %v11565_v57 = vand.u32 4294901760, %v7542_v34 }
  0x5e   :  { %1168 = vmatmul.mubr.f32.gmra.mxu1 %v7410_v63  ;;  %v139_v63 = vld [vmem:[%s11478_s1 + $0xd0] sm:$0xff]  ;;  %12134 = vst [vmem:[#allocation32_spill] sm:$0xff] %v7535_v52  ;;  %v651_v55 = vsub.f32 %v7527_v33, %v11560_v2 }
  0x5f   :  { %1173 = vmatprep.mubr.f32.mxu1 %v11750_v3  ;;  %v662_v2 = vsub.f32 %v7542_v34, %v11565_v57 }
  0x60   :  { %609 = vmatmul.mubr.f32.gmra.mxu0 %v608_v58  ;;  %v630_v58 = vand.u32 4294901760, %v629_v4  ;;  %v7552_v4 = vsub.f32 %v250_v47, %v7535_v52  ;;  %v141_v47 = vld [vmem:[%s11478_s1 + $0xe0] sm:$0xff]  ;;  %v652_v54 = vand.u32 4294901760, %v651_v55 }
  0x61   :  { %614 = vmatprep.mubr.f32.mxu0 %v11750_v3 }
  0x62   :  { %1175 = vmatmul.mubr.f32.gmra.mxu1 %v7423_v51  ;;  %v253_v51 = vsel %vm173_vm0, %v139_v63, 0  ;;  %12136 = vst [vmem:[#allocation34_spill] sm:$0xff] %v7552_v4 }
  0x63   :  { %1180 = vmatprep.mubr.f32.mxu1 %v11750_v3  ;;  %v7558_v63 = vand.u32 4294901760, %v253_v51 }
  0x64   :  { %620 = vmatmul.mubr.f32.gmra.mxu0 %v619_v27  ;;  %v140_v27 = vld [vmem:[%s11478_s1 + $0xd8] sm:$0xff] }
  0x65   :  { %625 = vmatprep.mubr.f32.mxu0 %v11750_v3  ;;  %12137 = vst [vmem:[#allocation35_spill] sm:$0xff] %v7558_v63  ;;  %v7572_v33 = vsub.f32 %v253_v51, %v7558_v63  ;;  %v663_v51 = vand.u32 4294901760, %v662_v2 }
  0x66   :  { %1182 = vmatmul.mubr.f32.gmra.mxu1 %v7446_v44  ;;  %v256_v44 = vsel %vm173_vm0, %v140_v27, 0 }
  0x67   :  { %1187 = vmatprep.mubr.f32.mxu1 %v11750_v3  ;;  %12138 = vst [vmem:[#allocation36_spill] sm:$0xff] %v7572_v33  ;;  %v7574_v27 = vand.u32 4294901760, %v256_v44  ;;  %v11577_v57 = vand.u32 4294901760, %v7572_v33 }
  0x68   :  { %631 = vmatmul.mubr.f32.gmra.mxu0 %v630_v58  ;;  %v11572_v58 = vand.u32 4294901760, %v7552_v4 }
  0x69   :  { %636 = vmatprep.mubr.f32.mxu0 %v11750_v3  ;;  %12139 = vst [vmem:[#allocation37_spill] sm:$0xff] %v7574_v27  ;;  %v7588_v34 = vsub.f32 %v256_v44, %v7574_v27  ;;  %v684_v44 = vsub.f32 %v7572_v33, %v11577_v57 }
  0x6a   :  { %1189 = vmatmul.mubr.f32.gmra.mxu1 %v7462_v61  ;;  %v259_v61 = vsel %vm173_vm0, %v141_v47, 0  ;;  %v673_v55 = vsub.f32 %v7552_v4, %v11572_v58 }
  0x6b   :  { %1194 = vmatprep.mubr.f32.mxu1 %v11750_v3  ;;  %12140 = vst [vmem:[#allocation38_spill] sm:$0xff] %v7588_v34  ;;  %v7590_v47 = vand.u32 4294901760, %v259_v61  ;;  %v11582_v58 = vand.u32 4294901760, %v7588_v34 }
  0x6c   :  { %642 = vmatmul.mubr.f32.gmra.mxu0 %v641_v59  ;;  %v142_v59 = vld [vmem:[%s11478_s1 + $0xe8] sm:$0xff]  ;;  %v674_v2 = vand.u32 4294901760, %v673_v55 }
  0x6d   :  { %647 = vmatprep.mubr.f32.mxu0 %v11750_v3  ;;  %12141 = vst [vmem:[#allocation39_spill] sm:$0xff] %v7590_v47  ;;  %v262_v28 = vsel %vm173_vm0, %v142_v59, 0  ;;  %v7605_v4 = vsub.f32 %v259_v61, %v7590_v47  ;;  %v144_v59 = vld [vmem:[%s11478_s1 + $0xf8] sm:$0xff]  ;;  %v695_v61 = vsub.f32 %v7588_v34, %v11582_v58 }
  0x6e   :  { %1196 = vmatmul.mubr.f32.gmra.mxu1 %v7479_v1  ;;  %v143_v1 = vld [vmem:[%s11478_s1 + $0xf0] sm:$0xff]  ;;  %v7607_v40 = vand.u32 4294901760, %v262_v28  ;;  %v268_v55 = vsel %vm173_vm0, %v144_v59, 0 }
  0x6f   :  { %1201 = vmatprep.mubr.f32.mxu1 %v11750_v3  ;;  %12142 = vst [vmem:[#allocation40_spill] sm:$0xff] %v7605_v4  ;;  %v11587_v57 = vand.u32 4294901760, %v7605_v4  ;;  %v696_v59 = vand.u32 4294901760, %v695_v61 }
  0x70   :  { %653 = vmatmul.mubr.f32.gmra.mxu0 %v652_v54  ;;  %v265_v54 = vsel %vm173_vm0, %v143_v1, 0  ;;  %12143 = vst [vmem:[#allocation41_spill] sm:$0xff] %v7607_v40 }
  0x71   :  { %658 = vmatprep.mubr.f32.mxu0 %v11750_v3  ;;  %v7615_v1 = vand.u32 4294901760, %v265_v54 }
  0x72   :  { %1203 = vmatmul.mubr.f32.gmra.mxu1 %v7487_v43  ;;  %v7623_v43 = vsub.f32 %v262_v28, %v7607_v40  ;;  %v706_v28 = vsub.f32 %v7605_v4, %v11587_v57 }
  0x73   :  { %1208 = vmatprep.mubr.f32.mxu1 %v11750_v3  ;;  %12144 = vst [vmem:[#allocation42_spill] sm:$0xff] %v7615_v1  ;;  %v7639_v34 = vsub.f32 %v265_v54, %v7615_v1 }
  0x74   :  { %664 = vmatmul.mubr.f32.gmra.mxu0 %v663_v51  ;;  %v685_v51 = vand.u32 4294901760, %v684_v44  ;;  %12145 = vst [vmem:[#allocation43_spill] sm:$0xff] %v7623_v43  ;;  %v11592_v58 = vand.u32 4294901760, %v7623_v43  ;;  %v707_v61 = vand.u32 4294901760, %v706_v28 }
  0x75   :  { %669 = vmatprep.mubr.f32.mxu0 %v11750_v3  ;;  %12147 = vst [vmem:[#allocation45_spill] sm:$0xff] %v7639_v34  ;;  %v11595_v57 = vand.u32 4294901760, %v7639_v34 }
  0x76   :  { %1210 = vmatmul.mubr.f32.gmra.mxu1 %v7511_v13  ;;  %v145_v13 = vld [vmem:[%s11478_s1 + $0x100] sm:$0xff]  ;;  %v717_v54 = vsub.f32 %v7623_v43, %v11592_v58 }
  0x77   :  { %1215 = vmatprep.mubr.f32.mxu1 %v11750_v3  ;;  %v271_v44 = vsel %vm173_vm0, %v145_v13, 0  ;;  %v728_v28 = vsub.f32 %v7639_v34, %v11595_v57 }
  0x78   :  { %675 = vmatmul.mubr.f32.gmra.mxu0 %v674_v2  ;;  %v7631_v2 = vand.u32 4294901760, %v268_v55  ;;  %v7647_v13 = vand.u32 4294901760, %v271_v44 }
  0x79   :  { %680 = vmatprep.mubr.f32.mxu0 %v11750_v3  ;;  %v729_v57 = vand.u32 4294901760, %v728_v28 }
  0x7a   :  { %1217 = vmatmul.mubr.f32.gmra.mxu1 %v7519_v22  ;;  %12146 = vst [vmem:[#allocation44_spill] sm:$0xff] %v7631_v2  ;;  %v146_v22 = vld [vmem:[%s11478_s1 + $0x108] sm:$0xff]  ;;  %12148 = vst [vmem:[#allocation46_spill] sm:$0xff] %v7647_v13  ;;  %v7655_v4 = vsub.f32 %v268_v55, %v7631_v2  ;;  %v7670_v58 = vsub.f32 %v271_v44, %v7647_v13 }
  0x7b   :  { %1222 = vmatprep.mubr.f32.mxu1 %v11750_v3 }
  0x7c   :  { %686 = vmatmul.mubr.f32.gmra.mxu0 %v685_v51  ;;  %v274_v51 = vsel %vm173_vm0, %v146_v22, 0  ;;  %12149 = vst [vmem:[#allocation47_spill] sm:$0xff] %v7655_v4  ;;  %v11600_v55 = vand.u32 4294901760, %v7655_v4  ;;  %12151 = vst [vmem:[#allocation49_spill] sm:$0xff] %v7670_v58  ;;  %v11605_v34 = vand.u32 4294901760, %v7670_v58 }
  0x7d   :  { %691 = vmatprep.mubr.f32.mxu0 %v11750_v3  ;;  %v7663_v22 = vand.u32 4294901760, %v274_v51 }
  0x7e   :  { %1224 = vmatmul.mubr.f32.gmra.mxu1 %v7535_v52  ;;  %v147_v52 = vld [vmem:[%s11478_s1 + $0x110] sm:$0xff]  ;;  %v739_v44 = vsub.f32 %v7655_v4, %v11600_v55  ;;  %v750_v55 = vsub.f32 %v7670_v58, %v11605_v34 }
  0x7f   :  { %1229 = vmatprep.mubr.f32.mxu1 %v11750_v3  ;;  %12150 = vst [vmem:[#allocation48_spill] sm:$0xff] %v7663_v22 }
  0x80   :  { %697 = vmatmul.mubr.f32.gmra.mxu0 %v696_v59  ;;  %v718_v59 = vand.u32 4294901760, %v717_v54  ;;  %v7680_v54 = vsub.f32 %v274_v51, %v7663_v22  ;;  %v149_v51 = vld [vmem:[%s11478_s1 + $0x120] sm:$0xff]  ;;  %v740_v28 = vand.u32 4294901760, %v739_v44 }
  0x81   :  { %702 = vmatprep.mubr.f32.mxu0 %v11750_v3 }
  0x82   :  { %1231 = vmatmul.mubr.f32.gmra.mxu1 %v7558_v63  ;;  %v277_v63 = vsel %vm173_vm0, %v147_v52, 0  ;;  %12152 = vst [vmem:[#allocation50_spill] sm:$0xff] %v7680_v54 }
  0x83   :  { %1236 = vmatprep.mubr.f32.mxu1 %v11750_v3  ;;  %v7686_v52 = vand.u32 4294901760, %v277_v63 }
  0x84   :  { %708 = vmatmul.mubr.f32.gmra.mxu0 %v707_v61  ;;  %v148_v61 = vld [vmem:[%s11478_s1 + $0x118] sm:$0xff] }
  0x85   :  { %713 = vmatprep.mubr.f32.mxu0 %v11750_v3  ;;  %12153 = vst [vmem:[#allocation51_spill] sm:$0xff] %v7686_v52  ;;  %v7700_v4 = vsub.f32 %v277_v63, %v7686_v52  ;;  %v751_v63 = vand.u32 4294901760, %v750_v55 }
  0x86   :  { %1238 = vmatmul.mubr.f32.gmra.mxu1 %v7574_v27  ;;  %v280_v27 = vsel %vm173_vm0, %v148_v61, 0 }
  0x87   :  { %1243 = vmatprep.mubr.f32.mxu1 %v11750_v3  ;;  %12154 = vst [vmem:[#allocation52_spill] sm:$0xff] %v7700_v4  ;;  %v7702_v61 = vand.u32 4294901760, %v280_v27  ;;  %v11617_v34 = vand.u32 4294901760, %v7700_v4 }
  0x88   :  { %719 = vmatmul.mubr.f32.gmra.mxu0 %v718_v59  ;;  %v11612_v59 = vand.u32 4294901760, %v7680_v54 }
  0x89   :  { %724 = vmatprep.mubr.f32.mxu0 %v11750_v3  ;;  %12155 = vst [vmem:[#allocation53_spill] sm:$0xff] %v7702_v61  ;;  %v7716_v58 = vsub.f32 %v280_v27, %v7702_v61  ;;  %v772_v27 = vsub.f32 %v7700_v4, %v11617_v34 }
  0x8a   :  { %1245 = vmatmul.mubr.f32.gmra.mxu1 %v7590_v47  ;;  %v283_v47 = vsel %vm173_vm0, %v149_v51, 0  ;;  %v761_v44 = vsub.f32 %v7680_v54, %v11612_v59 }
  0x8b   :  { %1250 = vmatprep.mubr.f32.mxu1 %v11750_v3  ;;  %12156 = vst [vmem:[#allocation54_spill] sm:$0xff] %v7716_v58  ;;  %v7718_v51 = vand.u32 4294901760, %v283_v47  ;;  %v11622_v59 = vand.u32 4294901760, %v7716_v58 }
  0x8c   :  { %730 = vmatmul.mubr.f32.gmra.mxu0 %v729_v57  ;;  %v150_v57 = vld [vmem:[%s11478_s1 + $0x128] sm:$0xff]  ;;  %v762_v55 = vand.u32 4294901760, %v761_v44 }
  0x8d   :  { %735 = vmatprep.mubr.f32.mxu0 %v11750_v3  ;;  %12157 = vst [vmem:[#allocation55_spill] sm:$0xff] %v7718_v51  ;;  %v286_v43 = vsel %vm173_vm0, %v150_v57, 0  ;;  %v7733_v54 = vsub.f32 %v283_v47, %v7718_v51  ;;  %v152_v57 = vld [vmem:[%s11478_s1 + $0x138] sm:$0xff]  ;;  %v783_v47 = vsub.f32 %v7716_v58, %v11622_v59 }
  0x8e   :  { %1252 = vmatmul.mubr.f32.gmra.mxu1 %v7607_v40  ;;  %v151_v40 = vld [vmem:[%s11478_s1 + $0x130] sm:$0xff]  ;;  %v7735_v33 = vand.u32 4294901760, %v286_v43  ;;  %v292_v44 = vsel %vm173_vm0, %v152_v57, 0 }
  0x8f   :  { %1257 = vmatprep.mubr.f32.mxu1 %v11750_v3  ;;  %12158 = vst [vmem:[#allocation56_spill] sm:$0xff] %v7733_v54  ;;  %v11627_v34 = vand.u32 4294901760, %v7733_v54  ;;  %v784_v57 = vand.u32 4294901760, %v783_v47 }
  0x90   :  { %741 = vmatmul.mubr.f32.gmra.mxu0 %v740_v28  ;;  %v289_v28 = vsel %vm173_vm0, %v151_v40, 0  ;;  %12159 = vst [vmem:[#allocation57_spill] sm:$0xff] %v7735_v33 }
  0x91   :  { %746 = vmatprep.mubr.f32.mxu0 %v11750_v3  ;;  %v7743_v40 = vand.u32 4294901760, %v289_v28 }
  0x92   :  { %1259 = vmatmul.mubr.f32.gmra.mxu1 %v7615_v1  ;;  %v7751_v1 = vsub.f32 %v286_v43, %v7735_v33  ;;  %v794_v43 = vsub.f32 %v7733_v54, %v11627_v34 }
  0x93   :  { %1264 = vmatprep.mubr.f32.mxu1 %v11750_v3  ;;  %12160 = vst [vmem:[#allocation58_spill] sm:$0xff] %v7743_v40  ;;  %v7767_v58 = vsub.f32 %v289_v28, %v7743_v40 }
  0x94   :  { %752 = vmatmul.mubr.f32.gmra.mxu0 %v751_v63  ;;  %v773_v63 = vand.u32 4294901760, %v772_v27  ;;  %12161 = vst [vmem:[#allocation59_spill] sm:$0xff] %v7751_v1  ;;  %v11632_v59 = vand.u32 4294901760, %v7751_v1  ;;  %v795_v47 = vand.u32 4294901760, %v794_v43 }
  0x95   :  { %757 = vmatprep.mubr.f32.mxu0 %v11750_v3  ;;  %12163 = vst [vmem:[#allocation61_spill] sm:$0xff] %v7767_v58  ;;  %v11635_v34 = vand.u32 4294901760, %v7767_v58 }
  0x96   :  { %1266 = vmatmul.mubr.f32.gmra.mxu1 %v7631_v2  ;;  %v153_v2 = vld [vmem:[%s11478_s1 + $0x140] sm:$0xff]  ;;  %v805_v28 = vsub.f32 %v7751_v1, %v11632_v59 }
  0x97   :  { %1271 = vmatprep.mubr.f32.mxu1 %v11750_v3  ;;  %v295_v27 = vsel %vm173_vm0, %v153_v2, 0  ;;  %v816_v43 = vsub.f32 %v7767_v58, %v11635_v34 }
  0x98   :  { %763 = vmatmul.mubr.f32.gmra.mxu0 %v762_v55  ;;  %v7759_v55 = vand.u32 4294901760, %v292_v44  ;;  %v7775_v2 = vand.u32 4294901760, %v295_v27 }
  0x99   :  { %768 = vmatprep.mubr.f32.mxu0 %v11750_v3  ;;  %v817_v34 = vand.u32 4294901760, %v816_v43 }
  0x9a   :  { %1273 = vmatmul.mubr.f32.gmra.mxu1 %v7647_v13  ;;  %12162 = vst [vmem:[#allocation60_spill] sm:$0xff] %v7759_v55  ;;  %v154_v13 = vld [vmem:[%s11478_s1 + $0x148] sm:$0xff]  ;;  %12164 = vst [vmem:[#allocation62_spill] sm:$0xff] %v7775_v2  ;;  %v7783_v54 = vsub.f32 %v292_v44, %v7759_v55  ;;  %v7798_v59 = vsub.f32 %v295_v27, %v7775_v2 }
  0x9b   :  { %1278 = vmatprep.mubr.f32.mxu1 %v11750_v3 }
  0x9c   :  { %774 = vmatmul.mubr.f32.gmra.mxu0 %v773_v63  ;;  %v298_v63 = vsel %vm173_vm0, %v154_v13, 0  ;;  %12165 = vst [vmem:[#allocation63_spill] sm:$0xff] %v7783_v54  ;;  %v11640_v44 = vand.u32 4294901760, %v7783_v54  ;;  %12167 = vst [vmem:[#allocation65_spill] sm:$0xff] %v7798_v59  ;;  %v11645_v58 = vand.u32 4294901760, %v7798_v59 }
  0x9d   :  { %779 = vmatprep.mubr.f32.mxu0 %v11750_v3  ;;  %v7791_v13 = vand.u32 4294901760, %v298_v63 }
  0x9e   :  { %1280 = vmatmul.mubr.f32.gmra.mxu1 %v7663_v22  ;;  %v155_v22 = vld [vmem:[%s11478_s1 + $0x150] sm:$0xff]  ;;  %v827_v27 = vsub.f32 %v7783_v54, %v11640_v44  ;;  %v838_v44 = vsub.f32 %v7798_v59, %v11645_v58 }
  0x9f   :  { %1285 = vmatprep.mubr.f32.mxu1 %v11750_v3  ;;  %12166 = vst [vmem:[#allocation64_spill] sm:$0xff] %v7791_v13 }
  0xa0   :  { %785 = vmatmul.mubr.f32.gmra.mxu0 %v784_v57  ;;  %v806_v57 = vand.u32 4294901760, %v805_v28  ;;  %v7808_v28 = vsub.f32 %v298_v63, %v7791_v13  ;;  %v157_v63 = vld [vmem:[%s11478_s1 + $0x160] sm:$0xff]  ;;  %v828_v43 = vand.u32 4294901760, %v827_v27 }
  0xa1   :  { %790 = vmatprep.mubr.f32.mxu0 %v11750_v3 }
  0xa2   :  { %1287 = vmatmul.mubr.f32.gmra.mxu1 %v7686_v52  ;;  %v301_v52 = vsel %vm173_vm0, %v155_v22, 0  ;;  %12168 = vst [vmem:[#allocation66_spill] sm:$0xff] %v7808_v28 }
  0xa3   :  { %1292 = vmatprep.mubr.f32.mxu1 %v11750_v3  ;;  %v7814_v22 = vand.u32 4294901760, %v301_v52 }
  0xa4   :  { %796 = vmatmul.mubr.f32.gmra.mxu0 %v795_v47  ;;  %v156_v47 = vld [vmem:[%s11478_s1 + $0x158] sm:$0xff] }
  0xa5   :  { %801 = vmatprep.mubr.f32.mxu0 %v11750_v3  ;;  %12169 = vst [vmem:[#allocation67_spill] sm:$0xff] %v7814_v22  ;;  %v7828_v54 = vsub.f32 %v301_v52, %v7814_v22  ;;  %v839_v52 = vand.u32 4294901760, %v838_v44 }
  0xa6   :  { %1294 = vmatmul.mubr.f32.gmra.mxu1 %v7702_v61  ;;  %v304_v61 = vsel %vm173_vm0, %v156_v47, 0 }
  0xa7   :  { %1299 = vmatprep.mubr.f32.mxu1 %v11750_v3  ;;  %v7830_v47 = vand.u32 4294901760, %v304_v61  ;;  %v11657_v58 = vand.u32 4294901760, %v7828_v54 }
  0xa8   :  { %807 = vmatmul.mubr.f32.gmra.mxu0 %v806_v57  ;;  %v11652_v57 = vand.u32 4294901760, %v7808_v28 }
  0xa9   :  { %812 = vmatprep.mubr.f32.mxu0 %v11750_v3  ;;  %12170 = vst [vmem:[#allocation68_spill] sm:$0xff] %v7830_v47  ;;  %v7844_v59 = vsub.f32 %v304_v61, %v7830_v47  ;;  %v860_v61 = vsub.f32 %v7828_v54, %v11657_v58 }
  0xaa   :  { %1301 = vmatmul.mubr.f32.gmra.mxu1 %v7718_v51  ;;  %v307_v51 = vsel %vm173_vm0, %v157_v63, 0  ;;  %v849_v27 = vsub.f32 %v7808_v28, %v11652_v57 }
  0xab   :  { %1306 = vmatprep.mubr.f32.mxu1 %v11750_v3  ;;  %v7846_v63 = vand.u32 4294901760, %v307_v51  ;;  %v11662_v57 = vand.u32 4294901760, %v7844_v59 }
  0xac   :  { %818 = vmatmul.mubr.f32.gmra.mxu0 %v817_v34  ;;  %v158_v34 = vld [vmem:[%s11478_s1 + $0x168] sm:$0xff]  ;;  %v850_v44 = vand.u32 4294901760, %v849_v27 }
  0xad   :  { %823 = vmatprep.mubr.f32.mxu0 %v11750_v3  ;;  %12171 = vst [vmem:[#allocation69_spill] sm:$0xff] %v7846_v63  ;;  %v310_v1 = vsel %vm173_vm0, %v158_v34, 0  ;;  %v7861_v28 = vsub.f32 %v307_v51, %v7846_v63  ;;  %v160_v34 = vld [vmem:[%s11478_s1 + $0x178] sm:$0xff]  ;;  %v871_v51 = vsub.f32 %v7844_v59, %v11662_v57 }
  0xae   :  { %1308 = vmatmul.mubr.f32.gmra.mxu1 %v7735_v33  ;;  %v159_v33 = vld [vmem:[%s11478_s1 + $0x170] sm:$0xff]  ;;  %v7863_v4 = vand.u32 4294901760, %v310_v1  ;;  %v316_v27 = vsel %vm173_vm0, %v160_v34, 0 }
  0xaf   :  { %1313 = vmatprep.mubr.f32.mxu1 %v11750_v3  ;;  %v11663_v58 = vand.u32 4294901760, %v7861_v28 }
  0xb0   :  { %829 = vmatmul.mubr.f32.gmra.mxu0 %v828_v43  ;;  %v313_v43 = vsel %vm173_vm0, %v159_v33, 0  ;;  %12172 = vst [vmem:[#allocation70_spill] sm:$0xff] %v7863_v4 }
  0xb1   :  { %834 = vmatprep.mubr.f32.mxu0 %v11750_v3  ;;  %v7871_v33 = vand.u32 4294901760, %v313_v43 }
  0xb2   :  { %1315 = vmatmul.mubr.f32.gmra.mxu1 %v7743_v40  ;;  %v7879_v40 = vsub.f32 %v310_v1, %v7863_v4 }
  0xb3   :  { %1320 = vmatprep.mubr.f32.mxu1 %v11750_v3  ;;  %12173 = vst [vmem:[#allocation71_spill] sm:$0xff] %v7871_v33  ;;  %v7891_v57 = vsub.f32 %v313_v43, %v7871_v33 }
  0xb4   :  { %840 = vmatmul.mubr.f32.gmra.mxu0 %v839_v52  ;;  %v861_v52 = vand.u32 4294901760, %v860_v61  ;;  %v882_v61 = vsub.f32 %v7861_v28, %v11663_v58  ;;  %v11664_v34 = vand.u32 4294901760, %v7879_v40 }
  0xb5   :  { %845 = vmatprep.mubr.f32.mxu0 %v11750_v3 }
  0xb6   :  { %1322 = vmatmul.mubr.f32.gmra.mxu1 %v7759_v55  ;;  %v7884_v55 = vand.u32 4294901760, %v316_v27  ;;  %v883_v1 = vand.u32 4294901760, %v882_v61 }
  0xb7   :  { %1327 = vmatprep.mubr.f32.mxu1 %v11750_v3 }
  0xb8   :  { %851 = vmatmul.mubr.f32.gmra.mxu0 %v850_v44  ;;  %12174 = vst [vmem:[#allocation72_spill] sm:$0xff] %v7884_v55  ;;  %v872_v44 = vand.u32 4294901760, %v871_v51  ;;  %v11666_v51 = vand.u32 4294901760, %v7891_v57  ;;  %v7901_v58 = vsub.f32 %v316_v27, %v7884_v55 }
  0xb9   :  { %856 = vmatprep.mubr.f32.mxu0 %v11750_v3 }
  0xba   :  { %1329 = vmatmul.mubr.f32.gmra.mxu1 %v7775_v2  ;;  %v11665_v61 = vand.u32 4294901760, %v7901_v58 }
  0xbb   :  { %1334 = vmatprep.mubr.f32.mxu1 %v11750_v3 }
  0xbc   :  { %862 = vmatmul.mubr.f32.gmra.mxu0 %v861_v52  ;;  %v893_v52 = vsub.f32 %v7879_v40, %v11664_v34  ;;  %v915_v34 = vsub.f32 %v7901_v58, %v11665_v61  ;;  %v12178_v61 = vand.u32 4294901760, %v7059_v35 }
  0xbd   :  { %867 = vmatprep.mubr.f32.mxu0 %v11750_v3 }
  0xbe   :  { %1336 = vmatmul.mubr.f32.gmra.mxu1 %v7791_v13  ;;  %v894_v43 = vand.u32 4294901760, %v893_v52 }
  0xbf   :  { %1341 = vmatprep.mubr.f32.mxu1 %v11750_v3 }
  0xc0   :  { %873 = vmatmul.mubr.f32.gmra.mxu0 %v872_v44  ;;  %v904_v44 = vsub.f32 %v7891_v57, %v11666_v51 }
  0xc1   :  { %878 = vmatprep.mubr.f32.mxu0 %v11750_v3 }
  0xc2   :  { %1343 = vmatmul.mubr.f32.gmra.mxu1 %v7814_v22  ;;  %v905_v27 = vand.u32 4294901760, %v904_v44  ;;  %v12176_v44 = vand.u32 4294901760, %v7039_v26  ;;  %v12180_v26 = vand.u32 4294901760, %v7080_v42 }
  0xc3   :  { %1348 = vmatprep.mubr.f32.mxu1 %v11750_v3 }
  0xc4   :  { %884 = vmatmul.mubr.f32.gmra.mxu0 %v883_v1  ;;  %v916_v1 = vand.u32 4294901760, %v915_v34  ;;  %v12175_v34 = vand.u32 4294901760, %v7033_v24  ;;  %v12179_v24 = vand.u32 4294901760, %v7067_v38 }
  0xc5   :  { %889 = vmatprep.mubr.f32.mxu0 %v11750_v3 }
  0xc6   :  { %1350 = vmatmul.mubr.f32.gmra.mxu1 %v7830_v47 }
  0xc7   :  { %1355 = vmatprep.mubr.f32.mxu1 %v11750_v3 }
  0xc8   :  { %895 = vmatmul.mubr.f32.gmra.mxu0 %v894_v43 }
  0xc9   :  { %900 = vmatprep.mubr.f32.mxu0 %v11750_v3 }
  0xca   :  { %1357 = vmatmul.mubr.f32.gmra.mxu1 %v7846_v63 }
  0xcb   :  { %1362 = vmatprep.mubr.f32.mxu1 %v11750_v3 }
  0xcc   :  { %906 = vmatmul.mubr.f32.gmra.mxu0 %v905_v27  ;;  %v12177_v27 = vand.u32 4294901760, %v7050_v30 }
  0xcd   :  { %911 = vmatprep.mubr.f32.mxu0 %v11750_v3 }
  0xce   :  { %1364 = vmatmul.mubr.f32.gmra.mxu1 %v7863_v4 }
  0xcf   :  { %1369 = vmatprep.mubr.f32.mxu1 %v11750_v3 }
  0xd0   :  { %917 = vmatmul.mubr.f32.gmra.mxu0 %v916_v1 }
  0xd1   :  { %1472 = vmatprep.mubr.f32.mxu0 %v11750_v3  ;;  %v401_v52 = vpop.f32.mrf.mxu0 }
  0xd2   :  { %1371 = vmatmul.mubr.f32.gmra.mxu1 %v7871_v33 }
  0xd3   :  { %1376 = vmatprep.mubr.f32.mxu1 %v11750_v3  ;;  %v403_v43 = vpop.f32.mrf.mxu0 }
  0xd4   :  { %1475 = vmatmul.mubr.f32.vlgmr.msra.gmra.mxu0 %v7080_v42 }
  0xd5   :  { %1480 = vmatprep.mubr.f32.mxu0 %v11750_v3  ;;  %2393 = vmatpush1.msra.mxu0 %v12175_v34 }
  0xd6   :  { %1378 = vmatmul.mubr.f32.gmra.mxu1 %v7884_v55  ;;  %2397 = vmatprep.subr.mxu0 %v12176_v44  ;;  %v12181_v44 = vand.u32 4294901760, %v7070_v39  ;;  %v12205_v55 = vand.u32 4294901760, %v7440_v19 }
  0xd7   :  { %1933 = vmatprep.mubr.f32.mxu1 %v11750_v3  ;;  %2401 = vmatpush1.msra.mxu0 %v12177_v27  ;;  %v12184_v27 = vand.u32 4294901760, %v7169_v53 }
  0xd8   :  { %v412_v1 = vpop.f32.mrf.mxu0  ;;  %1483 = vmatmul.mubr.f32.gmra.mxu0 %v7139_v15  ;;  %2405 = vmatprep.subr.mxu0 %v12178_v61 }
  0xd9   :  { %1488 = vmatprep.mubr.f32.mxu0 %v11750_v3  ;;  %2409 = vmatpush1.msra.mxu0 %v12179_v24 }
  0xda   :  { %v414_v34 = vpop.f32.mrf.mxu0  ;;  %v1050_v51 = vpop.f32.mrf.mxu1  ;;  %1937 = vmatmul.mubr.f32.vlgmr.msra.gmra.mxu1 %v12180_v26  ;;  %2413 = vmatprep.subr.mxu0 %v12181_v44  ;;  %v12187_v26 = vand.u32 4294901760, %v7195_v41 }
  0xdb   :  { %v7945_v30 = vadd.f32 %v1050_v51, %v401_v52  ;;  %2826 = vmatpush1.msra.mxu1 %v6975_v5  ;;  %1942 = vmatprep.mubr.f32.mxu1 %v11750_v3  ;;  %v12182_v51 = vand.u32 4294901760, %v7139_v15  ;;  %v12183_v15 = vand.u32 4294901760, %v7105_v56 }
  0xdc   :  { %v423_v35 = vpop.f32.mrf.mxu0  ;;  %1491 = vmatmul.mubr.f32.gmra.mxu0 %v7169_v53  ;;  %v1052_v61 = vpop.f32.mrf.mxu1  ;;  %2828 = vmatprep.subr.mxu1 %v6977_v6  ;;  %v12186_v53 = vand.u32 4294901760, %v7126_v8 }
  0xdd   :  { %v7951_v38 = vadd.f32 %v1052_v61, %v403_v43  ;;  %1496 = vmatprep.mubr.f32.mxu0 %v11750_v3  ;;  %2830 = vmatpush1.msra.mxu1 %v6988_v10 }
  0xde   :  { %v425_v39 = vpop.f32.mrf.mxu0  ;;  %v1057_v42 = vpop.f32.mrf.mxu1  ;;  %1946 = vmatmul.mubr.f32.gmra.mxu1 %v12182_v51  ;;  %2832 = vmatprep.subr.mxu1 %v6990_v11 }
  0xdf   :  { %v7958_v5 = vadd.f32 %v1057_v42, %v412_v1  ;;  %1951 = vmatprep.mubr.f32.mxu1 %v11750_v3  ;;  %2834 = vmatpush1.msra.mxu1 %v6992_v12  ;;  %v12185_v12 = vand.u32 4294901760, %v7113_v60 }
  0xe0   :  { %v434_v6 = vpop.f32.mrf.mxu0  ;;  %1499 = vmatmul.mubr.f32.gmra.mxu0 %v7195_v41  ;;  %v1059_v52 = vpop.f32.mrf.mxu1  ;;  %2836 = vmatprep.subr.mxu1 %v7004_v16  ;;  %v12189_v41 = vand.u32 4294901760, %v7144_v20 }
  0xe1   :  { %v7964_v10 = vadd.f32 %v1059_v52, %v414_v34  ;;  %1504 = vmatprep.mubr.f32.mxu0 %v11750_v3  ;;  %2417 = vmatpush1.msra.mxu0 %v12183_v15 }
  0xe2   :  { %v436_v11 = vpop.f32.mrf.mxu0  ;;  %v1064_v43 = vpop.f32.mrf.mxu1  ;;  %1955 = vmatmul.mubr.f32.gmra.mxu1 %v12184_v27  ;;  %2421 = vmatprep.subr.mxu0 %v12185_v12  ;;  %v12192_v12 = vand.u32 4294901760, %v7236_v36 }
  0xe3   :  { %v7973_v1 = vadd.f32 %v1064_v43, %v423_v35  ;;  %1960 = vmatprep.mubr.f32.mxu1 %v11750_v3  ;;  %2838 = vmatpush1.msra.mxu1 %v7006_v17  ;;  %v12188_v17 = vand.u32 4294901760, %v7130_v9 }
  0xe4   :  { %v445_v16 = vpop.f32.mrf.mxu0  ;;  %1507 = vmatmul.mubr.f32.gmra.mxu0 %v7203_v50  ;;  %v1066_v24 = vpop.f32.mrf.mxu1  ;;  %2840 = vmatprep.subr.mxu1 %v7008_v18 }
  0xe5   :  { %v7979_v56 = vadd.f32 %v1066_v24, %v425_v39  ;;  %1512 = vmatprep.mubr.f32.mxu0 %v11750_v3  ;;  %2425 = vmatpush1.msra.mxu0 %v12186_v53  ;;  %v12190_v39 = vand.u32 4294901760, %v7203_v50 }
  0xe6   :  { %v447_v60 = vpop.f32.mrf.mxu0  ;;  %v1071_v34 = vpop.f32.mrf.mxu1  ;;  %1964 = vmatmul.mubr.f32.gmra.mxu1 %v12187_v26  ;;  %2429 = vmatprep.subr.mxu0 %v12188_v17  ;;  %v12193_v26 = vand.u32 4294901760, %v7256_v31 }
  0xe7   :  { %v7988_v44 = vadd.f32 %v1071_v34, %v434_v6  ;;  %1969 = vmatprep.mubr.f32.mxu1 %v11750_v3  ;;  %2842 = vmatpush1.msra.mxu1 %v7030_v23  ;;  %v12191_v6 = vand.u32 4294901760, %v7219_v45 }
  0xe8   :  { %v456_v18 = vpop.f32.mrf.mxu0  ;;  %1515 = vmatmul.mubr.f32.gmra.mxu0 %v7219_v45  ;;  %v1073_v35 = vpop.f32.mrf.mxu1  ;;  %2844 = vmatprep.subr.mxu1 %v7036_v25 }
  0xe9   :  { %v7994_v8 = vadd.f32 %v1073_v35, %v436_v11  ;;  %1520 = vmatprep.mubr.f32.mxu0 %v11750_v3  ;;  %2433 = vmatpush1.msra.mxu0 %v12189_v41 }
  0xea   :  { %v458_v9 = vpop.f32.mrf.mxu0  ;;  %v1078_v61 = vpop.f32.mrf.mxu1  ;;  %1973 = vmatmul.mubr.f32.gmra.mxu1 %v12190_v39  ;;  %3475 = vmatprep.subr.mxu0 %v11750_v3 }
  0xeb   :  { %v8002_v23 = vadd.f32 %v1078_v61, %v445_v16  ;;  %1978 = vmatprep.mubr.f32.mxu1 %v11750_v3  ;;  %2846 = vmatpush1.msra.mxu1 %v7047_v29  ;;  %v12194_v61 = vand.u32 4294901760, %v7275_v7 }
  0xec   :  { %v467_v25 = vpop.f32.mrf.mxu0  ;;  %1523 = vmatmul.mubr.f32.gmra.mxu0 %v7236_v36  ;;  %v1080_v42 = vpop.f32.mrf.mxu1  ;;  %4278 = vmatprep.subr.mxu1 %v11750_v3 }
  0xed   :  { %v8008_v20 = vadd.f32 %v1080_v42, %v447_v60  ;;  %1528 = vmatprep.mubr.f32.mxu0 %v11750_v3 }
  0xee   :  { %v469_v50 = vpop.f32.mrf.mxu0  ;;  %v1085_v51 = vpop.f32.mrf.mxu1  ;;  %1982 = vmatmul.mubr.f32.gmra.mxu1 %v12191_v6  ;;  %v12195_v6 = vand.u32 4294901760, %v7288_v21 }
  0xef   :  { %v8013_v52 = vadd.f32 %v1085_v51, %v456_v18  ;;  %1987 = vmatprep.mubr.f32.mxu1 %v11750_v3 }
  0xf0   :  { %v478_v29 = vpop.f32.mrf.mxu0  ;;  %1531 = vmatmul.mubr.f32.gmra.mxu0 %v7256_v31  ;;  %v1087_v15 = vpop.f32.mrf.mxu1 }
  0xf1   :  { %v8017_v11 = vadd.f32 %v1087_v15, %v458_v9  ;;  %1536 = vmatprep.mubr.f32.mxu0 %v11750_v3 }
  0xf2   :  { %v480_v43 = vpop.f32.mrf.mxu0  ;;  %v1092_v27 = vpop.f32.mrf.mxu1  ;;  %1991 = vmatmul.mubr.f32.gmra.mxu1 %v12192_v12 }
  0xf3   :  { %v8022_v16 = vadd.f32 %v1092_v27, %v467_v25  ;;  %1996 = vmatprep.mubr.f32.mxu1 %v11750_v3 }
  0xf4   :  { %v489_v45 = vpop.f32.mrf.mxu0  ;;  %1539 = vmatmul.mubr.f32.gmra.mxu0 %v7275_v7  ;;  %v1094_v24 = vpop.f32.mrf.mxu1 }
  0xf5   :  { %v8026_v53 = vadd.f32 %v1094_v24, %v469_v50  ;;  %1544 = vmatprep.mubr.f32.mxu0 %v11750_v3 }
  0xf6   :  { %v491_v60 = vpop.f32.mrf.mxu0  ;;  %v1099_v34 = vpop.f32.mrf.mxu1  ;;  %2000 = vmatmul.mubr.f32.gmra.mxu1 %v12193_v26 }
  0xf7   :  { %v8031_v17 = vadd.f32 %v1099_v34, %v478_v29  ;;  %2005 = vmatprep.mubr.f32.mxu1 %v11750_v3 }
  0xf8   :  { %v500_v36 = vpop.f32.mrf.mxu0  ;;  %1547 = vmatmul.mubr.f32.gmra.mxu0 %v7288_v21  ;;  %v1101_v18 = vpop.f32.mrf.mxu1 }
  0xf9   :  { %v8035_v35 = vadd.f32 %v1101_v18, %v480_v43  ;;  %1552 = vmatprep.mubr.f32.mxu0 %v11750_v3  ;;  %v12197_v18 = vand.u32 4294901760, %v7332_v48 }
  0xfa   :  { %v502_v41 = vpop.f32.mrf.mxu0  ;;  %v1106_v9 = vpop.f32.mrf.mxu1  ;;  %2009 = vmatmul.mubr.f32.gmra.mxu1 %v12194_v61 }
  0xfb   :  { %v8040_v39 = vadd.f32 %v1106_v9, %v489_v45  ;;  %2014 = vmatprep.mubr.f32.mxu1 %v11750_v3  ;;  %v12196_v45 = vand.u32 4294901760, %v7313_v49 }
  0xfc   :  { %v511_v31 = vpop.f32.mrf.mxu0  ;;  %1555 = vmatmul.mubr.f32.gmra.mxu0 %v7313_v49  ;;  %v1108_v25 = vpop.f32.mrf.mxu1 }
  0xfd   :  { %v8044_v42 = vadd.f32 %v1108_v25, %v491_v60  ;;  %1560 = vmatprep.mubr.f32.mxu0 %v11750_v3 }
  0xfe   :  { %v513_v50 = vpop.f32.mrf.mxu0  ;;  %v1113_v51 = vpop.f32.mrf.mxu1  ;;  %2018 = vmatmul.mubr.f32.gmra.mxu1 %v12195_v6 }
  0xff   :  { %v8049_v29 = vadd.f32 %v1113_v51, %v500_v36  ;;  %2023 = vmatprep.mubr.f32.mxu1 %v11750_v3 }
 0x100   :  { %v522_v7 = vpop.f32.mrf.mxu0  ;;  %1563 = vmatmul.mubr.f32.gmra.mxu0 %v7332_v48  ;;  %v1115_v15 = vpop.f32.mrf.mxu1 }
 0x101   :  { %v8053_v43 = vadd.f32 %v1115_v15, %v502_v41  ;;  %1568 = vmatprep.mubr.f32.mxu0 %v11750_v3 }
 0x102   :  { %v524_v27 = vpop.f32.mrf.mxu0  ;;  %v1120_v12 = vpop.f32.mrf.mxu1  ;;  %2027 = vmatmul.mubr.f32.gmra.mxu1 %v12196_v45 }
 0x103   :  { %v8058_v24 = vadd.f32 %v1120_v12, %v511_v31  ;;  %2032 = vmatprep.mubr.f32.mxu1 %v11750_v3  ;;  %v12199_v12 = vand.u32 4294901760, %v7367_v37 }
 0x104   :  { %v533_v21 = vpop.f32.mrf.mxu0  ;;  %1571 = vmatmul.mubr.f32.gmra.mxu0 %v7349_v46  ;;  %v1122_v60 = vpop.f32.mrf.mxu1 }
 0x105   :  { %v8062_v34 = vadd.f32 %v1122_v60, %v513_v50  ;;  %1576 = vmatprep.mubr.f32.mxu0 %v11750_v3  ;;  %v12198_v50 = vand.u32 4294901760, %v7349_v46 }
 0x106   :  { %v535_v26 = vpop.f32.mrf.mxu0  ;;  %v1127_v36 = vpop.f32.mrf.mxu1  ;;  %2036 = vmatmul.mubr.f32.gmra.mxu1 %v12197_v18  ;;  %v12200_v18 = vand.u32 4294901760, %v7383_v32 }
 0x107   :  { %v8067_v41 = vadd.f32 %v1127_v36, %v522_v7  ;;  %2041 = vmatprep.mubr.f32.mxu1 %v11750_v3 }
 0x108   :  { %v544_v49 = vpop.f32.mrf.mxu0  ;;  %1579 = vmatmul.mubr.f32.gmra.mxu0 %v7367_v37  ;;  %v1129_v9 = vpop.f32.mrf.mxu1 }
 0x109   :  { %v8071_v61 = vadd.f32 %v1129_v9, %v524_v27  ;;  %1584 = vmatprep.mubr.f32.mxu0 %v11750_v3 }
 0x10a   :  { %v546_v31 = vpop.f32.mrf.mxu0  ;;  %v1134_v25 = vpop.f32.mrf.mxu1  ;;  %2045 = vmatmul.mubr.f32.gmra.mxu1 %v12198_v50 }
 0x10b   :  { %v8076_v51 = vadd.f32 %v1134_v25, %v533_v21  ;;  %2050 = vmatprep.mubr.f32.mxu1 %v11750_v3 }
 0x10c   :  { %v555_v48 = vpop.f32.mrf.mxu0  ;;  %1587 = vmatmul.mubr.f32.gmra.mxu0 %v7383_v32  ;;  %v1136_v6 = vpop.f32.mrf.mxu1 }
 0x10d   :  { %v8080_v7 = vadd.f32 %v1136_v6, %v535_v26  ;;  %1592 = vmatprep.mubr.f32.mxu0 %v11750_v3  ;;  %v12201_v6 = vand.u32 4294901760, %v7399_v14 }
 0x10e   :  { %v557_v15 = vpop.f32.mrf.mxu0  ;;  %v1141_v27 = vpop.f32.mrf.mxu1  ;;  %2054 = vmatmul.mubr.f32.gmra.mxu1 %v12199_v12 }
 0x10f   :  { %v8085_v45 = vadd.f32 %v1141_v27, %v544_v49  ;;  %2059 = vmatprep.mubr.f32.mxu1 %v11750_v3 }
 0x110   :  { %v566_v46 = vpop.f32.mrf.mxu0  ;;  %1595 = vmatmul.mubr.f32.gmra.mxu0 %v7399_v14  ;;  %v1143_v21 = vpop.f32.mrf.mxu1 }
 0x111   :  { %v8089_v60 = vadd.f32 %v1143_v21, %v546_v31  ;;  %1600 = vmatprep.mubr.f32.mxu0 %v11750_v3 }
 0x112   :  { %v568_v26 = vpop.f32.mrf.mxu0  ;;  %v1148_v36 = vpop.f32.mrf.mxu1  ;;  %2063 = vmatmul.mubr.f32.gmra.mxu1 %v12200_v18 }
 0x113   :  { %v8094_v9 = vadd.f32 %v1148_v36, %v555_v48  ;;  %2068 = vmatprep.mubr.f32.mxu1 %v11750_v3  ;;  %v12202_v36 = vand.u32 4294901760, %v7408_v62 }
 0x114   :  { %v577_v37 = vpop.f32.mrf.mxu0  ;;  %1603 = vmatmul.mubr.f32.gmra.mxu0 %v7408_v62  ;;  %v1150_v49 = vpop.f32.mrf.mxu1 }
 0x115   :  { %v8098_v25 = vadd.f32 %v1150_v49, %v557_v15  ;;  %1608 = vmatprep.mubr.f32.mxu0 %v11750_v3 }
 0x116   :  { %v579_v31 = vpop.f32.mrf.mxu0  ;;  %v1155_v50 = vpop.f32.mrf.mxu1  ;;  %2072 = vmatmul.mubr.f32.gmra.mxu1 %v12201_v6  ;;  %v12203_v6 = vand.u32 4294901760, %v7430_v0 }
 0x117   :  { %v8103_v27 = vadd.f32 %v1155_v50, %v566_v46  ;;  %2077 = vmatprep.mubr.f32.mxu1 %v11750_v3 }
 0x118   :  { %v588_v32 = vpop.f32.mrf.mxu0  ;;  %1611 = vmatmul.mubr.f32.gmra.mxu0 %v7430_v0  ;;  %v1157_v48 = vpop.f32.mrf.mxu1 }
 0x119   :  { %v8107_v12 = vadd.f32 %v1157_v48, %v568_v26  ;;  %1616 = vmatprep.mubr.f32.mxu0 %v11750_v3 }
 0x11a   :  { %v590_v15 = vpop.f32.mrf.mxu0  ;;  %v1162_v21 = vpop.f32.mrf.mxu1  ;;  %2081 = vmatmul.mubr.f32.gmra.mxu1 %v12202_v36 }
 0x11b   :  { %v8112_v18 = vadd.f32 %v1162_v21, %v577_v37  ;;  %2086 = vmatprep.mubr.f32.mxu1 %v11750_v3  ;;  %v12204_v37 = vld [vmem:[#allocation22_spill] sm:$0xff] }
 0x11c   :  { %v599_v14 = vpop.f32.mrf.mxu0  ;;  %1619 = vmatmul.mubr.f32.gmra.mxu0 %v7440_v19  ;;  %v1164_v46 = vpop.f32.mrf.mxu1  ;;  %v12208_v4 = vand.u32 4294901760, %v12204_v37 }
 0x11d   :  { %v8116_v49 = vadd.f32 %v1164_v46, %v579_v31  ;;  %1624 = vmatprep.mubr.f32.mxu0 %v11750_v3 }
 0x11e   :  { %v601_v26 = vpop.f32.mrf.mxu0  ;;  %v1169_v50 = vpop.f32.mrf.mxu1  ;;  %2090 = vmatmul.mubr.f32.gmra.mxu1 %v12203_v6 }
 0x11f   :  { %v8121_v48 = vadd.f32 %v1169_v50, %v588_v32  ;;  %2095 = vmatprep.mubr.f32.mxu1 %v11750_v3  ;;  %v12206_v32 = vld [vmem:[#allocation24_spill] sm:$0xff] }
 0x120   :  { %v610_v62 = vpop.f32.mrf.mxu0  ;;  %1627 = vmatmul.mubr.f32.gmra.mxu0 %v12204_v37  ;;  %v1171_v21 = vpop.f32.mrf.mxu1  ;;  %v12212_v47 = vand.u32 4294901760, %v12206_v32 }
 0x121   :  { %v8125_v36 = vadd.f32 %v1171_v21, %v590_v15  ;;  %1632 = vmatprep.mubr.f32.mxu0 %v11750_v3 }
 0x122   :  { %v612_v31 = vpop.f32.mrf.mxu0  ;;  %v1176_v46 = vpop.f32.mrf.mxu1  ;;  %2099 = vmatmul.mubr.f32.gmra.mxu1 %v12205_v55  ;;  %v12210_v55 = vld [vmem:[#allocation27_spill] sm:$0xff] }
 0x123   :  { %v8130_v33 = vadd.f32 %v1176_v46, %v599_v14  ;;  %2104 = vmatprep.mubr.f32.mxu1 %v11750_v3  ;;  %v12216_v13 = vand.u32 4294901760, %v12210_v55 }
 0x124   :  { %v621_v0 = vpop.f32.mrf.mxu0  ;;  %1635 = vmatmul.mubr.f32.gmra.mxu0 %v12206_v32  ;;  %v1178_v50 = vpop.f32.mrf.mxu1 }
 0x125   :  { %v8134_v6 = vadd.f32 %v1178_v50, %v601_v26  ;;  %1640 = vmatprep.mubr.f32.mxu0 %v11750_v3 }
 0x126   :  { %v623_v15 = vpop.f32.mrf.mxu0  ;;  %v1183_v21 = vpop.f32.mrf.mxu1  ;;  %2108 = vmatmul.mubr.f32.gmra.mxu1 %v12208_v4 }
 0x127   :  { %12207 = vst [vmem:[#allocation22_spill] sm:$0xff] %v8134_v6  ;;  %v8139_v63 = vadd.f32 %v1183_v21, %v610_v62  ;;  %2113 = vmatprep.mubr.f32.mxu1 %v11750_v3  ;;  %v12214_v62 = vld [vmem:[#allocation28_spill] sm:$0xff]  ;;  %v12328_v6 = vld [vmem:[#allocation3_spill] sm:$0xff] }
 0x128   :  { %v632_v19 = vpop.f32.mrf.mxu0  ;;  %1643 = vmatmul.mubr.f32.gmra.mxu0 %v12210_v55  ;;  %v1185_v14 = vpop.f32.mrf.mxu1 }
 0x129   :  { %12209 = vst [vmem:[#allocation24_spill] sm:$0xff] %v8139_v63  ;;  %v8143_v46 = vadd.f32 %v1185_v14, %v612_v31  ;;  %1648 = vmatprep.mubr.f32.mxu0 %v11750_v3 }
 0x12a   :  { %v634_v26 = vpop.f32.mrf.mxu0  ;;  %v1190_v50 = vpop.f32.mrf.mxu1  ;;  %2117 = vmatmul.mubr.f32.gmra.mxu1 %v12212_v47 }
 0x12b   :  { %12211 = vst [vmem:[#allocation27_spill] sm:$0xff] %v8143_v46  ;;  %v8148_v22 = vadd.f32 %v1190_v50, %v621_v0  ;;  %2122 = vmatprep.mubr.f32.mxu1 %v11750_v3  ;;  %v12218_v0 = vld [vmem:[#allocation31_spill] sm:$0xff] }
 0x12c   :  { %v643_v4 = vpop.f32.mrf.mxu0  ;;  %1651 = vmatmul.mubr.f32.gmra.mxu0 %v12214_v62  ;;  %v1192_v37 = vpop.f32.mrf.mxu1 }
 0x12d   :  { %12213 = vst [vmem:[#allocation73_spill] sm:$0xff] %v8148_v22  ;;  %v8152_v21 = vadd.f32 %v1192_v37, %v623_v15  ;;  %1656 = vmatprep.mubr.f32.mxu0 %v11750_v3 }
 0x12e   :  { %v645_v31 = vpop.f32.mrf.mxu0  ;;  %v1197_v14 = vpop.f32.mrf.mxu1  ;;  %2126 = vmatmul.mubr.f32.gmra.mxu1 %v12216_v13 }
 0x12f   :  { %12215 = vst [vmem:[#allocation28_spill] sm:$0xff] %v8152_v21  ;;  %v8157_v2 = vadd.f32 %v1197_v14, %v632_v19  ;;  %2131 = vmatprep.mubr.f32.mxu1 %v11750_v3  ;;  %v12220_v21 = vand.u32 4294901760, %v12214_v62  ;;  %v12222_v19 = vld [vmem:[#allocation33_spill] sm:$0xff]  ;;  %v12226_v62 = vld [vmem:[#allocation34_spill] sm:$0xff] }
 0x130   :  { %v654_v47 = vpop.f32.mrf.mxu0  ;;  %1659 = vmatmul.mubr.f32.gmra.mxu0 %v12218_v0  ;;  %v1199_v32 = vpop.f32.mrf.mxu1 }
 0x131   :  { %12217 = vst [vmem:[#allocation74_spill] sm:$0xff] %v8157_v2  ;;  %v8161_v50 = vadd.f32 %v1199_v32, %v634_v26  ;;  %1664 = vmatprep.mubr.f32.mxu0 %v11750_v3 }
 0x132   :  { %v656_v15 = vpop.f32.mrf.mxu0  ;;  %v1204_v37 = vpop.f32.mrf.mxu1  ;;  %2135 = vmatmul.mubr.f32.gmra.mxu1 %v12220_v21 }
 0x133   :  { %12219 = vst [vmem:[#allocation31_spill] sm:$0xff] %v8161_v50  ;;  %v8166_v22 = vadd.f32 %v1204_v37, %v643_v4  ;;  %2140 = vmatprep.mubr.f32.mxu1 %v11750_v3  ;;  %v12224_v50 = vand.u32 4294901760, %v12218_v0  ;;  %v12230_v0 = vld [vmem:[#allocation36_spill] sm:$0xff] }
 0x134   :  { %v665_v13 = vpop.f32.mrf.mxu0  ;;  %1667 = vmatmul.mubr.f32.gmra.mxu0 %v12222_v19  ;;  %v1206_v55 = vpop.f32.mrf.mxu1 }
 0x135   :  { %12221 = vst [vmem:[#allocation75_spill] sm:$0xff] %v8166_v22  ;;  %v8170_v14 = vadd.f32 %v1206_v55, %v645_v31  ;;  %1672 = vmatprep.mubr.f32.mxu0 %v11750_v3 }
 0x136   :  { %v667_v26 = vpop.f32.mrf.mxu0  ;;  %v1211_v32 = vpop.f32.mrf.mxu1  ;;  %2144 = vmatmul.mubr.f32.gmra.mxu1 %v12224_v50 }
 0x137   :  { %12223 = vst [vmem:[#allocation33_spill] sm:$0xff] %v8170_v14  ;;  %v8175_v2 = vadd.f32 %v1211_v32, %v654_v47  ;;  %2149 = vmatprep.mubr.f32.mxu1 %v11750_v3  ;;  %v12228_v14 = vand.u32 4294901760, %v12222_v19  ;;  %v12234_v19 = vld [vmem:[#allocation38_spill] sm:$0xff] }
 0x138   :  { %v676_v4 = vpop.f32.mrf.mxu0  ;;  %1675 = vmatmul.mubr.f32.gmra.mxu0 %v12226_v62  ;;  %v1213_v21 = vpop.f32.mrf.mxu1 }
 0x139   :  { %12225 = vst [vmem:[#allocation76_spill] sm:$0xff] %v8175_v2  ;;  %v8179_v37 = vadd.f32 %v1213_v21, %v656_v15  ;;  %1680 = vmatprep.mubr.f32.mxu0 %v11750_v3 }
 0x13a   :  { %v678_v31 = vpop.f32.mrf.mxu0  ;;  %v1218_v55 = vpop.f32.mrf.mxu1  ;;  %2153 = vmatmul.mubr.f32.gmra.mxu1 %v12228_v14 }
 0x13b   :  { %12227 = vst [vmem:[#allocation34_spill] sm:$0xff] %v8179_v37  ;;  %v8184_v22 = vadd.f32 %v1218_v55, %v665_v13  ;;  %2158 = vmatprep.mubr.f32.mxu1 %v11750_v3  ;;  %v12232_v37 = vand.u32 4294901760, %v12226_v62  ;;  %v12238_v62 = vld [vmem:[#allocation40_spill] sm:$0xff] }
 0x13c   :  { %v687_v47 = vpop.f32.mrf.mxu0  ;;  %1683 = vmatmul.mubr.f32.gmra.mxu0 %v12230_v0  ;;  %v1220_v50 = vpop.f32.mrf.mxu1 }
 0x13d   :  { %12229 = vst [vmem:[#allocation77_spill] sm:$0xff] %v8184_v22  ;;  %v8188_v32 = vadd.f32 %v1220_v50, %v667_v26  ;;  %1688 = vmatprep.mubr.f32.mxu0 %v11750_v3 }
 0x13e   :  { %v689_v15 = vpop.f32.mrf.mxu0  ;;  %v1225_v21 = vpop.f32.mrf.mxu1  ;;  %2162 = vmatmul.mubr.f32.gmra.mxu1 %v12232_v37 }
 0x13f   :  { %12231 = vst [vmem:[#allocation36_spill] sm:$0xff] %v8188_v32  ;;  %v8193_v2 = vadd.f32 %v1225_v21, %v676_v4  ;;  %2167 = vmatprep.mubr.f32.mxu1 %v11750_v3  ;;  %v12236_v32 = vand.u32 4294901760, %v12230_v0  ;;  %v12242_v0 = vld [vmem:[#allocation43_spill] sm:$0xff] }
 0x140   :  { %v698_v13 = vpop.f32.mrf.mxu0  ;;  %1691 = vmatmul.mubr.f32.gmra.mxu0 %v12234_v19  ;;  %v1227_v14 = vpop.f32.mrf.mxu1 }
 0x141   :  { %12233 = vst [vmem:[#allocation78_spill] sm:$0xff] %v8193_v2  ;;  %v8197_v55 = vadd.f32 %v1227_v14, %v678_v31  ;;  %1696 = vmatprep.mubr.f32.mxu0 %v11750_v3 }
 0x142   :  { %v700_v26 = vpop.f32.mrf.mxu0  ;;  %v1232_v50 = vpop.f32.mrf.mxu1  ;;  %2171 = vmatmul.mubr.f32.gmra.mxu1 %v12236_v32 }
 0x143   :  { %12235 = vst [vmem:[#allocation38_spill] sm:$0xff] %v8197_v55  ;;  %v8202_v22 = vadd.f32 %v1232_v50, %v687_v47  ;;  %2176 = vmatprep.mubr.f32.mxu1 %v11750_v3  ;;  %v12240_v55 = vand.u32 4294901760, %v12234_v19  ;;  %v12246_v19 = vld [vmem:[#allocation45_spill] sm:$0xff] }
 0x144   :  { %v709_v4 = vpop.f32.mrf.mxu0  ;;  %1699 = vmatmul.mubr.f32.gmra.mxu0 %v12238_v62  ;;  %v1234_v37 = vpop.f32.mrf.mxu1 }
 0x145   :  { %12237 = vst [vmem:[#allocation79_spill] sm:$0xff] %v8202_v22  ;;  %v8206_v21 = vadd.f32 %v1234_v37, %v689_v15  ;;  %1704 = vmatprep.mubr.f32.mxu0 %v11750_v3 }
 0x146   :  { %v711_v31 = vpop.f32.mrf.mxu0  ;;  %v1239_v14 = vpop.f32.mrf.mxu1  ;;  %2180 = vmatmul.mubr.f32.gmra.mxu1 %v12240_v55 }
 0x147   :  { %12239 = vst [vmem:[#allocation40_spill] sm:$0xff] %v8206_v21  ;;  %v8211_v2 = vadd.f32 %v1239_v14, %v698_v13  ;;  %2185 = vmatprep.mubr.f32.mxu1 %v11750_v3  ;;  %v12244_v21 = vand.u32 4294901760, %v12238_v62  ;;  %v12250_v62 = vld [vmem:[#allocation47_spill] sm:$0xff] }
 0x148   :  { %v720_v47 = vpop.f32.mrf.mxu0  ;;  %1707 = vmatmul.mubr.f32.gmra.mxu0 %v12242_v0  ;;  %v1241_v32 = vpop.f32.mrf.mxu1 }
 0x149   :  { %12241 = vst [vmem:[#allocation80_spill] sm:$0xff] %v8211_v2  ;;  %v8215_v50 = vadd.f32 %v1241_v32, %v700_v26  ;;  %1712 = vmatprep.mubr.f32.mxu0 %v11750_v3 }
 0x14a   :  { %v722_v15 = vpop.f32.mrf.mxu0  ;;  %v1246_v37 = vpop.f32.mrf.mxu1  ;;  %2189 = vmatmul.mubr.f32.gmra.mxu1 %v12244_v21 }
 0x14b   :  { %12243 = vst [vmem:[#allocation43_spill] sm:$0xff] %v8215_v50  ;;  %v8220_v22 = vadd.f32 %v1246_v37, %v709_v4  ;;  %2194 = vmatprep.mubr.f32.mxu1 %v11750_v3  ;;  %v12248_v50 = vand.u32 4294901760, %v12242_v0  ;;  %v12254_v0 = vld [vmem:[#allocation49_spill] sm:$0xff] }
 0x14c   :  { %v731_v13 = vpop.f32.mrf.mxu0  ;;  %1715 = vmatmul.mubr.f32.gmra.mxu0 %v12246_v19  ;;  %v1248_v55 = vpop.f32.mrf.mxu1 }
 0x14d   :  { %12245 = vst [vmem:[#allocation81_spill] sm:$0xff] %v8220_v22  ;;  %v8224_v14 = vadd.f32 %v1248_v55, %v711_v31  ;;  %1720 = vmatprep.mubr.f32.mxu0 %v11750_v3 }
 0x14e   :  { %v733_v26 = vpop.f32.mrf.mxu0  ;;  %v1253_v32 = vpop.f32.mrf.mxu1  ;;  %2198 = vmatmul.mubr.f32.gmra.mxu1 %v12248_v50 }
 0x14f   :  { %12247 = vst [vmem:[#allocation45_spill] sm:$0xff] %v8224_v14  ;;  %v8229_v2 = vadd.f32 %v1253_v32, %v720_v47  ;;  %2203 = vmatprep.mubr.f32.mxu1 %v11750_v3  ;;  %v12252_v14 = vand.u32 4294901760, %v12246_v19  ;;  %v12258_v19 = vld [vmem:[#allocation50_spill] sm:$0xff] }
 0x150   :  { %v742_v4 = vpop.f32.mrf.mxu0  ;;  %1723 = vmatmul.mubr.f32.gmra.mxu0 %v12250_v62  ;;  %v1255_v21 = vpop.f32.mrf.mxu1 }
 0x151   :  { %12249 = vst [vmem:[#allocation82_spill] sm:$0xff] %v8229_v2  ;;  %v8233_v37 = vadd.f32 %v1255_v21, %v722_v15  ;;  %1728 = vmatprep.mubr.f32.mxu0 %v11750_v3 }
 0x152   :  { %v744_v31 = vpop.f32.mrf.mxu0  ;;  %v1260_v55 = vpop.f32.mrf.mxu1  ;;  %2207 = vmatmul.mubr.f32.gmra.mxu1 %v12252_v14 }
 0x153   :  { %12251 = vst [vmem:[#allocation47_spill] sm:$0xff] %v8233_v37  ;;  %v8238_v22 = vadd.f32 %v1260_v55, %v731_v13  ;;  %2212 = vmatprep.mubr.f32.mxu1 %v11750_v3  ;;  %v12256_v37 = vand.u32 4294901760, %v12250_v62  ;;  %v12262_v62 = vld [vmem:[#allocation52_spill] sm:$0xff] }
 0x154   :  { %v753_v47 = vpop.f32.mrf.mxu0  ;;  %1731 = vmatmul.mubr.f32.gmra.mxu0 %v12254_v0  ;;  %v1262_v50 = vpop.f32.mrf.mxu1 }
 0x155   :  { %12253 = vst [vmem:[#allocation83_spill] sm:$0xff] %v8238_v22  ;;  %v8242_v32 = vadd.f32 %v1262_v50, %v733_v26  ;;  %1736 = vmatprep.mubr.f32.mxu0 %v11750_v3 }
 0x156   :  { %v755_v15 = vpop.f32.mrf.mxu0  ;;  %v1267_v21 = vpop.f32.mrf.mxu1  ;;  %2216 = vmatmul.mubr.f32.gmra.mxu1 %v12256_v37 }
 0x157   :  { %12255 = vst [vmem:[#allocation49_spill] sm:$0xff] %v8242_v32  ;;  %v8247_v2 = vadd.f32 %v1267_v21, %v742_v4  ;;  %2221 = vmatprep.mubr.f32.mxu1 %v11750_v3  ;;  %v12260_v32 = vand.u32 4294901760, %v12254_v0  ;;  %v12266_v0 = vld [vmem:[#allocation54_spill] sm:$0xff] }
 0x158   :  { %v764_v13 = vpop.f32.mrf.mxu0  ;;  %1739 = vmatmul.mubr.f32.gmra.mxu0 %v12258_v19  ;;  %v1269_v14 = vpop.f32.mrf.mxu1 }
 0x159   :  { %12257 = vst [vmem:[#allocation84_spill] sm:$0xff] %v8247_v2  ;;  %v8251_v55 = vadd.f32 %v1269_v14, %v744_v31  ;;  %1744 = vmatprep.mubr.f32.mxu0 %v11750_v3 }
 0x15a   :  { %v766_v26 = vpop.f32.mrf.mxu0  ;;  %v1274_v50 = vpop.f32.mrf.mxu1  ;;  %2225 = vmatmul.mubr.f32.gmra.mxu1 %v12260_v32 }
 0x15b   :  { %12259 = vst [vmem:[#allocation50_spill] sm:$0xff] %v8251_v55  ;;  %v8256_v22 = vadd.f32 %v1274_v50, %v753_v47  ;;  %2230 = vmatprep.mubr.f32.mxu1 %v11750_v3  ;;  %v12264_v55 = vand.u32 4294901760, %v12258_v19  ;;  %v12270_v19 = vld [vmem:[#allocation56_spill] sm:$0xff] }
 0x15c   :  { %v775_v4 = vpop.f32.mrf.mxu0  ;;  %1747 = vmatmul.mubr.f32.gmra.mxu0 %v12262_v62  ;;  %v1276_v37 = vpop.f32.mrf.mxu1 }
 0x15d   :  { %12261 = vst [vmem:[#allocation85_spill] sm:$0xff] %v8256_v22  ;;  %v8260_v21 = vadd.f32 %v1276_v37, %v755_v15  ;;  %1752 = vmatprep.mubr.f32.mxu0 %v11750_v3 }
 0x15e   :  { %v777_v31 = vpop.f32.mrf.mxu0  ;;  %v1281_v14 = vpop.f32.mrf.mxu1  ;;  %2234 = vmatmul.mubr.f32.gmra.mxu1 %v12264_v55 }
 0x15f   :  { %12263 = vst [vmem:[#allocation52_spill] sm:$0xff] %v8260_v21  ;;  %v8265_v2 = vadd.f32 %v1281_v14, %v764_v13  ;;  %2239 = vmatprep.mubr.f32.mxu1 %v11750_v3  ;;  %v12268_v21 = vand.u32 4294901760, %v12262_v62  ;;  %v12274_v62 = vld [vmem:[#allocation59_spill] sm:$0xff] }
 0x160   :  { %v786_v47 = vpop.f32.mrf.mxu0  ;;  %1755 = vmatmul.mubr.f32.gmra.mxu0 %v12266_v0  ;;  %v1283_v32 = vpop.f32.mrf.mxu1 }
 0x161   :  { %12265 = vst [vmem:[#allocation86_spill] sm:$0xff] %v8265_v2  ;;  %v8269_v50 = vadd.f32 %v1283_v32, %v766_v26  ;;  %1760 = vmatprep.mubr.f32.mxu0 %v11750_v3 }
 0x162   :  { %v788_v15 = vpop.f32.mrf.mxu0  ;;  %v1288_v37 = vpop.f32.mrf.mxu1  ;;  %2243 = vmatmul.mubr.f32.gmra.mxu1 %v12268_v21 }
 0x163   :  { %12267 = vst [vmem:[#allocation54_spill] sm:$0xff] %v8269_v50  ;;  %v8274_v22 = vadd.f32 %v1288_v37, %v775_v4  ;;  %2248 = vmatprep.mubr.f32.mxu1 %v11750_v3  ;;  %v12272_v50 = vand.u32 4294901760, %v12266_v0  ;;  %v12278_v0 = vld [vmem:[#allocation61_spill] sm:$0xff] }
 0x164   :  { %v797_v13 = vpop.f32.mrf.mxu0  ;;  %1763 = vmatmul.mubr.f32.gmra.mxu0 %v12270_v19  ;;  %v1290_v55 = vpop.f32.mrf.mxu1 }
 0x165   :  { %12269 = vst [vmem:[#allocation87_spill] sm:$0xff] %v8274_v22  ;;  %v8278_v14 = vadd.f32 %v1290_v55, %v777_v31  ;;  %1768 = vmatprep.mubr.f32.mxu0 %v11750_v3 }
 0x166   :  { %v799_v26 = vpop.f32.mrf.mxu0  ;;  %v1295_v32 = vpop.f32.mrf.mxu1  ;;  %2252 = vmatmul.mubr.f32.gmra.mxu1 %v12272_v50 }
 0x167   :  { %12271 = vst [vmem:[#allocation56_spill] sm:$0xff] %v8278_v14  ;;  %v8283_v2 = vadd.f32 %v1295_v32, %v786_v47  ;;  %2257 = vmatprep.mubr.f32.mxu1 %v11750_v3  ;;  %v12276_v14 = vand.u32 4294901760, %v12270_v19  ;;  %v12282_v19 = vld [vmem:[#allocation63_spill] sm:$0xff] }
 0x168   :  { %v808_v4 = vpop.f32.mrf.mxu0  ;;  %1771 = vmatmul.mubr.f32.gmra.mxu0 %v12274_v62  ;;  %v1297_v21 = vpop.f32.mrf.mxu1 }
 0x169   :  { %12273 = vst [vmem:[#allocation88_spill] sm:$0xff] %v8283_v2  ;;  %v8287_v37 = vadd.f32 %v1297_v21, %v788_v15  ;;  %1776 = vmatprep.mubr.f32.mxu0 %v11750_v3 }
 0x16a   :  { %v810_v31 = vpop.f32.mrf.mxu0  ;;  %v1302_v55 = vpop.f32.mrf.mxu1  ;;  %2261 = vmatmul.mubr.f32.gmra.mxu1 %v12276_v14 }
 0x16b   :  { %12275 = vst [vmem:[#allocation59_spill] sm:$0xff] %v8287_v37  ;;  %v8292_v22 = vadd.f32 %v1302_v55, %v797_v13  ;;  %2266 = vmatprep.mubr.f32.mxu1 %v11750_v3  ;;  %v12280_v37 = vand.u32 4294901760, %v12274_v62  ;;  %v12286_v62 = vld [vmem:[#allocation65_spill] sm:$0xff] }
 0x16c   :  { %v819_v47 = vpop.f32.mrf.mxu0  ;;  %1779 = vmatmul.mubr.f32.gmra.mxu0 %v12278_v0  ;;  %v1304_v50 = vpop.f32.mrf.mxu1 }
 0x16d   :  { %12277 = vst [vmem:[#allocation89_spill] sm:$0xff] %v8292_v22  ;;  %v8296_v32 = vadd.f32 %v1304_v50, %v799_v26  ;;  %1784 = vmatprep.mubr.f32.mxu0 %v11750_v3 }
 0x16e   :  { %v821_v15 = vpop.f32.mrf.mxu0  ;;  %v1309_v21 = vpop.f32.mrf.mxu1  ;;  %2270 = vmatmul.mubr.f32.gmra.mxu1 %v12280_v37 }
 0x16f   :  { %12279 = vst [vmem:[#allocation61_spill] sm:$0xff] %v8296_v32  ;;  %v8301_v2 = vadd.f32 %v1309_v21, %v808_v4  ;;  %2275 = vmatprep.mubr.f32.mxu1 %v11750_v3  ;;  %v12284_v32 = vand.u32 4294901760, %v12278_v0  ;;  %v12290_v0 = vld [vmem:[#allocation66_spill] sm:$0xff] }
 0x170   :  { %v830_v13 = vpop.f32.mrf.mxu0  ;;  %1787 = vmatmul.mubr.f32.gmra.mxu0 %v12282_v19  ;;  %v1311_v14 = vpop.f32.mrf.mxu1 }
 0x171   :  { %12281 = vst [vmem:[#allocation90_spill] sm:$0xff] %v8301_v2  ;;  %v8305_v55 = vadd.f32 %v1311_v14, %v810_v31  ;;  %1792 = vmatprep.mubr.f32.mxu0 %v11750_v3 }
 0x172   :  { %v832_v26 = vpop.f32.mrf.mxu0  ;;  %v1316_v50 = vpop.f32.mrf.mxu1  ;;  %2279 = vmatmul.mubr.f32.gmra.mxu1 %v12284_v32 }
 0x173   :  { %12283 = vst [vmem:[#allocation63_spill] sm:$0xff] %v8305_v55  ;;  %v8310_v22 = vadd.f32 %v1316_v50, %v819_v47  ;;  %2284 = vmatprep.mubr.f32.mxu1 %v11750_v3  ;;  %v12288_v55 = vand.u32 4294901760, %v12282_v19 }
 0x174   :  { %v841_v4 = vpop.f32.mrf.mxu0  ;;  %1795 = vmatmul.mubr.f32.gmra.mxu0 %v12286_v62  ;;  %v1318_v37 = vpop.f32.mrf.mxu1 }
 0x175   :  { %12285 = vst [vmem:[#allocation91_spill] sm:$0xff] %v8310_v22  ;;  %v8314_v21 = vadd.f32 %v1318_v37, %v821_v15  ;;  %1800 = vmatprep.mubr.f32.mxu0 %v11750_v3 }
 0x176   :  { %v843_v31 = vpop.f32.mrf.mxu0  ;;  %v1323_v14 = vpop.f32.mrf.mxu1  ;;  %2288 = vmatmul.mubr.f32.gmra.mxu1 %v12288_v55 }
 0x177   :  { %12287 = vst [vmem:[#allocation65_spill] sm:$0xff] %v8314_v21  ;;  %v8319_v2 = vadd.f32 %v1323_v14, %v830_v13  ;;  %2293 = vmatprep.mubr.f32.mxu1 %v11750_v3  ;;  %v12292_v21 = vand.u32 4294901760, %v12286_v62 }
 0x178   :  { %v852_v47 = vpop.f32.mrf.mxu0  ;;  %1803 = vmatmul.mubr.f32.gmra.mxu0 %v12290_v0  ;;  %v1325_v32 = vpop.f32.mrf.mxu1 }
 0x179   :  { %12289 = vst [vmem:[#allocation92_spill] sm:$0xff] %v8319_v2  ;;  %v8323_v50 = vadd.f32 %v1325_v32, %v832_v26  ;;  %1808 = vmatprep.mubr.f32.mxu0 %v11750_v3  ;;  %v12295_v32 = vand.u32 4294901760, %v12290_v0  ;;  %v12317_v2 = vand.u32 4294901760, %v7891_v57 }
 0x17a   :  { %v854_v15 = vpop.f32.mrf.mxu0  ;;  %v1330_v37 = vpop.f32.mrf.mxu1  ;;  %2297 = vmatmul.mubr.f32.gmra.mxu1 %v12292_v21 }
 0x17b   :  { %12291 = vst [vmem:[#allocation66_spill] sm:$0xff] %v8323_v50  ;;  %v8328_v22 = vadd.f32 %v1330_v37, %v841_v4  ;;  %2302 = vmatprep.mubr.f32.mxu1 %v11750_v3 }
 0x17c   :  { %v863_v13 = vpop.f32.mrf.mxu0  ;;  %1811 = vmatmul.mubr.f32.gmra.mxu0 %v7828_v54  ;;  %v1332_v19 = vpop.f32.mrf.mxu1 }
 0x17d   :  { %12293 = vst [vmem:[#allocation93_spill] sm:$0xff] %v8328_v22  ;;  %v8332_v55 = vadd.f32 %v1332_v19, %v843_v31  ;;  %1816 = vmatprep.mubr.f32.mxu0 %v11750_v3  ;;  %v12298_v19 = vand.u32 4294901760, %v7828_v54  ;;  %v12301_v54 = vand.u32 4294901760, %v7844_v59 }
 0x17e   :  { %v865_v26 = vpop.f32.mrf.mxu0  ;;  %v1337_v14 = vpop.f32.mrf.mxu1  ;;  %2306 = vmatmul.mubr.f32.gmra.mxu1 %v12295_v32 }
 0x17f   :  { %12294 = vst [vmem:[#allocation94_spill] sm:$0xff] %v8332_v55  ;;  %v8337_v50 = vadd.f32 %v1337_v14, %v852_v47  ;;  %2311 = vmatprep.mubr.f32.mxu1 %v11750_v3 }
 0x180   :  { %v874_v4 = vpop.f32.mrf.mxu0  ;;  %1819 = vmatmul.mubr.f32.gmra.mxu0 %v7844_v59  ;;  %v1339_v62 = vpop.f32.mrf.mxu1 }
 0x181   :  { %12296 = vst [vmem:[#allocation95_spill] sm:$0xff] %v8337_v50  ;;  %v8341_v21 = vadd.f32 %v1339_v62, %v854_v15  ;;  %1824 = vmatprep.mubr.f32.mxu0 %v11750_v3  ;;  %v3327_v15 = vld [vmem:[%s11479_s3 + $0x78] sm:$0xff] }
 0x182   :  { %v876_v31 = vpop.f32.mrf.mxu0  ;;  %v1344_v37 = vpop.f32.mrf.mxu1  ;;  %2315 = vmatmul.mubr.f32.gmra.mxu1 %v12298_v19  ;;  %v8364_v19 = vand.u32 4294901760, %v3327_v15 }
 0x183   :  { %12297 = vst [vmem:[#allocation96_spill] sm:$0xff] %v8341_v21  ;;  %v8346_v55 = vadd.f32 %v1344_v37, %v863_v13  ;;  %2320 = vmatprep.mubr.f32.mxu1 %v11750_v3  ;;  %v3326_v13 = vld [vmem:[%s11479_s3 + $0x70] sm:$0xff] }
 0x184   :  { %v885_v47 = vpop.f32.mrf.mxu0  ;;  %1827 = vmatmul.mubr.f32.gmra.mxu0 %v7861_v28  ;;  %v1346_v0 = vpop.f32.mrf.mxu1  ;;  %12303 = vst [vmem:[#allocation100_spill] sm:$0xff] %v8364_v19  ;;  %v8381_v21 = vsub.f32 %v3327_v15, %v8364_v19 }
 0x185   :  { %12299 = vst [vmem:[#allocation97_spill] sm:$0xff] %v8346_v55  ;;  %v8353_v14 = vadd.f32 %v1346_v0, %v865_v26  ;;  %1832 = vmatprep.mubr.f32.mxu0 %v11750_v3  ;;  %v3325_v0 = vld [vmem:[%s11479_s3 + $0x68] sm:$0xff] }
 0x186   :  { %v887_v32 = vpop.f32.mrf.mxu0  ;;  %v1351_v62 = vpop.f32.mrf.mxu1  ;;  %2324 = vmatmul.mubr.f32.gmra.mxu1 %v12301_v54  ;;  %v8373_v54 = vand.u32 4294901760, %v3326_v13  ;;  %12308 = vst [vmem:[#allocation104_spill] sm:$0xff] %v8381_v21  ;;  %v8383_v50 = vand.u32 4294901760, %v3325_v0 }
 0x187   :  { %12300 = vst [vmem:[#allocation98_spill] sm:$0xff] %v8353_v14  ;;  %v8361_v37 = vadd.f32 %v1351_v62, %v874_v4  ;;  %2329 = vmatprep.mubr.f32.mxu1 %v11750_v3 }
 0x188   :  { %v896_v55 = vpop.f32.mrf.mxu0  ;;  %1835 = vmatmul.mubr.f32.gmra.mxu0 %v7879_v40  ;;  %v1353_v26 = vpop.f32.mrf.mxu1  ;;  %12305 = vst [vmem:[#allocation102_spill] sm:$0xff] %v8373_v54  ;;  %12309 = vst [vmem:[#allocation105_spill] sm:$0xff] %v8383_v50 }
 0x189   :  { %12302 = vst [vmem:[#allocation99_spill] sm:$0xff] %v8361_v37  ;;  %v8370_v59 = vadd.f32 %v1353_v26, %v876_v31  ;;  %1840 = vmatprep.mubr.f32.mxu0 %v11750_v3  ;;  %v12306_v37 = vand.u32 4294901760, %v7861_v28  ;;  %v3324_v31 = vld [vmem:[%s11479_s3 + $0x60] sm:$0xff]  ;;  %v8393_v28 = vsub.f32 %v3326_v13, %v8373_v54  ;;  %v3323_v13 = vld [vmem:[%s11479_s3 + $0x58] sm:$0xff] }
 0x18a   :  { %v898_v4 = vpop.f32.mrf.mxu0  ;;  %v1358_v62 = vpop.f32.mrf.mxu1 }
 0x18b   :  { %12304 = vst [vmem:[#allocation101_spill] sm:$0xff] %v8370_v59  ;;  %2333 = vmatmul.mubr.f32.gmra.mxu1 %v12306_v37  ;;  %v8377_v14 = vadd.f32 %v1358_v62, %v885_v47  ;;  %12311 = vst [vmem:[#allocation107_spill] sm:$0xff] %v8393_v28  ;;  %v12312_v37 = vand.u32 4294901760, %v7879_v40  ;;  %v8397_v62 = vand.u32 4294901760, %v3324_v31 }
 0x18c   :  { %2338 = vmatprep.mubr.f32.mxu1 %v11750_v3  ;;  %v907_v26 = vpop.f32.mrf.mxu0  ;;  %1843 = vmatmul.mubr.f32.gmra.mxu0 %v7891_v57  ;;  %v1360_v59 = vpop.f32.mrf.mxu1  ;;  %v3322_v57 = vld [vmem:[%s11479_s3 + $0x50] sm:$0xff] }
 0x18d   :  { %12307 = vst [vmem:[#allocation103_spill] sm:$0xff] %v8377_v14  ;;  %v8389_v22 = vadd.f32 %v1360_v59, %v887_v32  ;;  %1848 = vmatprep.mubr.f32.mxu0 %v11750_v3  ;;  %12313 = vst [vmem:[#allocation108_spill] sm:$0xff] %v8397_v62  ;;  %v8404_v32 = vsub.f32 %v3325_v0, %v8383_v50  ;;  %v8417_v0 = vsub.f32 %v3324_v31, %v8397_v62 }
 0x18e   :  { %v909_v47 = vpop.f32.mrf.mxu0  ;;  %v1365_v15 = vpop.f32.mrf.mxu1 }
 0x18f   :  { %12310 = vst [vmem:[#allocation106_spill] sm:$0xff] %v8389_v22  ;;  %2342 = vmatmul.mubr.f32.gmra.mxu1 %v12312_v37  ;;  %v8399_v14 = vadd.f32 %v1365_v15, %v896_v55  ;;  %12315 = vst [vmem:[#allocation110_spill] sm:$0xff] %v8404_v32  ;;  %v8419_v22 = vand.u32 4294901760, %v3323_v13 }
 0x190   :  { %2347 = vmatprep.mubr.f32.mxu1 %v11750_v3  ;;  %v918_v59 = vpop.f32.mrf.mxu0  ;;  %1851 = vmatmul.mubr.f32.gmra.mxu0 %v7901_v58  ;;  %v1367_v40 = vpop.f32.mrf.mxu1  ;;  %12318 = vst [vmem:[#allocation112_spill] sm:$0xff] %v8417_v0 }
 0x191   :  { %12314 = vst [vmem:[#allocation109_spill] sm:$0xff] %v8399_v14  ;;  %v8410_v37 = vadd.f32 %v1367_v40, %v898_v4  ;;  %2466 = vmatprep.mubr.f32.mxu0 %v11750_v3  ;;  %12319 = vst [vmem:[#allocation113_spill] sm:$0xff] %v8419_v22  ;;  %v12321_v4 = vand.u32 4294901760, %v8381_v21 }
 0x192   :  { %v920_v15 = vpop.f32.mrf.mxu0  ;;  %v1372_v14 = vpop.f32.mrf.mxu1 }
 0x193   :  { %12316 = vst [vmem:[#allocation111_spill] sm:$0xff] %v8410_v37  ;;  %2351 = vmatmul.mubr.f32.gmra.mxu1 %v12317_v2  ;;  %v8421_v46 = vadd.f32 %v1372_v14, %v907_v26  ;;  %v4282_v40 = vsub.f32 %v8381_v21, %v12321_v4  ;;  %v12322_v37 = vld [vmem:[#allocation2_spill] sm:$0xff]  ;;  %v12323_v26 = vand.u32 4294901760, %v8393_v28 }
 0x194   :  { %2356 = vmatprep.mubr.f32.mxu1 %v11750_v3  ;;  %v1476_v2 = vpop.f32.mrf.mxu0  ;;  %2468 = vmatmul.mubr.f32.vlgmr.msra.gmra.mxu0 %v12322_v37  ;;  %v1374_v31 = vpop.f32.mrf.mxu1 }
 0x195   :  { %12320 = vst [vmem:[#allocation114_spill] sm:$0xff] %v8421_v46  ;;  %v1477_v63 = vadd.f32 %v1476_v2, %v7945_v30  ;;  %v8433_v14 = vadd.f32 %v1374_v31, %v909_v47  ;;  %2473 = vmatprep.mubr.f32.mxu0 %v11750_v3  ;;  %3477 = vmatpush1.msra.mxu0 %v8364_v19  ;;  %v12324_v46 = vand.u32 4294901760, %v7901_v58  ;;  %v8447_v47 = vand.u32 4294901760, %v3322_v57 }
 0x196   :  { %v4289_v4 = vsub.f32 %v8393_v28, %v12323_v26  ;;  %v1478_v55 = vpop.f32.mrf.mxu0  ;;  %v1379_v21 = vpop.f32.mrf.mxu1  ;;  %3478 = vmatprep.subr.mxu0 %v11750_v3  ;;  %v8445_v30 = vsub.f32 %v3323_v13, %v8419_v22  ;;  %v4283_v26 = vand.u32 4294901760, %v4282_v40  ;;  %v12327_v58 = vand.u32 4294901760, %v8404_v32 }
 0x197   :  { %2360 = vmatmul.mubr.f32.gmra.mxu1 %v12324_v46  ;;  %12326 = vst [vmem:[#allocation115_spill] sm:$0xff] %v8447_v47  ;;  %v1479_v2 = vadd.f32 %v1478_v55, %v7951_v38  ;;  %v8450_v31 = vadd.f32 %v1379_v21, %v918_v59  ;;  %3480 = vmatpush1.msra.mxu0 %v8373_v54  ;;  %v3321_v38 = vld [vmem:[%s11479_s3 + $0x48] sm:$0xff] }
 0x198   :  { %12325 = vst [vmem:[#allocation2_spill] sm:$0xff] %v8445_v30  ;;  %2879 = vmatprep.mubr.f32.mxu1 %v11750_v3  ;;  %v4296_v46 = vsub.f32 %v8404_v32, %v12327_v58  ;;  %v1484_v28 = vpop.f32.mrf.mxu0  ;;  %2475 = vmatmul.mubr.f32.gmra.mxu0 %v12328_v6  ;;  %v1381_v13 = vpop.f32.mrf.mxu1  ;;  %v4290_v55 = vand.u32 4294901760, %v4289_v4  ;;  %v12330_v32 = vand.u32 4294901760, %v8417_v0  ;;  %v11695_v19 = vand.u32 4294901760, %v8445_v30 }
 0x199   :  { %3481 = vmatprep.subr.mxu0 %v11750_v3  ;;  %v1485_v21 = vadd.f32 %v1484_v28, %v7958_v5  ;;  %v8463_v59 = vadd.f32 %v1381_v13, %v920_v15  ;;  %2480 = vmatprep.mubr.f32.mxu0 %v11750_v3  ;;  %v8474_v5 = vsub.f32 %v3322_v57, %v8447_v47 }
 0x19a   :  { %3483 = vmatpush1.msra.mxu0 %v8383_v50  ;;  %v1486_v40 = vpop.f32.mrf.mxu0  ;;  %v1938_v58 = vpop.f32.mrf.mxu1  ;;  %v4303_v54 = vsub.f32 %v8417_v0, %v12330_v32  ;;  %v4297_v4 = vand.u32 4294901760, %v4296_v46  ;;  %v12333_v50 = vld [vmem:[#allocation4_spill] sm:$0xff]  ;;  %v3320_v32 = vld [vmem:[%s11479_s3 + $0x40] sm:$0xff]  ;;  %v12341_v0 = vld [vmem:[#allocation7_spill] sm:$0xff] }
 0x19b   :  { %12329 = vst [vmem:[#allocation3_spill] sm:$0xff] %v8463_v59  ;;  %2881 = vmatmul.mubr.f32.vlgmr.msra.gmra.mxu1 %v12322_v37  ;;  %3484 = vmatprep.subr.mxu0 %v11750_v3  ;;  %12331 = vst [vmem:[#allocation116_spill] sm:$0xff] %v8474_v5  ;;  %v1487_v28 = vadd.f32 %v1486_v40, %v7964_v10  ;;  %v8477_v15 = vadd.f32 %v1938_v58, %v1477_v63  ;;  %v8480_v37 = vand.u32 4294901760, %v3321_v38 }
 0x19c   :  { %2886 = vmatprep.mubr.f32.mxu1 %v11750_v3  ;;  %4284 = vmatpush1.msra.mxu1 %v4283_v26  ;;  %v1492_v13 = vpop.f32.mrf.mxu0  ;;  %v1940_v59 = vpop.f32.mrf.mxu1  ;;  %v4304_v46 = vand.u32 4294901760, %v4303_v54  ;;  %v4310_v40 = vsub.f32 %v8445_v30, %v11695_v19  ;;  %v11698_v58 = vand.u32 4294901760, %v8474_v5  ;;  %v3319_v54 = vld [vmem:[%s11479_s3 + $0x38] sm:$0xff] }
 0x19d   :  { %12332 = vst [vmem:[#allocation117_spill] sm:$0xff] %v8480_v37  ;;  %2482 = vmatmul.mubr.f32.gmra.mxu0 %v12333_v50  ;;  %4285 = vmatprep.subr.mxu1 %v11750_v3  ;;  %v1493_v10 = vadd.f32 %v1492_v13, %v7973_v1  ;;  %v8488_v63 = vadd.f32 %v1940_v59, %v1479_v2  ;;  %v12335_v13 = vld [vmem:[#allocation5_spill] sm:$0xff]  ;;  %v8521_v30 = vand.u32 4294901760, %v3319_v54 }
 0x19e   :  { %2487 = vmatprep.mubr.f32.mxu0 %v11750_v3  ;;  %4291 = vmatpush1.msra.mxu1 %v4290_v55  ;;  %v1494_v57 = vpop.f32.mrf.mxu0  ;;  %v1947_v26 = vpop.f32.mrf.mxu1  ;;  %v8502_v59 = vsub.f32 %v3321_v38, %v8480_v37 }
 0x19f   :  { %2888 = vmatmul.mubr.f32.gmra.mxu1 %v12328_v6  ;;  %4292 = vmatprep.subr.mxu1 %v11750_v3  ;;  %v1495_v1 = vadd.f32 %v1494_v57, %v7979_v56  ;;  %v8498_v2 = vadd.f32 %v1947_v26, %v1485_v21  ;;  %v8504_v6 = vand.u32 4294901760, %v3320_v32  ;;  %v4311_v57 = vand.u32 4294901760, %v4310_v40  ;;  %v3318_v40 = vld [vmem:[%s11479_s3 + $0x30] sm:$0xff] }
 0x1a0   :  { %2893 = vmatprep.mubr.f32.mxu1 %v11750_v3  ;;  %4298 = vmatpush1.msra.mxu1 %v4297_v4  ;;  %12334 = vst [vmem:[#allocation4_spill] sm:$0xff] %v8502_v59  ;;  %v1500_v55 = vpop.f32.mrf.mxu0  ;;  %v1949_v19 = vpop.f32.mrf.mxu1  ;;  %v4317_v26 = vsub.f32 %v8474_v5, %v11698_v58  ;;  %v12337_v58 = vld [vmem:[#allocation6_spill] sm:$0xff] }
 0x1a1   :  { %2489 = vmatmul.mubr.f32.gmra.mxu0 %v12335_v13  ;;  %4299 = vmatprep.subr.mxu1 %v11750_v3  ;;  %v1501_v56 = vadd.f32 %v1500_v55, %v7988_v44  ;;  %v8512_v21 = vadd.f32 %v1949_v19, %v1487_v28  ;;  %v8546_v28 = vand.u32 4294901760, %v3318_v40 }
 0x1a2   :  { %2494 = vmatprep.mubr.f32.mxu0 %v11750_v3  ;;  %3486 = vmatpush1.msra.mxu0 %v8397_v62  ;;  %v1502_v38 = vpop.f32.mrf.mxu0  ;;  %v1956_v4 = vpop.f32.mrf.mxu1 }
 0x1a3   :  { %2895 = vmatmul.mubr.f32.gmra.mxu1 %v12333_v50  ;;  %3487 = vmatprep.subr.mxu0 %v11750_v3  ;;  %v1503_v44 = vadd.f32 %v1502_v38, %v7994_v8  ;;  %v8524_v19 = vadd.f32 %v1956_v4, %v1493_v10  ;;  %v8529_v50 = vsub.f32 %v3320_v32, %v8504_v6  ;;  %v4318_v38 = vand.u32 4294901760, %v4317_v26 }
 0x1a4   :  { %2900 = vmatprep.mubr.f32.mxu1 %v11750_v3  ;;  %4305 = vmatpush1.msra.mxu1 %v4304_v46  ;;  %v1508_v55 = vpop.f32.mrf.mxu0  ;;  %v1958_v5 = vpop.f32.mrf.mxu1  ;;  %v8544_v4 = vsub.f32 %v3319_v54, %v8521_v30  ;;  %12339 = vst [vmem:[#allocation118_spill] sm:$0xff] %v8546_v28  ;;  %v3317_v54 = vld [vmem:[%s11479_s3 + $0x28] sm:$0xff] }
 0x1a5   :  { %12336 = vst [vmem:[#allocation5_spill] sm:$0xff] %v8529_v50  ;;  %2496 = vmatmul.mubr.f32.gmra.mxu0 %v12337_v58  ;;  %4306 = vmatprep.subr.mxu1 %v11750_v3  ;;  %v1509_v8 = vadd.f32 %v1508_v55, %v8002_v23  ;;  %v8537_v10 = vadd.f32 %v1958_v5, %v1495_v1  ;;  %v12340_v1 = vand.u32 4294901760, %v8502_v59 }
 0x1a6   :  { %2501 = vmatprep.mubr.f32.mxu0 %v11750_v3  ;;  %3489 = vmatpush1.msra.mxu0 %v8419_v22  ;;  %v1510_v32 = vpop.f32.mrf.mxu0  ;;  %v1965_v46 = vpop.f32.mrf.mxu1  ;;  %12338 = vst [vmem:[#allocation6_spill] sm:$0xff] %v8544_v4 }
 0x1a7   :  { %2902 = vmatmul.mubr.f32.gmra.mxu1 %v12335_v13  ;;  %3490 = vmatprep.subr.mxu0 %v11750_v3  ;;  %v1511_v23 = vadd.f32 %v1510_v32, %v8008_v20  ;;  %v8549_v5 = vadd.f32 %v1965_v46, %v1501_v56  ;;  %v4324_v55 = vsub.f32 %v8502_v59, %v12340_v1  ;;  %v8572_v13 = vand.u32 4294901760, %v3317_v54 }
 0x1a8   :  { %2907 = vmatprep.mubr.f32.mxu1 %v11750_v3  ;;  %4312 = vmatpush1.msra.mxu1 %v4311_v57  ;;  %v1516_v26 = vpop.f32.mrf.mxu0  ;;  %v1967_v22 = vpop.f32.mrf.mxu1  ;;  %v8570_v1 = vsub.f32 %v3318_v40, %v8546_v28 }
 0x1a9   :  { %2503 = vmatmul.mubr.f32.gmra.mxu0 %v12341_v0  ;;  %4313 = vmatprep.subr.mxu1 %v11750_v3  ;;  %v1517_v20 = vadd.f32 %v1516_v26, %v8013_v52  ;;  %v8562_v56 = vadd.f32 %v1967_v22, %v1503_v44  ;;  %12343 = vst [vmem:[#allocation119_spill] sm:$0xff] %v8572_v13  ;;  %v4325_v44 = vand.u32 4294901760, %v4324_v55  ;;  %v12344_v26 = vand.u32 4294901760, %v8529_v50 }
 0x1aa   :  { %2508 = vmatprep.mubr.f32.mxu0 %v11750_v3  ;;  %3492 = vmatpush1.msra.mxu0 %v8447_v47  ;;  %v1518_v57 = vpop.f32.mrf.mxu0  ;;  %v1974_v32 = vpop.f32.mrf.mxu1  ;;  %12342 = vst [vmem:[#allocation7_spill] sm:$0xff] %v8570_v1  ;;  %v12345_v47 = vld [vmem:[#allocation8_spill] sm:$0xff] }
 0x1ab   :  { %2909 = vmatmul.mubr.f32.gmra.mxu1 %v12337_v58  ;;  %3493 = vmatprep.subr.mxu0 %v11750_v3  ;;  %v1519_v22 = vadd.f32 %v1518_v57, %v8017_v11  ;;  %v8575_v52 = vadd.f32 %v1974_v32, %v1509_v8  ;;  %v4331_v58 = vsub.f32 %v8529_v50, %v12344_v26  ;;  %v3316_v11 = vld [vmem:[%s11479_s3 + $0x20] sm:$0xff]  ;;  %v12346_v57 = vand.u32 4294901760, %v8544_v4 }
 0x1ac   :  { %2914 = vmatprep.mubr.f32.mxu1 %v11750_v3  ;;  %4319 = vmatpush1.msra.mxu1 %v4318_v38  ;;  %v1524_v59 = vpop.f32.mrf.mxu0  ;;  %v1976_v46 = vpop.f32.mrf.mxu1  ;;  %v11717_v26 = vand.u32 4294901760, %v8570_v1 }
 0x1ad   :  { %2510 = vmatmul.mubr.f32.gmra.mxu0 %v12345_v47  ;;  %4320 = vmatprep.subr.mxu1 %v11750_v3  ;;  %v1525_v40 = vadd.f32 %v1524_v59, %v8022_v16  ;;  %v8587_v8 = vadd.f32 %v1976_v46, %v1511_v23  ;;  %v4338_v32 = vsub.f32 %v8544_v4, %v12346_v57  ;;  %v4332_v46 = vand.u32 4294901760, %v4331_v58 }
 0x1ae   :  { %2515 = vmatprep.mubr.f32.mxu0 %v11750_v3  ;;  %3495 = vmatpush1.msra.mxu0 %v8480_v37  ;;  %v1526_v38 = vpop.f32.mrf.mxu0  ;;  %v1983_v55 = vpop.f32.mrf.mxu1  ;;  %v8598_v16 = vsub.f32 %v3317_v54, %v8572_v13  ;;  %v12349_v37 = vld [vmem:[#allocation9_spill] sm:$0xff] }
 0x1af   :  { %2916 = vmatmul.mubr.f32.gmra.mxu1 %v12341_v0  ;;  %3496 = vmatprep.subr.mxu0 %v11750_v3  ;;  %v1527_v59 = vadd.f32 %v1526_v38, %v8026_v53  ;;  %v8601_v23 = vadd.f32 %v1983_v55, %v1517_v20  ;;  %v8604_v0 = vand.u32 4294901760, %v3316_v11  ;;  %v3315_v53 = vld [vmem:[%s11479_s3 + $0x18] sm:$0xff]  ;;  %v4339_v58 = vand.u32 4294901760, %v4338_v32  ;;  %v12352_v32 = vld [vmem:[#allocation10_spill] sm:$0xff] }
 0x1b0   :  { %12347 = vst [vmem:[#allocation8_spill] sm:$0xff] %v8598_v16  ;;  %2921 = vmatprep.mubr.f32.mxu1 %v11750_v3  ;;  %4326 = vmatpush1.msra.mxu1 %v4325_v44  ;;  %v1532_v50 = vpop.f32.mrf.mxu0  ;;  %v1985_v62 = vpop.f32.mrf.mxu1 }
 0x1b1   :  { %12348 = vst [vmem:[#allocation120_spill] sm:$0xff] %v8604_v0  ;;  %2517 = vmatmul.mubr.f32.gmra.mxu0 %v12349_v37  ;;  %4327 = vmatprep.subr.mxu1 %v11750_v3  ;;  %v1533_v57 = vadd.f32 %v1532_v50, %v8031_v17  ;;  %v8609_v54 = vadd.f32 %v1985_v62, %v1519_v22 }
 0x1b2   :  { %2522 = vmatprep.mubr.f32.mxu0 %v11750_v3  ;;  %3498 = vmatpush1.msra.mxu0 %v8504_v6  ;;  %v1534_v20 = vpop.f32.mrf.mxu0  ;;  %v1992_v44 = vpop.f32.mrf.mxu1  ;;  %v4345_v17 = vsub.f32 %v8570_v1, %v11717_v26  ;;  %v8627_v38 = vsub.f32 %v3316_v11, %v8604_v0 }
 0x1b3   :  { %2923 = vmatmul.mubr.f32.gmra.mxu1 %v12345_v47  ;;  %3499 = vmatprep.subr.mxu0 %v11750_v3  ;;  %v1535_v50 = vadd.f32 %v1534_v20, %v8035_v35  ;;  %v8623_v22 = vadd.f32 %v1992_v44, %v1525_v40  ;;  %v8629_v47 = vand.u32 4294901760, %v3315_v53 }
 0x1b4   :  { %2928 = vmatprep.mubr.f32.mxu1 %v11750_v3  ;;  %4333 = vmatpush1.msra.mxu1 %v4332_v46  ;;  %12350 = vst [vmem:[#allocation9_spill] sm:$0xff] %v8627_v38  ;;  %v1540_v55 = vpop.f32.mrf.mxu0  ;;  %v1994_v4 = vpop.f32.mrf.mxu1  ;;  %v4346_v11 = vand.u32 4294901760, %v4345_v17  ;;  %v12353_v46 = vand.u32 4294901760, %v8598_v16 }
 0x1b5   :  { %12351 = vst [vmem:[#allocation121_spill] sm:$0xff] %v8629_v47  ;;  %2524 = vmatmul.mubr.f32.gmra.mxu0 %v12352_v32  ;;  %4334 = vmatprep.subr.mxu1 %v11750_v3  ;;  %v1541_v26 = vadd.f32 %v1540_v55, %v8040_v39  ;;  %v8634_v62 = vadd.f32 %v1994_v4, %v1527_v59  ;;  %v11720_v4 = vand.u32 4294901760, %v8627_v38  ;;  %v12355_v55 = vld [vmem:[#allocation11_spill] sm:$0xff] }
 0x1b6   :  { %2529 = vmatprep.mubr.f32.mxu0 %v11750_v3  ;;  %3501 = vmatpush1.msra.mxu0 %v8521_v30  ;;  %v1542_v35 = vpop.f32.mrf.mxu0  ;;  %v2001_v40 = vpop.f32.mrf.mxu1  ;;  %v4352_v20 = vsub.f32 %v8598_v16, %v12353_v46  ;;  %v8649_v59 = vsub.f32 %v3315_v53, %v8629_v47 }
 0x1b7   :  { %2930 = vmatmul.mubr.f32.gmra.mxu1 %v12349_v37  ;;  %3502 = vmatprep.subr.mxu0 %v11750_v3  ;;  %v1543_v44 = vadd.f32 %v1542_v35, %v8044_v42  ;;  %v8644_v39 = vadd.f32 %v2001_v40, %v1533_v57 }
 0x1b8   :  { %2935 = vmatprep.mubr.f32.mxu1 %v11750_v3  ;;  %4340 = vmatpush1.msra.mxu1 %v4339_v58  ;;  %12354 = vst [vmem:[#allocation10_spill] sm:$0xff] %v8649_v59  ;;  %v1548_v37 = vpop.f32.mrf.mxu0  ;;  %v2003_v17 = vpop.f32.mrf.mxu1  ;;  %v4353_v53 = vand.u32 4294901760, %v4352_v20 }
 0x1b9   :  { %2531 = vmatmul.mubr.f32.gmra.mxu0 %v12355_v55  ;;  %4341 = vmatprep.subr.mxu1 %v11750_v3  ;;  %v1549_v46 = vadd.f32 %v1548_v37, %v8049_v29  ;;  %v8654_v16 = vadd.f32 %v2003_v17, %v1535_v50  ;;  %v4359_v29 = vsub.f32 %v8627_v38, %v11720_v4  ;;  %v12356_v37 = vld [vmem:[#allocation12_spill] sm:$0xff]  ;;  %v12360_v38 = vld [vmem:[#allocation13_spill] sm:$0xff] }
 0x1ba   :  { %2536 = vmatprep.mubr.f32.mxu0 %v11750_v3  ;;  %3504 = vmatpush1.msra.mxu0 %v8546_v28  ;;  %v1550_v42 = vpop.f32.mrf.mxu0  ;;  %v2010_v57 = vpop.f32.mrf.mxu1 }
 0x1bb   :  { %2937 = vmatmul.mubr.f32.gmra.mxu1 %v12352_v32  ;;  %3505 = vmatprep.subr.mxu0 %v11750_v3  ;;  %v1551_v58 = vadd.f32 %v1550_v42, %v8053_v43  ;;  %v8661_v35 = vadd.f32 %v2010_v57, %v1541_v26  ;;  %v3314_v32 = vld [vmem:[%s11479_s3 + $0x10] sm:$0xff] }
 0x1bc   :  { %2942 = vmatprep.mubr.f32.mxu1 %v11750_v3  ;;  %4347 = vmatpush1.msra.mxu1 %v4346_v11  ;;  %v1556_v40 = vpop.f32.mrf.mxu0  ;;  %v2012_v20 = vpop.f32.mrf.mxu1  ;;  %v8673_v43 = vand.u32 4294901760, %v3314_v32 }
 0x1bd   :  { %2538 = vmatmul.mubr.f32.gmra.mxu0 %v12356_v37  ;;  %4348 = vmatprep.subr.mxu1 %v11750_v3  ;;  %v1557_v26 = vadd.f32 %v1556_v40, %v8058_v24  ;;  %v8676_v11 = vadd.f32 %v2012_v20, %v1543_v44  ;;  %v4360_v24 = vand.u32 4294901760, %v4359_v29  ;;  %v12359_v44 = vand.u32 4294901760, %v8649_v59 }
 0x1be   :  { %12357 = vst [vmem:[#allocation11_spill] sm:$0xff] %v8673_v43  ;;  %2543 = vmatprep.mubr.f32.mxu0 %v11750_v3  ;;  %3507 = vmatpush1.msra.mxu0 %v8572_v13  ;;  %v1558_v17 = vpop.f32.mrf.mxu0  ;;  %v2019_v42 = vpop.f32.mrf.mxu1  ;;  %v8683_v57 = vsub.f32 %v3314_v32, %v8673_v43 }
 0x1bf   :  { %2944 = vmatmul.mubr.f32.gmra.mxu1 %v12355_v55  ;;  %3508 = vmatprep.subr.mxu0 %v11750_v3  ;;  %v1559_v4 = vadd.f32 %v1558_v17, %v8062_v34  ;;  %v8686_v50 = vadd.f32 %v2019_v42, %v1549_v46  ;;  %v4366_v40 = vsub.f32 %v8649_v59, %v12359_v44 }
 0x1c0   :  { %12358 = vst [vmem:[#allocation12_spill] sm:$0xff] %v8683_v57  ;;  %2949 = vmatprep.mubr.f32.mxu1 %v11750_v3  ;;  %4354 = vmatpush1.msra.mxu1 %v4353_v53  ;;  %v1564_v20 = vpop.f32.mrf.mxu0  ;;  %v2021_v55 = vpop.f32.mrf.mxu1  ;;  %v11725_v32 = vand.u32 4294901760, %v8683_v57 }
 0x1c1   :  { %2545 = vmatmul.mubr.f32.gmra.mxu0 %v12360_v38  ;;  %4355 = vmatprep.subr.mxu1 %v11750_v3  ;;  %v1565_v34 = vadd.f32 %v1564_v20, %v8067_v41  ;;  %v8696_v46 = vadd.f32 %v2021_v55, %v1551_v58  ;;  %v4367_v41 = vand.u32 4294901760, %v4366_v40  ;;  %v12361_v20 = vld [vmem:[#allocation14_spill] sm:$0xff] }
 0x1c2   :  { %2550 = vmatprep.mubr.f32.mxu0 %v11750_v3  ;;  %3510 = vmatpush1.msra.mxu0 %v8604_v0  ;;  %v1566_v53 = vpop.f32.mrf.mxu0  ;;  %v2028_v29 = vpop.f32.mrf.mxu1  ;;  %v4373_v58 = vsub.f32 %v8683_v57, %v11725_v32 }
 0x1c3   :  { %2951 = vmatmul.mubr.f32.gmra.mxu1 %v12356_v37  ;;  %3511 = vmatprep.subr.mxu0 %v11750_v3  ;;  %v1567_v17 = vadd.f32 %v1566_v53, %v8071_v61  ;;  %v8703_v42 = vadd.f32 %v2028_v29, %v1557_v26  ;;  %v12362_v29 = vld [vmem:[#allocation15_spill] sm:$0xff] }
 0x1c4   :  { %2956 = vmatprep.mubr.f32.mxu1 %v11750_v3  ;;  %4361 = vmatpush1.msra.mxu1 %v4360_v24  ;;  %v1572_v44 = vpop.f32.mrf.mxu0  ;;  %v2030_v55 = vpop.f32.mrf.mxu1 }
 0x1c5   :  { %2552 = vmatmul.mubr.f32.gmra.mxu0 %v12361_v20  ;;  %4362 = vmatprep.subr.mxu1 %v11750_v3  ;;  %v1573_v37 = vadd.f32 %v1572_v44, %v8076_v51  ;;  %v8712_v59 = vadd.f32 %v2030_v55, %v1559_v4  ;;  %v4374_v51 = vand.u32 4294901760, %v4373_v58  ;;  %v3313_v4 = vld [vmem:[%s11479_s3 + $0x8] sm:$0xff] }
 0x1c6   :  { %2557 = vmatprep.mubr.f32.mxu0 %v11750_v3  ;;  %3513 = vmatpush1.msra.mxu0 %v8629_v47  ;;  %v1574_v61 = vpop.f32.mrf.mxu0  ;;  %v2037_v26 = vpop.f32.mrf.mxu1 }
 0x1c7   :  { %2958 = vmatmul.mubr.f32.gmra.mxu1 %v12360_v38  ;;  %3514 = vmatprep.subr.mxu0 %v11750_v3  ;;  %v1575_v24 = vadd.f32 %v1574_v61, %v8080_v7  ;;  %v8719_v40 = vadd.f32 %v2037_v26, %v1565_v34  ;;  %v8727_v38 = vand.u32 4294901760, %v3313_v4 }
 0x1c8   :  { %2963 = vmatprep.mubr.f32.mxu1 %v11750_v3  ;;  %4368 = vmatpush1.msra.mxu1 %v4367_v41  ;;  %v1580_v53 = vpop.f32.mrf.mxu0  ;;  %v2039_v44 = vpop.f32.mrf.mxu1 }
 0x1c9   :  { %2559 = vmatmul.mubr.f32.gmra.mxu0 %v12362_v29  ;;  %4369 = vmatprep.subr.mxu1 %v11750_v3  ;;  %12363 = vst [vmem:[#allocation13_spill] sm:$0xff] %v8727_v38  ;;  %v1581_v7 = vadd.f32 %v1580_v53, %v8085_v45  ;;  %v8730_v34 = vadd.f32 %v2039_v44, %v1567_v17  ;;  %v12365_v17 = vld [vmem:[#allocation16_spill] sm:$0xff] }
 0x1ca   :  { %2564 = vmatprep.mubr.f32.mxu0 %v11750_v3  ;;  %3516 = vmatpush1.msra.mxu0 %v8673_v43  ;;  %v1582_v41 = vpop.f32.mrf.mxu0  ;;  %v2046_v58 = vpop.f32.mrf.mxu1  ;;  %v8737_v55 = vsub.f32 %v3313_v4, %v8727_v38 }
 0x1cb   :  { %2965 = vmatmul.mubr.f32.gmra.mxu1 %v12361_v20  ;;  %3517 = vmatprep.subr.mxu0 %v11750_v3  ;;  %v1583_v61 = vadd.f32 %v1582_v41, %v8089_v60  ;;  %v8740_v26 = vadd.f32 %v2046_v58, %v1573_v37 }
 0x1cc   :  { %12364 = vst [vmem:[#allocation14_spill] sm:$0xff] %v8737_v55  ;;  %2970 = vmatprep.mubr.f32.mxu1 %v11750_v3  ;;  %4375 = vmatpush1.msra.mxu1 %v4374_v51  ;;  %v1588_v45 = vpop.f32.mrf.mxu0  ;;  %v2048_v53 = vpop.f32.mrf.mxu1  ;;  %v11726_v20 = vand.u32 4294901760, %v8737_v55 }
 0x1cd   :  { %2566 = vmatmul.mubr.f32.gmra.mxu0 %v12365_v17  ;;  %4376 = vmatprep.subr.mxu1 %v11750_v3  ;;  %v1589_v44 = vadd.f32 %v1588_v45, %v8094_v9  ;;  %v8747_v32 = vadd.f32 %v2048_v53, %v1575_v24  ;;  %v12366_v24 = vld [vmem:[#allocation17_spill] sm:$0xff] }
 0x1ce   :  { %2571 = vmatprep.mubr.f32.mxu0 %v11750_v3  ;;  %3519 = vmatpush1.msra.mxu0 %v8727_v38  ;;  %v1590_v60 = vpop.f32.mrf.mxu0  ;;  %v2055_v37 = vpop.f32.mrf.mxu1  ;;  %v4380_v51 = vsub.f32 %v8737_v55, %v11726_v20  ;;  %v3312_v20 = vld [vmem:[%s11479_s3] sm:$0xff] }
 0x1cf   :  { %2972 = vmatmul.mubr.f32.gmra.mxu1 %v12362_v29  ;;  %3520 = vmatprep.subr.mxu0 %v11750_v3  ;;  %v1591_v4 = vadd.f32 %v1590_v60, %v8098_v25  ;;  %v8757_v41 = vadd.f32 %v2055_v37, %v1581_v7  ;;  %v8769_v60 = vand.u32 4294901760, %v3312_v20 }
 0x1d0   :  { %2977 = vmatprep.mubr.f32.mxu1 %v11750_v3  ;;  %v1596_v9 = vpop.f32.mrf.mxu0  ;;  %v2057_v58 = vpop.f32.mrf.mxu1  ;;  %v4381_v45 = vand.u32 4294901760, %v4380_v51 }
 0x1d1   :  { %2573 = vmatmul.mubr.f32.gmra.mxu0 %v12366_v24  ;;  %v1597_v53 = vadd.f32 %v1596_v9, %v8103_v27  ;;  %v8762_v29 = vadd.f32 %v2057_v58, %v1583_v61  ;;  %12367 = vst [vmem:[#allocation15_spill] sm:$0xff] %v8769_v60  ;;  %v12368_v61 = vld [vmem:[#allocation18_spill] sm:$0xff]  ;;  %v8777_v9 = vsub.f32 %v3312_v20, %v8769_v60 }
 0x1d2   :  { %2578 = vmatprep.mubr.f32.mxu0 %v11750_v3  ;;  %v1598_v25 = vpop.f32.mrf.mxu0  ;;  %v2064_v7 = vpop.f32.mrf.mxu1  ;;  %4382 = vmatpush1.msra.mxu1 %v4381_v45 }
 0x1d3   :  { %2979 = vmatmul.mubr.f32.gmra.mxu1 %v12365_v17  ;;  %v1599_v37 = vadd.f32 %v1598_v25, %v8107_v12  ;;  %v8772_v38 = vadd.f32 %v2064_v7, %v1589_v44  ;;  %12369 = vst [vmem:[#allocation16_spill] sm:$0xff] %v8777_v9  ;;  %4383 = vmatprep.subr.mxu1 %v11750_v3  ;;  %v11733_v45 = vand.u32 4294901760, %v8777_v9 }
 0x1d4   :  { %2984 = vmatprep.mubr.f32.mxu1 %v11750_v3  ;;  %v1604_v27 = vpop.f32.mrf.mxu0  ;;  %v2066_v51 = vpop.f32.mrf.mxu1  ;;  %3522 = vmatpush1.msra.mxu0 %v8769_v60 }
 0x1d5   :  { %2580 = vmatmul.mubr.f32.gmra.mxu0 %v12368_v61  ;;  %v1605_v17 = vadd.f32 %v1604_v27, %v8112_v18  ;;  %v8781_v58 = vadd.f32 %v2066_v51, %v1591_v4  ;;  %3551 = vmatprep.subr.mxu0 %v11750_v3  ;;  %v12370_v4 = vld [vmem:[#allocation19_spill] sm:$0xff]  ;;  %v4387_v27 = vsub.f32 %v8777_v9, %v11733_v45 }
 0x1d6   :  { %2585 = vmatprep.mubr.f32.mxu0 %v11750_v3  ;;  %v1606_v12 = vpop.f32.mrf.mxu0  ;;  %v2073_v44 = vpop.f32.mrf.mxu1 }
 0x1d7   :  { %2986 = vmatmul.mubr.f32.gmra.mxu1 %v12366_v24  ;;  %v1607_v20 = vadd.f32 %v1606_v12, %v8116_v49  ;;  %v8789_v25 = vadd.f32 %v2073_v44, %v1597_v53  ;;  %v3329_v49 = vld [vmem:[%s11479_s3 + $0x88] sm:$0xff]  ;;  %v4388_v44 = vand.u32 4294901760, %v4387_v27 }
 0x1d8   :  { %2991 = vmatprep.mubr.f32.mxu1 %v11750_v3  ;;  %v1612_v18 = vpop.f32.mrf.mxu0  ;;  %v2075_v7 = vpop.f32.mrf.mxu1  ;;  %v8804_v60 = vand.u32 4294901760, %v3329_v49 }
 0x1d9   :  { %2587 = vmatmul.mubr.f32.gmra.mxu0 %v12370_v4  ;;  %v1613_v24 = vadd.f32 %v1612_v18, %v8121_v48  ;;  %v8797_v51 = vadd.f32 %v2075_v7, %v1599_v37  ;;  %v12372_v37 = vld [vmem:[#allocation20_spill] sm:$0xff]  ;;  %4389 = vmatpush1.msra.mxu1 %v4388_v44 }
 0x1da   :  { %2592 = vmatprep.mubr.f32.mxu0 %v11750_v3  ;;  %v1614_v53 = vpop.f32.mrf.mxu0  ;;  %v2082_v12 = vpop.f32.mrf.mxu1  ;;  %12371 = vst [vmem:[#allocation17_spill] sm:$0xff] %v8804_v60  ;;  %v8812_v7 = vsub.f32 %v3329_v49, %v8804_v60  ;;  %3553 = vmatpush2.msra.mxu0 %v8804_v60  ;;  %v12380_v60 = vld [vmem:[#allocation24_spill] sm:$0xff] }
 0x1db   :  { %2993 = vmatmul.mubr.f32.gmra.mxu1 %v12368_v61  ;;  %v1615_v55 = vadd.f32 %v1614_v53, %v8125_v36  ;;  %v8807_v45 = vadd.f32 %v2082_v12, %v1605_v17  ;;  %v3328_v61 = vld [vmem:[%s11479_s3 + $0x80] sm:$0xff]  ;;  %4418 = vmatprep.subr.mxu1 %v11750_v3 }
 0x1dc   :  { %2998 = vmatprep.mubr.f32.mxu1 %v11750_v3  ;;  %v1620_v48 = vpop.f32.mrf.mxu0  ;;  %v2084_v18 = vpop.f32.mrf.mxu1  ;;  %12373 = vst [vmem:[#allocation18_spill] sm:$0xff] %v8812_v7  ;;  %v8822_v36 = vand.u32 4294901760, %v3328_v61  ;;  %v11742_v49 = vand.u32 4294901760, %v8812_v7  ;;  %v12376_v12 = vld [vmem:[#allocation22_spill] sm:$0xff]  ;;  %3554 = vmatprep.subr.mxu0 %v11750_v3 }
 0x1dd   :  { %2594 = vmatmul.mubr.f32.gmra.mxu0 %v12372_v37  ;;  %v1621_v27 = vadd.f32 %v1620_v48, %v8130_v33  ;;  %v8818_v9 = vadd.f32 %v2084_v18, %v1607_v20  ;;  %v12379_v48 = vld [vmem:[#allocation21_spill] sm:$0xff] }
 0x1de   :  { %2599 = vmatprep.mubr.f32.mxu0 %v11750_v3  ;;  %12375 = vst [vmem:[#allocation20_spill] sm:$0xff] %v8822_v36  ;;  %v1622_v17 = vpop.f32.mrf.mxu0  ;;  %v2091_v53 = vpop.f32.mrf.mxu1  ;;  %v8833_v33 = vsub.f32 %v3328_v61, %v8822_v36  ;;  %3556 = vmatpush2.msra.mxu0 %v8822_v36  ;;  %v12383_v36 = vld [vmem:[#allocation73_spill] sm:$0xff] }
 0x1df   :  { %12374 = vst [vmem:[#allocation19_spill] sm:$0xff] %v8818_v9  ;;  %3000 = vmatmul.mubr.f32.gmra.mxu1 %v12370_v4  ;;  %v1623_v44 = vadd.f32 %v1622_v17, %v12376_v12  ;;  %v8828_v43 = vadd.f32 %v2091_v53, %v1613_v24  ;;  %v4422_v4 = vsub.f32 %v8812_v7, %v11742_v49 }
 0x1e0   :  { %3005 = vmatprep.mubr.f32.mxu1 %v11750_v3  ;;  %12378 = vst [vmem:[#allocation122_spill] sm:$0xff] %v8833_v33  ;;  %v1628_v20 = vpop.f32.mrf.mxu0  ;;  %v2093_v18 = vpop.f32.mrf.mxu1  ;;  %v11745_v24 = vand.u32 4294901760, %v8833_v33  ;;  %4769 = vmatprep.subr.mxu0 %v11750_v3 }
 0x1e1   :  { %12377 = vst [vmem:[#allocation22_spill] sm:$0xff] %v8828_v43  ;;  %2601 = vmatmul.mubr.f32.gmra.mxu0 %v12379_v48  ;;  %v1629_v57 = vadd.f32 %v1628_v20, %v12380_v60  ;;  %v8840_v17 = vadd.f32 %v2093_v18, %v1615_v55  ;;  %v4423_v12 = vand.u32 4294901760, %v4422_v4  ;;  %v12381_v43 = vld [vmem:[#allocation27_spill] sm:$0xff] }
 0x1e2   :  { %2606 = vmatprep.mubr.f32.mxu0 %v11750_v3  ;;  %v1630_v61 = vpop.f32.mrf.mxu0  ;;  %v2100_v53 = vpop.f32.mrf.mxu1  ;;  %v4429_v55 = vsub.f32 %v8833_v33, %v11745_v24  ;;  %v12382_v20 = vld [vmem:[#allocation23_spill] sm:$0xff] }
 0x1e3   :  { %3007 = vmatmul.mubr.f32.gmra.mxu1 %v12372_v37  ;;  %v1631_v9 = vadd.f32 %v1630_v61, %v12381_v43  ;;  %v8848_v49 = vadd.f32 %v2100_v53, %v1621_v27  ;;  %v12385_v53 = vld [vmem:[#allocation28_spill] sm:$0xff] }
 0x1e4   :  { %3012 = vmatprep.mubr.f32.mxu1 %v11750_v3  ;;  %v1636_v60 = vpop.f32.mrf.mxu0  ;;  %v2102_v18 = vpop.f32.mrf.mxu1  ;;  %4424 = vmatpush2.msra.mxu1 %v4423_v12  ;;  %v4430_v43 = vand.u32 4294901760, %v4429_v55 }
 0x1e5   :  { %2608 = vmatmul.mubr.f32.gmra.mxu0 %v12382_v20  ;;  %v1637_v37 = vadd.f32 %v1636_v60, %v12383_v36  ;;  %v8856_v4 = vadd.f32 %v2102_v18, %v1623_v44  ;;  %4425 = vmatprep.subr.mxu1 %v11750_v3  ;;  %v12387_v36 = vld [vmem:[#allocation25_spill] sm:$0xff]  ;;  %v12388_v60 = vld [vmem:[#allocation74_spill] sm:$0xff] }
 0x1e6   :  { %2613 = vmatprep.mubr.f32.mxu0 %v11750_v3  ;;  %v1638_v27 = vpop.f32.mrf.mxu0  ;;  %v2109_v61 = vpop.f32.mrf.mxu1  ;;  %4431 = vmatpush2.msra.mxu1 %v4430_v43 }
 0x1e7   :  { %12384 = vst [vmem:[#allocation21_spill] sm:$0xff] %v8856_v4  ;;  %3014 = vmatmul.mubr.f32.gmra.mxu1 %v12379_v48  ;;  %v1639_v24 = vadd.f32 %v1638_v27, %v12385_v53  ;;  %v8862_v33 = vadd.f32 %v2109_v61, %v1629_v57  ;;  %5302 = vmatprep.subr.mxu1 %v11750_v3  ;;  %v12390_v57 = vld [vmem:[#allocation31_spill] sm:$0xff]  ;;  %v12392_v53 = vld [vmem:[#allocation26_spill] sm:$0xff] }
 0x1e8   :  { %3019 = vmatprep.mubr.f32.mxu1 %v11750_v3  ;;  %v1644_v12 = vpop.f32.mrf.mxu0  ;;  %v2111_v44 = vpop.f32.mrf.mxu1  ;;  %v12393_v4 = vld [vmem:[#allocation75_spill] sm:$0xff] }
 0x1e9   :  { %12386 = vst [vmem:[#allocation24_spill] sm:$0xff] %v8862_v33  ;;  %2615 = vmatmul.mubr.f32.gmra.mxu0 %v12387_v36  ;;  %v1645_v18 = vadd.f32 %v1644_v12, %v12388_v60  ;;  %v8868_v55 = vadd.f32 %v2111_v44, %v1631_v9 }
 0x1ea   :  { %2620 = vmatprep.mubr.f32.mxu0 %v11750_v3  ;;  %v1646_v48 = vpop.f32.mrf.mxu0  ;;  %v2118_v7 = vpop.f32.mrf.mxu1 }
 0x1eb   :  { %12389 = vst [vmem:[#allocation27_spill] sm:$0xff] %v8868_v55  ;;  %3021 = vmatmul.mubr.f32.gmra.mxu1 %v12382_v20  ;;  %v1647_v27 = vadd.f32 %v1646_v48, %v12390_v57  ;;  %v8873_v61 = vadd.f32 %v2118_v7, %v1637_v37  ;;  %v12395_v20 = vld [vmem:[#allocation33_spill] sm:$0xff]  ;;  %v12398_v55 = vld [vmem:[#allocation76_spill] sm:$0xff] }
 0x1ec   :  { %3026 = vmatprep.mubr.f32.mxu1 %v11750_v3  ;;  %v1652_v43 = vpop.f32.mrf.mxu0  ;;  %v2120_v33 = vpop.f32.mrf.mxu1  ;;  %v12397_v57 = vld [vmem:[#allocation29_spill] sm:$0xff] }
 0x1ed   :  { %12391 = vst [vmem:[#allocation23_spill] sm:$0xff] %v8873_v61  ;;  %2622 = vmatmul.mubr.f32.gmra.mxu0 %v12392_v53  ;;  %v1653_v12 = vadd.f32 %v1652_v43, %v12393_v4  ;;  %v8878_v9 = vadd.f32 %v2120_v33, %v1639_v24 }
 0x1ee   :  { %2627 = vmatprep.mubr.f32.mxu0 %v11750_v3  ;;  %v1654_v44 = vpop.f32.mrf.mxu0  ;;  %v2127_v60 = vpop.f32.mrf.mxu1 }
 0x1ef   :  { %12394 = vst [vmem:[#allocation73_spill] sm:$0xff] %v8878_v9  ;;  %3028 = vmatmul.mubr.f32.gmra.mxu1 %v12387_v36  ;;  %v1655_v48 = vadd.f32 %v1654_v44, %v12395_v20  ;;  %v8883_v7 = vadd.f32 %v2127_v60, %v1645_v18  ;;  %v12400_v36 = vld [vmem:[#allocation34_spill] sm:$0xff]  ;;  %v12403_v9 = vld [vmem:[#allocation77_spill] sm:$0xff] }
 0x1f0   :  { %3033 = vmatprep.mubr.f32.mxu1 %v11750_v3  ;;  %v1660_v37 = vpop.f32.mrf.mxu0  ;;  %v2129_v61 = vpop.f32.mrf.mxu1  ;;  %v12402_v20 = vld [vmem:[#allocation30_spill] sm:$0xff] }
 0x1f1   :  { %12396 = vst [vmem:[#allocation28_spill] sm:$0xff] %v8883_v7  ;;  %2629 = vmatmul.mubr.f32.gmra.mxu0 %v12397_v57  ;;  %v1661_v4 = vadd.f32 %v1660_v37, %v12398_v55  ;;  %v8888_v33 = vadd.f32 %v2129_v61, %v1647_v27 }
 0x1f2   :  { %2634 = vmatprep.mubr.f32.mxu0 %v11750_v3  ;;  %v1662_v24 = vpop.f32.mrf.mxu0  ;;  %v2136_v43 = vpop.f32.mrf.mxu1 }
 0x1f3   :  { %12399 = vst [vmem:[#allocation25_spill] sm:$0xff] %v8888_v33  ;;  %3035 = vmatmul.mubr.f32.gmra.mxu1 %v12392_v53  ;;  %v1663_v44 = vadd.f32 %v1662_v24, %v12400_v36  ;;  %v8893_v18 = vadd.f32 %v2136_v43, %v1653_v12  ;;  %v12405_v53 = vld [vmem:[#allocation36_spill] sm:$0xff]  ;;  %v12408_v33 = vld [vmem:[#allocation78_spill] sm:$0xff] }
 0x1f4   :  { %3040 = vmatprep.mubr.f32.mxu1 %v11750_v3  ;;  %v1668_v60 = vpop.f32.mrf.mxu0  ;;  %v2138_v7 = vpop.f32.mrf.mxu1  ;;  %v12407_v36 = vld [vmem:[#allocation32_spill] sm:$0xff] }
 0x1f5   :  { %12401 = vst [vmem:[#allocation74_spill] sm:$0xff] %v8893_v18  ;;  %2636 = vmatmul.mubr.f32.gmra.mxu0 %v12402_v20  ;;  %v1669_v55 = vadd.f32 %v1668_v60, %v12403_v9  ;;  %v8898_v27 = vadd.f32 %v2138_v7, %v1655_v48 }
 0x1f6   :  { %2641 = vmatprep.mubr.f32.mxu0 %v11750_v3  ;;  %v1670_v61 = vpop.f32.mrf.mxu0  ;;  %v2145_v37 = vpop.f32.mrf.mxu1 }
 0x1f7   :  { %12404 = vst [vmem:[#allocation31_spill] sm:$0xff] %v8898_v27  ;;  %3042 = vmatmul.mubr.f32.gmra.mxu1 %v12397_v57  ;;  %v1671_v24 = vadd.f32 %v1670_v61, %v12405_v53  ;;  %v8903_v12 = vadd.f32 %v2145_v37, %v1661_v4  ;;  %v12410_v57 = vld [vmem:[#allocation38_spill] sm:$0xff]  ;;  %v12412_v53 = vld [vmem:[#allocation35_spill] sm:$0xff] }
 0x1f8   :  { %3047 = vmatprep.mubr.f32.mxu1 %v11750_v3  ;;  %v1676_v43 = vpop.f32.mrf.mxu0  ;;  %v2147_v18 = vpop.f32.mrf.mxu1  ;;  %v12413_v27 = vld [vmem:[#allocation79_spill] sm:$0xff] }
 0x1f9   :  { %12406 = vst [vmem:[#allocation26_spill] sm:$0xff] %v8903_v12  ;;  %2643 = vmatmul.mubr.f32.gmra.mxu0 %v12407_v36  ;;  %v1677_v9 = vadd.f32 %v1676_v43, %v12408_v33  ;;  %v8908_v48 = vadd.f32 %v2147_v18, %v1663_v44 }
 0x1fa   :  { %2648 = vmatprep.mubr.f32.mxu0 %v11750_v3  ;;  %v1678_v7 = vpop.f32.mrf.mxu0  ;;  %v2154_v60 = vpop.f32.mrf.mxu1 }
 0x1fb   :  { %12409 = vst [vmem:[#allocation75_spill] sm:$0xff] %v8908_v48  ;;  %3049 = vmatmul.mubr.f32.gmra.mxu1 %v12402_v20  ;;  %v1679_v61 = vadd.f32 %v1678_v7, %v12410_v57  ;;  %v8913_v4 = vadd.f32 %v2154_v60, %v1669_v55  ;;  %v12415_v20 = vld [vmem:[#allocation40_spill] sm:$0xff]  ;;  %v12417_v57 = vld [vmem:[#allocation37_spill] sm:$0xff] }
 0x1fc   :  { %3054 = vmatprep.mubr.f32.mxu1 %v11750_v3  ;;  %v1684_v37 = vpop.f32.mrf.mxu0  ;;  %v2156_v12 = vpop.f32.mrf.mxu1  ;;  %v12418_v48 = vld [vmem:[#allocation80_spill] sm:$0xff] }
 0x1fd   :  { %12411 = vst [vmem:[#allocation33_spill] sm:$0xff] %v8913_v4  ;;  %2650 = vmatmul.mubr.f32.gmra.mxu0 %v12412_v53  ;;  %v1685_v33 = vadd.f32 %v1684_v37, %v12413_v27  ;;  %v8918_v44 = vadd.f32 %v2156_v12, %v1671_v24 }
 0x1fe   :  { %2655 = vmatprep.mubr.f32.mxu0 %v11750_v3  ;;  %v1686_v18 = vpop.f32.mrf.mxu0  ;;  %v2163_v43 = vpop.f32.mrf.mxu1 }
 0x1ff   :  { %12414 = vst [vmem:[#allocation29_spill] sm:$0xff] %v8918_v44  ;;  %3056 = vmatmul.mubr.f32.gmra.mxu1 %v12407_v36  ;;  %v1687_v7 = vadd.f32 %v1686_v18, %v12415_v20  ;;  %v8923_v55 = vadd.f32 %v2163_v43, %v1677_v9  ;;  %v12420_v36 = vld [vmem:[#allocation43_spill] sm:$0xff]  ;;  %v12423_v44 = vld [vmem:[#allocation81_spill] sm:$0xff] }
 0x200   :  { %3061 = vmatprep.mubr.f32.mxu1 %v11750_v3  ;;  %v1692_v60 = vpop.f32.mrf.mxu0  ;;  %v2165_v4 = vpop.f32.mrf.mxu1  ;;  %v12422_v20 = vld [vmem:[#allocation39_spill] sm:$0xff] }
 0x201   :  { %12416 = vst [vmem:[#allocation76_spill] sm:$0xff] %v8923_v55  ;;  %2657 = vmatmul.mubr.f32.gmra.mxu0 %v12417_v57  ;;  %v1693_v27 = vadd.f32 %v1692_v60, %v12418_v48  ;;  %v8928_v24 = vadd.f32 %v2165_v4, %v1679_v61 }
 0x202   :  { %2662 = vmatprep.mubr.f32.mxu0 %v11750_v3  ;;  %v1694_v12 = vpop.f32.mrf.mxu0  ;;  %v2172_v37 = vpop.f32.mrf.mxu1 }
 0x203   :  { %12419 = vst [vmem:[#allocation34_spill] sm:$0xff] %v8928_v24  ;;  %3063 = vmatmul.mubr.f32.gmra.mxu1 %v12412_v53  ;;  %v1695_v18 = vadd.f32 %v1694_v12, %v12420_v36  ;;  %v8933_v9 = vadd.f32 %v2172_v37, %v1685_v33  ;;  %v12425_v53 = vld [vmem:[#allocation45_spill] sm:$0xff]  ;;  %v12428_v24 = vld [vmem:[#allocation82_spill] sm:$0xff] }
 0x204   :  { %3068 = vmatprep.mubr.f32.mxu1 %v11750_v3  ;;  %v1700_v43 = vpop.f32.mrf.mxu0  ;;  %v2174_v55 = vpop.f32.mrf.mxu1  ;;  %v12427_v36 = vld [vmem:[#allocation41_spill] sm:$0xff] }
 0x205   :  { %12421 = vst [vmem:[#allocation30_spill] sm:$0xff] %v8933_v9  ;;  %2664 = vmatmul.mubr.f32.gmra.mxu0 %v12422_v20  ;;  %v1701_v48 = vadd.f32 %v1700_v43, %v12423_v44  ;;  %v8938_v61 = vadd.f32 %v2174_v55, %v1687_v7 }
 0x206   :  { %2669 = vmatprep.mubr.f32.mxu0 %v11750_v3  ;;  %v1702_v4 = vpop.f32.mrf.mxu0  ;;  %v2181_v60 = vpop.f32.mrf.mxu1 }
 0x207   :  { %12424 = vst [vmem:[#allocation77_spill] sm:$0xff] %v8938_v61  ;;  %3070 = vmatmul.mubr.f32.gmra.mxu1 %v12417_v57  ;;  %v1703_v12 = vadd.f32 %v1702_v4, %v12425_v53  ;;  %v8943_v33 = vadd.f32 %v2181_v60, %v1693_v27  ;;  %v12430_v57 = vld [vmem:[#allocation47_spill] sm:$0xff]  ;;  %v12432_v53 = vld [vmem:[#allocation42_spill] sm:$0xff] }
 0x208   :  { %3075 = vmatprep.mubr.f32.mxu1 %v11750_v3  ;;  %v1708_v37 = vpop.f32.mrf.mxu0  ;;  %v2183_v9 = vpop.f32.mrf.mxu1  ;;  %v12433_v61 = vld [vmem:[#allocation83_spill] sm:$0xff] }
 0x209   :  { %12426 = vst [vmem:[#allocation36_spill] sm:$0xff] %v8943_v33  ;;  %2671 = vmatmul.mubr.f32.gmra.mxu0 %v12427_v36  ;;  %v1709_v44 = vadd.f32 %v1708_v37, %v12428_v24  ;;  %v8948_v7 = vadd.f32 %v2183_v9, %v1695_v18 }
 0x20a   :  { %2676 = vmatprep.mubr.f32.mxu0 %v11750_v3  ;;  %v1710_v55 = vpop.f32.mrf.mxu0  ;;  %v2190_v43 = vpop.f32.mrf.mxu1 }
 0x20b   :  { %12429 = vst [vmem:[#allocation32_spill] sm:$0xff] %v8948_v7  ;;  %3077 = vmatmul.mubr.f32.gmra.mxu1 %v12422_v20  ;;  %v1711_v4 = vadd.f32 %v1710_v55, %v12430_v57  ;;  %v8953_v27 = vadd.f32 %v2190_v43, %v1701_v48  ;;  %v12435_v20 = vld [vmem:[#allocation49_spill] sm:$0xff]  ;;  %v12437_v57 = vld [vmem:[#allocation44_spill] sm:$0xff] }
 0x20c   :  { %3082 = vmatprep.mubr.f32.mxu1 %v11750_v3  ;;  %v1716_v60 = vpop.f32.mrf.mxu0  ;;  %v2192_v33 = vpop.f32.mrf.mxu1  ;;  %v12438_v7 = vld [vmem:[#allocation84_spill] sm:$0xff] }
 0x20d   :  { %12431 = vst [vmem:[#allocation78_spill] sm:$0xff] %v8953_v27  ;;  %2678 = vmatmul.mubr.f32.gmra.mxu0 %v12432_v53  ;;  %v1717_v24 = vadd.f32 %v1716_v60, %v12433_v61  ;;  %v8958_v18 = vadd.f32 %v2192_v33, %v1703_v12 }
 0x20e   :  { %2683 = vmatprep.mubr.f32.mxu0 %v11750_v3  ;;  %v1718_v9 = vpop.f32.mrf.mxu0  ;;  %v2199_v37 = vpop.f32.mrf.mxu1 }
 0x20f   :  { %12434 = vst [vmem:[#allocation38_spill] sm:$0xff] %v8958_v18  ;;  %3084 = vmatmul.mubr.f32.gmra.mxu1 %v12427_v36  ;;  %v1719_v55 = vadd.f32 %v1718_v9, %v12435_v20  ;;  %v8963_v48 = vadd.f32 %v2199_v37, %v1709_v44  ;;  %v12440_v36 = vld [vmem:[#allocation50_spill] sm:$0xff]  ;;  %v12443_v18 = vld [vmem:[#allocation85_spill] sm:$0xff] }
 0x210   :  { %3089 = vmatprep.mubr.f32.mxu1 %v11750_v3  ;;  %v1724_v43 = vpop.f32.mrf.mxu0  ;;  %v2201_v27 = vpop.f32.mrf.mxu1  ;;  %v12442_v20 = vld [vmem:[#allocation46_spill] sm:$0xff] }
 0x211   :  { %12436 = vst [vmem:[#allocation35_spill] sm:$0xff] %v8963_v48  ;;  %2685 = vmatmul.mubr.f32.gmra.mxu0 %v12437_v57  ;;  %v1725_v61 = vadd.f32 %v1724_v43, %v12438_v7  ;;  %v8968_v12 = vadd.f32 %v2201_v27, %v1711_v4 }
 0x212   :  { %2690 = vmatprep.mubr.f32.mxu0 %v11750_v3  ;;  %v1726_v33 = vpop.f32.mrf.mxu0  ;;  %v2208_v60 = vpop.f32.mrf.mxu1 }
 0x213   :  { %12439 = vst [vmem:[#allocation79_spill] sm:$0xff] %v8968_v12  ;;  %3091 = vmatmul.mubr.f32.gmra.mxu1 %v12432_v53  ;;  %v1727_v9 = vadd.f32 %v1726_v33, %v12440_v36  ;;  %v8973_v44 = vadd.f32 %v2208_v60, %v1717_v24  ;;  %v12445_v53 = vld [vmem:[#allocation52_spill] sm:$0xff]  ;;  %v12448_v12 = vld [vmem:[#allocation86_spill] sm:$0xff] }
 0x214   :  { %3096 = vmatprep.mubr.f32.mxu1 %v11750_v3  ;;  %v1732_v37 = vpop.f32.mrf.mxu0  ;;  %v2210_v48 = vpop.f32.mrf.mxu1  ;;  %v12447_v36 = vld [vmem:[#allocation48_spill] sm:$0xff] }
 0x215   :  { %12441 = vst [vmem:[#allocation40_spill] sm:$0xff] %v8973_v44  ;;  %2692 = vmatmul.mubr.f32.gmra.mxu0 %v12442_v20  ;;  %v1733_v7 = vadd.f32 %v1732_v37, %v12443_v18  ;;  %v8978_v4 = vadd.f32 %v2210_v48, %v1719_v55 }
 0x216   :  { %2697 = vmatprep.mubr.f32.mxu0 %v11750_v3  ;;  %v1734_v27 = vpop.f32.mrf.mxu0  ;;  %v2217_v43 = vpop.f32.mrf.mxu1 }
 0x217   :  { %12444 = vst [vmem:[#allocation37_spill] sm:$0xff] %v8978_v4  ;;  %3098 = vmatmul.mubr.f32.gmra.mxu1 %v12437_v57  ;;  %v1735_v33 = vadd.f32 %v1734_v27, %v12445_v53  ;;  %v8983_v24 = vadd.f32 %v2217_v43, %v1725_v61  ;;  %v12450_v57 = vld [vmem:[#allocation54_spill] sm:$0xff]  ;;  %v12452_v53 = vld [vmem:[#allocation51_spill] sm:$0xff] }
 0x218   :  { %3103 = vmatprep.mubr.f32.mxu1 %v11750_v3  ;;  %v1740_v60 = vpop.f32.mrf.mxu0  ;;  %v2219_v44 = vpop.f32.mrf.mxu1  ;;  %v12453_v4 = vld [vmem:[#allocation87_spill] sm:$0xff] }
 0x219   :  { %12446 = vst [vmem:[#allocation80_spill] sm:$0xff] %v8983_v24  ;;  %2699 = vmatmul.mubr.f32.gmra.mxu0 %v12447_v36  ;;  %v1741_v18 = vadd.f32 %v1740_v60, %v12448_v12  ;;  %v8988_v55 = vadd.f32 %v2219_v44, %v1727_v9 }
 0x21a   :  { %2704 = vmatprep.mubr.f32.mxu0 %v11750_v3  ;;  %v1742_v48 = vpop.f32.mrf.mxu0  ;;  %v2226_v37 = vpop.f32.mrf.mxu1 }
 0x21b   :  { %12449 = vst [vmem:[#allocation43_spill] sm:$0xff] %v8988_v55  ;;  %3105 = vmatmul.mubr.f32.gmra.mxu1 %v12442_v20  ;;  %v1743_v27 = vadd.f32 %v1742_v48, %v12450_v57  ;;  %v8993_v61 = vadd.f32 %v2226_v37, %v1733_v7  ;;  %v12455_v20 = vld [vmem:[#allocation56_spill] sm:$0xff]  ;;  %v12457_v57 = vld [vmem:[#allocation53_spill] sm:$0xff] }
 0x21c   :  { %3110 = vmatprep.mubr.f32.mxu1 %v11750_v3  ;;  %v1748_v43 = vpop.f32.mrf.mxu0  ;;  %v2228_v24 = vpop.f32.mrf.mxu1  ;;  %v12458_v55 = vld [vmem:[#allocation88_spill] sm:$0xff] }
 0x21d   :  { %12451 = vst [vmem:[#allocation39_spill] sm:$0xff] %v8993_v61  ;;  %2706 = vmatmul.mubr.f32.gmra.mxu0 %v12452_v53  ;;  %v1749_v12 = vadd.f32 %v1748_v43, %v12453_v4  ;;  %v8998_v9 = vadd.f32 %v2228_v24, %v1735_v33 }
 0x21e   :  { %2711 = vmatprep.mubr.f32.mxu0 %v11750_v3  ;;  %v1750_v44 = vpop.f32.mrf.mxu0  ;;  %v2235_v60 = vpop.f32.mrf.mxu1 }
 0x21f   :  { %12454 = vst [vmem:[#allocation81_spill] sm:$0xff] %v8998_v9  ;;  %3112 = vmatmul.mubr.f32.gmra.mxu1 %v12447_v36  ;;  %v1751_v48 = vadd.f32 %v1750_v44, %v12455_v20  ;;  %v9003_v7 = vadd.f32 %v2235_v60, %v1741_v18  ;;  %v12460_v36 = vld [vmem:[#allocation59_spill] sm:$0xff]  ;;  %v12463_v9 = vld [vmem:[#allocation89_spill] sm:$0xff] }
 0x220   :  { %3117 = vmatprep.mubr.f32.mxu1 %v11750_v3  ;;  %v1756_v37 = vpop.f32.mrf.mxu0  ;;  %v2237_v61 = vpop.f32.mrf.mxu1  ;;  %v12462_v20 = vld [vmem:[#allocation55_spill] sm:$0xff] }
 0x221   :  { %12456 = vst [vmem:[#allocation45_spill] sm:$0xff] %v9003_v7  ;;  %2713 = vmatmul.mubr.f32.gmra.mxu0 %v12457_v57  ;;  %v1757_v4 = vadd.f32 %v1756_v37, %v12458_v55  ;;  %v9008_v33 = vadd.f32 %v2237_v61, %v1743_v27 }
 0x222   :  { %2718 = vmatprep.mubr.f32.mxu0 %v11750_v3  ;;  %v1758_v24 = vpop.f32.mrf.mxu0  ;;  %v2244_v43 = vpop.f32.mrf.mxu1 }
 0x223   :  { %12459 = vst [vmem:[#allocation41_spill] sm:$0xff] %v9008_v33  ;;  %3119 = vmatmul.mubr.f32.gmra.mxu1 %v12452_v53  ;;  %v1759_v44 = vadd.f32 %v1758_v24, %v12460_v36  ;;  %v9013_v18 = vadd.f32 %v2244_v43, %v1749_v12  ;;  %v12465_v53 = vld [vmem:[#allocation61_spill] sm:$0xff]  ;;  %v12468_v33 = vld [vmem:[#allocation90_spill] sm:$0xff] }
 0x224   :  { %3124 = vmatprep.mubr.f32.mxu1 %v11750_v3  ;;  %v1764_v60 = vpop.f32.mrf.mxu0  ;;  %v2246_v7 = vpop.f32.mrf.mxu1  ;;  %v12467_v36 = vld [vmem:[#allocation57_spill] sm:$0xff] }
 0x225   :  { %12461 = vst [vmem:[#allocation82_spill] sm:$0xff] %v9013_v18  ;;  %2720 = vmatmul.mubr.f32.gmra.mxu0 %v12462_v20  ;;  %v1765_v55 = vadd.f32 %v1764_v60, %v12463_v9  ;;  %v9018_v27 = vadd.f32 %v2246_v7, %v1751_v48 }
 0x226   :  { %2725 = vmatprep.mubr.f32.mxu0 %v11750_v3  ;;  %v1766_v61 = vpop.f32.mrf.mxu0  ;;  %v2253_v37 = vpop.f32.mrf.mxu1 }
 0x227   :  { %12464 = vst [vmem:[#allocation47_spill] sm:$0xff] %v9018_v27  ;;  %3126 = vmatmul.mubr.f32.gmra.mxu1 %v12457_v57  ;;  %v1767_v24 = vadd.f32 %v1766_v61, %v12465_v53  ;;  %v9023_v12 = vadd.f32 %v2253_v37, %v1757_v4  ;;  %v12470_v57 = vld [vmem:[#allocation63_spill] sm:$0xff]  ;;  %v12472_v53 = vld [vmem:[#allocation58_spill] sm:$0xff] }
 0x228   :  { %3131 = vmatprep.mubr.f32.mxu1 %v11750_v3  ;;  %v1772_v43 = vpop.f32.mrf.mxu0  ;;  %v2255_v18 = vpop.f32.mrf.mxu1  ;;  %v12473_v27 = vld [vmem:[#allocation91_spill] sm:$0xff] }
 0x229   :  { %12466 = vst [vmem:[#allocation42_spill] sm:$0xff] %v9023_v12  ;;  %2727 = vmatmul.mubr.f32.gmra.mxu0 %v12467_v36  ;;  %v1773_v9 = vadd.f32 %v1772_v43, %v12468_v33  ;;  %v9028_v48 = vadd.f32 %v2255_v18, %v1759_v44 }
 0x22a   :  { %2732 = vmatprep.mubr.f32.mxu0 %v11750_v3  ;;  %v1774_v7 = vpop.f32.mrf.mxu0  ;;  %v2262_v60 = vpop.f32.mrf.mxu1 }
 0x22b   :  { %12469 = vst [vmem:[#allocation83_spill] sm:$0xff] %v9028_v48  ;;  %3133 = vmatmul.mubr.f32.gmra.mxu1 %v12462_v20  ;;  %v1775_v61 = vadd.f32 %v1774_v7, %v12470_v57  ;;  %v9033_v4 = vadd.f32 %v2262_v60, %v1765_v55  ;;  %v12475_v20 = vld [vmem:[#allocation65_spill] sm:$0xff]  ;;  %v12477_v57 = vld [vmem:[#allocation60_spill] sm:$0xff] }
 0x22c   :  { %3138 = vmatprep.mubr.f32.mxu1 %v11750_v3  ;;  %v1780_v37 = vpop.f32.mrf.mxu0  ;;  %v2264_v12 = vpop.f32.mrf.mxu1  ;;  %v12478_v48 = vld [vmem:[#allocation92_spill] sm:$0xff] }
 0x22d   :  { %12471 = vst [vmem:[#allocation49_spill] sm:$0xff] %v9033_v4  ;;  %2734 = vmatmul.mubr.f32.gmra.mxu0 %v12472_v53  ;;  %v1781_v33 = vadd.f32 %v1780_v37, %v12473_v27  ;;  %v9038_v44 = vadd.f32 %v2264_v12, %v1767_v24 }
 0x22e   :  { %2739 = vmatprep.mubr.f32.mxu0 %v11750_v3  ;;  %v1782_v18 = vpop.f32.mrf.mxu0  ;;  %v2271_v43 = vpop.f32.mrf.mxu1 }
 0x22f   :  { %12474 = vst [vmem:[#allocation44_spill] sm:$0xff] %v9038_v44  ;;  %3140 = vmatmul.mubr.f32.gmra.mxu1 %v12467_v36  ;;  %v1783_v7 = vadd.f32 %v1782_v18, %v12475_v20  ;;  %v9043_v55 = vadd.f32 %v2271_v43, %v1773_v9  ;;  %v12480_v36 = vld [vmem:[#allocation66_spill] sm:$0xff]  ;;  %v12483_v44 = vld [vmem:[#allocation93_spill] sm:$0xff] }
 0x230   :  { %3145 = vmatprep.mubr.f32.mxu1 %v11750_v3  ;;  %v1788_v60 = vpop.f32.mrf.mxu0  ;;  %v2273_v4 = vpop.f32.mrf.mxu1  ;;  %v12482_v20 = vld [vmem:[#allocation62_spill] sm:$0xff] }
 0x231   :  { %12476 = vst [vmem:[#allocation84_spill] sm:$0xff] %v9043_v55  ;;  %2741 = vmatmul.mubr.f32.gmra.mxu0 %v12477_v57  ;;  %v1789_v27 = vadd.f32 %v1788_v60, %v12478_v48  ;;  %v9048_v24 = vadd.f32 %v2273_v4, %v1775_v61 }
 0x232   :  { %2746 = vmatprep.mubr.f32.mxu0 %v11750_v3  ;;  %v1790_v12 = vpop.f32.mrf.mxu0  ;;  %v2280_v37 = vpop.f32.mrf.mxu1 }
 0x233   :  { %12479 = vst [vmem:[#allocation50_spill] sm:$0xff] %v9048_v24  ;;  %3147 = vmatmul.mubr.f32.gmra.mxu1 %v12472_v53  ;;  %v1791_v18 = vadd.f32 %v1790_v12, %v12480_v36  ;;  %v9053_v9 = vadd.f32 %v2280_v37, %v1781_v33  ;;  %v12485_v53 = vld [vmem:[#allocation94_spill] sm:$0xff]  ;;  %v12487_v36 = vld [vmem:[#allocation64_spill] sm:$0xff]  ;;  %v12488_v24 = vld [vmem:[#allocation95_spill] sm:$0xff] }
 0x234   :  { %3152 = vmatprep.mubr.f32.mxu1 %v11750_v3  ;;  %v1796_v43 = vpop.f32.mrf.mxu0  ;;  %v2282_v55 = vpop.f32.mrf.mxu1 }
 0x235   :  { %12481 = vst [vmem:[#allocation46_spill] sm:$0xff] %v9053_v9  ;;  %2748 = vmatmul.mubr.f32.gmra.mxu0 %v12482_v20  ;;  %v1797_v48 = vadd.f32 %v1796_v43, %v12483_v44  ;;  %v9058_v61 = vadd.f32 %v2282_v55, %v1783_v7 }
 0x236   :  { %2753 = vmatprep.mubr.f32.mxu0 %v11750_v3  ;;  %v1798_v4 = vpop.f32.mrf.mxu0  ;;  %v2289_v60 = vpop.f32.mrf.mxu1 }
 0x237   :  { %12484 = vst [vmem:[#allocation85_spill] sm:$0xff] %v9058_v61  ;;  %3154 = vmatmul.mubr.f32.gmra.mxu1 %v12477_v57  ;;  %v1799_v12 = vadd.f32 %v1798_v4, %v12485_v53  ;;  %v9063_v33 = vadd.f32 %v2289_v60, %v1789_v27  ;;  %v12490_v57 = vld [vmem:[#allocation96_spill] sm:$0xff]  ;;  %v12492_v53 = vld [vmem:[#allocation67_spill] sm:$0xff]  ;;  %v12493_v61 = vld [vmem:[#allocation97_spill] sm:$0xff] }
 0x238   :  { %3159 = vmatprep.mubr.f32.mxu1 %v11750_v3  ;;  %v1804_v37 = vpop.f32.mrf.mxu0  ;;  %v2291_v9 = vpop.f32.mrf.mxu1 }
 0x239   :  { %12486 = vst [vmem:[#allocation52_spill] sm:$0xff] %v9063_v33  ;;  %2755 = vmatmul.mubr.f32.gmra.mxu0 %v12487_v36  ;;  %v1805_v44 = vadd.f32 %v1804_v37, %v12488_v24  ;;  %v9068_v7 = vadd.f32 %v2291_v9, %v1791_v18 }
 0x23a   :  { %2760 = vmatprep.mubr.f32.mxu0 %v11750_v3  ;;  %v1806_v55 = vpop.f32.mrf.mxu0  ;;  %v2298_v43 = vpop.f32.mrf.mxu1 }
 0x23b   :  { %12489 = vst [vmem:[#allocation48_spill] sm:$0xff] %v9068_v7  ;;  %3161 = vmatmul.mubr.f32.gmra.mxu1 %v12482_v20  ;;  %v1807_v4 = vadd.f32 %v1806_v55, %v12490_v57  ;;  %v9073_v27 = vadd.f32 %v2298_v43, %v1797_v48  ;;  %v12495_v20 = vld [vmem:[#allocation98_spill] sm:$0xff]  ;;  %v12497_v57 = vld [vmem:[#allocation68_spill] sm:$0xff]  ;;  %v12498_v7 = vld [vmem:[#allocation99_spill] sm:$0xff] }
 0x23c   :  { %3166 = vmatprep.mubr.f32.mxu1 %v11750_v3  ;;  %v1812_v60 = vpop.f32.mrf.mxu0  ;;  %v2300_v33 = vpop.f32.mrf.mxu1 }
 0x23d   :  { %12491 = vst [vmem:[#allocation86_spill] sm:$0xff] %v9073_v27  ;;  %2762 = vmatmul.mubr.f32.gmra.mxu0 %v12492_v53  ;;  %v1813_v24 = vadd.f32 %v1812_v60, %v12493_v61  ;;  %v9078_v18 = vadd.f32 %v2300_v33, %v1799_v12 }
 0x23e   :  { %2767 = vmatprep.mubr.f32.mxu0 %v11750_v3  ;;  %v1814_v9 = vpop.f32.mrf.mxu0  ;;  %v2307_v37 = vpop.f32.mrf.mxu1 }
 0x23f   :  { %12494 = vst [vmem:[#allocation54_spill] sm:$0xff] %v9078_v18  ;;  %3168 = vmatmul.mubr.f32.gmra.mxu1 %v12487_v36  ;;  %v1815_v55 = vadd.f32 %v1814_v9, %v12495_v20  ;;  %v9083_v48 = vadd.f32 %v2307_v37, %v1805_v44  ;;  %v12500_v36 = vld [vmem:[#allocation101_spill] sm:$0xff]  ;;  %v12503_v18 = vld [vmem:[#allocation103_spill] sm:$0xff] }
 0x240   :  { %3173 = vmatprep.mubr.f32.mxu1 %v11750_v3  ;;  %v1820_v43 = vpop.f32.mrf.mxu0  ;;  %v2309_v27 = vpop.f32.mrf.mxu1  ;;  %v12502_v20 = vld [vmem:[#allocation69_spill] sm:$0xff] }
 0x241   :  { %12496 = vst [vmem:[#allocation51_spill] sm:$0xff] %v9083_v48  ;;  %2769 = vmatmul.mubr.f32.gmra.mxu0 %v12497_v57  ;;  %v1821_v61 = vadd.f32 %v1820_v43, %v12498_v7  ;;  %v9088_v12 = vadd.f32 %v2309_v27, %v1807_v4 }
 0x242   :  { %2774 = vmatprep.mubr.f32.mxu0 %v11750_v3  ;;  %v1822_v33 = vpop.f32.mrf.mxu0  ;;  %v2316_v60 = vpop.f32.mrf.mxu1 }
 0x243   :  { %12499 = vst [vmem:[#allocation87_spill] sm:$0xff] %v9088_v12  ;;  %3175 = vmatmul.mubr.f32.gmra.mxu1 %v12492_v53  ;;  %v1823_v9 = vadd.f32 %v1822_v33, %v12500_v36  ;;  %v9093_v44 = vadd.f32 %v2316_v60, %v1813_v24  ;;  %v12505_v53 = vld [vmem:[#allocation106_spill] sm:$0xff]  ;;  %v12508_v12 = vld [vmem:[#allocation109_spill] sm:$0xff] }
 0x244   :  { %3180 = vmatprep.mubr.f32.mxu1 %v11750_v3  ;;  %v1828_v37 = vpop.f32.mrf.mxu0  ;;  %v2318_v48 = vpop.f32.mrf.mxu1  ;;  %v12507_v36 = vld [vmem:[#allocation70_spill] sm:$0xff] }
 0x245   :  { %12501 = vst [vmem:[#allocation56_spill] sm:$0xff] %v9093_v44  ;;  %2776 = vmatmul.mubr.f32.gmra.mxu0 %v12502_v20  ;;  %v1829_v7 = vadd.f32 %v1828_v37, %v12503_v18  ;;  %v9098_v4 = vadd.f32 %v2318_v48, %v1815_v55 }
 0x246   :  { %2781 = vmatprep.mubr.f32.mxu0 %v11750_v3  ;;  %v1830_v27 = vpop.f32.mrf.mxu0  ;;  %v2325_v43 = vpop.f32.mrf.mxu1 }
 0x247   :  { %12504 = vst [vmem:[#allocation53_spill] sm:$0xff] %v9098_v4  ;;  %3182 = vmatmul.mubr.f32.gmra.mxu1 %v12497_v57  ;;  %v1831_v33 = vadd.f32 %v1830_v27, %v12505_v53  ;;  %v9103_v24 = vadd.f32 %v2325_v43, %v1821_v61  ;;  %v12509_v57 = vld [vmem:[#allocation111_spill] sm:$0xff]  ;;  %v12512_v4 = vld [vmem:[#allocation114_spill] sm:$0xff] }
 0x248   :  { %3187 = vmatprep.mubr.f32.mxu1 %v11750_v3  ;;  %v1836_v60 = vpop.f32.mrf.mxu0  ;;  %v2327_v44 = vpop.f32.mrf.mxu1  ;;  %v12511_v53 = vld [vmem:[#allocation71_spill] sm:$0xff] }
 0x249   :  { %12506 = vst [vmem:[#allocation88_spill] sm:$0xff] %v9103_v24  ;;  %2783 = vmatmul.mubr.f32.gmra.mxu0 %v12507_v36  ;;  %v1837_v18 = vadd.f32 %v1836_v60, %v12508_v12  ;;  %v9108_v55 = vadd.f32 %v2327_v44, %v1823_v9 }
 0x24a   :  { %2788 = vmatprep.mubr.f32.mxu0 %v11750_v3  ;;  %v1838_v48 = vpop.f32.mrf.mxu0 }
 0x24b   :  { %v2334_v37 = vpop.f32.mrf.mxu1  ;;  %3189 = vmatmul.mubr.f32.gmra.mxu1 %v12502_v20  ;;  %v1839_v27 = vadd.f32 %v1838_v48, %v12509_v57 }
 0x24c   :  { %v9113_v61 = vadd.f32 %v2334_v37, %v1829_v7  ;;  %3194 = vmatprep.mubr.f32.mxu1 %v11750_v3  ;;  %v1844_v43 = vpop.f32.mrf.mxu0  ;;  %v12515_v37 = vld [vmem:[#allocation72_spill] sm:$0xff] }
 0x24d   :  { %2790 = vmatmul.mubr.f32.gmra.mxu0 %v12511_v53  ;;  %v2336_v24 = vpop.f32.mrf.mxu1  ;;  %v1845_v12 = vadd.f32 %v1844_v43, %v12512_v4 }
 0x24e   :  { %12510 = vst [vmem:[#allocation59_spill] sm:$0xff] %v9113_v61  ;;  %v9118_v9 = vadd.f32 %v2336_v24, %v1831_v33  ;;  %2795 = vmatprep.mubr.f32.mxu0 %v11750_v3  ;;  %v1846_v44 = vpop.f32.mrf.mxu0 }
 0x24f   :  { %v2343_v60 = vpop.f32.mrf.mxu1  ;;  %3196 = vmatmul.mubr.f32.gmra.mxu1 %v12507_v36  ;;  %v1847_v20 = vadd.f32 %v1846_v44, %v8433_v14 }
 0x250   :  { %12513 = vst [vmem:[#allocation55_spill] sm:$0xff] %v9118_v9  ;;  %v9123_v7 = vadd.f32 %v2343_v60, %v1837_v18  ;;  %3201 = vmatprep.mubr.f32.mxu1 %v11750_v3  ;;  %v1852_v48 = vpop.f32.mrf.mxu0  ;;  %v12517_v9 = vld [vmem:[#allocation3_spill] sm:$0xff] }
 0x251   :  { %2797 = vmatmul.mubr.f32.gmra.mxu0 %v12515_v37  ;;  %v2345_v57 = vpop.f32.mrf.mxu1  ;;  %v1853_v4 = vadd.f32 %v1852_v48, %v8450_v31 }
 0x252   :  { %12514 = vst [vmem:[#allocation89_spill] sm:$0xff] %v9123_v7  ;;  %v9128_v33 = vadd.f32 %v2345_v57, %v1839_v27  ;;  %v1854_v24 = vpop.f32.mrf.mxu0 }
 0x253   :  { %v2352_v43 = vpop.f32.mrf.mxu1  ;;  %3203 = vmatmul.mubr.f32.gmra.mxu1 %v12511_v53  ;;  %v1855_v36 = vadd.f32 %v1854_v24, %v12517_v9  ;;  %v17_v9 = vld [vmem:[%s11480_s0] sm:$0xff] }
 0x254   :  { %12516 = vst [vmem:[#allocation61_spill] sm:$0xff] %v9128_v33  ;;  %v9132_v61 = vadd.f32 %v2352_v43, %v1845_v12  ;;  %3208 = vmatprep.mubr.f32.mxu1 %v11750_v3  ;;  %v2469_v14 = vpop.f32.mrf.mxu0 }
 0x255   :  { %v2354_v18 = vpop.f32.mrf.mxu1  ;;  %v2470_v53 = vadd.f32 %v2469_v14, %v8477_v15 }
 0x256   :  { %12518 = vst [vmem:[#allocation57_spill] sm:$0xff] %v9132_v61  ;;  %v9135_v44 = vadd.f32 %v2354_v18, %v1847_v20  ;;  %v2471_v60 = vpop.f32.mrf.mxu0 }
 0x257   :  { %v2361_v7 = vpop.f32.mrf.mxu1  ;;  %3210 = vmatmul.mubr.f32.gmra.mxu1 %v12515_v37  ;;  %v2472_v20 = vadd.f32 %v2471_v60, %v8488_v63 }
 0x258   :  { %12519 = vst [vmem:[#allocation90_spill] sm:$0xff] %v9135_v44  ;;  %v9138_v31 = vadd.f32 %v2361_v7, %v1853_v4  ;;  %v2476_v27 = vpop.f32.mrf.mxu0  ;;  %v18_v7 = vld [vmem:[%s11480_s0 + $0x8] sm:$0xff] }
 0x259   :  { %v2363_v48 = vpop.f32.mrf.mxu1  ;;  %v2477_v4 = vadd.f32 %v2476_v27, %v8498_v2 }
 0x25a   :  { %12520 = vst [vmem:[#allocation63_spill] sm:$0xff] %v9138_v31  ;;  %v9141_v57 = vadd.f32 %v2363_v48, %v1855_v36  ;;  %v2478_v12 = vpop.f32.mrf.mxu0  ;;  %v19_v48 = vld [vmem:[%s11480_s0 + $0x10] sm:$0xff] }
 0x25b   :  { %v2882_v24 = vpop.f32.mrf.mxu1 }
 0x25c   :  { %12521 = vst [vmem:[#allocation58_spill] sm:$0xff] %v9141_v57  ;;  %v2883_v43 = vadd.f32 %v2882_v24, %v2470_v53  ;;  %v2479_v53 = vadd.f32 %v2478_v12, %v8512_v21  ;;  %v21_v21 = vld [vmem:[%s11480_s0 + $0x20] sm:$0xff] }
 0x25d   :  { %v2483_v18 = vpop.f32.mrf.mxu0  ;;  %v2884_v37 = vpop.f32.mrf.mxu1 }
 0x25e   :  { %v3216_v15 = vmul.f32 %v2883_v43, %v17_v9  ;;  %v2885_v36 = vadd.f32 %v2884_v37, %v2472_v20  ;;  %v2484_v44 = vadd.f32 %v2483_v18, %v8524_v19  ;;  %v20_v20 = vld [vmem:[%s11480_s0 + $0x18] sm:$0xff] }
 0x25f   :  { %v2485_v14 = vpop.f32.mrf.mxu0  ;;  %v2889_v3 = vpop.f32.mrf.mxu1 }
 0x260   :  { %v9154_v57 = vand.u32 4294901760, %v3216_v15  ;;  %v3217_v63 = vmul.f32 %v2885_v36, %v18_v7  ;;  %v2890_v60 = vadd.f32 %v2889_v3, %v2477_v4  ;;  %v2486_v4 = vadd.f32 %v2485_v14, %v8537_v10 }
 0x261   :  { %v2490_v24 = vpop.f32.mrf.mxu0  ;;  %v2891_v31 = vpop.f32.mrf.mxu1 }
 0x262   :  { %12522 = vst [vmem:[#allocation91_spill] sm:$0xff] %v9154_v57  ;;  %v9159_v2 = vsub.f32 %v3216_v15, %v9154_v57  ;;  %v3332_v27 = vsel %vm3330_vm1, %v3217_v63, 0  ;;  %v3218_v9 = vmul.f32 %v2890_v60, %v19_v48  ;;  %v2892_v3 = vadd.f32 %v2891_v31, %v2479_v53 }
 0x263   :  { %v9165_v43 = vand.u32 4294901760, %v3332_v27  ;;  %v2492_v7 = vpop.f32.mrf.mxu0  ;;  %v2896_v12 = vpop.f32.mrf.mxu1  ;;  %v2491_v31 = vadd.f32 %v2490_v24, %v8549_v5  ;;  %v12527_v24 = vld [vmem:[#allocation100_spill] sm:$0xff]  ;;  %v24_v5 = vld [vmem:[%s11480_s0 + $0x38] sm:$0xff] }
 0x264   :  { %12523 = vst [vmem:[#allocation65_spill] sm:$0xff] %v9159_v2  ;;  %v11752_v19 = vand.u32 4294901760, %v9159_v2  ;;  %v9171_v18 = vand.u32 4294901760, %v3218_v9  ;;  %v2897_v37 = vadd.f32 %v2896_v12, %v2484_v44  ;;  %v3219_v36 = vmul.f32 %v2892_v3, %v20_v20  ;;  %v22_v44 = vld [vmem:[%s11480_s0 + $0x28] sm:$0xff] }
 0x265   :  { %12524 = vst [vmem:[#allocation60_spill] sm:$0xff] %v9165_v43  ;;  %v9175_v15 = vsub.f32 %v3332_v27, %v9165_v43  ;;  %v2497_v48 = vpop.f32.mrf.mxu0  ;;  %v2898_v63 = vpop.f32.mrf.mxu1  ;;  %4433 = vmatprep.mubr.f32.mxu1 %v9165_v43 }
 0x266   :  { %12525 = vst [vmem:[#allocation92_spill] sm:$0xff] %v9171_v18  ;;  %v9180_v60 = vsub.f32 %v3218_v9, %v9171_v18  ;;  %v3220_v53 = vmul.f32 %v2897_v37, %v21_v21  ;;  %4435 = vmatmul.mubr.f32.vlgmr.msra.gmra.mxu1 %v9154_v57  ;;  %v3566_v10 = vsub.f32 %v9159_v2, %v11752_v19  ;;  %v3335_v14 = vsel %vm3330_vm1, %v3219_v36, 0  ;;  %v23_v37 = vld [vmem:[%s11480_s0 + $0x30] sm:$0xff] }
 0x267   :  { %v2499_v27 = vpop.f32.mrf.mxu0  ;;  %v2899_v20 = vadd.f32 %v2898_v63, %v2486_v4  ;;  %v2903_v3 = vpop.f32.mrf.mxu1  ;;  %5304 = vmatpush1.msra.mxu1 %v12527_v24  ;;  %v2493_v9 = vadd.f32 %v2492_v7, %v8562_v56  ;;  %v9193_v21 = vand.u32 4294901760, %v3335_v14  ;;  %v12530_v19 = vmov 0.0   ;;  %v12532_v24 = vld [vmem:[#allocation102_spill] sm:$0xff] }
 0x268   :  { %12526 = vst [vmem:[#allocation66_spill] sm:$0xff] %v9180_v60  ;;  %v9195_v12 = vand.u32 4294901760, %v3220_v53  ;;  %5305 = vmatprep.subr.mxu1 %v12530_v19  ;;  %v2904_v57 = vadd.f32 %v2903_v3, %v2491_v31  ;;  %v12531_v7 = vand.u32 4294901760, %v9175_v15  ;;  %v2498_v61 = vadd.f32 %v2497_v48, %v8575_v52 }
 0x269   :  { %12528 = vst [vmem:[#allocation62_spill] sm:$0xff] %v9193_v21  ;;  %v3221_v4 = vmul.f32 %v2899_v20, %v22_v44  ;;  %v2504_v63 = vpop.f32.mrf.mxu0  ;;  %v2905_v56 = vpop.f32.mrf.mxu1  ;;  %5307 = vmatpush1.msra.mxu1 %v12532_v24  ;;  %v9210_v2 = vsub.f32 %v3335_v14, %v9193_v21  ;;  %4440 = vmatprep.mubr.f32.mxu1 %v9193_v21  ;;  %v3567_v20 = vand.u32 4294901760, %v3566_v10  ;;  %v25_v10 = vld [vmem:[%s11480_s0 + $0x40] sm:$0xff] }
 0x26a   :  { %12529 = vst [vmem:[#allocation93_spill] sm:$0xff] %v9195_v12  ;;  %v3560_v43 = vsub.f32 %v9175_v15, %v12531_v7  ;;  %v9214_v44 = vsub.f32 %v3220_v53, %v9195_v12  ;;  %v2906_v31 = vadd.f32 %v2905_v56, %v2493_v9  ;;  %v3222_v36 = vmul.f32 %v2904_v57, %v23_v37  ;;  %v12534_v9 = vld [vmem:[#allocation105_spill] sm:$0xff] }
 0x26b   :  { %v3338_v3 = vsel %vm3330_vm1, %v3221_v4, 0  ;;  %v2506_v33 = vpop.f32.mrf.mxu0  ;;  %4442 = vmatmul.mubr.f32.gmra.mxu1 %v9171_v18  ;;  %v2910_v7 = vpop.f32.mrf.mxu1  ;;  %5308 = vmatprep.subr.mxu1 %v12530_v19  ;;  %v2500_v14 = vadd.f32 %v2499_v27, %v8587_v8  ;;  %v2505_v48 = vadd.f32 %v2504_v63, %v8601_v23  ;;  %v12536_v23 = vand.u32 4294901760, %v9180_v60  ;;  %v12539_v63 = vld [vmem:[#allocation104_spill] sm:$0xff] }
 0x26c   :  { %v3561_v24 = vand.u32 4294901760, %v3560_v43  ;;  %v9221_v52 = vand.u32 4294901760, %v3338_v3  ;;  %v3223_v53 = vmul.f32 %v2906_v31, %v24_v5  ;;  %5310 = vmatpush1.msra.mxu1 %v12534_v9  ;;  %v9228_v57 = vand.u32 4294901760, %v3222_v36  ;;  %v26_v43 = vld [vmem:[%s11480_s0 + $0x48] sm:$0xff] }
 0x26d   :  { %v2511_v37 = vpop.f32.mrf.mxu0  ;;  %v2911_v4 = vadd.f32 %v2910_v7, %v2498_v61  ;;  %v2912_v8 = vpop.f32.mrf.mxu1  ;;  %v3581_v5 = vsub.f32 %v9180_v60, %v12536_v23  ;;  %5311 = vmatprep.subr.mxu1 %v12530_v19  ;;  %v27_v23 = vld [vmem:[%s11480_s0 + $0x50] sm:$0xff] }
 0x26e   :  { %12533 = vst [vmem:[#allocation94_spill] sm:$0xff] %v9221_v52  ;;  %12535 = vst [vmem:[#allocation64_spill] sm:$0xff] %v9228_v57  ;;  %3562 = vmatprep.mubr.f32.mxu0 %v3561_v24  ;;  %v9240_v56 = vsub.f32 %v3338_v3, %v9221_v52  ;;  %v3341_v61 = vsel %vm3330_vm1, %v3223_v53, 0  ;;  %v2913_v31 = vadd.f32 %v2912_v8, %v2500_v14  ;;  %4447 = vmatprep.mubr.f32.mxu1 %v9221_v52 }
 0x26f   :  { %3568 = vmatmul.mubr.f32.vlgmr.msra.gmra.mxu0 %v3567_v20  ;;  %v2507_v24 = vadd.f32 %v2506_v33, %v8609_v54  ;;  %v9245_v7 = vand.u32 4294901760, %v3341_v61  ;;  %v3224_v27 = vmul.f32 %v2911_v4, %v25_v10  ;;  %v2513_v18 = vpop.f32.mrf.mxu0  ;;  %4449 = vmatmul.mubr.f32.gmra.mxu1 %v9195_v12  ;;  %v2917_v3 = vpop.f32.mrf.mxu1  ;;  %v12540_v14 = vand.u32 4294901760, %v9210_v2  ;;  %v12541_v4 = vld [vmem:[#allocation108_spill] sm:$0xff] }
 0x270   :  { %12537 = vst [vmem:[#allocation95_spill] sm:$0xff] %v9240_v56  ;;  %4772 = vmatpush1.msra.mxu0 %v12539_v63  ;;  %v9256_v20 = vsub.f32 %v3222_v36, %v9228_v57  ;;  %v3225_v54 = vmul.f32 %v2913_v31, %v26_v43  ;;  %v2918_v33 = vadd.f32 %v2917_v3, %v2505_v48  ;;  %v3582_v48 = vand.u32 4294901760, %v3581_v5  ;;  %v12543_v43 = vld [vmem:[#allocation107_spill] sm:$0xff]  ;;  %v29_v5 = vld [vmem:[%s11480_s0 + $0x60] sm:$0xff] }
 0x271   :  { %12538 = vst [vmem:[#allocation96_spill] sm:$0xff] %v9245_v7  ;;  %v3575_v53 = vsub.f32 %v9210_v2, %v12540_v14  ;;  %4773 = vmatprep.subr.mxu0 %v12530_v19  ;;  %5313 = vmatpush1.msra.mxu1 %v12541_v4  ;;  %v2512_v8 = vadd.f32 %v2511_v37, %v8623_v22  ;;  %v9262_v12 = vand.u32 4294901760, %v3224_v27  ;;  %v2518_v52 = vpop.f32.mrf.mxu0  ;;  %v28_v14 = vld [vmem:[%s11480_s0 + $0x58] sm:$0xff]  ;;  %v2919_v21 = vpop.f32.mrf.mxu1 }
 0x272   :  { %4454 = vmatprep.mubr.f32.mxu1 %v9245_v7  ;;  %4776 = vmatpush1.msra.mxu0 %v12543_v43  ;;  %v9270_v31 = vsub.f32 %v3341_v61, %v9245_v7  ;;  %v3344_v3 = vsel %vm3330_vm1, %v3225_v54, 0  ;;  %v3226_v22 = vmul.f32 %v2918_v33, %v27_v23  ;;  %v2920_v37 = vadd.f32 %v2919_v21, %v2507_v24  ;;  %v12549_v7 = vld [vmem:[#allocation113_spill] sm:$0xff] }
 0x273   :  { %12542 = vst [vmem:[#allocation67_spill] sm:$0xff] %v9262_v12  ;;  %v3576_v36 = vand.u32 4294901760, %v3575_v53  ;;  %4777 = vmatprep.subr.mxu0 %v12530_v19  ;;  %5314 = vmatprep.subr.mxu1 %v12530_v19  ;;  %v9276_v10 = vsub.f32 %v3224_v27, %v9262_v12  ;;  %v9278_v53 = vand.u32 4294901760, %v3344_v3  ;;  %v2520_v63 = vpop.f32.mrf.mxu0  ;;  %v2924_v61 = vpop.f32.mrf.mxu1  ;;  %v12546_v21 = vand.u32 4294901760, %v9240_v56 }
 0x274   :  { %4456 = vmatmul.mubr.f32.gmra.mxu1 %v9228_v57  ;;  %v12547_v23 = vand.u32 4294901760, %v9214_v44  ;;  %v9291_v33 = vand.u32 4294901760, %v3226_v22  ;;  %v2925_v57 = vadd.f32 %v2924_v61, %v2512_v8  ;;  %v2514_v43 = vadd.f32 %v2513_v18, %v8634_v62  ;;  %v30_v62 = vld [vmem:[%s11480_s0 + $0x68] sm:$0xff] }
 0x275   :  { %12544 = vst [vmem:[#allocation97_spill] sm:$0xff] %v9276_v10  ;;  %12545 = vst [vmem:[#allocation98_spill] sm:$0xff] %v9278_v53  ;;  %3577 = vmatprep.mubr.f32.mxu0 %v3576_v36  ;;  %v3590_v24 = vsub.f32 %v9240_v56, %v12546_v21  ;;  %v3227_v36 = vmul.f32 %v2920_v37, %v28_v14  ;;  %5316 = vmatpush1.msra.mxu1 %v12549_v7  ;;  %v2525_v21 = vpop.f32.mrf.mxu0  ;;  %v2926_v56 = vpop.f32.mrf.mxu1  ;;  %v11777_v37 = vand.u32 4294901760, %v9270_v31 }
 0x276   :  { %v3596_v27 = vsub.f32 %v9214_v44, %v12547_v23  ;;  %12548 = vst [vmem:[#allocation68_spill] sm:$0xff] %v9291_v33  ;;  %3583 = vmatmul.mubr.f32.gmra.mxu0 %v3582_v48  ;;  %v2519_v4 = vadd.f32 %v2518_v52, %v8644_v39  ;;  %v2521_v9 = vadd.f32 %v2520_v63, %v8654_v16  ;;  %v12550_v23 = vld [vmem:[#allocation110_spill] sm:$0xff] }
 0x277   :  { %v3591_v60 = vand.u32 4294901760, %v3590_v24  ;;  %4461 = vmatprep.mubr.f32.mxu1 %v9278_v53  ;;  %4780 = vmatpush1.msra.mxu0 %v12550_v23  ;;  %v3347_v14 = vsel %vm3330_vm1, %v3227_v36, 0  ;;  %v3228_v8 = vmul.f32 %v2925_v57, %v29_v5  ;;  %v9307_v16 = vsub.f32 %v3344_v3, %v9278_v53  ;;  %v2527_v52 = vpop.f32.mrf.mxu0  ;;  %v31_v57 = vld [vmem:[%s11480_s0 + $0x70] sm:$0xff]  ;;  %v2931_v48 = vpop.f32.mrf.mxu1 }
 0x278   :  { %v3597_v18 = vand.u32 4294901760, %v3596_v27  ;;  %4781 = vmatprep.subr.mxu0 %v12530_v19  ;;  %5317 = vmatprep.subr.mxu1 %v12530_v19  ;;  %v9309_v39 = vand.u32 4294901760, %v3347_v14  ;;  %v2927_v63 = vadd.f32 %v2926_v56, %v2514_v43  ;;  %v9317_v5 = vsub.f32 %v3226_v22, %v9291_v33  ;;  %v12554_v56 = vld [vmem:[#allocation115_spill] sm:$0xff] }
 0x279   :  { %3592 = vmatprep.mubr.f32.mxu0 %v3591_v60  ;;  %4463 = vmatmul.mubr.f32.gmra.mxu1 %v9262_v12  ;;  %v9319_v61 = vand.u32 4294901760, %v3228_v8  ;;  %v2932_v3 = vadd.f32 %v2931_v48, %v2519_v4  ;;  %v12553_v24 = vand.u32 4294901760, %v9256_v20  ;;  %v2526_v43 = vadd.f32 %v2525_v21, %v8661_v35  ;;  %v2532_v36 = vpop.f32.mrf.mxu0  ;;  %v2933_v54 = vpop.f32.mrf.mxu1  ;;  %v12555_v12 = vld [vmem:[#allocation112_spill] sm:$0xff]  ;;  %v32_v35 = vld [vmem:[%s11480_s0 + $0x78] sm:$0xff] }
 0x27a   :  { %12551 = vst [vmem:[#allocation99_spill] sm:$0xff] %v9309_v39  ;;  %3598 = vmatmul.mubr.f32.gmra.mxu0 %v3597_v18  ;;  %5319 = vmatpush1.msra.mxu1 %v12554_v56  ;;  %v3229_v27 = vmul.f32 %v2927_v63, %v30_v62  ;;  %v3605_v22 = vsub.f32 %v9270_v31, %v11777_v37 }
 0x27b   :  { %12552 = vst [vmem:[#allocation101_spill] sm:$0xff] %v9319_v61  ;;  %v3611_v60 = vsub.f32 %v9256_v20, %v12553_v24  ;;  %4468 = vmatprep.mubr.f32.mxu1 %v9309_v39  ;;  %4784 = vmatpush1.msra.mxu0 %v12555_v12  ;;  %v9332_v4 = vsub.f32 %v3347_v14, %v9309_v39  ;;  %v2534_v63 = vpop.f32.mrf.mxu0  ;;  %v2938_v37 = vpop.f32.mrf.mxu1  ;;  %v12556_v39 = vand.u32 4294901760, %v9276_v10  ;;  %v12561_v12 = vld [vmem:[#allocation116_spill] sm:$0xff] }
 0x27c   :  { %v2528_v18 = vadd.f32 %v2527_v52, %v8676_v11  ;;  %v3230_v48 = vmul.f32 %v2932_v3, %v31_v57  ;;  %v2934_v21 = vadd.f32 %v2933_v54, %v2521_v9  ;;  %4785 = vmatprep.subr.mxu0 %v12530_v19  ;;  %v3350_v62 = vsel %vm3330_vm1, %v3229_v27, 0  ;;  %v12557_v52 = vld [vmem:[#allocation2_spill] sm:$0xff]  ;;  %5320 = vmatprep.subr.mxu1 %v12530_v19 }
 0x27d   :  { %v3606_v24 = vand.u32 4294901760, %v3605_v22  ;;  %4470 = vmatmul.mubr.f32.gmra.mxu1 %v9291_v33  ;;  %v3626_v11 = vsub.f32 %v9276_v10, %v12556_v39  ;;  %4788 = vmatpush1.msra.mxu0 %v12557_v52  ;;  %v9347_v57 = vsub.f32 %v3228_v8, %v9319_v61  ;;  %v9349_v9 = vand.u32 4294901760, %v3350_v62  ;;  %v33_v27 = vld [vmem:[%s11480_s0 + $0x80] sm:$0xff]  ;;  %v2539_v14 = vpop.f32.mrf.mxu0  ;;  %v34_v33 = vld [vmem:[%s11480_s0 + $0x88] sm:$0xff]  ;;  %v2940_v53 = vpop.f32.mrf.mxu1 }
 0x27e   :  { %v9351_v54 = vand.u32 4294901760, %v3230_v48  ;;  %v3612_v3 = vand.u32 4294901760, %v3611_v60  ;;  %4789 = vmatprep.subr.mxu0 %v12530_v19  ;;  %v3231_v22 = vmul.f32 %v2934_v21, %v32_v35  ;;  %v2939_v8 = vadd.f32 %v2938_v37, %v2526_v43 }
 0x27f   :  { %12558 = vst [vmem:[#allocation69_spill] sm:$0xff] %v9349_v9  ;;  %3607 = vmatprep.mubr.f32.mxu0 %v3606_v24  ;;  %v12560_v60 = vand.u32 4294901760, %v9307_v16  ;;  %4792 = vmatpush1.msra.mxu0 %v12561_v12  ;;  %v2533_v56 = vadd.f32 %v2532_v36, %v8686_v50  ;;  %v2535_v23 = vadd.f32 %v2534_v63, %v8696_v46  ;;  %v3627_v21 = vand.u32 4294901760, %v3626_v11  ;;  %v2541_v24 = vpop.f32.mrf.mxu0  ;;  %v2945_v7 = vpop.f32.mrf.mxu1  ;;  %v35_v36 = vld [vmem:[%s11480_s0 + $0x90] sm:$0xff] }
 0x280   :  { %12559 = vst [vmem:[#allocation103_spill] sm:$0xff] %v9351_v54  ;;  %3613 = vmatmul.mubr.f32.gmra.mxu0 %v3612_v3  ;;  %v2941_v35 = vadd.f32 %v2940_v53, %v2528_v18  ;;  %v3353_v37 = vsel %vm3330_vm1, %v3231_v22, 0  ;;  %v3232_v43 = vmul.f32 %v2939_v8, %v33_v27  ;;  %4475 = vmatprep.mubr.f32.mxu1 %v9349_v9  ;;  %v11788_v10 = vand.u32 4294901760, %v9332_v4  ;;  %v12563_v18 = vld [vmem:[#allocation4_spill] sm:$0xff]  ;;  %v12566_v22 = vld [vmem:[#allocation117_spill] sm:$0xff] }
 0x281   :  { %v3620_v52 = vsub.f32 %v9307_v16, %v12560_v60  ;;  %4793 = vmatprep.subr.mxu0 %v12530_v19  ;;  %v9373_v60 = vsub.f32 %v3350_v62, %v9349_v9  ;;  %v9376_v50 = vsub.f32 %v3230_v48, %v9351_v54  ;;  %v9378_v46 = vand.u32 4294901760, %v3353_v37  ;;  %4477 = vmatmul.mubr.f32.gmra.mxu1 %v9319_v61  ;;  %v2546_v11 = vpop.f32.mrf.mxu0  ;;  %v36_v48 = vld [vmem:[%s11480_s0 + $0x98] sm:$0xff] }
 0x282   :  { %v3233_v53 = vmul.f32 %v2941_v35, %v34_v33  ;;  %4796 = vmatpush1.msra.mxu0 %v12563_v18  ;;  %v9385_v63 = vand.u32 4294901760, %v3232_v43  ;;  %v2946_v62 = vadd.f32 %v2945_v7, %v2533_v56  ;;  %v3635_v33 = vsub.f32 %v9332_v4, %v11788_v10  ;;  %5322 = vmatpush1.msra.mxu1 %v12566_v22 }
 0x283   :  { %v3621_v39 = vand.u32 4294901760, %v3620_v52  ;;  %12562 = vst [vmem:[#allocation106_spill] sm:$0xff] %v9378_v46  ;;  %v2947_v52 = vpop.f32.mrf.mxu1  ;;  %v12565_v3 = vand.u32 4294901760, %v9317_v5  ;;  %4482 = vmatprep.mubr.f32.mxu1 %v9378_v46  ;;  %v2542_v35 = vadd.f32 %v2541_v24, %v8712_v59  ;;  %v2548_v9 = vpop.f32.mrf.mxu0  ;;  %4797 = vmatprep.subr.mxu0 %v12530_v19 }
 0x284   :  { %12564 = vst [vmem:[#allocation70_spill] sm:$0xff] %v9385_v63  ;;  %v3356_v7 = vsel %vm3330_vm1, %v3233_v53, 0  ;;  %v2948_v56 = vadd.f32 %v2947_v52, %v2535_v23  ;;  %v3234_v10 = vmul.f32 %v2946_v62, %v35_v36  ;;  %v3636_v18 = vand.u32 4294901760, %v3635_v33  ;;  %5323 = vmatprep.subr.mxu1 %v12530_v19 }
 0x285   :  { %3622 = vmatprep.mubr.f32.mxu0 %v3621_v39  ;;  %v3641_v27 = vsub.f32 %v9317_v5, %v12565_v3  ;;  %v2540_v39 = vadd.f32 %v2539_v14, %v8703_v42  ;;  %v9402_v61 = vand.u32 4294901760, %v3356_v7  ;;  %v37_v3 = vld [vmem:[%s11480_s0 + $0xa0] sm:$0xff]  ;;  %v2952_v8 = vpop.f32.mrf.mxu1  ;;  %v9410_v42 = vsub.f32 %v3232_v43, %v9385_v63  ;;  %4484 = vmatmul.mubr.f32.gmra.mxu1 %v9351_v54  ;;  %v2553_v62 = vpop.f32.mrf.mxu0  ;;  %v38_v43 = vld [vmem:[%s11480_s0 + $0xa8] sm:$0xff] }
 0x286   :  { %3628 = vmatmul.mubr.f32.gmra.mxu0 %v3627_v21  ;;  %v3235_v23 = vmul.f32 %v2948_v56, %v36_v48  ;;  %v12568_v21 = vld [vmem:[#allocation5_spill] sm:$0xff]  ;;  %v9416_v53 = vsub.f32 %v3353_v37, %v9378_v46  ;;  %v9418_v36 = vand.u32 4294901760, %v3234_v10  ;;  %v11793_v52 = vand.u32 4294901760, %v9373_v60  ;;  %5325 = vmatpush1.msra.mxu1 %v8504_v6 }
 0x287   :  { %12567 = vst [vmem:[#allocation109_spill] sm:$0xff] %v9402_v61  ;;  %v3642_v14 = vand.u32 4294901760, %v3641_v27  ;;  %v2953_v59 = vadd.f32 %v2952_v8, %v2540_v39  ;;  %4800 = vmatpush1.msra.mxu0 %v12568_v21  ;;  %3637 = vmatprep.mubr.f32.mxu0 %v3636_v18  ;;  %v2954_v48 = vpop.f32.mrf.mxu1  ;;  %v2547_v33 = vadd.f32 %v2546_v11, %v8719_v40  ;;  %v2555_v56 = vpop.f32.mrf.mxu0  ;;  %v12571_v54 = vand.u32 4294901760, %v9347_v57  ;;  %v39_v11 = vld [vmem:[%s11480_s0 + $0xb0] sm:$0xff] }
 0x288   :  { %12569 = vst [vmem:[#allocation111_spill] sm:$0xff] %v9418_v36  ;;  %4489 = vmatprep.mubr.f32.mxu1 %v9402_v61  ;;  %v3359_v27 = vsel %vm3330_vm1, %v3235_v23, 0  ;;  %v2955_v8 = vadd.f32 %v2954_v48, %v2542_v35  ;;  %v2549_v18 = vadd.f32 %v2548_v9, %v8730_v34  ;;  %v3650_v24 = vsub.f32 %v9373_v60, %v11793_v52 }
 0x289   :  { %v3236_v37 = vmul.f32 %v2953_v59, %v37_v3  ;;  %v9429_v39 = vand.u32 4294901760, %v3359_v27  ;;  %v3656_v40 = vsub.f32 %v9347_v57, %v12571_v54  ;;  %v2959_v35 = vpop.f32.mrf.mxu1  ;;  %4801 = vmatprep.subr.mxu0 %v12530_v19  ;;  %5326 = vmatprep.subr.mxu1 %v12530_v19  ;;  %v9448_v54 = vsub.f32 %v3356_v7, %v9402_v61  ;;  %v2560_v46 = vpop.f32.mrf.mxu0 }
 0x28a   :  { %3643 = vmatmul.mubr.f32.gmra.mxu0 %v3642_v14  ;;  %v3237_v3 = vmul.f32 %v2955_v8, %v38_v43  ;;  %4491 = vmatmul.mubr.f32.gmra.mxu1 %v9385_v63  ;;  %v2960_v23 = vadd.f32 %v2959_v35, %v2547_v33  ;;  %v12573_v14 = vld [vmem:[#allocation6_spill] sm:$0xff]  ;;  %v9451_v59 = vsub.f32 %v3234_v10, %v9418_v36  ;;  %v3651_v52 = vand.u32 4294901760, %v3650_v24  ;;  %v40_v10 = vld [vmem:[%s11480_s0 + $0xb8] sm:$0xff] }
 0x28b   :  { %12570 = vst [vmem:[#allocation71_spill] sm:$0xff] %v9429_v39  ;;  %v9443_v9 = vand.u32 4294901760, %v3236_v37  ;;  %4804 = vmatpush1.msra.mxu0 %v12573_v14  ;;  %v2554_v48 = vadd.f32 %v2553_v62, %v8740_v26  ;;  %v2961_v21 = vpop.f32.mrf.mxu1  ;;  %4496 = vmatprep.mubr.f32.mxu1 %v9429_v39  ;;  %v2556_v43 = vadd.f32 %v2555_v56, %v8747_v32  ;;  %v3657_v8 = vand.u32 4294901760, %v3656_v40  ;;  %v2562_v24 = vpop.f32.mrf.mxu0  ;;  %v41_v56 = vld [vmem:[%s11480_s0 + $0xc0] sm:$0xff]  ;;  %v12583_v14 = vld [vmem:[#allocation9_spill] sm:$0xff] }
 0x28c   :  { %5328 = vmatpush1.msra.mxu1 %v8521_v30  ;;  %v3362_v33 = vsel %vm3330_vm1, %v3237_v3, 0  ;;  %v3238_v35 = vmul.f32 %v2960_v23, %v39_v11  ;;  %4805 = vmatprep.subr.mxu0 %v12530_v19  ;;  %v9464_v26 = vsub.f32 %v3359_v27, %v9429_v39  ;;  %v2962_v32 = vadd.f32 %v2961_v21, %v2549_v18 }
 0x28d   :  { %12572 = vst [vmem:[#allocation114_spill] sm:$0xff] %v9443_v9  ;;  %5329 = vmatprep.subr.mxu1 %v12530_v19  ;;  %v9466_v7 = vand.u32 4294901760, %v3362_v33  ;;  %3652 = vmatprep.mubr.f32.mxu0 %v3651_v52  ;;  %v11798_v62 = vand.u32 4294901760, %v9416_v53  ;;  %v2966_v40 = vpop.f32.mrf.mxu1  ;;  %v9474_v11 = vsub.f32 %v3236_v37, %v9443_v9  ;;  %v12577_v3 = vand.u32 4294901760, %v9376_v50  ;;  %v2567_v39 = vpop.f32.mrf.mxu0 }
 0x28e   :  { %4808 = vmatpush1.msra.mxu0 %v8570_v1  ;;  %v9476_v27 = vand.u32 4294901760, %v3238_v35  ;;  %4498 = vmatmul.mubr.f32.gmra.mxu1 %v9418_v36  ;;  %v2967_v21 = vadd.f32 %v2966_v40, %v2554_v48  ;;  %v2561_v23 = vadd.f32 %v2560_v46, %v8757_v41  ;;  %v3239_v34 = vmul.f32 %v2962_v32, %v40_v10  ;;  %v42_v41 = vld [vmem:[%s11480_s0 + $0xc8] sm:$0xff] }
 0x28f   :  { %12574 = vst [vmem:[#allocation72_spill] sm:$0xff] %v9466_v7  ;;  %12575 = vst [vmem:[#allocation3_spill] sm:$0xff] %v9474_v11  ;;  %3658 = vmatmul.mubr.f32.gmra.mxu0 %v3657_v8  ;;  %v3671_v52 = vsub.f32 %v9376_v50, %v12577_v3  ;;  %v3665_v37 = vsub.f32 %v9416_v53, %v11798_v62  ;;  %v2968_v8 = vpop.f32.mrf.mxu1  ;;  %4503 = vmatprep.mubr.f32.mxu1 %v9466_v7  ;;  %v2569_v62 = vpop.f32.mrf.mxu0  ;;  %v11809_v18 = vand.u32 4294901760, %v9448_v54 }
 0x290   :  { %12576 = vst [vmem:[#allocation116_spill] sm:$0xff] %v9476_v27  ;;  %5331 = vmatpush1.msra.mxu1 %v8546_v28  ;;  %v9490_v3 = vsub.f32 %v3362_v33, %v9466_v7  ;;  %v2563_v48 = vadd.f32 %v2562_v24, %v8762_v29  ;;  %v3240_v40 = vmul.f32 %v2967_v21, %v41_v56  ;;  %v3365_v10 = vsel %vm3330_vm1, %v3239_v34, 0  ;;  %v12579_v29 = vld [vmem:[#allocation8_spill] sm:$0xff] }
 0x291   :  { %v2969_v46 = vadd.f32 %v2968_v8, %v2556_v43  ;;  %4809 = vmatprep.subr.mxu0 %v12530_v19  ;;  %v3666_v32 = vand.u32 4294901760, %v3665_v37  ;;  %v12578_v36 = vand.u32 4294901760, %v9410_v42  ;;  %v2973_v7 = vpop.f32.mrf.mxu1  ;;  %5332 = vmatprep.subr.mxu1 %v12530_v19  ;;  %v9505_v24 = vsub.f32 %v3238_v35, %v9476_v27  ;;  %v43_v21 = vld [vmem:[%s11480_s0 + $0xd0] sm:$0xff]  ;;  %v2574_v8 = vpop.f32.mrf.mxu0 }
 0x292   :  { %4812 = vmatpush1.msra.mxu0 %v12579_v29  ;;  %v9507_v43 = vand.u32 4294901760, %v3365_v10  ;;  %v3672_v56 = vand.u32 4294901760, %v3671_v52  ;;  %v9509_v34 = vand.u32 4294901760, %v3240_v40  ;;  %4505 = vmatmul.mubr.f32.gmra.mxu1 %v9443_v9  ;;  %v3680_v35 = vsub.f32 %v9448_v54, %v11809_v18  ;;  %v44_v9 = vld [vmem:[%s11480_s0 + $0xd8] sm:$0xff] }
 0x293   :  { %v3686_v33 = vsub.f32 %v9410_v42, %v12578_v36  ;;  %12580 = vst [vmem:[#allocation117_spill] sm:$0xff] %v9505_v24  ;;  %4813 = vmatprep.subr.mxu0 %v12530_v19  ;;  %3667 = vmatprep.mubr.f32.mxu0 %v3666_v32  ;;  %v3241_v37 = vmul.f32 %v2969_v46, %v42_v41  ;;  %v2975_v63 = vpop.f32.mrf.mxu1  ;;  %v2576_v1 = vpop.f32.mrf.mxu0 }
 0x294   :  { %12581 = vst [vmem:[#allocation123_spill] sm:$0xff] %v9507_v43  ;;  %12582 = vst [vmem:[#allocation124_spill] sm:$0xff] %v9509_v34  ;;  %v2974_v52 = vadd.f32 %v2973_v7, %v2561_v23  ;;  %5334 = vmatpush1.msra.mxu1 %v8572_v13  ;;  %3673 = vmatmul.mubr.f32.gmra.mxu0 %v3672_v56  ;;  %v2568_v61 = vadd.f32 %v2567_v39, %v8772_v38  ;;  %v3681_v29 = vand.u32 4294901760, %v3680_v35 }
 0x295   :  { %v2570_v36 = vadd.f32 %v2569_v62, %v8781_v58  ;;  %v3687_v32 = vand.u32 4294901760, %v3686_v33  ;;  %v2976_v41 = vadd.f32 %v2975_v63, %v2563_v48  ;;  %v3368_v46 = vsel %vm3330_vm1, %v3241_v37, 0  ;;  %4510 = vmatprep.mubr.f32.mxu1 %v9507_v43  ;;  %v2980_v23 = vpop.f32.mrf.mxu1  ;;  %4816 = vmatpush1.msra.mxu0 %v12583_v14 }
 0x296   :  { %v3242_v18 = vmul.f32 %v2974_v52, %v43_v21  ;;  %v11811_v7 = vand.u32 4294901760, %v9464_v26  ;;  %v9531_v56 = vsub.f32 %v3365_v10, %v9507_v43  ;;  %v9534_v38 = vsub.f32 %v3240_v40, %v9509_v34  ;;  %4512 = vmatmul.mubr.f32.gmra.mxu1 %v9476_v27  ;;  %5335 = vmatprep.subr.mxu1 %v12530_v19  ;;  %v2581_v40 = vpop.f32.mrf.mxu0  ;;  %v46_v21 = vld [vmem:[%s11480_s0 + $0xe8] sm:$0xff] }
 0x297   :  { %v9536_v58 = vand.u32 4294901760, %v3368_v46  ;;  %v3243_v63 = vmul.f32 %v2976_v41, %v44_v9  ;;  %3682 = vmatprep.mubr.f32.mxu0 %v3681_v29  ;;  %v12587_v48 = vand.u32 4294901760, %v9451_v59  ;;  %v45_v9 = vld [vmem:[%s11480_s0 + $0xe0] sm:$0xff]  ;;  %v2981_v33 = vadd.f32 %v2980_v23, %v2568_v61  ;;  %v2982_v37 = vpop.f32.mrf.mxu1  ;;  %5337 = vmatpush1.msra.mxu1 %v8604_v0  ;;  %v12602_v43 = vld [vmem:[#allocation11_spill] sm:$0xff]  ;;  %v12628_v0 = vld [vmem:[#allocation17_spill] sm:$0xff] }
 0x298   :  { %12584 = vst [vmem:[#allocation125_spill] sm:$0xff] %v9531_v56  ;;  %12585 = vst [vmem:[#allocation126_spill] sm:$0xff] %v9534_v38  ;;  %v3695_v62 = vsub.f32 %v9464_v26, %v11811_v7  ;;  %3688 = vmatmul.mubr.f32.gmra.mxu0 %v3687_v32  ;;  %v2575_v29 = vadd.f32 %v2574_v8, %v8789_v25  ;;  %v9555_v35 = vand.u32 4294901760, %v3242_v18  ;;  %v2583_v39 = vpop.f32.mrf.mxu0  ;;  %4817 = vmatprep.subr.mxu0 %v12530_v19 }
 0x299   :  { %12586 = vst [vmem:[#allocation127_spill] sm:$0xff] %v9536_v58  ;;  %v3701_v10 = vsub.f32 %v9451_v59, %v12587_v48  ;;  %v3371_v52 = vsel %vm3330_vm1, %v3243_v63, 0  ;;  %v2983_v41 = vadd.f32 %v2982_v37, %v2570_v36  ;;  %4517 = vmatprep.mubr.f32.mxu1 %v9536_v58  ;;  %v9560_v48 = vsub.f32 %v3368_v46, %v9536_v58  ;;  %v2987_v27 = vpop.f32.mrf.mxu1 }
 0x29a   :  { %12588 = vst [vmem:[#allocation128_spill] sm:$0xff] %v9555_v35  ;;  %v2577_v61 = vadd.f32 %v2576_v1, %v8797_v51  ;;  %v9563_v23 = vand.u32 4294901760, %v3371_v52  ;;  %v3696_v7 = vand.u32 4294901760, %v3695_v62  ;;  %5338 = vmatprep.subr.mxu1 %v12530_v19  ;;  %v3244_v8 = vmul.f32 %v2981_v33, %v45_v9  ;;  %4519 = vmatmul.mubr.f32.gmra.mxu1 %v9509_v34  ;;  %v47_v1 = vld [vmem:[%s11480_s0 + $0xf0] sm:$0xff]  ;;  %v12591_v51 = vld [vmem:[#allocation10_spill] sm:$0xff]  ;;  %v2588_v9 = vpop.f32.mrf.mxu0 }
 0x29b   :  { %12589 = vst [vmem:[#allocation129_spill] sm:$0xff] %v9560_v48  ;;  %v3702_v25 = vand.u32 4294901760, %v3701_v10  ;;  %v3245_v32 = vmul.f32 %v2983_v41, %v46_v21  ;;  %v11816_v36 = vand.u32 4294901760, %v9490_v3  ;;  %4820 = vmatpush1.msra.mxu0 %v12591_v51  ;;  %v2582_v63 = vadd.f32 %v2581_v40, %v8807_v45  ;;  %v2989_v21 = vpop.f32.mrf.mxu1  ;;  %5340 = vmatpush1.msra.mxu1 %v8629_v47 }
 0x29c   :  { %12590 = vst [vmem:[#allocation130_spill] sm:$0xff] %v9563_v23  ;;  %3697 = vmatprep.mubr.f32.mxu0 %v3696_v7  ;;  %v12592_v62 = vand.u32 4294901760, %v9474_v11  ;;  %v2988_v33 = vadd.f32 %v2987_v27, %v2575_v29  ;;  %4524 = vmatprep.mubr.f32.mxu1 %v9563_v23  ;;  %v9580_v37 = vsub.f32 %v3242_v18, %v9555_v35  ;;  %v9582_v41 = vand.u32 4294901760, %v3244_v8  ;;  %v48_v7 = vld [vmem:[%s11480_s0 + $0xf8] sm:$0xff]  ;;  %v12595_v27 = vld [vmem:[#allocation19_spill] sm:$0xff] }
 0x29d   :  { %3703 = vmatmul.mubr.f32.gmra.mxu0 %v3702_v25  ;;  %v3374_v46 = vsel %vm3330_vm1, %v3245_v32, 0  ;;  %v3710_v45 = vsub.f32 %v9490_v3, %v11816_v36  ;;  %v2584_v40 = vadd.f32 %v2583_v39, %v12595_v27  ;;  %v2590_v25 = vpop.f32.mrf.mxu0  ;;  %v2994_v34 = vpop.f32.mrf.mxu1  ;;  %4821 = vmatprep.subr.mxu0 %v12530_v19  ;;  %v9598_v32 = vsub.f32 %v3371_v52, %v9563_v23  ;;  %v12598_v39 = vld [vmem:[#allocation12_spill] sm:$0xff] }
 0x29e   :  { %v3716_v10 = vsub.f32 %v9474_v11, %v12592_v62  ;;  %12593 = vst [vmem:[#allocation131_spill] sm:$0xff] %v9580_v37  ;;  %12594 = vst [vmem:[#allocation132_spill] sm:$0xff] %v9582_v41  ;;  %v9593_v29 = vand.u32 4294901760, %v3374_v46  ;;  %v3246_v18 = vmul.f32 %v2988_v33, %v47_v1  ;;  %v2990_v62 = vadd.f32 %v2989_v21, %v2577_v61 }
 0x29f   :  { %5341 = vmatprep.subr.mxu1 %v12530_v19  ;;  %12597 = vst [vmem:[#allocation133_spill] sm:$0xff] %v9598_v32  ;;  %v3711_v36 = vand.u32 4294901760, %v3710_v45  ;;  %4526 = vmatmul.mubr.f32.gmra.mxu1 %v9555_v35  ;;  %v9604_v1 = vsub.f32 %v3244_v8, %v9582_v41  ;;  %v12601_v21 = vand.u32 4294901760, %v9505_v24  ;;  %v2595_v52 = vpop.f32.mrf.mxu0  ;;  %v2996_v45 = vpop.f32.mrf.mxu1  ;;  %v12603_v35 = vld [vmem:[#allocation22_spill] sm:$0xff]  ;;  %v2591_v8 = vadd.f32 %v2590_v25, %v8840_v17  ;;  %v12612_v17 = vld [vmem:[#allocation21_spill] sm:$0xff] }
 0x2a0   :  { %12596 = vst [vmem:[#allocation19_spill] sm:$0xff] %v9593_v29  ;;  %v3717_v58 = vand.u32 4294901760, %v3716_v10  ;;  %4824 = vmatpush1.msra.mxu0 %v12598_v39  ;;  %v9606_v61 = vand.u32 4294901760, %v3246_v18  ;;  %v3247_v33 = vmul.f32 %v2990_v62, %v48_v7  ;;  %v49_v10 = vld [vmem:[%s11480_s0 + $0x100] sm:$0xff]  ;;  %4531 = vmatprep.mubr.f32.mxu1 %v9593_v29  ;;  %v2589_v23 = vadd.f32 %v2588_v9, %v12603_v35  ;;  %v50_v39 = vld [vmem:[%s11480_s0 + $0x108] sm:$0xff] }
 0x2a1   :  { %12599 = vst [vmem:[#allocation134_spill] sm:$0xff] %v9604_v1  ;;  %v3731_v27 = vsub.f32 %v9505_v24, %v12601_v21  ;;  %5343 = vmatpush1.msra.mxu1 %v12602_v43  ;;  %3712 = vmatprep.mubr.f32.mxu0 %v3711_v36  ;;  %v12604_v7 = vand.u32 4294901760, %v9531_v56  ;;  %v2995_v21 = vadd.f32 %v2994_v34, %v2582_v63  ;;  %v2597_v35 = vpop.f32.mrf.mxu0  ;;  %v3001_v14 = vpop.f32.mrf.mxu1 }
 0x2a2   :  { %12600 = vst [vmem:[#allocation135_spill] sm:$0xff] %v9606_v61  ;;  %4825 = vmatprep.subr.mxu0 %v12530_v19  ;;  %v9626_v51 = vsub.f32 %v3374_v46, %v9593_v29  ;;  %3718 = vmatmul.mubr.f32.gmra.mxu0 %v3717_v58  ;;  %v3377_v36 = vsel %vm3330_vm1, %v3247_v33, 0  ;;  %v2997_v9 = vadd.f32 %v2996_v45, %v2584_v40  ;;  %v12608_v46 = vld [vmem:[#allocation14_spill] sm:$0xff]  ;;  %v12609_v29 = vld [vmem:[#allocation13_spill] sm:$0xff] }
 0x2a3   :  { %v3725_v62 = vsub.f32 %v9531_v56, %v12604_v7  ;;  %5344 = vmatprep.subr.mxu1 %v12530_v19  ;;  %v9632_v34 = vsub.f32 %v3246_v18, %v9606_v61  ;;  %v9634_v63 = vand.u32 4294901760, %v3377_v36  ;;  %v3248_v43 = vmul.f32 %v2995_v21, %v49_v10  ;;  %4533 = vmatmul.mubr.f32.gmra.mxu1 %v9582_v41  ;;  %v2602_v33 = vpop.f32.mrf.mxu0  ;;  %v51_v18 = vld [vmem:[%s11480_s0 + $0x110] sm:$0xff]  ;;  %v3003_v45 = vpop.f32.mrf.mxu1 }
 0x2a4   :  { %12605 = vst [vmem:[#allocation22_spill] sm:$0xff] %v9626_v51  ;;  %4828 = vmatpush1.msra.mxu0 %v12608_v46  ;;  %v3732_v58 = vand.u32 4294901760, %v3731_v27  ;;  %v3249_v25 = vmul.f32 %v2997_v9, %v50_v39  ;;  %5346 = vmatpush1.msra.mxu1 %v12609_v29  ;;  %v2596_v10 = vadd.f32 %v2595_v52, %v8848_v49  ;;  %v12611_v27 = vand.u32 4294901760, %v9534_v38  ;;  %v52_v9 = vld [vmem:[%s11480_s0 + $0x118] sm:$0xff] }
 0x2a5   :  { %12606 = vst [vmem:[#allocation136_spill] sm:$0xff] %v9632_v34  ;;  %12607 = vst [vmem:[#allocation137_spill] sm:$0xff] %v9634_v63  ;;  %v3726_v7 = vand.u32 4294901760, %v3725_v62  ;;  %4829 = vmatprep.subr.mxu0 %v12530_v19  ;;  %v9646_v62 = vand.u32 4294901760, %v3248_v43  ;;  %v3002_v21 = vadd.f32 %v3001_v14, %v2589_v23  ;;  %4538 = vmatprep.mubr.f32.mxu1 %v9634_v63  ;;  %v12613_v49 = vand.u32 4294901760, %v9560_v48  ;;  %v2604_v41 = vpop.f32.mrf.mxu0  ;;  %v3008_v29 = vpop.f32.mrf.mxu1  ;;  %v12618_v14 = vld [vmem:[#allocation15_spill] sm:$0xff] }
 0x2a6   :  { %v3746_v39 = vsub.f32 %v9534_v38, %v12611_v27  ;;  %v2598_v40 = vadd.f32 %v2597_v35, %v12612_v17  ;;  %v3004_v46 = vadd.f32 %v3003_v45, %v2591_v8  ;;  %5347 = vmatprep.subr.mxu1 %v12530_v19  ;;  %v12616_v35 = vld [vmem:[#allocation16_spill] sm:$0xff]  ;;  %v9670_v17 = vsub.f32 %v3377_v36, %v9634_v63 }
 0x2a7   :  { %3727 = vmatprep.mubr.f32.mxu0 %v3726_v7  ;;  %12610 = vst [vmem:[#allocation138_spill] sm:$0xff] %v9646_v62  ;;  %v3380_v7 = vsel %vm3330_vm1, %v3249_v25, 0  ;;  %v3740_v52 = vsub.f32 %v9560_v48, %v12613_v49  ;;  %v9663_v23 = vsub.f32 %v3248_v43, %v9646_v62  ;;  %4540 = vmatmul.mubr.f32.gmra.mxu1 %v9606_v61  ;;  %v2609_v49 = vpop.f32.mrf.mxu0  ;;  %v3010_v47 = vpop.f32.mrf.mxu1  ;;  %v12619_v38 = vld [vmem:[#allocation24_spill] sm:$0xff]  ;;  %v12621_v61 = vand.u32 4294901760, %v9580_v37 }
 0x2a8   :  { %3733 = vmatmul.mubr.f32.gmra.mxu0 %v3732_v58  ;;  %v9665_v27 = vand.u32 4294901760, %v3380_v7  ;;  %v3250_v58 = vmul.f32 %v3002_v21, %v51_v18  ;;  %12617 = vst [vmem:[#allocation140_spill] sm:$0xff] %v9670_v17  ;;  %v3251_v8 = vmul.f32 %v3004_v46, %v52_v9  ;;  %5349 = vmatpush1.msra.mxu1 %v12618_v14  ;;  %v3747_v43 = vand.u32 4294901760, %v3746_v39  ;;  %v53_v46 = vld [vmem:[%s11480_s0 + $0x120] sm:$0xff] }
 0x2a9   :  { %12614 = vst [vmem:[#allocation21_spill] sm:$0xff] %v9663_v23  ;;  %4832 = vmatpush1.msra.mxu0 %v12616_v35  ;;  %v3741_v25 = vand.u32 4294901760, %v3740_v52  ;;  %v2603_v18 = vadd.f32 %v2602_v33, %v12619_v38  ;;  %v3761_v36 = vsub.f32 %v9580_v37, %v12621_v61  ;;  %v12622_v9 = vld [vmem:[#allocation18_spill] sm:$0xff]  ;;  %v12623_v52 = vld [vmem:[#allocation27_spill] sm:$0xff]  ;;  %v12624_v38 = vand.u32 4294901760, %v9598_v32  ;;  %v2611_v35 = vpop.f32.mrf.mxu0  ;;  %v3015_v14 = vpop.f32.mrf.mxu1  ;;  %5378 = vmatprep.subr.mxu1 %v12530_v19 }
 0x2aa   :  { %12615 = vst [vmem:[#allocation139_spill] sm:$0xff] %v9665_v27  ;;  %4861 = vmatprep.subr.mxu0 %v12530_v19  ;;  %v9676_v21 = vand.u32 4294901760, %v3250_v58  ;;  %4545 = vmatprep.mubr.f32.mxu1 %v9665_v27  ;;  %v2605_v45 = vadd.f32 %v2604_v41, %v12623_v52  ;;  %v3383_v39 = vsel %vm3330_vm1, %v3251_v8, 0  ;;  %v3009_v63 = vadd.f32 %v3008_v29, %v2596_v10  ;;  %v54_v61 = vld [vmem:[%s11480_s0 + $0x128] sm:$0xff] }
 0x2ab   :  { %4864 = vmatpush2.msra.mxu0 %v12622_v9  ;;  %3742 = vmatprep.mubr.f32.mxu0 %v3741_v25  ;;  %v3755_v33 = vsub.f32 %v9598_v32, %v12624_v38  ;;  %v9699_v25 = vand.u32 4294901760, %v3383_v39  ;;  %v3011_v8 = vadd.f32 %v3010_v47, %v2598_v40  ;;  %v9703_v29 = vsub.f32 %v3380_v7, %v9665_v27  ;;  %v2616_v37 = vpop.f32.mrf.mxu0  ;;  %v3017_v32 = vpop.f32.mrf.mxu1 }
 0x2ac   :  { %12620 = vst [vmem:[#allocation24_spill] sm:$0xff] %v9676_v21  ;;  %3748 = vmatmul.mubr.f32.gmra.mxu0 %v3747_v43  ;;  %v9697_v41 = vsub.f32 %v3250_v58, %v9676_v21  ;;  %4547 = vmatmul.mubr.f32.gmra.mxu1 %v9646_v62  ;;  %v3252_v52 = vmul.f32 %v3009_v63, %v53_v46  ;;  %v11845_v38 = vand.u32 4294901760, %v9626_v51  ;;  %v3762_v58 = vand.u32 4294901760, %v3761_v36  ;;  %v12629_v43 = vld [vmem:[#allocation23_spill] sm:$0xff]  ;;  %v55_v63 = vld [vmem:[%s11480_s0 + $0x130] sm:$0xff]  ;;  %v12631_v46 = vld [vmem:[#allocation73_spill] sm:$0xff] }
 0x2ad   :  { %12626 = vst [vmem:[#allocation141_spill] sm:$0xff] %v9699_v25  ;;  %12627 = vst [vmem:[#allocation142_spill] sm:$0xff] %v9703_v29  ;;  %v3756_v10 = vand.u32 4294901760, %v3755_v33  ;;  %5380 = vmatpush2.msra.mxu1 %v12628_v0  ;;  %4865 = vmatprep.subr.mxu0 %v12530_v19  ;;  %v2610_v9 = vadd.f32 %v2609_v49, %v12629_v43  ;;  %v3253_v48 = vmul.f32 %v3011_v8, %v54_v61  ;;  %v2618_v61 = vpop.f32.mrf.mxu0  ;;  %v56_v8 = vld [vmem:[%s11480_s0 + $0x138] sm:$0xff]  ;;  %v3022_v43 = vpop.f32.mrf.mxu1 }
 0x2ae   :  { %12625 = vst [vmem:[#allocation27_spill] sm:$0xff] %v9697_v41  ;;  %v12630_v47 = vand.u32 4294901760, %v9604_v1  ;;  %4552 = vmatprep.mubr.f32.mxu1 %v9699_v25  ;;  %5381 = vmatprep.subr.mxu1 %v12530_v19  ;;  %v2612_v36 = vadd.f32 %v2611_v35, %v12631_v46  ;;  %v3770_v49 = vsub.f32 %v9626_v51, %v11845_v38  ;;  %v9726_v62 = vand.u32 4294901760, %v3252_v52 }
 0x2af   :  { %3757 = vmatprep.mubr.f32.mxu0 %v3756_v10  ;;  %v3016_v33 = vadd.f32 %v3015_v14, %v2603_v18  ;;  %v3386_v10 = vsel %vm3330_vm1, %v3253_v48, 0  ;;  %v3018_v7 = vadd.f32 %v3017_v32, %v2605_v45  ;;  %v11852_v35 = vand.u32 4294901760, %v9670_v17  ;;  %v2623_v27 = vpop.f32.mrf.mxu0  ;;  %v3024_v0 = vpop.f32.mrf.mxu1 }
 0x2b0   :  { %v3776_v40 = vsub.f32 %v9604_v1, %v12630_v47  ;;  %v12632_v47 = vld [vmem:[#allocation122_spill] sm:$0xff]  ;;  %3763 = vmatmul.mubr.f32.gmra.mxu0 %v3762_v58  ;;  %12633 = vst [vmem:[#allocation23_spill] sm:$0xff] %v9726_v62  ;;  %4554 = vmatmul.mubr.f32.gmra.mxu1 %v9676_v21  ;;  %v9732_v14 = vsub.f32 %v3383_v39, %v9699_v25  ;;  %v9734_v18 = vand.u32 4294901760, %v3386_v10  ;;  %v3771_v46 = vand.u32 4294901760, %v3770_v49  ;;  %v12638_v49 = vld [vmem:[#allocation28_spill] sm:$0xff] }
 0x2b1   :  { %4868 = vmatpush2.msra.mxu0 %v12632_v47  ;;  %v3254_v38 = vmul.f32 %v3016_v33, %v55_v63  ;;  %v12636_v47 = vld [vmem:[#allocation20_spill] sm:$0xff]  ;;  %v3255_v48 = vmul.f32 %v3018_v7, %v56_v8  ;;  %v3785_v32 = vsub.f32 %v9670_v17, %v11852_v35  ;;  %v12637_v45 = vand.u32 4294901760, %v9632_v34  ;;  %v57_v63 = vld [vmem:[%s11480_s0 + $0x140] sm:$0xff]  ;;  %v2625_v25 = vpop.f32.mrf.mxu0  ;;  %v3029_v35 = vpop.f32.mrf.mxu1 }
 0x2b2   :  { %12634 = vst [vmem:[#allocation73_spill] sm:$0xff] %v9732_v14  ;;  %12635 = vst [vmem:[#allocation143_spill] sm:$0xff] %v9734_v18  ;;  %5383 = vmatpush2.msra.mxu1 %v12636_v47  ;;  %5913 = vmatprep.subr.mxu0 %v12530_v19  ;;  %v3777_v58 = vand.u32 4294901760, %v3776_v40  ;;  %v2617_v33 = vadd.f32 %v2616_v37, %v12638_v49  ;;  %v12640_v40 = vld [vmem:[#allocation25_spill] sm:$0xff]  ;;  %v3023_v8 = vadd.f32 %v3022_v43, %v2610_v9  ;;  %v12642_v17 = vld [vmem:[#allocation74_spill] sm:$0xff] }
 0x2b3   :  { %v3791_v39 = vsub.f32 %v9632_v34, %v12637_v45  ;;  %6368 = vmatprep.subr.mxu1 %v12530_v19  ;;  %3772 = vmatprep.mubr.f32.mxu0 %v3771_v46  ;;  %v9749_v21 = vand.u32 4294901760, %v3254_v38  ;;  %v2619_v7 = vadd.f32 %v2618_v61, %v12640_v40  ;;  %v9754_v45 = vsub.f32 %v3252_v52, %v9726_v62  ;;  %v58_v37 = vld [vmem:[%s11480_s0 + $0x148] sm:$0xff]  ;;  %v2630_v49 = vpop.f32.mrf.mxu0 }
 0x2b4   :  { %4559 = vmatprep.mubr.f32.mxu1 %v9734_v18  ;;  %3778 = vmatmul.mubr.f32.gmra.mxu0 %v3777_v58  ;;  %v3389_v47 = vsel %vm3330_vm1, %v3255_v48, 0  ;;  %v3786_v34 = vand.u32 4294901760, %v3785_v32  ;;  %v2624_v46 = vadd.f32 %v2623_v27, %v12642_v17  ;;  %v9763_v9 = vsub.f32 %v3386_v10, %v9734_v18  ;;  %v59_v58 = vld [vmem:[%s11480_s0 + $0x150] sm:$0xff]  ;;  %v3031_v48 = vpop.f32.mrf.mxu1 }
 0x2b5   :  { %12639 = vst [vmem:[#allocation28_spill] sm:$0xff] %v9749_v21  ;;  %12641 = vst [vmem:[#allocation25_spill] sm:$0xff] %v9754_v45  ;;  %4561 = vmatmul.mubr.f32.gmra.mxu1 %v9726_v62  ;;  %v9765_v61 = vand.u32 4294901760, %v3389_v47  ;;  %v3256_v43 = vmul.f32 %v3023_v8, %v57_v63  ;;  %v3025_v52 = vadd.f32 %v3024_v0, %v2612_v36  ;;  %v3792_v17 = vand.u32 4294901760, %v3791_v39  ;;  %v12647_v62 = vld [vmem:[#allocation31_spill] sm:$0xff]  ;;  %v2632_v8 = vpop.f32.mrf.mxu0 }
 0x2b6   :  { %12643 = vst [vmem:[#allocation74_spill] sm:$0xff] %v9763_v9  ;;  %v9771_v27 = vsub.f32 %v3254_v38, %v9749_v21  ;;  %3787 = vmatprep.mubr.f32.mxu0 %v3786_v34  ;;  %v11863_v32 = vand.u32 4294901760, %v9703_v29  ;;  %v3030_v40 = vadd.f32 %v3029_v35, %v2617_v33  ;;  %v2626_v18 = vadd.f32 %v2625_v25, %v12647_v62  ;;  %v3036_v1 = vpop.f32.mrf.mxu1  ;;  %v12649_v35 = vld [vmem:[#allocation26_spill] sm:$0xff]  ;;  %v60_v62 = vld [vmem:[%s11480_s0 + $0x158] sm:$0xff] }
 0x2b7   :  { %12644 = vst [vmem:[#allocation144_spill] sm:$0xff] %v9765_v61  ;;  %v9774_v10 = vand.u32 4294901760, %v3256_v43  ;;  %v3257_v63 = vmul.f32 %v3025_v52, %v58_v37  ;;  %v12648_v0 = vand.u32 4294901760, %v9663_v23  ;;  %4566 = vmatprep.mubr.f32.mxu1 %v9765_v61  ;;  %v2631_v39 = vadd.f32 %v2630_v49, %v12649_v35 }
 0x2b8   :  { %12645 = vst [vmem:[#allocation145_spill] sm:$0xff] %v9771_v27  ;;  %3793 = vmatmul.mubr.f32.gmra.mxu0 %v3792_v17  ;;  %v3800_v34 = vsub.f32 %v9703_v29, %v11863_v32  ;;  %v3258_v33 = vmul.f32 %v3030_v40, %v59_v58  ;;  %v3032_v52 = vadd.f32 %v3031_v48, %v2619_v7  ;;  %v11868_v17 = vand.u32 4294901760, %v9732_v14  ;;  %v3038_v38 = vpop.f32.mrf.mxu1 }
 0x2b9   :  { %12646 = vst [vmem:[#allocation146_spill] sm:$0xff] %v9774_v10  ;;  %v3806_v36 = vsub.f32 %v9663_v23, %v12648_v0  ;;  %4568 = vmatmul.mubr.f32.gmra.mxu1 %v9749_v21  ;;  %v9791_v25 = vsub.f32 %v3256_v43, %v9774_v10  ;;  %v3392_v37 = vsel %vm3330_vm1, %v3257_v63, 0  ;;  %v2637_v0 = vpop.f32.mrf.mxu0  ;;  %v9797_v49 = vsub.f32 %v3389_v47, %v9765_v61  ;;  %v61_v63 = vld [vmem:[%s11480_s0 + $0x160] sm:$0xff] }
 0x2ba   :  { %v9799_v58 = vand.u32 4294901760, %v3392_v37  ;;  %v3801_v40 = vand.u32 4294901760, %v3800_v34  ;;  %v3259_v21 = vmul.f32 %v3032_v52, %v60_v62  ;;  %v3815_v43 = vsub.f32 %v9732_v14, %v11868_v17  ;;  %v3043_v47 = vpop.f32.mrf.mxu1  ;;  %v62_v17 = vld [vmem:[%s11480_s0 + $0x168] sm:$0xff]  ;;  %v12656_v14 = vld [vmem:[#allocation33_spill] sm:$0xff] }
 0x2bb   :  { %12650 = vst [vmem:[#allocation31_spill] sm:$0xff] %v9791_v25  ;;  %12651 = vst [vmem:[#allocation26_spill] sm:$0xff] %v9797_v49  ;;  %v3807_v35 = vand.u32 4294901760, %v3806_v36  ;;  %v12653_v7 = vand.u32 4294901760, %v9697_v41  ;;  %v2639_v32 = vpop.f32.mrf.mxu0  ;;  %v9811_v34 = vand.u32 4294901760, %v3258_v33  ;;  %v12655_v36 = vld [vmem:[#allocation75_spill] sm:$0xff]  ;;  %v3037_v52 = vadd.f32 %v3036_v1, %v2624_v46 }
 0x2bc   :  { %12652 = vst [vmem:[#allocation147_spill] sm:$0xff] %v9799_v58  ;;  %3802 = vmatprep.mubr.f32.mxu0 %v3801_v40  ;;  %v2633_v62 = vadd.f32 %v2632_v8, %v12655_v36  ;;  %4573 = vmatprep.mubr.f32.mxu1 %v9799_v58  ;;  %v2638_v23 = vadd.f32 %v2637_v0, %v12656_v14  ;;  %v3045_v61 = vpop.f32.mrf.mxu1 }
 0x2bd   :  { %v3821_v48 = vsub.f32 %v9697_v41, %v12653_v7  ;;  %12654 = vst [vmem:[#allocation148_spill] sm:$0xff] %v9811_v34  ;;  %3808 = vmatmul.mubr.f32.gmra.mxu0 %v3807_v35  ;;  %v3395_v7 = vsel %vm3330_vm1, %v3259_v21, 0  ;;  %v3816_v41 = vand.u32 4294901760, %v3815_v43  ;;  %v3039_v29 = vadd.f32 %v3038_v38, %v2626_v18  ;;  %4575 = vmatmul.mubr.f32.gmra.mxu1 %v9774_v10  ;;  %v2644_v40 = vpop.f32.mrf.mxu0  ;;  %v63_v21 = vld [vmem:[%s11480_s0 + $0x170] sm:$0xff] }
 0x2be   :  { %v9822_v8 = vsub.f32 %v3392_v37, %v9799_v58  ;;  %v9824_v1 = vand.u32 4294901760, %v3395_v7  ;;  %v3260_v46 = vmul.f32 %v3037_v52, %v61_v63  ;;  %v12659_v18 = vand.u32 4294901760, %v9754_v45  ;;  %v3050_v37 = vpop.f32.mrf.mxu1  ;;  %v12662_v52 = vld [vmem:[#allocation29_spill] sm:$0xff] }
 0x2bf   :  { %3817 = vmatprep.mubr.f32.mxu0 %v3816_v41  ;;  %v3822_v35 = vand.u32 4294901760, %v3821_v48  ;;  %v3261_v14 = vmul.f32 %v3039_v29, %v62_v17  ;;  %v3044_v0 = vadd.f32 %v3043_v47, %v2631_v39  ;;  %v2646_v43 = vpop.f32.mrf.mxu0  ;;  %v9834_v10 = vsub.f32 %v3258_v33, %v9811_v34  ;;  %v64_v29 = vld [vmem:[%s11480_s0 + $0x178] sm:$0xff]  ;;  %v12664_v17 = vld [vmem:[#allocation76_spill] sm:$0xff] }
 0x2c0   :  { %12657 = vst [vmem:[#allocation75_spill] sm:$0xff] %v9822_v8  ;;  %12658 = vst [vmem:[#allocation33_spill] sm:$0xff] %v9824_v1  ;;  %v3836_v38 = vsub.f32 %v9754_v45, %v12659_v18  ;;  %v9836_v63 = vand.u32 4294901760, %v3260_v46  ;;  %v2640_v36 = vadd.f32 %v2639_v32, %v12662_v52  ;;  %v12663_v58 = vand.u32 4294901760, %v9763_v9  ;;  %4580 = vmatprep.mubr.f32.mxu1 %v9824_v1  ;;  %v3052_v18 = vpop.f32.mrf.mxu1 }
 0x2c1   :  { %12660 = vst [vmem:[#allocation149_spill] sm:$0xff] %v9834_v10  ;;  %3823 = vmatmul.mubr.f32.gmra.mxu0 %v3822_v35  ;;  %v3398_v39 = vsel %vm3330_vm1, %v3261_v14, 0  ;;  %v2645_v33 = vadd.f32 %v2644_v40, %v12664_v17  ;;  %v3262_v48 = vmul.f32 %v3044_v0, %v63_v21  ;;  %v3046_v47 = vadd.f32 %v3045_v61, %v2633_v62  ;;  %v2651_v32 = vpop.f32.mrf.mxu0  ;;  %v65_v62 = vld [vmem:[%s11480_s0 + $0x180] sm:$0xff] }
 0x2c2   :  { %12661 = vst [vmem:[#allocation150_spill] sm:$0xff] %v9836_v63  ;;  %v3830_v41 = vsub.f32 %v9763_v9, %v12663_v58  ;;  %4582 = vmatmul.mubr.f32.gmra.mxu1 %v9811_v34  ;;  %v9849_v52 = vand.u32 4294901760, %v3398_v39  ;;  %v3837_v45 = vand.u32 4294901760, %v3836_v38  ;;  %v11891_v9 = vand.u32 4294901760, %v9797_v49  ;;  %v3057_v0 = vpop.f32.mrf.mxu1  ;;  %v12672_v38 = vld [vmem:[#allocation30_spill] sm:$0xff] }
 0x2c3   :  { %v9853_v51 = vsub.f32 %v3260_v46, %v9836_v63  ;;  %v9855_v35 = vand.u32 4294901760, %v3262_v48  ;;  %v3263_v14 = vmul.f32 %v3046_v47, %v64_v29  ;;  %v12668_v40 = vand.u32 4294901760, %v9771_v27  ;;  %v2653_v21 = vpop.f32.mrf.mxu0  ;;  %v12671_v47 = vld [vmem:[#allocation34_spill] sm:$0xff] }
 0x2c4   :  { %12665 = vst [vmem:[#allocation29_spill] sm:$0xff] %v9849_v52  ;;  %v3831_v58 = vand.u32 4294901760, %v3830_v41  ;;  %v9865_v41 = vsub.f32 %v3395_v7, %v9824_v1  ;;  %v3845_v46 = vsub.f32 %v9797_v49, %v11891_v9  ;;  %v3051_v29 = vadd.f32 %v3050_v37, %v2638_v23  ;;  %4587 = vmatprep.mubr.f32.mxu1 %v9849_v52  ;;  %v66_v7 = vld [vmem:[%s11480_s0 + $0x188] sm:$0xff]  ;;  %v3059_v23 = vpop.f32.mrf.mxu1 }
 0x2c5   :  { %12666 = vst [vmem:[#allocation76_spill] sm:$0xff] %v9853_v51  ;;  %12667 = vst [vmem:[#allocation151_spill] sm:$0xff] %v9855_v35  ;;  %v3851_v61 = vsub.f32 %v9771_v27, %v12668_v40  ;;  %v9872_v17 = vsub.f32 %v3262_v48, %v9855_v35  ;;  %v2647_v40 = vadd.f32 %v2646_v43, %v12671_v47  ;;  %v3401_v34 = vsel %vm3330_vm1, %v3263_v14, 0 }
 0x2c6   :  { %12669 = vst [vmem:[#allocation152_spill] sm:$0xff] %v9865_v41  ;;  %3832 = vmatprep.mubr.f32.mxu0 %v3831_v58  ;;  %v2652_v27 = vadd.f32 %v2651_v32, %v12672_v38  ;;  %4589 = vmatmul.mubr.f32.gmra.mxu1 %v9836_v63  ;;  %v2658_v58 = vpop.f32.mrf.mxu0  ;;  %v9881_v37 = vand.u32 4294901760, %v3401_v34  ;;  %v3264_v9 = vmul.f32 %v3051_v29, %v65_v62  ;;  %v11904_v32 = vand.u32 4294901760, %v9822_v8  ;;  %v67_v38 = vld [vmem:[%s11480_s0 + $0x190] sm:$0xff]  ;;  %v3064_v63 = vpop.f32.mrf.mxu1  ;;  %v12677_v29 = vld [vmem:[#allocation77_spill] sm:$0xff] }
 0x2c7   :  { %3838 = vmatmul.mubr.f32.gmra.mxu0 %v3837_v45  ;;  %12670 = vst [vmem:[#allocation153_spill] sm:$0xff] %v9872_v17  ;;  %v3846_v45 = vand.u32 4294901760, %v3845_v46  ;;  %v3053_v48 = vadd.f32 %v3052_v18, %v2640_v36  ;;  %v9885_v43 = vsub.f32 %v3398_v39, %v9849_v52  ;;  %v3852_v14 = vand.u32 4294901760, %v3851_v61  ;;  %v68_v39 = vld [vmem:[%s11480_s0 + $0x198] sm:$0xff] }
 0x2c8   :  { %12673 = vst [vmem:[#allocation34_spill] sm:$0xff] %v9881_v37  ;;  %v2660_v47 = vpop.f32.mrf.mxu0  ;;  %v9891_v49 = vand.u32 4294901760, %v3264_v9  ;;  %v12676_v36 = vand.u32 4294901760, %v9791_v25  ;;  %v3058_v62 = vadd.f32 %v3057_v0, %v2645_v33  ;;  %4594 = vmatprep.mubr.f32.mxu1 %v9881_v37  ;;  %v2654_v1 = vadd.f32 %v2653_v21, %v12677_v29  ;;  %v3066_v33 = vpop.f32.mrf.mxu1  ;;  %v12680_v29 = vld [vmem:[#allocation36_spill] sm:$0xff] }
 0x2c9   :  { %12674 = vst [vmem:[#allocation30_spill] sm:$0xff] %v9885_v43  ;;  %3847 = vmatprep.mubr.f32.mxu0 %v3846_v45  ;;  %v3265_v46 = vmul.f32 %v3053_v48, %v66_v7  ;;  %v3860_v7 = vsub.f32 %v9822_v8, %v11904_v32  ;;  %v3060_v45 = vadd.f32 %v3059_v23, %v2647_v40  ;;  %v11907_v61 = vand.u32 4294901760, %v9865_v41  ;;  %v12686_v8 = vld [vmem:[#allocation78_spill] sm:$0xff] }
 0x2ca   :  { %12675 = vst [vmem:[#allocation154_spill] sm:$0xff] %v9891_v49  ;;  %v3866_v18 = vsub.f32 %v9791_v25, %v12676_v36  ;;  %4596 = vmatmul.mubr.f32.gmra.mxu1 %v9855_v35  ;;  %v2665_v48 = vpop.f32.mrf.mxu0  ;;  %v9907_v0 = vsub.f32 %v3264_v9, %v9891_v49  ;;  %v3266_v52 = vmul.f32 %v3058_v62, %v67_v38  ;;  %v3071_v40 = vpop.f32.mrf.mxu1  ;;  %v69_v62 = vld [vmem:[%s11480_s0 + $0x1a0] sm:$0xff] }
 0x2cb   :  { %3853 = vmatmul.mubr.f32.gmra.mxu0 %v3852_v14  ;;  %v3404_v36 = vsel %vm3330_vm1, %v3265_v46, 0  ;;  %v3861_v21 = vand.u32 4294901760, %v3860_v7  ;;  %v2659_v25 = vadd.f32 %v2658_v58, %v12680_v29  ;;  %v3267_v24 = vmul.f32 %v3060_v45, %v68_v39  ;;  %v12684_v39 = vld [vmem:[#allocation32_spill] sm:$0xff] }
 0x2cc   :  { %12678 = vst [vmem:[#allocation77_spill] sm:$0xff] %v9907_v0  ;;  %v9911_v14 = vand.u32 4294901760, %v3404_v36  ;;  %v2667_v32 = vpop.f32.mrf.mxu0  ;;  %v3867_v23 = vand.u32 4294901760, %v3866_v18  ;;  %v9914_v35 = vand.u32 4294901760, %v3266_v52  ;;  %v3875_v9 = vsub.f32 %v9865_v41, %v11907_v61  ;;  %v3073_v61 = vpop.f32.mrf.mxu1 }
 0x2cd   :  { %v12682_v46 = vand.u32 4294901760, %v9834_v10  ;;  %v9926_v58 = vsub.f32 %v3401_v34, %v9881_v37  ;;  %3862 = vmatprep.mubr.f32.mxu0 %v3861_v21  ;;  %v2661_v18 = vadd.f32 %v2660_v47, %v12684_v39  ;;  %v3407_v7 = vsel %vm3330_vm1, %v3267_v24, 0  ;;  %v70_v34 = vld [vmem:[%s11480_s0 + $0x1a8] sm:$0xff] }
 0x2ce   :  { %12679 = vst [vmem:[#allocation155_spill] sm:$0xff] %v9911_v14  ;;  %12681 = vst [vmem:[#allocation36_spill] sm:$0xff] %v9914_v35  ;;  %v3065_v45 = vadd.f32 %v3064_v63, %v2652_v27  ;;  %4601 = vmatprep.mubr.f32.mxu1 %v9911_v14  ;;  %v2672_v29 = vpop.f32.mrf.mxu0  ;;  %v2666_v13 = vadd.f32 %v2665_v48, %v12686_v8  ;;  %v3067_v27 = vadd.f32 %v3066_v33, %v2654_v1  ;;  %v3078_v8 = vpop.f32.mrf.mxu1 }
 0x2cf   :  { %v3881_v38 = vsub.f32 %v9834_v10, %v12682_v46  ;;  %12683 = vst [vmem:[#allocation156_spill] sm:$0xff] %v9926_v58  ;;  %3868 = vmatmul.mubr.f32.gmra.mxu0 %v3867_v23  ;;  %v9932_v46 = vand.u32 4294901760, %v3407_v7  ;;  %v3876_v10 = vand.u32 4294901760, %v3875_v9  ;;  %4603 = vmatmul.mubr.f32.gmra.mxu1 %v9891_v49  ;;  %v11919_v63 = vand.u32 4294901760, %v9885_v43  ;;  %v71_v23 = vld [vmem:[%s11480_s0 + $0x1b0] sm:$0xff] }
 0x2d0   :  { %v3268_v24 = vmul.f32 %v3065_v45, %v69_v62  ;;  %v12687_v47 = vand.u32 4294901760, %v9853_v51  ;;  %v2674_v9 = vpop.f32.mrf.mxu0  ;;  %v9947_v48 = vsub.f32 %v3404_v36, %v9911_v14  ;;  %v9950_v39 = vsub.f32 %v3266_v52, %v9914_v35  ;;  %v12691_v45 = vld [vmem:[#allocation38_spill] sm:$0xff]  ;;  %v72_v36 = vld [vmem:[%s11480_s0 + $0x1b8] sm:$0xff]  ;;  %v3080_v14 = vpop.f32.mrf.mxu1 }
 0x2d1   :  { %12685 = vst [vmem:[#allocation32_spill] sm:$0xff] %v9932_v46  ;;  %3877 = vmatprep.mubr.f32.mxu0 %v3876_v10  ;;  %v3882_v1 = vand.u32 4294901760, %v3881_v38  ;;  %v3072_v33 = vadd.f32 %v3071_v40, %v2659_v25  ;;  %4608 = vmatprep.mubr.f32.mxu1 %v9932_v46  ;;  %v3269_v41 = vmul.f32 %v3067_v27, %v70_v34  ;;  %v11928_v38 = vand.u32 4294901760, %v9926_v58 }
 0x2d2   :  { %v3896_v21 = vsub.f32 %v9853_v51, %v12687_v47  ;;  %12688 = vst [vmem:[#allocation78_spill] sm:$0xff] %v9947_v48  ;;  %12689 = vst [vmem:[#allocation157_spill] sm:$0xff] %v9950_v39  ;;  %v9953_v62 = vand.u32 4294901760, %v3268_v24  ;;  %v2668_v47 = vadd.f32 %v2667_v32, %v12691_v45  ;;  %v3890_v49 = vsub.f32 %v9885_v43, %v11919_v63  ;;  %v2679_v52 = vpop.f32.mrf.mxu0  ;;  %v3085_v51 = vpop.f32.mrf.mxu1 }
 0x2d3   :  { %3883 = vmatmul.mubr.f32.gmra.mxu0 %v3882_v1  ;;  %v3270_v25 = vmul.f32 %v3072_v33, %v71_v23  ;;  %v3074_v40 = vadd.f32 %v3073_v61, %v2661_v18  ;;  %4610 = vmatmul.mubr.f32.gmra.mxu1 %v9914_v35  ;;  %v3410_v34 = vsel %vm3330_vm1, %v3269_v41, 0  ;;  %v12693_v45 = vand.u32 4294901760, %v9872_v17  ;;  %v73_v41 = vld [vmem:[%s11480_s0 + $0x1c0] sm:$0xff]  ;;  %v12697_v23 = vld [vmem:[#allocation35_spill] sm:$0xff] }
 0x2d4   :  { %12690 = vst [vmem:[#allocation158_spill] sm:$0xff] %v9953_v62  ;;  %v3897_v10 = vand.u32 4294901760, %v3896_v21  ;;  %v9965_v32 = vsub.f32 %v3268_v24, %v9953_v62  ;;  %v3891_v27 = vand.u32 4294901760, %v3890_v49  ;;  %v2681_v37 = vpop.f32.mrf.mxu0  ;;  %v9971_v1 = vand.u32 4294901760, %v3410_v34 }
 0x2d5   :  { %v3911_v63 = vsub.f32 %v9872_v17, %v12693_v45  ;;  %v9973_v21 = vand.u32 4294901760, %v3270_v25  ;;  %v3271_v61 = vmul.f32 %v3074_v40, %v72_v36  ;;  %v3905_v18 = vsub.f32 %v9926_v58, %v11928_v38  ;;  %v3087_v17 = vpop.f32.mrf.mxu1  ;;  %v12699_v40 = vld [vmem:[#allocation79_spill] sm:$0xff] }
 0x2d6   :  { %12692 = vst [vmem:[#allocation38_spill] sm:$0xff] %v9965_v32  ;;  %12694 = vst [vmem:[#allocation159_spill] sm:$0xff] %v9971_v1  ;;  %v9983_v24 = vsub.f32 %v3407_v7, %v9932_v46  ;;  %3892 = vmatprep.mubr.f32.mxu0 %v3891_v27  ;;  %v2673_v33 = vadd.f32 %v2672_v29, %v12697_v23  ;;  %v3079_v45 = vadd.f32 %v3078_v8, %v2666_v13  ;;  %v2686_v35 = vpop.f32.mrf.mxu0  ;;  %v74_v7 = vld [vmem:[%s11480_s0 + $0x1c8] sm:$0xff]  ;;  %v75_v29 = vld [vmem:[%s11480_s0 + $0x1d0] sm:$0xff] }
 0x2d7   :  { %12695 = vst [vmem:[#allocation160_spill] sm:$0xff] %v9973_v21  ;;  %3898 = vmatmul.mubr.f32.gmra.mxu0 %v3897_v10  ;;  %v9987_v36 = vsub.f32 %v3270_v25, %v9973_v21  ;;  %v2675_v38 = vadd.f32 %v2674_v9, %v12699_v40  ;;  %v3413_v58 = vsel %vm3330_vm1, %v3271_v61, 0  ;;  %v3906_v43 = vand.u32 4294901760, %v3905_v18  ;;  %4615 = vmatprep.mubr.f32.mxu1 %v9971_v1  ;;  %v3092_v27 = vpop.f32.mrf.mxu1  ;;  %v12702_v18 = vld [vmem:[#allocation40_spill] sm:$0xff] }
 0x2d8   :  { %12696 = vst [vmem:[#allocation161_spill] sm:$0xff] %v9983_v24  ;;  %v9996_v13 = vand.u32 4294901760, %v3413_v58  ;;  %v3272_v8 = vmul.f32 %v3079_v45, %v73_v41  ;;  %v3081_v10 = vadd.f32 %v3080_v14, %v2668_v47  ;;  %4617 = vmatmul.mubr.f32.gmra.mxu1 %v9953_v62  ;;  %v2688_v25 = vpop.f32.mrf.mxu0  ;;  %v10000_v9 = vsub.f32 %v3410_v34, %v9971_v1 }
 0x2d9   :  { %12698 = vst [vmem:[#allocation35_spill] sm:$0xff] %v9987_v36  ;;  %3907 = vmatprep.mubr.f32.mxu0 %v3906_v43  ;;  %v3912_v61 = vand.u32 4294901760, %v3911_v63  ;;  %v2680_v23 = vadd.f32 %v2679_v52, %v12702_v18  ;;  %v12704_v47 = vand.u32 4294901760, %v9907_v0  ;;  %v3086_v45 = vadd.f32 %v3085_v51, %v2673_v33  ;;  %v76_v43 = vld [vmem:[%s11480_s0 + $0x1d8] sm:$0xff]  ;;  %v3094_v52 = vpop.f32.mrf.mxu1 }
 0x2da   :  { %12700 = vst [vmem:[#allocation79_spill] sm:$0xff] %v9996_v13  ;;  %12701 = vst [vmem:[#allocation162_spill] sm:$0xff] %v10000_v9  ;;  %v10007_v49 = vand.u32 4294901760, %v3272_v8  ;;  %v3273_v14 = vmul.f32 %v3081_v10, %v74_v7  ;;  %4622 = vmatprep.mubr.f32.mxu1 %v9996_v13  ;;  %v2693_v63 = vpop.f32.mrf.mxu0  ;;  %v12705_v18 = vld [vmem:[#allocation37_spill] sm:$0xff]  ;;  %v12706_v7 = vand.u32 4294901760, %v9947_v48  ;;  %v3088_v62 = vadd.f32 %v3087_v17, %v2675_v38 }
 0x2db   :  { %v3926_v41 = vsub.f32 %v9907_v0, %v12704_v47  ;;  %3913 = vmatmul.mubr.f32.gmra.mxu0 %v3912_v61  ;;  %v2682_v40 = vadd.f32 %v2681_v37, %v12705_v18  ;;  %v3274_v47 = vmul.f32 %v3086_v45, %v75_v29  ;;  %v11943_v1 = vand.u32 4294901760, %v9983_v24  ;;  %v3099_v34 = vpop.f32.mrf.mxu1  ;;  %v12709_v18 = vld [vmem:[#allocation80_spill] sm:$0xff] }
 0x2dc   :  { %12703 = vst [vmem:[#allocation40_spill] sm:$0xff] %v10007_v49  ;;  %v3920_v10 = vsub.f32 %v9947_v48, %v12706_v7  ;;  %v10022_v51 = vsub.f32 %v3272_v8, %v10007_v49  ;;  %v3416_v33 = vsel %vm3330_vm1, %v3273_v14, 0  ;;  %4624 = vmatmul.mubr.f32.gmra.mxu1 %v9973_v21  ;;  %v2695_v46 = vpop.f32.mrf.mxu0  ;;  %v2687_v0 = vadd.f32 %v2686_v35, %v12709_v18  ;;  %v77_v14 = vld [vmem:[%s11480_s0 + $0x1e0] sm:$0xff] }
 0x2dd   :  { %v10027_v61 = vand.u32 4294901760, %v3416_v33  ;;  %v3275_v56 = vmul.f32 %v3088_v62, %v76_v43  ;;  %v3927_v7 = vand.u32 4294901760, %v3926_v41  ;;  %v10030_v17 = vand.u32 4294901760, %v3274_v47  ;;  %v12713_v62 = vld [vmem:[#allocation43_spill] sm:$0xff] }
 0x2de   :  { %12707 = vst [vmem:[#allocation37_spill] sm:$0xff] %v10022_v51  ;;  %v3921_v37 = vand.u32 4294901760, %v3920_v10  ;;  %v3935_v38 = vsub.f32 %v9983_v24, %v11943_v1  ;;  %v12711_v29 = vand.u32 4294901760, %v9950_v39  ;;  %v2700_v45 = vpop.f32.mrf.mxu0  ;;  %v3101_v10 = vpop.f32.mrf.mxu1  ;;  %v10042_v35 = vsub.f32 %v3413_v58, %v9996_v13  ;;  %v78_v58 = vld [vmem:[%s11480_s0 + $0x1e8] sm:$0xff] }
 0x2df   :  { %12708 = vst [vmem:[#allocation163_spill] sm:$0xff] %v10027_v61  ;;  %12710 = vst [vmem:[#allocation80_spill] sm:$0xff] %v10030_v17  ;;  %v2689_v41 = vadd.f32 %v2688_v25, %v12713_v62  ;;  %v3419_v43 = vsel %vm3330_vm1, %v3275_v56, 0  ;;  %v3093_v18 = vadd.f32 %v3092_v27, %v2680_v23  ;;  %4629 = vmatprep.mubr.f32.mxu1 %v10027_v61  ;;  %v12716_v62 = vand.u32 4294901760, %v9965_v32 }
 0x2e0   :  { %v3941_v8 = vsub.f32 %v9950_v39, %v12711_v29  ;;  %12712 = vst [vmem:[#allocation164_spill] sm:$0xff] %v10042_v35  ;;  %3922 = vmatprep.mubr.f32.mxu0 %v3921_v37  ;;  %v10048_v29 = vand.u32 4294901760, %v3419_v43  ;;  %v3936_v21 = vand.u32 4294901760, %v3935_v38  ;;  %v12715_v39 = vld [vmem:[#allocation39_spill] sm:$0xff]  ;;  %4631 = vmatmul.mubr.f32.gmra.mxu1 %v10007_v49  ;;  %v2702_v25 = vpop.f32.mrf.mxu0  ;;  %v3106_v37 = vpop.f32.mrf.mxu1  ;;  %v3095_v27 = vadd.f32 %v3094_v52, %v2682_v40 }
 0x2e1   :  { %3928 = vmatmul.mubr.f32.gmra.mxu0 %v3927_v7  ;;  %v2694_v24 = vadd.f32 %v2693_v63, %v12715_v39  ;;  %v3276_v56 = vmul.f32 %v3093_v18, %v77_v14  ;;  %v3956_v7 = vsub.f32 %v9965_v32, %v12716_v62  ;;  %v79_v39 = vld [vmem:[%s11480_s0 + $0x1f0] sm:$0xff]  ;;  %v10063_v63 = vsub.f32 %v3416_v33, %v10027_v61  ;;  %v12720_v62 = vld [vmem:[#allocation81_spill] sm:$0xff] }
 0x2e2   :  { %12714 = vst [vmem:[#allocation43_spill] sm:$0xff] %v10048_v29  ;;  %v10066_v38 = vsub.f32 %v3274_v47, %v10030_v17  ;;  %3937 = vmatprep.mubr.f32.mxu0 %v3936_v21  ;;  %v3942_v1 = vand.u32 4294901760, %v3941_v8  ;;  %v3100_v14 = vadd.f32 %v3099_v34, %v2687_v0  ;;  %4636 = vmatprep.mubr.f32.mxu1 %v10048_v29  ;;  %v2707_v40 = vpop.f32.mrf.mxu0  ;;  %v3108_v52 = vpop.f32.mrf.mxu1  ;;  %v12721_v13 = vand.u32 4294901760, %v10000_v9  ;;  %v80_v47 = vld [vmem:[%s11480_s0 + $0x1f8] sm:$0xff] }
 0x2e3   :  { %12717 = vst [vmem:[#allocation39_spill] sm:$0xff] %v10063_v63  ;;  %v10069_v18 = vand.u32 4294901760, %v3276_v56  ;;  %v2696_v23 = vadd.f32 %v2695_v46, %v12720_v62  ;;  %v3277_v49 = vmul.f32 %v3095_v27, %v78_v58  ;;  %v3957_v21 = vand.u32 4294901760, %v3956_v7 }
 0x2e4   :  { %12718 = vst [vmem:[#allocation165_spill] sm:$0xff] %v10066_v38  ;;  %v3950_v33 = vsub.f32 %v10000_v9, %v12721_v13  ;;  %v3278_v0 = vmul.f32 %v3100_v14, %v79_v39  ;;  %v3102_v34 = vadd.f32 %v3101_v10, %v2689_v41  ;;  %v11962_v8 = vand.u32 4294901760, %v10042_v35  ;;  %4638 = vmatmul.mubr.f32.gmra.mxu1 %v10030_v17  ;;  %v2709_v61 = vpop.f32.mrf.mxu0  ;;  %v3113_v32 = vpop.f32.mrf.mxu1  ;;  %v82_v14 = vld [vmem:[%s11480_s0 + $0x208] sm:$0xff] }
 0x2e5   :  { %12719 = vst [vmem:[#allocation166_spill] sm:$0xff] %v10069_v18  ;;  %3943 = vmatmul.mubr.f32.gmra.mxu0 %v3942_v1  ;;  %v10081_v46 = vsub.f32 %v3276_v56, %v10069_v18  ;;  %v3422_v58 = vsel %vm3330_vm1, %v3277_v49, 0  ;;  %v12723_v27 = vand.u32 4294901760, %v9987_v36  ;;  %v81_v56 = vld [vmem:[%s11480_s0 + $0x200] sm:$0xff] }
 0x2e6   :  { %v3951_v13 = vand.u32 4294901760, %v3950_v33  ;;  %v10087_v1 = vand.u32 4294901760, %v3422_v58  ;;  %v10089_v7 = vand.u32 4294901760, %v3278_v0  ;;  %v3279_v10 = vmul.f32 %v3102_v34, %v80_v47  ;;  %v2714_v39 = vpop.f32.mrf.mxu0  ;;  %v3115_v49 = vpop.f32.mrf.mxu1  ;;  %v12729_v34 = vld [vmem:[#allocation41_spill] sm:$0xff] }
 0x2e7   :  { %12722 = vst [vmem:[#allocation81_spill] sm:$0xff] %v10081_v46  ;;  %v3971_v62 = vsub.f32 %v9987_v36, %v12723_v27  ;;  %v3965_v41 = vsub.f32 %v10042_v35, %v11962_v8  ;;  %v10099_v33 = vsub.f32 %v3419_v43, %v10048_v29  ;;  %v12727_v27 = vld [vmem:[#allocation45_spill] sm:$0xff]  ;;  %v3107_v36 = vadd.f32 %v3106_v37, %v2694_v24 }
 0x2e8   :  { %12724 = vst [vmem:[#allocation167_spill] sm:$0xff] %v10087_v1  ;;  %12725 = vst [vmem:[#allocation168_spill] sm:$0xff] %v10089_v7  ;;  %3952 = vmatprep.mubr.f32.mxu0 %v3951_v13  ;;  %v2701_v17 = vadd.f32 %v2700_v45, %v12727_v27  ;;  %v10103_v47 = vsub.f32 %v3278_v0, %v10089_v7  ;;  %v2703_v8 = vadd.f32 %v2702_v25, %v12729_v34  ;;  %v2716_v43 = vpop.f32.mrf.mxu0  ;;  %v3120_v13 = vpop.f32.mrf.mxu1  ;;  %v83_v34 = vld [vmem:[%s11480_s0 + $0x210] sm:$0xff] }
 0x2e9   :  { %12726 = vst [vmem:[#allocation169_spill] sm:$0xff] %v10099_v33  ;;  %3958 = vmatmul.mubr.f32.gmra.mxu0 %v3957_v21  ;;  %v3425_v35 = vsel %vm3330_vm1, %v3279_v10, 0  ;;  %v3966_v9 = vand.u32 4294901760, %v3965_v41  ;;  %4643 = vmatprep.mubr.f32.mxu1 %v10087_v1  ;;  %v3280_v37 = vmul.f32 %v3107_v36, %v81_v56  ;;  %v3109_v21 = vadd.f32 %v3108_v52, %v2696_v23  ;;  %v12732_v10 = vld [vmem:[#allocation82_spill] sm:$0xff] }
 0x2ea   :  { %12728 = vst [vmem:[#allocation45_spill] sm:$0xff] %v10103_v47  ;;  %v10112_v24 = vand.u32 4294901760, %v3425_v35  ;;  %4645 = vmatmul.mubr.f32.gmra.mxu1 %v10069_v18  ;;  %v10116_v25 = vsub.f32 %v3422_v58, %v10087_v1  ;;  %v3972_v0 = vand.u32 4294901760, %v3971_v62  ;;  %v2708_v41 = vadd.f32 %v2707_v40, %v12732_v10  ;;  %v2721_v45 = vpop.f32.mrf.mxu0  ;;  %v3122_v29 = vpop.f32.mrf.mxu1  ;;  %v12735_v62 = vld [vmem:[#allocation47_spill] sm:$0xff] }
 0x2eb   :  { %3967 = vmatprep.mubr.f32.mxu0 %v3966_v9  ;;  %v11977_v27 = vand.u32 4294901760, %v10063_v63  ;;  %v10123_v48 = vand.u32 4294901760, %v3280_v37  ;;  %v3281_v36 = vmul.f32 %v3109_v21, %v82_v14  ;;  %v12734_v23 = vand.u32 4294901760, %v10022_v51  ;;  %v84_v9 = vld [vmem:[%s11480_s0 + $0x218] sm:$0xff] }
 0x2ec   :  { %12730 = vst [vmem:[#allocation41_spill] sm:$0xff] %v10112_v24  ;;  %12731 = vst [vmem:[#allocation170_spill] sm:$0xff] %v10116_v25  ;;  %v3114_v58 = vadd.f32 %v3113_v32, %v2701_v17  ;;  %4650 = vmatprep.mubr.f32.mxu1 %v10112_v24  ;;  %v2710_v56 = vadd.f32 %v2709_v61, %v12735_v62  ;;  %v3116_v21 = vadd.f32 %v3115_v49, %v2703_v8  ;;  %v2723_v10 = vpop.f32.mrf.mxu0  ;;  %v3127_v18 = vpop.f32.mrf.mxu1  ;;  %v12738_v62 = vld [vmem:[#allocation42_spill] sm:$0xff] }
 0x2ed   :  { %12733 = vst [vmem:[#allocation82_spill] sm:$0xff] %v10123_v48  ;;  %v3986_v52 = vsub.f32 %v10022_v51, %v12734_v23  ;;  %3973 = vmatmul.mubr.f32.gmra.mxu0 %v3972_v0  ;;  %v3980_v14 = vsub.f32 %v10063_v63, %v11977_v27  ;;  %v10138_v32 = vsub.f32 %v3280_v37, %v10123_v48  ;;  %v3428_v17 = vsel %vm3330_vm1, %v3281_v36, 0 }
 0x2ee   :  { %v3282_v23 = vmul.f32 %v3114_v58, %v83_v34  ;;  %v11980_v1 = vand.u32 4294901760, %v10099_v33  ;;  %4652 = vmatmul.mubr.f32.gmra.mxu1 %v10089_v7  ;;  %v10143_v0 = vand.u32 4294901760, %v3428_v17  ;;  %v2715_v40 = vadd.f32 %v2714_v39, %v12738_v62  ;;  %v2728_v27 = vpop.f32.mrf.mxu0  ;;  %v3129_v8 = vpop.f32.mrf.mxu1  ;;  %v85_v58 = vld [vmem:[%s11480_s0 + $0x220] sm:$0xff] }
 0x2ef   :  { %12736 = vst [vmem:[#allocation47_spill] sm:$0xff] %v10138_v32  ;;  %v3981_v61 = vand.u32 4294901760, %v3980_v14  ;;  %v3283_v51 = vmul.f32 %v3116_v21, %v84_v9  ;;  %v3987_v49 = vand.u32 4294901760, %v3986_v52  ;;  %v12740_v34 = vand.u32 4294901760, %v10066_v38  ;;  %v12742_v9 = vld [vmem:[#allocation83_spill] sm:$0xff] }
 0x2f0   :  { %12737 = vst [vmem:[#allocation171_spill] sm:$0xff] %v10143_v0  ;;  %v10146_v63 = vand.u32 4294901760, %v3282_v23  ;;  %v3995_v37 = vsub.f32 %v10099_v33, %v11980_v1  ;;  %v10158_v39 = vsub.f32 %v3425_v35, %v10112_v24  ;;  %v2717_v52 = vadd.f32 %v2716_v43, %v12742_v9  ;;  %4657 = vmatprep.mubr.f32.mxu1 %v10143_v0  ;;  %v2730_v62 = vpop.f32.mrf.mxu0  ;;  %v3134_v1 = vpop.f32.mrf.mxu1  ;;  %v12744_v33 = vld [vmem:[#allocation49_spill] sm:$0xff]  ;;  %v86_v35 = vld [vmem:[%s11480_s0 + $0x228] sm:$0xff] }
 0x2f1   :  { %v4001_v36 = vsub.f32 %v10066_v38, %v12740_v34  ;;  %3982 = vmatprep.mubr.f32.mxu0 %v3981_v61  ;;  %v3431_v14 = vsel %vm3330_vm1, %v3283_v51, 0  ;;  %v3121_v21 = vadd.f32 %v3120_v13, %v2708_v41  ;;  %v2722_v11 = vadd.f32 %v2721_v45, %v12744_v33 }
 0x2f2   :  { %12739 = vst [vmem:[#allocation42_spill] sm:$0xff] %v10146_v63  ;;  %12741 = vst [vmem:[#allocation172_spill] sm:$0xff] %v10158_v39  ;;  %3988 = vmatmul.mubr.f32.gmra.mxu0 %v3987_v49  ;;  %v10164_v34 = vand.u32 4294901760, %v3431_v14  ;;  %v3996_v38 = vand.u32 4294901760, %v3995_v37  ;;  %4659 = vmatmul.mubr.f32.gmra.mxu1 %v10123_v48  ;;  %v3123_v43 = vadd.f32 %v3122_v29, %v2710_v56  ;;  %v11993_v13 = vand.u32 4294901760, %v10116_v25  ;;  %v87_v49 = vld [vmem:[%s11480_s0 + $0x230] sm:$0xff]  ;;  %v2735_v37 = vpop.f32.mrf.mxu0  ;;  %v3136_v33 = vpop.f32.mrf.mxu1 }
 0x2f3   :  { %v3284_v51 = vmul.f32 %v3121_v21, %v85_v58  ;;  %v12745_v41 = vand.u32 4294901760, %v10081_v46  ;;  %v10179_v45 = vsub.f32 %v3428_v17, %v10143_v0  ;;  %v10182_v9 = vsub.f32 %v3282_v23, %v10146_v63  ;;  %v12749_v21 = vld [vmem:[#allocation44_spill] sm:$0xff]  ;;  %v88_v17 = vld [vmem:[%s11480_s0 + $0x238] sm:$0xff] }
 0x2f4   :  { %12743 = vst [vmem:[#allocation83_spill] sm:$0xff] %v10164_v34  ;;  %3997 = vmatprep.mubr.f32.mxu0 %v3996_v38  ;;  %v4002_v29 = vand.u32 4294901760, %v4001_v36  ;;  %v3128_v56 = vadd.f32 %v3127_v18, %v2715_v40  ;;  %4664 = vmatprep.mubr.f32.mxu1 %v10164_v34  ;;  %v3285_v7 = vmul.f32 %v3123_v43, %v86_v35  ;;  %v2737_v23 = vpop.f32.mrf.mxu0  ;;  %v3141_v0 = vpop.f32.mrf.mxu1  ;;  %v12002_v36 = vand.u32 4294901760, %v10158_v39 }
 0x2f5   :  { %v4016_v61 = vsub.f32 %v10081_v46, %v12745_v41  ;;  %12746 = vst [vmem:[#allocation49_spill] sm:$0xff] %v10179_v45  ;;  %12747 = vst [vmem:[#allocation173_spill] sm:$0xff] %v10182_v9  ;;  %v10185_v58 = vand.u32 4294901760, %v3284_v51  ;;  %v2724_v41 = vadd.f32 %v2723_v10, %v12749_v21  ;;  %v4010_v48 = vsub.f32 %v10116_v25, %v11993_v13 }
 0x2f6   :  { %4003 = vmatmul.mubr.f32.gmra.mxu0 %v4002_v29  ;;  %v3286_v18 = vmul.f32 %v3128_v56, %v87_v49  ;;  %v3130_v40 = vadd.f32 %v3129_v8, %v2717_v52  ;;  %4666 = vmatmul.mubr.f32.gmra.mxu1 %v10146_v63  ;;  %v3434_v35 = vsel %vm3330_vm1, %v3285_v7, 0  ;;  %v12751_v21 = vand.u32 4294901760, %v10103_v47  ;;  %v2742_v24 = vpop.f32.mrf.mxu0  ;;  %v3143_v46 = vpop.f32.mrf.mxu1  ;;  %v89_v7 = vld [vmem:[%s11480_s0 + $0x240] sm:$0xff]  ;;  %v12755_v49 = vld [vmem:[#allocation84_spill] sm:$0xff] }
 0x2f7   :  { %12748 = vst [vmem:[#allocation174_spill] sm:$0xff] %v10185_v58  ;;  %v4017_v38 = vand.u32 4294901760, %v4016_v61  ;;  %v10197_v10 = vsub.f32 %v3284_v51, %v10185_v58  ;;  %v4011_v43 = vand.u32 4294901760, %v4010_v48  ;;  %v10203_v29 = vand.u32 4294901760, %v3434_v35 }
 0x2f8   :  { %v4031_v13 = vsub.f32 %v10103_v47, %v12751_v21  ;;  %v10205_v61 = vand.u32 4294901760, %v3286_v18  ;;  %v3287_v8 = vmul.f32 %v3130_v40, %v88_v17  ;;  %v4025_v52 = vsub.f32 %v10158_v39, %v12002_v36  ;;  %v2744_v63 = vpop.f32.mrf.mxu0  ;;  %v3148_v47 = vpop.f32.mrf.mxu1  ;;  %v12757_v40 = vld [vmem:[#allocation50_spill] sm:$0xff] }
 0x2f9   :  { %12750 = vst [vmem:[#allocation44_spill] sm:$0xff] %v10197_v10  ;;  %12752 = vst [vmem:[#allocation175_spill] sm:$0xff] %v10203_v29  ;;  %v10215_v51 = vsub.f32 %v3431_v14, %v10164_v34  ;;  %4012 = vmatprep.mubr.f32.mxu0 %v4011_v43  ;;  %v2729_v56 = vadd.f32 %v2728_v27, %v12755_v49  ;;  %v3135_v21 = vadd.f32 %v3134_v1, %v2722_v11  ;;  %v90_v14 = vld [vmem:[%s11480_s0 + $0x248] sm:$0xff]  ;;  %v91_v27 = vld [vmem:[%s11480_s0 + $0x250] sm:$0xff] }
 0x2fa   :  { %12753 = vst [vmem:[#allocation176_spill] sm:$0xff] %v10205_v61  ;;  %4018 = vmatmul.mubr.f32.gmra.mxu0 %v4017_v38  ;;  %v10219_v17 = vsub.f32 %v3286_v18, %v10205_v61  ;;  %v2731_v36 = vadd.f32 %v2730_v62, %v12757_v40  ;;  %v3437_v39 = vsel %vm3330_vm1, %v3287_v8, 0  ;;  %v4026_v25 = vand.u32 4294901760, %v4025_v52  ;;  %4671 = vmatprep.mubr.f32.mxu1 %v10203_v29  ;;  %v2749_v18 = vpop.f32.mrf.mxu0  ;;  %v3150_v43 = vpop.f32.mrf.mxu1  ;;  %v12760_v52 = vld [vmem:[#allocation46_spill] sm:$0xff] }
 0x2fb   :  { %12754 = vst [vmem:[#allocation177_spill] sm:$0xff] %v10215_v51  ;;  %v10228_v11 = vand.u32 4294901760, %v3437_v39  ;;  %v3288_v1 = vmul.f32 %v3135_v21, %v89_v7  ;;  %v3137_v38 = vadd.f32 %v3136_v33, %v2724_v41  ;;  %4673 = vmatmul.mubr.f32.gmra.mxu1 %v10185_v58  ;;  %v10232_v62 = vsub.f32 %v3434_v35, %v10203_v29 }
 0x2fc   :  { %12756 = vst [vmem:[#allocation84_spill] sm:$0xff] %v10219_v17  ;;  %4027 = vmatprep.mubr.f32.mxu0 %v4026_v25  ;;  %v4032_v8 = vand.u32 4294901760, %v4031_v13  ;;  %v2736_v49 = vadd.f32 %v2735_v37, %v12760_v52  ;;  %v12762_v41 = vand.u32 4294901760, %v10138_v32  ;;  %v3142_v21 = vadd.f32 %v3141_v0, %v2729_v56  ;;  %v92_v25 = vld [vmem:[%s11480_s0 + $0x258] sm:$0xff]  ;;  %v2751_v13 = vpop.f32.mrf.mxu0  ;;  %v3155_v37 = vpop.f32.mrf.mxu1 }
 0x2fd   :  { %12758 = vst [vmem:[#allocation50_spill] sm:$0xff] %v10228_v11  ;;  %12759 = vst [vmem:[#allocation178_spill] sm:$0xff] %v10232_v62  ;;  %v10239_v48 = vand.u32 4294901760, %v3288_v1  ;;  %v3289_v33 = vmul.f32 %v3137_v38, %v90_v14  ;;  %4678 = vmatprep.mubr.f32.mxu1 %v10228_v11  ;;  %v12763_v52 = vld [vmem:[#allocation85_spill] sm:$0xff]  ;;  %v12764_v14 = vand.u32 4294901760, %v10179_v45  ;;  %v3144_v58 = vadd.f32 %v3143_v46, %v2731_v36 }
 0x2fe   :  { %v4046_v7 = vsub.f32 %v10138_v32, %v12762_v41  ;;  %4033 = vmatmul.mubr.f32.gmra.mxu0 %v4032_v8  ;;  %v2738_v40 = vadd.f32 %v2737_v23, %v12763_v52  ;;  %v3290_v41 = vmul.f32 %v3142_v21, %v91_v27  ;;  %v12017_v29 = vand.u32 4294901760, %v10215_v51  ;;  %v10259_v34 = vpop.f32.mrf.mxu0  ;;  %v3157_v8 = vpop.f32.mrf.mxu1  ;;  %v12767_v52 = vld [vmem:[#allocation52_spill] sm:$0xff]  ;;  %v93_v21 = vld [vmem:[%s11480_s0 + $0x260] sm:$0xff] }
 0x2ff   :  { %12761 = vst [vmem:[#allocation46_spill] sm:$0xff] %v10239_v48  ;;  %v4040_v38 = vsub.f32 %v10179_v45, %v12764_v14  ;;  %v10254_v0 = vsub.f32 %v3288_v1, %v10239_v48  ;;  %v3440_v56 = vsel %vm3330_vm1, %v3289_v33, 0  ;;  %4680 = vmatmul.mubr.f32.gmra.mxu1 %v10205_v61  ;;  %v2743_v32 = vadd.f32 %v2742_v24, %v12767_v52 }
 0x300   :  { %v10261_v35 = vand.u32 4294901760, %v3440_v56  ;;  %v3291_v14 = vmul.f32 %v3144_v58, %v92_v25  ;;  %v4047_v46 = vand.u32 4294901760, %v4046_v7  ;;  %v10264_v36 = vand.u32 4294901760, %v3290_v41  ;;  %v2758_v61 = vpop.f32.mrf.mxu0  ;;  %v12771_v58 = vld [vmem:[#allocation48_spill] sm:$0xff] }
 0x301   :  { %12765 = vst [vmem:[#allocation85_spill] sm:$0xff] %v10254_v0  ;;  %v4041_v23 = vand.u32 4294901760, %v4040_v38  ;;  %v4055_v27 = vsub.f32 %v10215_v51, %v12017_v29  ;;  %v12769_v1 = vand.u32 4294901760, %v10182_v9  ;;  %v3162_v38 = vpop.f32.mrf.mxu1  ;;  %v10276_v24 = vsub.f32 %v3437_v39, %v10228_v11  ;;  %v12773_v51 = vld [vmem:[#allocation86_spill] sm:$0xff]  ;;  %v94_v39 = vld [vmem:[%s11480_s0 + $0x268] sm:$0xff] }
 0x302   :  { %12766 = vst [vmem:[#allocation179_spill] sm:$0xff] %v10261_v35  ;;  %12768 = vst [vmem:[#allocation52_spill] sm:$0xff] %v10264_v36  ;;  %v2745_v7 = vadd.f32 %v2744_v63, %v12771_v58  ;;  %v3443_v25 = vsel %vm3330_vm1, %v3291_v14, 0  ;;  %v3149_v52 = vadd.f32 %v3148_v47, %v2736_v49  ;;  %4685 = vmatprep.mubr.f32.mxu1 %v10261_v35  ;;  %v2763_v63 = vpop.f32.mrf.mxu0  ;;  %v12774_v58 = vand.u32 4294901760, %v10197_v10 }
 0x303   :  { %v4061_v33 = vsub.f32 %v10182_v9, %v12769_v1  ;;  %12770 = vst [vmem:[#allocation180_spill] sm:$0xff] %v10276_v24  ;;  %4042 = vmatprep.mubr.f32.mxu0 %v4041_v23  ;;  %v10282_v1 = vand.u32 4294901760, %v3443_v25  ;;  %v4056_v9 = vand.u32 4294901760, %v4055_v27  ;;  %v2750_v45 = vadd.f32 %v2749_v18, %v12773_v51  ;;  %4687 = vmatmul.mubr.f32.gmra.mxu1 %v10239_v48  ;;  %v3164_v23 = vpop.f32.mrf.mxu1  ;;  %v95_v51 = vld [vmem:[%s11480_s0 + $0x270] sm:$0xff] }
 0x304   :  { %4048 = vmatmul.mubr.f32.gmra.mxu0 %v4047_v46  ;;  %v3292_v14 = vmul.f32 %v3149_v52, %v93_v21  ;;  %v3151_v47 = vadd.f32 %v3150_v43, %v2738_v40  ;;  %v4076_v46 = vsub.f32 %v10197_v10, %v12774_v58  ;;  %v10297_v18 = vsub.f32 %v3440_v56, %v10261_v35  ;;  %v2765_v43 = vpop.f32.mrf.mxu0  ;;  %v12777_v58 = vld [vmem:[#allocation54_spill] sm:$0xff] }
 0x305   :  { %12772 = vst [vmem:[#allocation48_spill] sm:$0xff] %v10282_v1  ;;  %v10300_v27 = vsub.f32 %v3290_v41, %v10264_v36  ;;  %4057 = vmatprep.mubr.f32.mxu0 %v4056_v9  ;;  %v4062_v29 = vand.u32 4294901760, %v4061_v33  ;;  %v3156_v21 = vadd.f32 %v3155_v37, %v2743_v32  ;;  %4692 = vmatprep.mubr.f32.mxu1 %v10282_v1  ;;  %v3169_v40 = vpop.f32.mrf.mxu1  ;;  %v12778_v11 = vand.u32 4294901760, %v10232_v62  ;;  %v96_v41 = vld [vmem:[%s11480_s0 + $0x278] sm:$0xff] }
 0x306   :  { %12775 = vst [vmem:[#allocation86_spill] sm:$0xff] %v10297_v18  ;;  %v10303_v52 = vand.u32 4294901760, %v3292_v14  ;;  %v2752_v49 = vadd.f32 %v2751_v13, %v12777_v58  ;;  %v3293_v48 = vmul.f32 %v3151_v47, %v94_v39  ;;  %v4077_v9 = vand.u32 4294901760, %v4076_v46  ;;  %v2770_v35 = vpop.f32.mrf.mxu0 }
 0x307   :  { %v4070_v56 = vsub.f32 %v10232_v62, %v12778_v11  ;;  %v3294_v32 = vmul.f32 %v3156_v21, %v95_v51  ;;  %v3158_v37 = vadd.f32 %v3157_v8, %v2745_v7  ;;  %v12034_v33 = vand.u32 4294901760, %v10276_v24  ;;  %4694 = vmatmul.mubr.f32.gmra.mxu1 %v10264_v36  ;;  %v3171_v10 = vpop.f32.mrf.mxu1  ;;  %v98_v21 = vld [vmem:[%s11480_s0 + $0x288] sm:$0xff] }
 0x308   :  { %12776 = vst [vmem:[#allocation181_spill] sm:$0xff] %v10303_v52  ;;  %4063 = vmatmul.mubr.f32.gmra.mxu0 %v4062_v29  ;;  %v10315_v13 = vsub.f32 %v3292_v14, %v10303_v52  ;;  %v3446_v39 = vsel %vm3330_vm1, %v3293_v48, 0  ;;  %v12780_v47 = vand.u32 4294901760, %v10219_v17  ;;  %v97_v14 = vld [vmem:[%s11480_s0 + $0x280] sm:$0xff]  ;;  %v2772_v51 = vpop.f32.mrf.mxu0 }
 0x309   :  { %v4071_v11 = vand.u32 4294901760, %v4070_v56  ;;  %v10321_v29 = vand.u32 4294901760, %v3446_v39  ;;  %v10323_v46 = vand.u32 4294901760, %v3294_v32  ;;  %v3295_v8 = vmul.f32 %v3158_v37, %v96_v41  ;;  %v3176_v48 = vpop.f32.mrf.mxu1 }
 0x30a   :  { %12779 = vst [vmem:[#allocation54_spill] sm:$0xff] %v10315_v13  ;;  %v4091_v58 = vsub.f32 %v10219_v17, %v12780_v47  ;;  %v4085_v7 = vsub.f32 %v10276_v24, %v12034_v33  ;;  %v10333_v56 = vsub.f32 %v3443_v25, %v10282_v1  ;;  %v12783_v47 = vld [vmem:[#allocation51_spill] sm:$0xff]  ;;  %v3163_v41 = vadd.f32 %v3162_v38, %v2750_v45  ;;  %v2777_v25 = vpop.f32.mrf.mxu0 }
 0x30b   :  { %12781 = vst [vmem:[#allocation182_spill] sm:$0xff] %v10321_v29  ;;  %12782 = vst [vmem:[#allocation183_spill] sm:$0xff] %v10323_v46  ;;  %4072 = vmatprep.mubr.f32.mxu0 %v4071_v11  ;;  %v2757_v36 = vadd.f32 %v10259_v34, %v12783_v47  ;;  %v10338_v37 = vsub.f32 %v3294_v32, %v10323_v46  ;;  %v12784_v33 = vld [vmem:[#allocation87_spill] sm:$0xff]  ;;  %v3449_v24 = vsel %vm3330_vm1, %v3295_v8, 0  ;;  %4699 = vmatprep.mubr.f32.mxu1 %v10321_v29  ;;  %v3178_v11 = vpop.f32.mrf.mxu1  ;;  %v99_v47 = vld [vmem:[%s11480_s0 + $0x290] sm:$0xff] }
 0x30c   :  { %4078 = vmatmul.mubr.f32.gmra.mxu0 %v4077_v9  ;;  %v2759_v17 = vadd.f32 %v2758_v61, %v12784_v33  ;;  %v4086_v62 = vand.u32 4294901760, %v4085_v7  ;;  %v10347_v45 = vand.u32 4294901760, %v3449_v24  ;;  %v3296_v38 = vmul.f32 %v3163_v41, %v97_v14  ;;  %4701 = vmatmul.mubr.f32.gmra.mxu1 %v10303_v52  ;;  %v12786_v33 = vld [vmem:[#allocation56_spill] sm:$0xff]  ;;  %v2779_v34 = vpop.f32.mrf.mxu0 }
 0x30d   :  { %v3165_v9 = vadd.f32 %v3164_v23, %v2752_v49  ;;  %v10351_v61 = vsub.f32 %v3446_v39, %v10321_v29  ;;  %v4092_v32 = vand.u32 4294901760, %v4091_v58  ;;  %v2764_v8 = vadd.f32 %v2763_v63, %v12786_v33  ;;  %v3183_v1 = vpop.f32.mrf.mxu1  ;;  %v12789_v58 = vld [vmem:[#allocation53_spill] sm:$0xff] }
 0x30e   :  { %12785 = vst [vmem:[#allocation51_spill] sm:$0xff] %v10347_v45  ;;  %4087 = vmatprep.mubr.f32.mxu0 %v4086_v62  ;;  %v12048_v7 = vand.u32 4294901760, %v10297_v18  ;;  %v10358_v28 = vand.u32 4294901760, %v3296_v38  ;;  %v12788_v49 = vand.u32 4294901760, %v10254_v0  ;;  %v3170_v14 = vadd.f32 %v3169_v40, %v2757_v36  ;;  %v100_v62 = vld [vmem:[%s11480_s0 + $0x298] sm:$0xff]  ;;  %4706 = vmatprep.mubr.f32.mxu1 %v10347_v45  ;;  %v10372_v33 = vpop.f32.mrf.mxu0 }
 0x30f   :  { %v3297_v23 = vmul.f32 %v3165_v9, %v98_v21  ;;  %v2766_v41 = vadd.f32 %v2765_v43, %v12789_v58  ;;  %v3172_v9 = vadd.f32 %v3171_v10, %v2759_v17  ;;  %v12053_v29 = vand.u32 4294901760, %v10333_v56  ;;  %v12792_v58 = vld [vmem:[#allocation88_spill] sm:$0xff] }
 0x310   :  { %12787 = vst [vmem:[#allocation87_spill] sm:$0xff] %v10358_v28  ;;  %v4106_v39 = vsub.f32 %v10254_v0, %v12788_v49  ;;  %4093 = vmatmul.mubr.f32.gmra.mxu0 %v4092_v32  ;;  %v4100_v21 = vsub.f32 %v10297_v18, %v12048_v7  ;;  %v3185_v49 = vpop.f32.mrf.mxu1  ;;  %v10375_v36 = vsub.f32 %v3296_v38, %v10358_v28  ;;  %v10383_v10 = vpop.f32.mrf.mxu0 }
 0x311   :  { %v3452_v40 = vsel %vm3330_vm1, %v3297_v23, 0  ;;  %v3298_v52 = vmul.f32 %v3170_v14, %v99_v47  ;;  %4708 = vmatmul.mubr.f32.gmra.mxu1 %v10323_v46  ;;  %v2771_v63 = vadd.f32 %v2770_v35, %v12792_v58  ;;  %v3299_v7 = vmul.f32 %v3172_v9, %v100_v62  ;;  %v101_v14 = vld [vmem:[%s11480_s0 + $0x2a0] sm:$0xff] }
 0x312   :  { %12790 = vst [vmem:[#allocation56_spill] sm:$0xff] %v10375_v36  ;;  %v10380_v32 = vand.u32 4294901760, %v3452_v40  ;;  %v4101_v43 = vand.u32 4294901760, %v4100_v21  ;;  %v3190_v17 = vpop.f32.mrf.mxu1  ;;  %v4107_v0 = vand.u32 4294901760, %v4106_v39  ;;  %v4115_v38 = vsub.f32 %v10333_v56, %v12053_v29 }
 0x313   :  { %v10385_v18 = vand.u32 4294901760, %v3298_v52  ;;  %v12794_v47 = vand.u32 4294901760, %v10300_v27  ;;  %v10397_v35 = vsub.f32 %v3449_v24, %v10347_v45  ;;  %v2773_v39 = vadd.f32 %v2772_v51, %v9108_v55  ;;  %v102_v24 = vld [vmem:[%s11480_s0 + $0x2a8] sm:$0xff] }
 0x314   :  { %12791 = vst [vmem:[#allocation53_spill] sm:$0xff] %v10380_v32  ;;  %4102 = vmatprep.mubr.f32.mxu0 %v4101_v43  ;;  %v3455_v62 = vsel %vm3330_vm1, %v3299_v7, 0  ;;  %v3177_v21 = vadd.f32 %v3176_v48, %v2764_v8  ;;  %4713 = vmatprep.mubr.f32.mxu1 %v10380_v32  ;;  %v3192_v9 = vpop.f32.mrf.mxu1  ;;  %v4116_v46 = vand.u32 4294901760, %v4115_v38  ;;  %v12796_v55 = vld [vmem:[#allocation59_spill] sm:$0xff]  ;;  %v3179_v8 = vadd.f32 %v3178_v11, %v2766_v41 }
 0x315   :  { %12793 = vst [vmem:[#allocation88_spill] sm:$0xff] %v10385_v18  ;;  %v4121_v23 = vsub.f32 %v10300_v27, %v12794_v47  ;;  %4108 = vmatmul.mubr.f32.gmra.mxu0 %v4107_v0  ;;  %v10404_v47 = vsub.f32 %v3298_v52, %v10385_v18  ;;  %v10406_v29 = vand.u32 4294901760, %v3455_v62  ;;  %4715 = vmatmul.mubr.f32.gmra.mxu1 %v10358_v28  ;;  %v12060_v7 = vand.u32 4294901760, %v10351_v61  ;;  %v103_v0 = vld [vmem:[%s11480_s0 + $0x2b0] sm:$0xff]  ;;  %v2791_v52 = vpop.f32.mrf.mxu0  ;;  %v12799_v41 = vld [vmem:[#allocation55_spill] sm:$0xff] }
 0x316   :  { %v2778_v51 = vadd.f32 %v2777_v25, %v12796_v55  ;;  %v3300_v48 = vmul.f32 %v3177_v21, %v101_v14  ;;  %v3197_v43 = vpop.f32.mrf.mxu1  ;;  %v10418_v38 = vsub.f32 %v3452_v40, %v10380_v32  ;;  %4117 = vmatprep.mubr.f32.mxu0 %v4116_v46  ;;  %v12797_v45 = vand.u32 4294901760, %v10315_v13  ;;  %v104_v46 = vld [vmem:[%s11480_s0 + $0x2b8] sm:$0xff] }
 0x317   :  { %12795 = vst [vmem:[#allocation184_spill] sm:$0xff] %v10406_v29  ;;  %v4122_v58 = vand.u32 4294901760, %v4121_v23  ;;  %v3184_v25 = vadd.f32 %v3183_v1, %v2771_v63  ;;  %4720 = vmatprep.mubr.f32.mxu1 %v10406_v29  ;;  %v2780_v14 = vadd.f32 %v2779_v34, %v12799_v41  ;;  %v3301_v21 = vmul.f32 %v3179_v8, %v102_v24  ;;  %v2793_v32 = vpop.f32.mrf.mxu0 }
 0x318   :  { %v4136_v28 = vsub.f32 %v10315_v13, %v12797_v45  ;;  %v10424_v11 = vand.u32 4294901760, %v3300_v48  ;;  %v4130_v55 = vsub.f32 %v10351_v61, %v12060_v7  ;;  %v3199_v40 = vpop.f32.mrf.mxu1  ;;  %v3186_v45 = vadd.f32 %v3185_v49, %v2773_v39 }
 0x319   :  { %4123 = vmatmul.mubr.f32.gmra.mxu0 %v4122_v58  ;;  %v3302_v1 = vmul.f32 %v3184_v25, %v103_v0  ;;  %v12065_v63 = vand.u32 4294901760, %v10397_v35  ;;  %4722 = vmatmul.mubr.f32.gmra.mxu1 %v10385_v18  ;;  %v3458_v24 = vsel %vm3330_vm1, %v3301_v21, 0  ;;  %v12800_v41 = vand.u32 4294901760, %v10338_v37  ;;  %v12802_v25 = vld [vmem:[#allocation89_spill] sm:$0xff] }
 0x31a   :  { %12798 = vst [vmem:[#allocation59_spill] sm:$0xff] %v10424_v11  ;;  %v10437_v34 = vsub.f32 %v3300_v48, %v10424_v11  ;;  %v4131_v8 = vand.u32 4294901760, %v4130_v55  ;;  %v3204_v13 = vpop.f32.mrf.mxu1  ;;  %v10443_v23 = vand.u32 4294901760, %v3458_v24  ;;  %v4137_v58 = vand.u32 4294901760, %v4136_v28  ;;  %v105_v48 = vld [vmem:[%s11480_s0 + $0x2c0] sm:$0xff] }
 0x31b   :  { %v4151_v7 = vsub.f32 %v10338_v37, %v12800_v41  ;;  %v3303_v49 = vmul.f32 %v3186_v45, %v104_v46  ;;  %v4145_v39 = vsub.f32 %v10397_v35, %v12065_v63  ;;  %v10452_v0 = vsub.f32 %v3455_v62, %v10406_v29  ;;  %v12804_v46 = vld [vmem:[#allocation61_spill] sm:$0xff]  ;;  %v106_v62 = vld [vmem:[%s11480_s0 + $0x2c8] sm:$0xff] }
 0x31c   :  { %12801 = vst [vmem:[#allocation55_spill] sm:$0xff] %v10443_v23  ;;  %4132 = vmatprep.mubr.f32.mxu0 %v4131_v8  ;;  %v2785_v21 = vadd.f32 %v10372_v33, %v12802_v25  ;;  %v10456_v55 = vand.u32 4294901760, %v3302_v1  ;;  %v3191_v41 = vadd.f32 %v3190_v17, %v2778_v51  ;;  %v2787_v45 = vadd.f32 %v10383_v10, %v12804_v46  ;;  %v3206_v8 = vpop.f32.mrf.mxu1 }
 0x31d   :  { %4138 = vmatmul.mubr.f32.gmra.mxu0 %v4137_v58  ;;  %v3461_v63 = vsel %vm3330_vm1, %v3303_v49, 0  ;;  %v4146_v18 = vand.u32 4294901760, %v4145_v39  ;;  %4727 = vmatprep.mubr.f32.mxu1 %v10443_v23  ;;  %v4152_v25 = vand.u32 4294901760, %v4151_v7  ;;  %v3193_v51 = vadd.f32 %v3192_v9, %v2780_v14  ;;  %v2798_v58 = vpop.f32.mrf.mxu0  ;;  %v12806_v49 = vld [vmem:[#allocation57_spill] sm:$0xff]  ;;  %v107_v7 = vld [vmem:[%s11480_s0 + $0x2d0] sm:$0xff] }
 0x31e   :  { %12803 = vst [vmem:[#allocation89_spill] sm:$0xff] %v10456_v55  ;;  %v10466_v33 = vand.u32 4294901760, %v3461_v63  ;;  %v3304_v17 = vmul.f32 %v3191_v41, %v105_v48  ;;  %4729 = vmatmul.mubr.f32.gmra.mxu1 %v10424_v11  ;;  %v10470_v10 = vsub.f32 %v3458_v24, %v10443_v23  ;;  %v2792_v39 = vadd.f32 %v2791_v52, %v12806_v49  ;;  %v12809_v52 = vld [vmem:[#allocation90_spill] sm:$0xff]  ;;  %v12810_v49 = vld [vmem:[#allocation63_spill] sm:$0xff]  ;;  %v3211_v23 = vpop.f32.mrf.mxu1 }
 0x31f   :  { %4147 = vmatprep.mubr.f32.mxu0 %v4146_v18  ;;  %v12076_v46 = vand.u32 4294901760, %v10418_v38  ;;  %v12807_v28 = vand.u32 4294901760, %v10375_v36  ;;  %v10481_v9 = vsub.f32 %v3302_v1, %v10456_v55  ;;  %v3305_v24 = vmul.f32 %v3193_v51, %v106_v62  ;;  %v108_v18 = vld [vmem:[%s11480_s0 + $0x2d8] sm:$0xff]  ;;  %v2800_v51 = vpop.f32.mrf.mxu0 }
 0x320   :  { %12805 = vst [vmem:[#allocation61_spill] sm:$0xff] %v10466_v33  ;;  %v10483_v14 = vand.u32 4294901760, %v3304_v17  ;;  %v3198_v48 = vadd.f32 %v3197_v43, %v2785_v21  ;;  %4734 = vmatprep.mubr.f32.mxu1 %v10466_v33  ;;  %v2794_v41 = vadd.f32 %v2793_v32, %v12809_v52  ;;  %v2799_v1 = vadd.f32 %v2798_v58, %v12810_v49  ;;  %v3213_v49 = vpop.f32.mrf.mxu1 }
 0x321   :  { %v4166_v29 = vsub.f32 %v10375_v36, %v12807_v28  ;;  %4153 = vmatmul.mubr.f32.gmra.mxu0 %v4152_v25  ;;  %v4160_v28 = vsub.f32 %v10418_v38, %v12076_v46  ;;  %v3200_v11 = vadd.f32 %v3199_v40, %v2787_v45  ;;  %v10495_v62 = vsub.f32 %v3461_v63, %v10466_v33  ;;  %v109_v40 = vld [vmem:[%s11480_s0 + $0x2e0] sm:$0xff] }
 0x322   :  { %12808 = vst [vmem:[#allocation57_spill] sm:$0xff] %v10483_v14  ;;  %v3464_v43 = vsel %vm3330_vm1, %v3305_v24, 0  ;;  %v3306_v21 = vmul.f32 %v3198_v48, %v107_v7  ;;  %v12077_v36 = vand.u32 4294901760, %v10452_v0  ;;  %4736 = vmatmul.mubr.f32.gmra.mxu1 %v10456_v55  ;;  %v10506_v63 = vsub.f32 %v3304_v17, %v10483_v14  ;;  %v12814_v48 = vld [vmem:[#allocation58_spill] sm:$0xff] }
 0x323   :  { %v10500_v32 = vand.u32 4294901760, %v3464_v43  ;;  %v4161_v25 = vand.u32 4294901760, %v4160_v28  ;;  %v4167_v52 = vand.u32 4294901760, %v4166_v29  ;;  %v3307_v46 = vmul.f32 %v3200_v11, %v108_v18  ;;  %v110_v29 = vld [vmem:[%s11480_s0 + $0x2e8] sm:$0xff] }
 0x324   :  { %v4175_v45 = vsub.f32 %v10452_v0, %v12077_v36  ;;  %v12812_v58 = vand.u32 4294901760, %v10404_v47  ;;  %v3205_v24 = vadd.f32 %v3204_v13, %v2792_v39  ;;  %v10517_v11 = vand.u32 4294901760, %v3306_v21 }
 0x325   :  { %12811 = vst [vmem:[#allocation90_spill] sm:$0xff] %v10500_v32  ;;  %4162 = vmatprep.mubr.f32.mxu0 %v4161_v25  ;;  %v2801_v18 = vadd.f32 %v2800_v51, %v12814_v48  ;;  %v3467_v17 = vsel %vm3330_vm1, %v3307_v46, 0  ;;  %v3207_v28 = vadd.f32 %v3206_v8, %v2794_v41  ;;  %4741 = vmatprep.mubr.f32.mxu1 %v10500_v32  ;;  %v12080_v55 = vand.u32 4294901760, %v10470_v10  ;;  %v112_v41 = vld [vmem:[%s11480_s0 + $0x2f8] sm:$0xff] }
 0x326   :  { %v4181_v7 = vsub.f32 %v10404_v47, %v12812_v58  ;;  %12813 = vst [vmem:[#allocation63_spill] sm:$0xff] %v10517_v11  ;;  %v10523_v36 = vsub.f32 %v3464_v43, %v10500_v32  ;;  %4168 = vmatmul.mubr.f32.gmra.mxu0 %v4167_v52  ;;  %v10525_v13 = vand.u32 4294901760, %v3467_v17  ;;  %v4176_v39 = vand.u32 4294901760, %v4175_v45  ;;  %4743 = vmatmul.mubr.f32.gmra.mxu1 %v10483_v14  ;;  %v111_v45 = vld [vmem:[%s11480_s0 + $0x2f0] sm:$0xff]  ;;  %v12835_v32 = vld [vmem:[#allocation102_spill] sm:$0xff] }
 0x327   :  { %v3308_v58 = vmul.f32 %v3205_v24, %v109_v40  ;;  %v3309_v25 = vmul.f32 %v3207_v28, %v110_v29  ;;  %v12816_v51 = vand.u32 4294901760, %v10437_v34  ;;  %v3212_v46 = vadd.f32 %v3211_v23, %v2799_v1 }
 0x328   :  { %12815 = vst [vmem:[#allocation58_spill] sm:$0xff] %v10525_v13  ;;  %v12081_v43 = vand.u32 4294901760, %v10481_v9  ;;  %4177 = vmatprep.mubr.f32.mxu0 %v4176_v39  ;;  %v4182_v40 = vand.u32 4294901760, %v4181_v7  ;;  %v3214_v24 = vadd.f32 %v3213_v49, %v2801_v18  ;;  %4748 = vmatprep.mubr.f32.mxu1 %v10525_v13  ;;  %v10542_v29 = vsub.f32 %v3306_v21, %v10517_v11 }
 0x329   :  { %v4196_v8 = vsub.f32 %v10437_v34, %v12816_v51  ;;  %v10545_v23 = vsub.f32 %v3467_v17, %v10525_v13  ;;  %v3470_v1 = vsel %vm3330_vm1, %v3309_v25, 0  ;;  %v4190_v48 = vsub.f32 %v10470_v10, %v12080_v55 }
 0x32a   :  { %4183 = vmatmul.mubr.f32.gmra.mxu0 %v4182_v40  ;;  %v10551_v7 = vand.u32 4294901760, %v3308_v58  ;;  %v10553_v28 = vand.u32 4294901760, %v3470_v1  ;;  %v3311_v18 = vmul.f32 %v3214_v24, %v112_v41  ;;  %v12083_v49 = vand.u32 4294901760, %v10495_v62  ;;  %4750 = vmatmul.mubr.f32.gmra.mxu1 %v10517_v11 }
 0x32b   :  { %v4191_v21 = vand.u32 4294901760, %v4190_v48  ;;  %v4197_v39 = vand.u32 4294901760, %v4196_v8  ;;  %v3310_v17 = vmul.f32 %v3212_v46, %v111_v45  ;;  %v12082_v51 = vand.u32 4294901760, %v10523_v36  ;;  %v4436_v45 = vpop.f32.mrf.mxu1 }
 0x32c   :  { %12817 = vst [vmem:[#allocation185_spill] sm:$0xff] %v10551_v7  ;;  %12818 = vst [vmem:[#allocation186_spill] sm:$0xff] %v10553_v28  ;;  %v10559_v25 = vsub.f32 %v3470_v1, %v10553_v28  ;;  %v3473_v55 = vsel %vm3330_vm1, %v3311_v18, 0  ;;  %v4205_v40 = vsub.f32 %v10495_v62, %v12083_v49  ;;  %v4211_v41 = vsub.f32 %v10481_v9, %v12081_v43 }
 0x32d   :  { %4755 = vmatprep.mubr.f32.mxu1 %v10553_v28  ;;  %4192 = vmatprep.mubr.f32.mxu0 %v4191_v21  ;;  %v10569_v8 = vand.u32 4294901760, %v3473_v55  ;;  %v4220_v46 = vsub.f32 %v10523_v36, %v12082_v51  ;;  %v12086_v48 = vand.u32 4294901760, %v10545_v23  ;;  %v10578_v18 = vsub.f32 %v3308_v58, %v10551_v7  ;;  %v4438_v49 = vpop.f32.mrf.mxu1 }
 0x32e   :  { %4198 = vmatmul.mubr.f32.gmra.mxu0 %v4197_v39  ;;  %v4206_v1 = vand.u32 4294901760, %v4205_v40  ;;  %4757 = vmatmul.mubr.f32.gmra.mxu1 %v10551_v7  ;;  %v12093_v51 = vand.u32 4294901760, %v10559_v25  ;;  %v10585_v52 = vand.u32 4294901760, %v3310_v17  ;;  %v4212_v39 = vand.u32 4294901760, %v4211_v41 }
 0x32f   :  { %12819 = vst [vmem:[#allocation187_spill] sm:$0xff] %v10569_v8  ;;  %v10581_v21 = vsub.f32 %v3473_v55, %v10569_v8  ;;  %v4221_v43 = vand.u32 4294901760, %v4220_v46  ;;  %4762 = vmatprep.mubr.f32.mxu1 %v10569_v8  ;;  %v12821_v40 = vand.u32 4294901760, %v10506_v63  ;;  %v4235_v58 = vsub.f32 %v10545_v23, %v12086_v48  ;;  %v4443_v55 = vpop.f32.mrf.mxu1  ;;  %v3569_v7 = vpop.f32.mrf.mxu0 }
 0x330   :  { %12820 = vst [vmem:[#allocation188_spill] sm:$0xff] %v10585_v52  ;;  %4207 = vmatprep.mubr.f32.mxu0 %v4206_v1  ;;  %v12822_v49 = vand.u32 4294901760, %v9175_v15  ;;  %v4250_v41 = vsub.f32 %v10559_v25, %v12093_v51  ;;  %v10602_v8 = vsub.f32 %v3310_v17, %v10585_v52  ;;  %v12823_v48 = vand.u32 4294901760, %v10542_v29 }
 0x331   :  { %v4226_v24 = vsub.f32 %v10506_v63, %v12821_v40  ;;  %v4236_v46 = vand.u32 4294901760, %v4235_v58  ;;  %v4445_v58 = vpop.f32.mrf.mxu1  ;;  %v10609_v11 = vadd.f32 %v4436_v45, %v3569_v7  ;;  %v12826_v40 = vand.u32 4294901760, %v9210_v2  ;;  %v12829_v45 = vld [vmem:[#allocation100_spill] sm:$0xff] }
 0x332   :  { %4213 = vmatmul.mubr.f32.gmra.mxu0 %v4212_v39  ;;  %4764 = vmatmul.mubr.f32.gmra.mxu1 %v10585_v52  ;;  %v4251_v1 = vand.u32 4294901760, %v4250_v41  ;;  %v12827_v17 = vand.u32 4294901760, %v10581_v21  ;;  %v3571_v52 = vpop.f32.mrf.mxu0  ;;  %v12834_v14 = vand.u32 4294901760, %v10602_v8 }
 0x333   :  { %4222 = vmatprep.mubr.f32.mxu0 %v4221_v43  ;;  %5387 = vmatprep.mubr.f32.mxu1 %v12822_v49  ;;  %v4227_v39 = vand.u32 4294901760, %v4226_v24  ;;  %v4241_v43 = vsub.f32 %v10542_v29, %v12823_v48  ;;  %v12824_v49 = vld [vmem:[#allocation65_spill] sm:$0xff]  ;;  %v4450_v51 = vpop.f32.mrf.mxu1  ;;  %v12832_v52 = vld [vmem:[#allocation95_spill] sm:$0xff] }
 0x334   :  { %v12825_v28 = vand.u32 4294901760, %v12824_v49  ;;  %v4265_v24 = vsub.f32 %v10581_v21, %v12827_v17  ;;  %v12833_v13 = vand.u32 4294901760, %v12832_v52 }
 0x335   :  { %v4242_v58 = vand.u32 4294901760, %v4241_v43  ;;  %v4452_v7 = vpop.f32.mrf.mxu1 }
 0x336   :  { %4228 = vmatmul.mubr.f32.gmra.mxu0 %v4227_v39  ;;  %5391 = vmatmul.mubr.f32.vlgmr.msra.gmra.mxu1 %v12825_v28  ;;  %v12828_v39 = vand.u32 4294901760, %v10578_v18  ;;  %v4266_v17 = vand.u32 4294901760, %v4265_v24  ;;  %v3584_v43 = vpop.f32.mrf.mxu0 }
 0x337   :  { %4237 = vmatprep.mubr.f32.mxu0 %v4236_v46  ;;  %5398 = vmatprep.mubr.f32.mxu1 %v12826_v40  ;;  %v12830_v46 = vld [vmem:[#allocation66_spill] sm:$0xff]  ;;  %v4457_v40 = vpop.f32.mrf.mxu1  ;;  %v10629_v7 = vadd.f32 %v4443_v55, %v3584_v43  ;;  %v12838_v43 = vld [vmem:[#allocation105_spill] sm:$0xff] }
 0x338   :  { %v4256_v28 = vsub.f32 %v10578_v18, %v12828_v39  ;;  %6370 = vmatpush1.msra.mxu1 %v12829_v45  ;;  %v12831_v41 = vand.u32 4294901760, %v12830_v46  ;;  %v4271_v39 = vsub.f32 %v10602_v8, %v12834_v14 }
 0x339   :  { %6371 = vmatprep.subr.mxu1 %v12530_v19  ;;  %v4459_v45 = vpop.f32.mrf.mxu1 }
 0x33a   :  { %4243 = vmatmul.mubr.f32.gmra.mxu0 %v4242_v58  ;;  %5402 = vmatmul.mubr.f32.gmra.mxu1 %v12831_v41  ;;  %v4257_v48 = vand.u32 4294901760, %v4256_v28  ;;  %v3586_v58 = vpop.f32.mrf.mxu0  ;;  %v4272_v41 = vand.u32 4294901760, %v4271_v39  ;;  %v12841_v39 = vld [vmem:[#allocation108_spill] sm:$0xff] }
 0x33b   :  { %4252 = vmatprep.mubr.f32.mxu0 %v4251_v1  ;;  %5409 = vmatprep.mubr.f32.mxu1 %v12833_v13  ;;  %v12836_v1 = vand.u32 4294901760, %v9214_v44  ;;  %v4464_v24 = vpop.f32.mrf.mxu1  ;;  %v12837_v13 = vand.u32 4294901760, %v9270_v31 }
 0x33c   :  { %6373 = vmatpush1.msra.mxu1 %v12835_v32  ;;  %v3599_v28 = vpop.f32.mrf.mxu0 }
 0x33d   :  { %6374 = vmatprep.subr.mxu1 %v12530_v19  ;;  %v10637_v14 = vadd.f32 %v4450_v51, %v3599_v28  ;;  %v4466_v55 = vpop.f32.mrf.mxu1 }
 0x33e   :  { %4258 = vmatmul.mubr.f32.gmra.mxu0 %v4257_v48  ;;  %5413 = vmatmul.mubr.f32.gmra.mxu1 %v12836_v1  ;;  %v3601_v32 = vpop.f32.mrf.mxu0  ;;  %v12839_v48 = vand.u32 4294901760, %v9256_v20  ;;  %v12842_v1 = vld [vmem:[#allocation97_spill] sm:$0xff] }
 0x33f   :  { %4267 = vmatprep.mubr.f32.mxu0 %v4266_v17  ;;  %5420 = vmatprep.mubr.f32.mxu1 %v12837_v13  ;;  %v4471_v45 = vpop.f32.mrf.mxu1  ;;  %v12840_v17 = vand.u32 4294901760, %v9307_v16  ;;  %v12843_v13 = vand.u32 4294901760, %v12842_v1  ;;  %v12846_v32 = vand.u32 4294901760, %v9332_v4 }
 0x340   :  { %6376 = vmatpush1.msra.mxu1 %v12838_v43  ;;  %v3614_v51 = vpop.f32.mrf.mxu0 }
 0x341   :  { %6377 = vmatprep.subr.mxu1 %v12530_v19  ;;  %v4473_v58 = vpop.f32.mrf.mxu1  ;;  %v10651_v28 = vadd.f32 %v4457_v40, %v3614_v51  ;;  %v12851_v51 = vand.u32 4294901760, %v9373_v60 }
 0x342   :  { %4273 = vmatmul.mubr.f32.gmra.mxu0 %v4272_v41  ;;  %5424 = vmatmul.mubr.f32.gmra.mxu1 %v12839_v48  ;;  %v12844_v41 = vld [vmem:[#allocation104_spill] sm:$0xff]  ;;  %v3616_v55 = vpop.f32.mrf.mxu0  ;;  %v12847_v48 = vld [vmem:[#allocation107_spill] sm:$0xff] }
 0x343   :  { %4871 = vmatprep.mubr.f32.mxu0 %v9175_v15  ;;  %5431 = vmatprep.mubr.f32.mxu1 %v12840_v17  ;;  %v12845_v15 = vand.u32 4294901760, %v12844_v41  ;;  %v4478_v43 = vpop.f32.mrf.mxu1  ;;  %v12848_v17 = vand.u32 4294901760, %v12847_v48  ;;  %v12854_v48 = vld [vmem:[#allocation115_spill] sm:$0xff] }
 0x344   :  { %6379 = vmatpush1.msra.mxu1 %v12841_v39  ;;  %v12849_v39 = vld [vmem:[#allocation113_spill] sm:$0xff] }
 0x345   :  { %6380 = vmatprep.subr.mxu1 %v12530_v19  ;;  %v4480_v58 = vpop.f32.mrf.mxu1 }
 0x346   :  { %4874 = vmatmul.mubr.f32.vlgmr.msra.gmra.mxu0 %v12824_v49  ;;  %5435 = vmatmul.mubr.f32.gmra.mxu1 %v12843_v13  ;;  %v3629_v49 = vpop.f32.mrf.mxu0 }
 0x347   :  { %4880 = vmatprep.mubr.f32.mxu0 %v9210_v2  ;;  %5917 = vmatpush1.msra.mxu0 %v12845_v15  ;;  %v12850_v2 = vand.u32 4294901760, %v9317_v5  ;;  %v10665_v40 = vadd.f32 %v4464_v24, %v3629_v49  ;;  %v4485_v41 = vpop.f32.mrf.mxu1 }
 0x348   :  { %5442 = vmatprep.mubr.f32.mxu1 %v12846_v32  ;;  %5918 = vmatprep.subr.mxu0 %v12530_v19  ;;  %v3631_v13 = vpop.f32.mrf.mxu0  ;;  %v12852_v32 = vld [vmem:[#allocation110_spill] sm:$0xff] }
 0x349   :  { %5922 = vmatpush1.msra.mxu0 %v12848_v17  ;;  %6382 = vmatpush1.msra.mxu1 %v12849_v39  ;;  %v4487_v55 = vpop.f32.mrf.mxu1  ;;  %v12856_v17 = vand.u32 4294901760, %v9416_v53 }
 0x34a   :  { %4883 = vmatmul.mubr.f32.gmra.mxu0 %v12830_v46  ;;  %5446 = vmatmul.mubr.f32.gmra.mxu1 %v12850_v2  ;;  %v3644_v15 = vpop.f32.mrf.mxu0  ;;  %v12853_v46 = vand.u32 4294901760, %v12852_v32  ;;  %v12857_v2 = vld [vmem:[#allocation112_spill] sm:$0xff]  ;;  %v12861_v32 = vld [vmem:[#allocation2_spill] sm:$0xff] }
 0x34b   :  { %4889 = vmatprep.mubr.f32.mxu0 %v12832_v52  ;;  %5453 = vmatprep.mubr.f32.mxu1 %v12851_v51  ;;  %v12855_v52 = vand.u32 4294901760, %v9347_v57  ;;  %v10678_v24 = vadd.f32 %v4471_v45, %v3644_v15  ;;  %v4492_v58 = vpop.f32.mrf.mxu1  ;;  %v12858_v51 = vand.u32 4294901760, %v12857_v2  ;;  %v12868_v2 = vld [vmem:[#allocation4_spill] sm:$0xff] }
 0x34c   :  { %5923 = vmatprep.subr.mxu0 %v12530_v19  ;;  %6383 = vmatprep.subr.mxu1 %v12530_v19  ;;  %v3646_v49 = vpop.f32.mrf.mxu0 }
 0x34d   :  { %5927 = vmatpush1.msra.mxu0 %v12853_v46  ;;  %6385 = vmatpush1.msra.mxu1 %v12854_v48  ;;  %v4494_v39 = vpop.f32.mrf.mxu1 }
 0x34e   :  { %4892 = vmatmul.mubr.f32.gmra.mxu0 %v9214_v44  ;;  %5457 = vmatmul.mubr.f32.gmra.mxu1 %v12855_v52  ;;  %v12859_v44 = vand.u32 4294901760, %v9376_v50 }
 0x34f   :  { %4898 = vmatprep.mubr.f32.mxu0 %v9270_v31  ;;  %5464 = vmatprep.mubr.f32.mxu1 %v12856_v17  ;;  %v12860_v31 = vand.u32 4294901760, %v9448_v54  ;;  %v3659_v45 = vpop.f32.mrf.mxu0  ;;  %v4499_v13 = vpop.f32.mrf.mxu1  ;;  %v12865_v17 = vand.u32 4294901760, %v12561_v12 }
 0x350   :  { %5928 = vmatprep.subr.mxu0 %v12530_v19  ;;  %6386 = vmatprep.subr.mxu1 %v12530_v19  ;;  %v10694_v15 = vadd.f32 %v4478_v43, %v3659_v45  ;;  %v12864_v43 = vand.u32 4294901760, %v9464_v26 }
 0x351   :  { %5932 = vmatpush1.msra.mxu0 %v12858_v51  ;;  %6388 = vmatpush1.msra.mxu1 %v12566_v22  ;;  %v3661_v55 = vpop.f32.mrf.mxu0  ;;  %v4501_v22 = vpop.f32.mrf.mxu1 }
 0x352   :  { %4901 = vmatmul.mubr.f32.gmra.mxu0 %v9256_v20  ;;  %5468 = vmatmul.mubr.f32.gmra.mxu1 %v12859_v44  ;;  %v12862_v20 = vand.u32 4294901760, %v12861_v32 }
 0x353   :  { %4907 = vmatprep.mubr.f32.mxu0 %v9307_v16  ;;  %5475 = vmatprep.mubr.f32.mxu1 %v12860_v31  ;;  %v12863_v16 = vand.u32 4294901760, %v9410_v42  ;;  %v4506_v46 = vpop.f32.mrf.mxu1  ;;  %v12873_v31 = vld [vmem:[#allocation125_spill] sm:$0xff] }
 0x354   :  { %5933 = vmatprep.subr.mxu0 %v12530_v19  ;;  %6389 = vmatprep.subr.mxu1 %v12530_v19  ;;  %v3674_v48 = vpop.f32.mrf.mxu0  ;;  %v12874_v45 = vand.u32 4294901760, %v12873_v31 }
 0x355   :  { %5937 = vmatpush1.msra.mxu0 %v12862_v20  ;;  %6391 = vmatpush1.msra.mxu1 %v8504_v6  ;;  %v4508_v52 = vpop.f32.mrf.mxu1  ;;  %v10713_v6 = vadd.f32 %v4485_v41, %v3674_v48  ;;  %v12870_v41 = vld [vmem:[#allocation118_spill] sm:$0xff] }
 0x356   :  { %4910 = vmatmul.mubr.f32.gmra.mxu0 %v12842_v1  ;;  %5479 = vmatmul.mubr.f32.gmra.mxu1 %v12863_v16  ;;  %v12867_v1 = vand.u32 4294901760, %v9490_v3  ;;  %v3676_v49 = vpop.f32.mrf.mxu0  ;;  %v12875_v16 = vld [vmem:[#allocation5_spill] sm:$0xff] }
 0x357   :  { %4916 = vmatprep.mubr.f32.mxu0 %v9332_v4  ;;  %5486 = vmatprep.mubr.f32.mxu1 %v12864_v43  ;;  %v12866_v4 = vand.u32 4294901760, %v9451_v59  ;;  %v4513_v39 = vpop.f32.mrf.mxu1  ;;  %v12880_v52 = vld [vmem:[#allocation129_spill] sm:$0xff] }
 0x358   :  { %5938 = vmatprep.subr.mxu0 %v12530_v19  ;;  %6392 = vmatprep.subr.mxu1 %v12530_v19  ;;  %v3689_v12 = vpop.f32.mrf.mxu0 }
 0x359   :  { %5942 = vmatpush1.msra.mxu0 %v12865_v17  ;;  %6394 = vmatpush1.msra.mxu1 %v8521_v30  ;;  %v4515_v30 = vpop.f32.mrf.mxu1  ;;  %v10726_v51 = vadd.f32 %v4492_v58, %v3689_v12  ;;  %v12877_v58 = vld [vmem:[#allocation119_spill] sm:$0xff]  ;;  %v12881_v17 = vand.u32 4294901760, %v12880_v52  ;;  %v12882_v12 = vld [vmem:[#allocation6_spill] sm:$0xff] }
 0x35a   :  { %4919 = vmatmul.mubr.f32.gmra.mxu0 %v9317_v5  ;;  %5490 = vmatmul.mubr.f32.gmra.mxu1 %v12866_v4  ;;  %v12869_v5 = vand.u32 4294901760, %v12868_v2  ;;  %v3691_v55 = vpop.f32.mrf.mxu0  ;;  %v12883_v30 = vand.u32 4294901760, %v12882_v12  ;;  %v12885_v2 = vld [vmem:[#allocation126_spill] sm:$0xff] }
 0x35b   :  { %4925 = vmatprep.mubr.f32.mxu0 %v9373_v60  ;;  %5497 = vmatprep.mubr.f32.mxu1 %v12867_v1  ;;  %v12871_v60 = vld [vmem:[#allocation3_spill] sm:$0xff]  ;;  %v4520_v22 = vpop.f32.mrf.mxu1 }
 0x35c   :  { %5943 = vmatprep.subr.mxu0 %v12530_v19  ;;  %6395 = vmatprep.subr.mxu1 %v12530_v19  ;;  %v12872_v44 = vand.u32 4294901760, %v12871_v60 }
 0x35d   :  { %5947 = vmatpush1.msra.mxu0 %v12869_v5  ;;  %6397 = vmatpush1.msra.mxu1 %v12870_v41  ;;  %v3704_v32 = vpop.f32.mrf.mxu0  ;;  %v4522_v20 = vpop.f32.mrf.mxu1  ;;  %v12887_v41 = vld [vmem:[#allocation133_spill] sm:$0xff] }
 0x35e   :  { %4928 = vmatmul.mubr.f32.gmra.mxu0 %v9347_v57  ;;  %5501 = vmatmul.mubr.f32.gmra.mxu1 %v12872_v44  ;;  %v12876_v57 = vand.u32 4294901760, %v12875_v16  ;;  %v10739_v43 = vadd.f32 %v4499_v13, %v3704_v32  ;;  %v12888_v44 = vand.u32 4294901760, %v12887_v41  ;;  %v12889_v20 = vld [vmem:[#allocation7_spill] sm:$0xff]  ;;  %v12891_v16 = vld [vmem:[#allocation121_spill] sm:$0xff] }
 0x35f   :  { %4934 = vmatprep.mubr.f32.mxu0 %v9416_v53  ;;  %5508 = vmatprep.mubr.f32.mxu1 %v12874_v45  ;;  %v12878_v53 = vld [vmem:[#allocation117_spill] sm:$0xff]  ;;  %v3706_v4 = vpop.f32.mrf.mxu0  ;;  %v4527_v1 = vpop.f32.mrf.mxu1 }
 0x360   :  { %5948 = vmatprep.subr.mxu0 %v12530_v19  ;;  %6398 = vmatprep.subr.mxu1 %v12530_v19  ;;  %v12879_v48 = vand.u32 4294901760, %v12878_v53 }
 0x361   :  { %5952 = vmatpush1.msra.mxu0 %v12876_v57  ;;  %6400 = vmatpush1.msra.mxu1 %v12877_v58  ;;  %v4529_v49 = vpop.f32.mrf.mxu1 }
 0x362   :  { %4937 = vmatmul.mubr.f32.gmra.mxu0 %v9376_v50  ;;  %5512 = vmatmul.mubr.f32.gmra.mxu1 %v12879_v48  ;;  %v12884_v50 = vld [vmem:[#allocation120_spill] sm:$0xff]  ;;  %v3719_v13 = vpop.f32.mrf.mxu0  ;;  %v12894_v48 = vld [vmem:[#allocation22_spill] sm:$0xff] }
 0x363   :  { %4943 = vmatprep.mubr.f32.mxu0 %v9448_v54  ;;  %5519 = vmatprep.mubr.f32.mxu1 %v12881_v17  ;;  %v12886_v54 = vand.u32 4294901760, %v12885_v2  ;;  %v10755_v5 = vadd.f32 %v4506_v46, %v3719_v13  ;;  %v4534_v45 = vpop.f32.mrf.mxu1  ;;  %v12892_v46 = vld [vmem:[#allocation131_spill] sm:$0xff]  ;;  %v12895_v17 = vand.u32 4294901760, %v12894_v48 }
 0x364   :  { %5953 = vmatprep.subr.mxu0 %v12530_v19  ;;  %6401 = vmatprep.subr.mxu1 %v12530_v19  ;;  %v3721_v55 = vpop.f32.mrf.mxu0  ;;  %v12893_v57 = vand.u32 4294901760, %v12892_v46 }
 0x365   :  { %5957 = vmatpush1.msra.mxu0 %v12883_v30  ;;  %6403 = vmatpush1.msra.mxu1 %v12884_v50  ;;  %v4536_v32 = vpop.f32.mrf.mxu1  ;;  %v12896_v30 = vld [vmem:[#allocation8_spill] sm:$0xff]  ;;  %v12898_v50 = vld [vmem:[#allocation11_spill] sm:$0xff] }
 0x366   :  { %4946 = vmatmul.mubr.f32.gmra.mxu0 %v9410_v42  ;;  %5523 = vmatmul.mubr.f32.gmra.mxu1 %v12886_v54  ;;  %v12890_v42 = vand.u32 4294901760, %v12889_v20  ;;  %v12901_v54 = vld [vmem:[#allocation140_spill] sm:$0xff] }
 0x367   :  { %4952 = vmatprep.mubr.f32.mxu0 %v9464_v26  ;;  %5530 = vmatprep.mubr.f32.mxu1 %v12888_v44  ;;  %v4541_v4 = vpop.f32.mrf.mxu1  ;;  %v12902_v44 = vand.u32 4294901760, %v12901_v54 }
 0x368   :  { %5958 = vmatprep.subr.mxu0 %v12530_v19  ;;  %6404 = vmatprep.subr.mxu1 %v12530_v19  ;;  %v3734_v26 = vpop.f32.mrf.mxu0 }
 0x369   :  { %5962 = vmatpush1.msra.mxu0 %v12890_v42  ;;  %6406 = vmatpush1.msra.mxu1 %v12891_v16  ;;  %v10768_v58 = vadd.f32 %v4513_v39, %v3734_v26  ;;  %v4543_v12 = vpop.f32.mrf.mxu1  ;;  %v12903_v16 = vld [vmem:[#allocation9_spill] sm:$0xff] }
 0x36a   :  { %4955 = vmatmul.mubr.f32.gmra.mxu0 %v9451_v59  ;;  %5534 = vmatmul.mubr.f32.gmra.mxu1 %v12893_v57  ;;  %v3736_v49 = vpop.f32.mrf.mxu0  ;;  %v12897_v59 = vand.u32 4294901760, %v12896_v30  ;;  %v12905_v26 = vld [vmem:[#allocation13_spill] sm:$0xff] }
 0x36b   :  { %4961 = vmatprep.mubr.f32.mxu0 %v9490_v3  ;;  %5541 = vmatprep.mubr.f32.mxu1 %v12895_v17  ;;  %v12899_v3 = vld [vmem:[#allocation134_spill] sm:$0xff] }
 0x36c   :  { %5963 = vmatprep.subr.mxu0 %v12530_v19  ;;  %6407 = vmatprep.subr.mxu1 %v12530_v19  ;;  %v12900_v39 = vand.u32 4294901760, %v12899_v3  ;;  %v3749_v13 = vpop.f32.mrf.mxu0  ;;  %v4548_v55 = vpop.f32.mrf.mxu1  ;;  %v12908_v17 = vld [vmem:[#allocation142_spill] sm:$0xff] }
 0x36d   :  { %5967 = vmatpush1.msra.mxu0 %v12897_v59  ;;  %6409 = vmatpush1.msra.mxu1 %v12898_v50  ;;  %v10783_v32 = vadd.f32 %v4520_v22, %v3749_v13  ;;  %v12909_v49 = vand.u32 4294901760, %v12908_v17  ;;  %v12912_v13 = vld [vmem:[#allocation15_spill] sm:$0xff] }
 0x36e   :  { %4964 = vmatmul.mubr.f32.gmra.mxu0 %v12871_v60  ;;  %5545 = vmatmul.mubr.f32.gmra.mxu1 %v12900_v39  ;;  %v3751_v20 = vpop.f32.mrf.mxu0  ;;  %v4550_v42 = vpop.f32.mrf.mxu1  ;;  %v12904_v60 = vand.u32 4294901760, %v12903_v16  ;;  %v12910_v39 = vld [vmem:[#allocation10_spill] sm:$0xff] }
 0x36f   :  { %4970 = vmatprep.mubr.f32.mxu0 %v12873_v31  ;;  %5552 = vmatprep.mubr.f32.mxu1 %v12902_v44  ;;  %v12906_v31 = vld [vmem:[#allocation136_spill] sm:$0xff]  ;;  %v12915_v20 = vld [vmem:[#allocation73_spill] sm:$0xff] }
 0x370   :  { %5968 = vmatprep.subr.mxu0 %v12530_v19  ;;  %6410 = vmatprep.subr.mxu1 %v12530_v19  ;;  %v12907_v57 = vand.u32 4294901760, %v12906_v31  ;;  %v3764_v22 = vpop.f32.mrf.mxu0  ;;  %v4555_v12 = vpop.f32.mrf.mxu1  ;;  %v12916_v42 = vand.u32 4294901760, %v12915_v20 }
 0x371   :  { %5972 = vmatpush1.msra.mxu0 %v12904_v60  ;;  %6412 = vmatpush1.msra.mxu1 %v12905_v26  ;;  %v10796_v30 = vadd.f32 %v4527_v1, %v3764_v22  ;;  %v12917_v22 = vld [vmem:[#allocation12_spill] sm:$0xff] }
 0x372   :  { %4973 = vmatmul.mubr.f32.gmra.mxu0 %v12878_v53  ;;  %5556 = vmatmul.mubr.f32.gmra.mxu1 %v12907_v57  ;;  %v3766_v59 = vpop.f32.mrf.mxu0  ;;  %v4557_v50 = vpop.f32.mrf.mxu1  ;;  %v12911_v53 = vand.u32 4294901760, %v12910_v39 }
 0x373   :  { %4979 = vmatprep.mubr.f32.mxu0 %v12880_v52  ;;  %5563 = vmatprep.mubr.f32.mxu1 %v12909_v49  ;;  %v12913_v52 = vld [vmem:[#allocation21_spill] sm:$0xff]  ;;  %v12922_v50 = vld [vmem:[#allocation74_spill] sm:$0xff] }
 0x374   :  { %5973 = vmatprep.subr.mxu0 %v12530_v19  ;;  %6413 = vmatprep.subr.mxu1 %v12530_v19  ;;  %v12914_v44 = vand.u32 4294901760, %v12913_v52  ;;  %v3779_v1 = vpop.f32.mrf.mxu0  ;;  %v12919_v49 = vld [vmem:[#allocation17_spill] sm:$0xff]  ;;  %v12923_v39 = vand.u32 4294901760, %v12922_v50 }
 0x375   :  { %5977 = vmatpush1.msra.mxu0 %v12911_v53  ;;  %6415 = vmatpush1.msra.mxu1 %v12912_v13  ;;  %v4562_v16 = vpop.f32.mrf.mxu1  ;;  %v10809_v60 = vadd.f32 %v4534_v45, %v3779_v1 }
 0x376   :  { %4982 = vmatmul.mubr.f32.gmra.mxu0 %v12885_v2  ;;  %5567 = vmatmul.mubr.f32.gmra.mxu1 %v12914_v44  ;;  %v3781_v26 = vpop.f32.mrf.mxu0  ;;  %v12918_v2 = vand.u32 4294901760, %v12917_v22 }
 0x377   :  { %4988 = vmatprep.mubr.f32.mxu0 %v12887_v41  ;;  %5574 = vmatprep.mubr.f32.mxu1 %v12916_v42  ;;  %v4564_v57 = vpop.f32.mrf.mxu1  ;;  %v12920_v41 = vld [vmem:[#allocation27_spill] sm:$0xff]  ;;  %v12924_v42 = vld [vmem:[#allocation14_spill] sm:$0xff]  ;;  %v12926_v26 = vld [vmem:[#allocation20_spill] sm:$0xff] }
 0x378   :  { %5978 = vmatprep.subr.mxu0 %v12530_v19  ;;  %6444 = vmatprep.subr.mxu1 %v12530_v19  ;;  %v12921_v59 = vand.u32 4294901760, %v12920_v41  ;;  %v3794_v45 = vpop.f32.mrf.mxu0 }
 0x379   :  { %5982 = vmatpush1.msra.mxu0 %v12918_v2  ;;  %6446 = vmatpush2.msra.mxu1 %v12919_v49  ;;  %v4569_v53 = vpop.f32.mrf.mxu1  ;;  %v10822_v13 = vadd.f32 %v4541_v4, %v3794_v45  ;;  %v12929_v4 = vld [vmem:[#allocation26_spill] sm:$0xff]  ;;  %v12931_v45 = vld [vmem:[#allocation16_spill] sm:$0xff] }
 0x37a   :  { %4991 = vmatmul.mubr.f32.gmra.mxu0 %v12892_v46  ;;  %5578 = vmatmul.mubr.f32.gmra.mxu1 %v12921_v59  ;;  %v3796_v44 = vpop.f32.mrf.mxu0  ;;  %v12925_v46 = vand.u32 4294901760, %v12924_v42  ;;  %v12930_v22 = vand.u32 4294901760, %v12929_v4 }
 0x37b   :  { %4997 = vmatprep.mubr.f32.mxu0 %v12894_v48  ;;  %5585 = vmatprep.mubr.f32.mxu1 %v12923_v39  ;;  %v4571_v1 = vpop.f32.mrf.mxu1  ;;  %v12927_v48 = vld [vmem:[#allocation25_spill] sm:$0xff]  ;;  %v12932_v39 = vand.u32 4294901760, %v12931_v45  ;;  %v12939_v45 = vld [vmem:[#allocation31_spill] sm:$0xff] }
 0x37c   :  { %5983 = vmatprep.subr.mxu0 %v12530_v19  ;;  %6447 = vmatprep.subr.mxu1 %v12530_v19  ;;  %v12928_v57 = vand.u32 4294901760, %v12927_v48  ;;  %v12933_v44 = vld [vmem:[#allocation145_spill] sm:$0xff] }
 0x37d   :  { %5987 = vmatpush1.msra.mxu0 %v12925_v46  ;;  %6449 = vmatpush2.msra.mxu1 %v12926_v26  ;;  %v3809_v2 = vpop.f32.mrf.mxu0  ;;  %v4576_v49 = vpop.f32.mrf.mxu1  ;;  %v12934_v1 = vand.u32 4294901760, %v12933_v44 }
 0x37e   :  { %5000 = vmatmul.mubr.f32.gmra.mxu0 %v12899_v3  ;;  %5589 = vmatmul.mubr.f32.gmra.mxu1 %v12928_v57  ;;  %v10836_v59 = vadd.f32 %v4548_v55, %v3809_v2 }
 0x37f   :  { %5006 = vmatprep.mubr.f32.mxu0 %v12901_v54  ;;  %5596 = vmatprep.mubr.f32.mxu1 %v12930_v22  ;;  %v3811_v3 = vpop.f32.mrf.mxu0  ;;  %v4578_v42 = vpop.f32.mrf.mxu1  ;;  %v12935_v54 = vld [vmem:[#allocation75_spill] sm:$0xff]  ;;  %v12937_v22 = vld [vmem:[#allocation18_spill] sm:$0xff] }
 0x380   :  { %5988 = vmatprep.subr.mxu0 %v12530_v19  ;;  %v12936_v46 = vand.u32 4294901760, %v12935_v54  ;;  %v12938_v2 = vand.u32 4294901760, %v12937_v22 }
 0x381   :  { %5992 = vmatpush1.msra.mxu0 %v12932_v39  ;;  %v3824_v26 = vpop.f32.mrf.mxu0  ;;  %v12940_v39 = vand.u32 4294901760, %v12939_v45 }
 0x382   :  { %5009 = vmatmul.mubr.f32.gmra.mxu0 %v12906_v31  ;;  %5600 = vmatmul.mubr.f32.gmra.mxu1 %v12934_v1  ;;  %v4583_v57 = vpop.f32.mrf.mxu1  ;;  %v10847_v55 = vadd.f32 %v4555_v12, %v3824_v26  ;;  %v12944_v26 = vld [vmem:[#allocation122_spill] sm:$0xff] }
 0x383   :  { %5015 = vmatprep.mubr.f32.mxu0 %v12908_v17  ;;  %5607 = vmatprep.mubr.f32.mxu1 %v12936_v46  ;;  %v3826_v31 = vpop.f32.mrf.mxu0  ;;  %v12941_v17 = vld [vmem:[#allocation152_spill] sm:$0xff]  ;;  %v12945_v22 = vand.u32 4294901760, %v12944_v26 }
 0x384   :  { %6021 = vmatprep.subr.mxu0 %v12530_v19  ;;  %v4585_v3 = vpop.f32.mrf.mxu1  ;;  %v12942_v1 = vand.u32 4294901760, %v12941_v17 }
 0x385   :  { %6025 = vmatpush2.msra.mxu0 %v12938_v2  ;;  %v12946_v2 = vld [vmem:[#allocation149_spill] sm:$0xff] }
 0x386   :  { %5018 = vmatmul.mubr.f32.gmra.mxu0 %v12913_v52  ;;  %5611 = vmatmul.mubr.f32.gmra.mxu1 %v12940_v39  ;;  %v4590_v46 = vpop.f32.mrf.mxu1  ;;  %v12947_v31 = vand.u32 4294901760, %v12946_v2 }
 0x387   :  { %5024 = vmatprep.mubr.f32.mxu0 %v12915_v20  ;;  %5618 = vmatprep.mubr.f32.mxu1 %v12942_v1  ;;  %v3839_v42 = vpop.f32.mrf.mxu0  ;;  %v12948_v20 = vld [vmem:[#allocation30_spill] sm:$0xff] }
 0x388   :  { %6026 = vmatprep.subr.mxu0 %v12530_v19  ;;  %v10858_v12 = vadd.f32 %v4562_v16, %v3839_v42  ;;  %v4592_v39 = vpop.f32.mrf.mxu1  ;;  %v12949_v3 = vand.u32 4294901760, %v12948_v20  ;;  %v12951_v42 = vld [vmem:[#allocation76_spill] sm:$0xff] }
 0x389   :  { %6030 = vmatpush2.msra.mxu0 %v12945_v22  ;;  %v3841_v52 = vpop.f32.mrf.mxu0  ;;  %v12952_v26 = vand.u32 4294901760, %v12951_v42  ;;  %v12953_v22 = vld [vmem:[#allocation156_spill] sm:$0xff] }
 0x38a   :  { %12943 = vst [vmem:[#allocation65_spill] sm:$0xff] %v10858_v12  ;;  %5027 = vmatmul.mubr.f32.gmra.mxu0 %v12920_v41  ;;  %5622 = vmatmul.mubr.f32.gmra.mxu1 %v12947_v31  ;;  %v4597_v33 = vpop.f32.mrf.mxu1  ;;  %v12954_v52 = vand.u32 4294901760, %v12953_v22 }
 0x38b   :  { %5033 = vmatprep.mubr.f32.mxu0 %v12922_v50  ;;  %5629 = vmatprep.mubr.f32.mxu1 %v12949_v3  ;;  %v3854_v1 = vpop.f32.mrf.mxu0 }
 0x38c   :  { %v10868_v19 = vadd.f32 %v4569_v53, %v3854_v1  ;;  %v4599_v41 = vpop.f32.mrf.mxu1  ;;  %v12956_v53 = vld [vmem:[#allocation153_spill] sm:$0xff]  ;;  %v12958_v1 = vld [vmem:[#allocation78_spill] sm:$0xff] }
 0x38d   :  { %v3856_v16 = vpop.f32.mrf.mxu0  ;;  %v12957_v3 = vand.u32 4294901760, %v12956_v53 }
 0x38e   :  { %12950 = vst [vmem:[#allocation100_spill] sm:$0xff] %v10868_v19  ;;  %5036 = vmatmul.mubr.f32.gmra.mxu0 %v12927_v48  ;;  %5633 = vmatmul.mubr.f32.gmra.mxu1 %v12952_v26  ;;  %v12959_v16 = vand.u32 4294901760, %v12958_v1  ;;  %v12961_v19 = vld [vmem:[#allocation77_spill] sm:$0xff] }
 0x38f   :  { %5042 = vmatprep.mubr.f32.mxu0 %v12929_v4  ;;  %5640 = vmatprep.mubr.f32.mxu1 %v12954_v52  ;;  %v3869_v50 = vpop.f32.mrf.mxu0  ;;  %v4604_v31 = vpop.f32.mrf.mxu1 }
 0x390   :  { %v10877_v39 = vadd.f32 %v4576_v49, %v3869_v50  ;;  %v12963_v50 = vld [vmem:[#allocation161_spill] sm:$0xff] }
 0x391   :  { %v3871_v48 = vpop.f32.mrf.mxu0  ;;  %v4606_v26 = vpop.f32.mrf.mxu1 }
 0x392   :  { %5045 = vmatmul.mubr.f32.gmra.mxu0 %v12933_v44  ;;  %12955 = vst [vmem:[#allocation66_spill] sm:$0xff] %v10877_v39  ;;  %5644 = vmatmul.mubr.f32.gmra.mxu1 %v12957_v3  ;;  %v12962_v44 = vand.u32 4294901760, %v12961_v19  ;;  %v12964_v3 = vand.u32 4294901760, %v12963_v50  ;;  %v12966_v26 = vld [vmem:[#allocation157_spill] sm:$0xff] }
 0x393   :  { %5051 = vmatprep.mubr.f32.mxu0 %v12935_v54  ;;  %5651 = vmatprep.mubr.f32.mxu1 %v12959_v16  ;;  %v3884_v4 = vpop.f32.mrf.mxu0  ;;  %v4611_v41 = vpop.f32.mrf.mxu1  ;;  %v12967_v39 = vand.u32 4294901760, %v12966_v26 }
 0x394   :  { %v10885_v52 = vadd.f32 %v4583_v57, %v3884_v4  ;;  %v12968_v4 = vld [vmem:[#allocation162_spill] sm:$0xff] }
 0x395   :  { %v3886_v49 = vpop.f32.mrf.mxu0  ;;  %v4613_v54 = vpop.f32.mrf.mxu1 }
 0x396   :  { %5054 = vmatmul.mubr.f32.gmra.mxu0 %v12939_v45  ;;  %12960 = vst [vmem:[#allocation95_spill] sm:$0xff] %v10885_v52  ;;  %5655 = vmatmul.mubr.f32.gmra.mxu1 %v12962_v44  ;;  %v12969_v44 = vand.u32 4294901760, %v12968_v4  ;;  %v12971_v54 = vld [vmem:[#allocation38_spill] sm:$0xff]  ;;  %v12983_v52 = vld [vmem:[#allocation169_spill] sm:$0xff] }
 0x397   :  { %5060 = vmatprep.mubr.f32.mxu0 %v12941_v17  ;;  %5662 = vmatprep.mubr.f32.mxu1 %v12964_v3  ;;  %v3899_v48 = vpop.f32.mrf.mxu0 }
 0x398   :  { %v10893_v16 = vadd.f32 %v4590_v46, %v3899_v48  ;;  %v4618_v57 = vpop.f32.mrf.mxu1  ;;  %v12973_v48 = vld [vmem:[#allocation164_spill] sm:$0xff] }
 0x399   :  { %v3901_v45 = vpop.f32.mrf.mxu0 }
 0x39a   :  { %5063 = vmatmul.mubr.f32.gmra.mxu0 %v12946_v2  ;;  %12965 = vst [vmem:[#allocation102_spill] sm:$0xff] %v10893_v16  ;;  %5666 = vmatmul.mubr.f32.gmra.mxu1 %v12967_v39  ;;  %v4620_v17 = vpop.f32.mrf.mxu1  ;;  %v12972_v2 = vand.u32 4294901760, %v12971_v54  ;;  %v12974_v16 = vand.u32 4294901760, %v12973_v48 }
 0x39b   :  { %5069 = vmatprep.mubr.f32.mxu0 %v12948_v20  ;;  %5673 = vmatprep.mubr.f32.mxu1 %v12969_v44  ;;  %v3914_v49 = vpop.f32.mrf.mxu0  ;;  %v12975_v44 = vld [vmem:[#allocation35_spill] sm:$0xff] }
 0x39c   :  { %v10901_v3 = vadd.f32 %v4597_v33, %v3914_v49  ;;  %v4625_v46 = vpop.f32.mrf.mxu1  ;;  %v12976_v17 = vand.u32 4294901760, %v12975_v44  ;;  %v12978_v49 = vld [vmem:[#allocation39_spill] sm:$0xff] }
 0x39d   :  { %v3916_v39 = vpop.f32.mrf.mxu0 }
 0x39e   :  { %5072 = vmatmul.mubr.f32.gmra.mxu0 %v12951_v42  ;;  %12970 = vst [vmem:[#allocation105_spill] sm:$0xff] %v10901_v3  ;;  %5677 = vmatmul.mubr.f32.gmra.mxu1 %v12972_v2  ;;  %v4627_v20 = vpop.f32.mrf.mxu1  ;;  %v12979_v2 = vand.u32 4294901760, %v12978_v49 }
 0x39f   :  { %5078 = vmatprep.mubr.f32.mxu0 %v12953_v22  ;;  %5684 = vmatprep.mubr.f32.mxu1 %v12974_v16  ;;  %v12980_v20 = vld [vmem:[#allocation37_spill] sm:$0xff] }
 0x3a0   :  { %v4632_v42 = vpop.f32.mrf.mxu1  ;;  %v12981_v3 = vand.u32 4294901760, %v12980_v20 }
 0x3a1   :  { %v3929_v45 = vpop.f32.mrf.mxu0 }
 0x3a2   :  { %5081 = vmatmul.mubr.f32.gmra.mxu0 %v12956_v53  ;;  %5688 = vmatmul.mubr.f32.gmra.mxu1 %v12976_v17  ;;  %v10912_v33 = vadd.f32 %v4604_v31, %v3929_v45  ;;  %v4634_v39 = vpop.f32.mrf.mxu1 }
 0x3a3   :  { %5087 = vmatprep.mubr.f32.mxu0 %v12958_v1  ;;  %5695 = vmatprep.mubr.f32.mxu1 %v12979_v2  ;;  %v3931_v22 = vpop.f32.mrf.mxu0  ;;  %v12984_v1 = vand.u32 4294901760, %v12983_v52 }
 0x3a4   :  { %12977 = vst [vmem:[#allocation108_spill] sm:$0xff] %v10912_v33  ;;  %v4639_v53 = vpop.f32.mrf.mxu1  ;;  %v12985_v22 = vld [vmem:[#allocation165_spill] sm:$0xff] }
 0x3a5   :  { %v3944_v16 = vpop.f32.mrf.mxu0  ;;  %v12986_v39 = vand.u32 4294901760, %v12985_v22 }
 0x3a6   :  { %5090 = vmatmul.mubr.f32.gmra.mxu0 %v12961_v19  ;;  %5699 = vmatmul.mubr.f32.gmra.mxu1 %v12981_v3  ;;  %v10920_v17 = vadd.f32 %v4611_v41, %v3944_v16  ;;  %v4641_v45 = vpop.f32.mrf.mxu1  ;;  %v12988_v3 = vld [vmem:[#allocation170_spill] sm:$0xff] }
 0x3a7   :  { %5096 = vmatprep.mubr.f32.mxu0 %v12963_v50  ;;  %5706 = vmatprep.mubr.f32.mxu1 %v12984_v1  ;;  %v3946_v31 = vpop.f32.mrf.mxu0  ;;  %v12989_v33 = vand.u32 4294901760, %v12988_v3 }
 0x3a8   :  { %12982 = vst [vmem:[#allocation97_spill] sm:$0xff] %v10920_v17  ;;  %v12990_v31 = vld [vmem:[#allocation81_spill] sm:$0xff] }
 0x3a9   :  { %v3959_v2 = vpop.f32.mrf.mxu0  ;;  %v12991_v45 = vand.u32 4294901760, %v12990_v31 }
 0x3aa   :  { %5099 = vmatmul.mubr.f32.gmra.mxu0 %v12966_v26  ;;  %5710 = vmatmul.mubr.f32.gmra.mxu1 %v12986_v39  ;;  %v10928_v19 = vadd.f32 %v4618_v57, %v3959_v2  ;;  %v4646_v41 = vpop.f32.mrf.mxu1  ;;  %v12993_v39 = vld [vmem:[#allocation172_spill] sm:$0xff] }
 0x3ab   :  { %5105 = vmatprep.mubr.f32.mxu0 %v12968_v4  ;;  %5717 = vmatprep.mubr.f32.mxu1 %v12989_v33  ;;  %v3961_v50 = vpop.f32.mrf.mxu0  ;;  %v12994_v4 = vand.u32 4294901760, %v12993_v39  ;;  %v12995_v33 = vld [vmem:[#allocation45_spill] sm:$0xff] }
 0x3ac   :  { %12987 = vst [vmem:[#allocation104_spill] sm:$0xff] %v10928_v19  ;;  %v4648_v16 = vpop.f32.mrf.mxu1  ;;  %v12996_v50 = vand.u32 4294901760, %v12995_v33 }
 0x3ad   :  { %v3974_v1 = vpop.f32.mrf.mxu0  ;;  %v12997_v16 = vld [vmem:[#allocation49_spill] sm:$0xff] }
 0x3ae   :  { %5108 = vmatmul.mubr.f32.gmra.mxu0 %v12971_v54  ;;  %5721 = vmatmul.mubr.f32.gmra.mxu1 %v12991_v45  ;;  %v10936_v26 = vadd.f32 %v4625_v46, %v3974_v1  ;;  %v4653_v57 = vpop.f32.mrf.mxu1  ;;  %v12998_v45 = vand.u32 4294901760, %v12997_v16 }
 0x3af   :  { %5114 = vmatprep.mubr.f32.mxu0 %v12973_v48  ;;  %5728 = vmatprep.mubr.f32.mxu1 %v12994_v4  ;;  %v3976_v2 = vpop.f32.mrf.mxu0  ;;  %v12999_v4 = vld [vmem:[#allocation47_spill] sm:$0xff] }
 0x3b0   :  { %12992 = vst [vmem:[#allocation107_spill] sm:$0xff] %v10936_v26  ;;  %v4655_v19 = vpop.f32.mrf.mxu1  ;;  %v13001_v2 = vld [vmem:[#allocation177_spill] sm:$0xff] }
 0x3b1   :  { %v13000_v19 = vand.u32 4294901760, %v12999_v4 }
 0x3b2   :  { %5117 = vmatmul.mubr.f32.gmra.mxu0 %v12975_v44  ;;  %5732 = vmatmul.mubr.f32.gmra.mxu1 %v12996_v50  ;;  %v3989_v54 = vpop.f32.mrf.mxu0  ;;  %v4660_v48 = vpop.f32.mrf.mxu1  ;;  %v13002_v50 = vand.u32 4294901760, %v13001_v2 }
 0x3b3   :  { %5123 = vmatprep.mubr.f32.mxu0 %v12978_v49  ;;  %5739 = vmatprep.mubr.f32.mxu1 %v12998_v45  ;;  %v10946_v46 = vadd.f32 %v4632_v42, %v3989_v54  ;;  %v13004_v42 = vld [vmem:[#allocation173_spill] sm:$0xff]  ;;  %v13006_v54 = vld [vmem:[#allocation178_spill] sm:$0xff] }
 0x3b4   :  { %v3991_v1 = vpop.f32.mrf.mxu0  ;;  %v4662_v26 = vpop.f32.mrf.mxu1 }
 0x3b5   :  { %v13005_v26 = vand.u32 4294901760, %v13004_v42  ;;  %v13007_v1 = vand.u32 4294901760, %v13006_v54 }
 0x3b6   :  { %5126 = vmatmul.mubr.f32.gmra.mxu0 %v12980_v20  ;;  %5743 = vmatmul.mubr.f32.gmra.mxu1 %v13000_v19  ;;  %v4004_v44 = vpop.f32.mrf.mxu0  ;;  %v4667_v49 = vpop.f32.mrf.mxu1 }
 0x3b7   :  { %5132 = vmatprep.mubr.f32.mxu0 %v12983_v52  ;;  %5750 = vmatprep.mubr.f32.mxu1 %v13002_v50  ;;  %v10954_v17 = vadd.f32 %v4639_v53, %v4004_v44  ;;  %v13009_v53 = vld [vmem:[#allocation44_spill] sm:$0xff] }
 0x3b8   :  { %v4006_v45 = vpop.f32.mrf.mxu0  ;;  %v4669_v12 = vpop.f32.mrf.mxu1  ;;  %v13010_v44 = vand.u32 4294901760, %v13009_v53 }
 0x3b9   :  { %13003 = vst [vmem:[#allocation113_spill] sm:$0xff] %v10954_v17  ;;  %v13011_v45 = vld [vmem:[#allocation180_spill] sm:$0xff] }
 0x3ba   :  { %5135 = vmatmul.mubr.f32.gmra.mxu0 %v12985_v22  ;;  %5754 = vmatmul.mubr.f32.gmra.mxu1 %v13005_v26  ;;  %v4019_v20 = vpop.f32.mrf.mxu0  ;;  %v13012_v26 = vand.u32 4294901760, %v13011_v45 }
 0x3bb   :  { %5141 = vmatprep.mubr.f32.mxu0 %v12988_v3  ;;  %5761 = vmatprep.mubr.f32.mxu1 %v13007_v1  ;;  %v10962_v52 = vadd.f32 %v4646_v41, %v4019_v20  ;;  %v4674_v19 = vpop.f32.mrf.mxu1  ;;  %v13013_v41 = vld [vmem:[#allocation84_spill] sm:$0xff] }
 0x3bc   :  { %v4021_v50 = vpop.f32.mrf.mxu0  ;;  %v13014_v20 = vand.u32 4294901760, %v13013_v41 }
 0x3bd   :  { %13008 = vst [vmem:[#allocation110_spill] sm:$0xff] %v10962_v52  ;;  %v4676_v12 = vpop.f32.mrf.mxu1  ;;  %v13015_v50 = vld [vmem:[#allocation86_spill] sm:$0xff] }
 0x3be   :  { %5144 = vmatmul.mubr.f32.gmra.mxu0 %v12990_v31  ;;  %5765 = vmatmul.mubr.f32.gmra.mxu1 %v13010_v44  ;;  %v4034_v22 = vpop.f32.mrf.mxu0  ;;  %v13016_v44 = vand.u32 4294901760, %v13015_v50 }
 0x3bf   :  { %5150 = vmatprep.mubr.f32.mxu0 %v12993_v39  ;;  %5772 = vmatprep.mubr.f32.mxu1 %v13012_v26  ;;  %v10970_v3 = vadd.f32 %v4653_v57, %v4034_v22  ;;  %v4681_v17 = vpop.f32.mrf.mxu1  ;;  %v13017_v22 = vld [vmem:[#allocation85_spill] sm:$0xff] }
 0x3c0   :  { %v4036_v1 = vpop.f32.mrf.mxu0  ;;  %v13018_v26 = vand.u32 4294901760, %v13017_v22 }
 0x3c1   :  { %v4683_v31 = vpop.f32.mrf.mxu1  ;;  %v13019_v1 = vand.u32 4294901760, %v10333_v56 }
 0x3c2   :  { %5153 = vmatmul.mubr.f32.gmra.mxu0 %v12995_v33  ;;  %5776 = vmatmul.mubr.f32.gmra.mxu1 %v13014_v20 }
 0x3c3   :  { %5159 = vmatprep.mubr.f32.mxu0 %v12997_v16  ;;  %5783 = vmatprep.mubr.f32.mxu1 %v13016_v44  ;;  %v4688_v12 = vpop.f32.mrf.mxu1  ;;  %v13020_v44 = vand.u32 4294901760, %v10300_v27 }
 0x3c4   :  { %v4049_v39 = vpop.f32.mrf.mxu0 }
 0x3c5   :  { %v10978_v52 = vadd.f32 %v4660_v48, %v4049_v39  ;;  %v4690_v33 = vpop.f32.mrf.mxu1  ;;  %v13021_v39 = vand.u32 4294901760, %v10351_v61 }
 0x3c6   :  { %5162 = vmatmul.mubr.f32.gmra.mxu0 %v12999_v4  ;;  %v4051_v57 = vpop.f32.mrf.mxu0  ;;  %5787 = vmatmul.mubr.f32.gmra.mxu1 %v13018_v26  ;;  %v13022_v33 = vld [vmem:[#allocation54_spill] sm:$0xff] }
 0x3c7   :  { %5168 = vmatprep.mubr.f32.mxu0 %v13001_v2  ;;  %5794 = vmatprep.mubr.f32.mxu1 %v13019_v1  ;;  %v4695_v20 = vpop.f32.mrf.mxu1  ;;  %v13023_v1 = vand.u32 4294901760, %v13022_v33 }
 0x3c8   :  { %v4064_v16 = vpop.f32.mrf.mxu0 }
 0x3c9   :  { %v10986_v31 = vadd.f32 %v4667_v49, %v4064_v16  ;;  %v4697_v4 = vpop.f32.mrf.mxu1 }
 0x3ca   :  { %5171 = vmatmul.mubr.f32.gmra.mxu0 %v13004_v42  ;;  %v4066_v48 = vpop.f32.mrf.mxu0  ;;  %5798 = vmatmul.mubr.f32.gmra.mxu1 %v13020_v44  ;;  %v13024_v42 = vand.u32 4294901760, %v10397_v35  ;;  %v13025_v4 = vand.u32 4294901760, %v10338_v37 }
 0x3cb   :  { %5177 = vmatprep.mubr.f32.mxu0 %v13006_v54  ;;  %5805 = vmatprep.mubr.f32.mxu1 %v13021_v39 }
 0x3cc   :  { %v4079_v2 = vpop.f32.mrf.mxu0  ;;  %v4702_v26 = vpop.f32.mrf.mxu1 }
 0x3cd   :  { %v10994_v57 = vadd.f32 %v4674_v19, %v4079_v2 }
 0x3ce   :  { %5180 = vmatmul.mubr.f32.gmra.mxu0 %v13009_v53  ;;  %v4081_v49 = vpop.f32.mrf.mxu0  ;;  %5809 = vmatmul.mubr.f32.gmra.mxu1 %v13023_v1  ;;  %v4704_v16 = vpop.f32.mrf.mxu1  ;;  %v13026_v53 = vand.u32 4294901760, %v10418_v38 }
 0x3cf   :  { %5186 = vmatprep.mubr.f32.mxu0 %v13011_v45  ;;  %5816 = vmatprep.mubr.f32.mxu1 %v13024_v42  ;;  %v13029_v42 = vand.u32 4294901760, %v10452_v0 }
 0x3d0   :  { %v4094_v54 = vpop.f32.mrf.mxu0 }
 0x3d1   :  { %v11002_v48 = vadd.f32 %v4681_v17, %v4094_v54  ;;  %v4709_v44 = vpop.f32.mrf.mxu1  ;;  %v13027_v17 = vld [vmem:[#allocation56_spill] sm:$0xff] }
 0x3d2   :  { %5189 = vmatmul.mubr.f32.gmra.mxu0 %v13013_v41  ;;  %v4096_v19 = vpop.f32.mrf.mxu0  ;;  %5820 = vmatmul.mubr.f32.gmra.mxu1 %v13025_v4  ;;  %v13028_v1 = vand.u32 4294901760, %v13027_v17  ;;  %v13031_v4 = vand.u32 4294901760, %v10470_v10 }
 0x3d3   :  { %5195 = vmatprep.mubr.f32.mxu0 %v13015_v50  ;;  %5827 = vmatprep.mubr.f32.mxu1 %v13026_v53  ;;  %v4711_v45 = vpop.f32.mrf.mxu1 }
 0x3d5   :  { %v4109_v39 = vpop.f32.mrf.mxu0  ;;  %v4716_v2 = vpop.f32.mrf.mxu1 }
 0x3d6   :  { %v11010_v49 = vadd.f32 %v4688_v12, %v4109_v39  ;;  %5198 = vmatmul.mubr.f32.gmra.mxu0 %v13017_v22  ;;  %5831 = vmatmul.mubr.f32.gmra.mxu1 %v13028_v1  ;;  %v13030_v12 = vand.u32 4294901760, %v10404_v47  ;;  %v13033_v1 = vand.u32 4294901760, %v10495_v62 }
 0x3d7   :  { %5204 = vmatprep.mubr.f32.mxu0 %v10333_v56  ;;  %v4111_v41 = vpop.f32.mrf.mxu0  ;;  %5838 = vmatprep.mubr.f32.mxu1 %v13029_v42  ;;  %v4718_v50 = vpop.f32.mrf.mxu1 }
 0x3d8   :  { %v13034_v50 = vand.u32 4294901760, %v10481_v9 }
 0x3d9   :  { %v4124_v16 = vpop.f32.mrf.mxu0  ;;  %v4723_v54 = vpop.f32.mrf.mxu1 }
 0x3da   :  { %v11018_v19 = vadd.f32 %v4695_v20, %v4124_v16  ;;  %5207 = vmatmul.mubr.f32.gmra.mxu0 %v10300_v27  ;;  %5842 = vmatmul.mubr.f32.gmra.mxu1 %v13030_v12  ;;  %v13032_v20 = vand.u32 4294901760, %v10437_v34  ;;  %v13035_v16 = vand.u32 4294901760, %v10523_v36 }
 0x3db   :  { %5213 = vmatprep.mubr.f32.mxu0 %v10351_v61  ;;  %v4126_v22 = vpop.f32.mrf.mxu0  ;;  %5849 = vmatprep.mubr.f32.mxu1 %v13031_v4  ;;  %v4725_v56 = vpop.f32.mrf.mxu1 }
 0x3dd   :  { %v4139_v53 = vpop.f32.mrf.mxu0 }
 0x3de   :  { %v11026_v45 = vadd.f32 %v4702_v26, %v4139_v53  ;;  %5216 = vmatmul.mubr.f32.gmra.mxu0 %v13022_v33  ;;  %v4730_v39 = vpop.f32.mrf.mxu1  ;;  %5853 = vmatmul.mubr.f32.gmra.mxu1 %v13032_v20 }
 0x3df   :  { %5222 = vmatprep.mubr.f32.mxu0 %v10397_v35  ;;  %v4141_v27 = vpop.f32.mrf.mxu0  ;;  %5860 = vmatprep.mubr.f32.mxu1 %v13033_v1 }
 0x3e0   :  { %v4732_v61 = vpop.f32.mrf.mxu1  ;;  %v13038_v27 = vand.u32 4294901760, %v10542_v29 }
 0x3e1   :  { %v4154_v41 = vpop.f32.mrf.mxu0 }
 0x3e2   :  { %v11034_v42 = vadd.f32 %v4709_v44, %v4154_v41  ;;  %5225 = vmatmul.mubr.f32.gmra.mxu0 %v10338_v37  ;;  %v4737_v26 = vpop.f32.mrf.mxu1  ;;  %5864 = vmatmul.mubr.f32.gmra.mxu1 %v13034_v50  ;;  %v13036_v44 = vand.u32 4294901760, %v10506_v63  ;;  %v13037_v37 = vand.u32 4294901760, %v10545_v23  ;;  %v13040_v50 = vand.u32 4294901760, %v10578_v18 }
 0x3e3   :  { %5231 = vmatprep.mubr.f32.mxu0 %v10418_v38  ;;  %v4156_v33 = vpop.f32.mrf.mxu0  ;;  %5871 = vmatprep.mubr.f32.mxu1 %v13035_v16 }
 0x3e4   :  { %v4739_v35 = vpop.f32.mrf.mxu1 }
 0x3e6   :  { %v4169_v12 = vpop.f32.mrf.mxu0  ;;  %5234 = vmatmul.mubr.f32.gmra.mxu0 %v13027_v17  ;;  %v4744_v22 = vpop.f32.mrf.mxu1  ;;  %5875 = vmatmul.mubr.f32.gmra.mxu1 %v13036_v44 }
 0x3e7   :  { %v11045_v4 = vadd.f32 %v4716_v2, %v4169_v12  ;;  %5240 = vmatprep.mubr.f32.mxu0 %v10452_v0  ;;  %5882 = vmatprep.mubr.f32.mxu1 %v13037_v37  ;;  %v13039_v2 = vand.u32 4294901760, %v10559_v25  ;;  %v13042_v12 = vand.u32 4294901760, %v10602_v8 }
 0x3e8   :  { %v4171_v38 = vpop.f32.mrf.mxu0  ;;  %v4746_v56 = vpop.f32.mrf.mxu1 }
 0x3e9   :  { %v13044_v56 = vld [vmem:[#allocation91_spill] sm:$0xff] }
 0x3ea   :  { %v4184_v53 = vpop.f32.mrf.mxu0  ;;  %5243 = vmatmul.mubr.f32.gmra.mxu0 %v10404_v47  ;;  %v4751_v20 = vpop.f32.mrf.mxu1  ;;  %5886 = vmatmul.mubr.f32.gmra.mxu1 %v13038_v27 }
 0x3eb   :  { %v11053_v17 = vadd.f32 %v4723_v54, %v4184_v53  ;;  %5249 = vmatprep.mubr.f32.mxu0 %v10470_v10  ;;  %5893 = vmatprep.mubr.f32.mxu1 %v13039_v2  ;;  %v13041_v54 = vand.u32 4294901760, %v10581_v21 }
 0x3ec   :  { %v4186_v0 = vpop.f32.mrf.mxu0  ;;  %v4753_v1 = vpop.f32.mrf.mxu1 }
 0x3ed   :  { %v13046_v0 = vld [vmem:[#allocation92_spill] sm:$0xff] }
 0x3ee   :  { %v4199_v61 = vpop.f32.mrf.mxu0  ;;  %5252 = vmatmul.mubr.f32.gmra.mxu0 %v10437_v34  ;;  %v4758_v41 = vpop.f32.mrf.mxu1  ;;  %5897 = vmatmul.mubr.f32.gmra.mxu1 %v13040_v50 }
 0x3ef   :  { %v11061_v47 = vadd.f32 %v4730_v39, %v4199_v61  ;;  %5258 = vmatprep.mubr.f32.mxu0 %v10495_v62  ;;  %5904 = vmatprep.mubr.f32.mxu1 %v13041_v54  ;;  %v13043_v39 = vld [vmem:[#allocation60_spill] sm:$0xff]  ;;  %v13048_v54 = vld [vmem:[#allocation93_spill] sm:$0xff] }
 0x3f0   :  { %v4201_v10 = vpop.f32.mrf.mxu0  ;;  %v4760_v33 = vpop.f32.mrf.mxu1 }
 0x3f2   :  { %v4214_v16 = vpop.f32.mrf.mxu0  ;;  %5261 = vmatmul.mubr.f32.gmra.mxu0 %v10481_v9  ;;  %v4765_v35 = vpop.f32.mrf.mxu1  ;;  %5908 = vmatmul.mubr.f32.gmra.mxu1 %v13042_v12  ;;  %v13045_v9 = vld [vmem:[#allocation62_spill] sm:$0xff]  ;;  %v13050_v12 = vld [vmem:[#allocation64_spill] sm:$0xff] }
 0x3f3   :  { %v11069_v34 = vadd.f32 %v4737_v26, %v4214_v16  ;;  %5267 = vmatprep.mubr.f32.mxu0 %v10523_v36  ;;  %6451 = vmatprep.mubr.f32.mxu1 %v13043_v39 }
 0x3f4   :  { %v4216_v44 = vpop.f32.mrf.mxu0  ;;  %v4767_v62 = vpop.f32.mrf.mxu1 }
 0x3f6   :  { %v4229_v37 = vpop.f32.mrf.mxu0  ;;  %5270 = vmatmul.mubr.f32.gmra.mxu0 %v10506_v63  ;;  %v5392_v38 = vpop.f32.mrf.mxu1  ;;  %6453 = vmatmul.mubr.f32.vlgmr.msra.gmra.mxu1 %v13044_v56  ;;  %v13047_v63 = vld [vmem:[#allocation94_spill] sm:$0xff] }
 0x3f7   :  { %v11075_v53 = vadd.f32 %v4744_v22, %v4229_v37  ;;  %5276 = vmatprep.mubr.f32.mxu0 %v10545_v23  ;;  %6458 = vmatprep.mubr.f32.mxu1 %v13045_v9 }
 0x3f8   :  { %v4231_v26 = vpop.f32.mrf.mxu0  ;;  %v5394_v27 = vpop.f32.mrf.mxu1 }
 0x3f9   :  { %v13052_v26 = vld [vmem:[#allocation67_spill] sm:$0xff] }
 0x3fa   :  { %v4244_v2 = vpop.f32.mrf.mxu0  ;;  %5279 = vmatmul.mubr.f32.gmra.mxu0 %v10542_v29  ;;  %v5403_v36 = vpop.f32.mrf.mxu1  ;;  %6460 = vmatmul.mubr.f32.gmra.mxu1 %v13046_v0  ;;  %v13049_v29 = vld [vmem:[#allocation96_spill] sm:$0xff] }
 0x3fb   :  { %v11081_v1 = vadd.f32 %v4751_v20, %v4244_v2  ;;  %5285 = vmatprep.mubr.f32.mxu0 %v10559_v25  ;;  %6465 = vmatprep.mubr.f32.mxu1 %v13047_v63 }
 0x3fc   :  { %v4246_v22 = vpop.f32.mrf.mxu0  ;;  %v5405_v61 = vpop.f32.mrf.mxu1 }
 0x3fe   :  { %v4259_v50 = vpop.f32.mrf.mxu0  ;;  %5288 = vmatmul.mubr.f32.gmra.mxu0 %v10578_v18  ;;  %v5414_v23 = vpop.f32.mrf.mxu1  ;;  %6467 = vmatmul.mubr.f32.gmra.mxu1 %v13048_v54  ;;  %v13051_v18 = vld [vmem:[#allocation98_spill] sm:$0xff] }
 0x3ff   :  { %v11087_v10 = vadd.f32 %v4758_v41, %v4259_v50  ;;  %5294 = vmatprep.mubr.f32.mxu0 %v10581_v21  ;;  %6472 = vmatprep.mubr.f32.mxu1 %v13049_v29  ;;  %v13054_v50 = vld [vmem:[#allocation68_spill] sm:$0xff] }
 0x400   :  { %v4261_v20 = vpop.f32.mrf.mxu0  ;;  %v5416_v33 = vpop.f32.mrf.mxu1 }
 0x401   :  { %v13055_v20 = vld [vmem:[#allocation69_spill] sm:$0xff] }
 0x402   :  { %v4274_v16 = vpop.f32.mrf.mxu0  ;;  %5297 = vmatmul.mubr.f32.gmra.mxu0 %v10602_v8  ;;  %v5425_v25 = vpop.f32.mrf.mxu1  ;;  %6474 = vmatmul.mubr.f32.gmra.mxu1 %v13050_v12  ;;  %v13053_v8 = vld [vmem:[#allocation99_spill] sm:$0xff] }
 0x403   :  { %v11093_v44 = vadd.f32 %v4765_v35, %v4274_v16  ;;  %6032 = vmatprep.mubr.f32.mxu0 %v13043_v39  ;;  %6479 = vmatprep.mubr.f32.mxu1 %v13051_v18 }
 0x404   :  { %v4276_v41 = vpop.f32.mrf.mxu0  ;;  %v5427_v62 = vpop.f32.mrf.mxu1 }
 0x405   :  { %v13056_v41 = vld [vmem:[#allocation101_spill] sm:$0xff]  ;;  %v13057_v62 = vld [vmem:[#allocation106_spill] sm:$0xff] }
 0x406   :  { %v4875_v37 = vpop.f32.mrf.mxu0  ;;  %6034 = vmatmul.mubr.f32.vlgmr.msra.gmra.mxu0 %v13044_v56  ;;  %v5436_v21 = vpop.f32.mrf.mxu1  ;;  %6481 = vmatmul.mubr.f32.gmra.mxu1 %v13052_v26 }
 0x407   :  { %v4876_v27 = vadd.f32 %v4875_v37, %v10609_v11  ;;  %6039 = vmatprep.mubr.f32.mxu0 %v13045_v9  ;;  %6486 = vmatprep.mubr.f32.mxu1 %v13053_v8 }
 0x408   :  { %v4877_v35 = vpop.f32.mrf.mxu0  ;;  %v5438_v2 = vpop.f32.mrf.mxu1 }
 0x409   :  { %v11102_v22 = vadd.f32 %v5392_v38, %v4876_v27  ;;  %v13058_v35 = vld [vmem:[#allocation103_spill] sm:$0xff]  ;;  %v13059_v2 = vld [vmem:[#allocation109_spill] sm:$0xff] }
 0x40a   :  { %v4884_v39 = vpop.f32.mrf.mxu0  ;;  %6041 = vmatmul.mubr.f32.gmra.mxu0 %v13046_v0  ;;  %v5447_v61 = vpop.f32.mrf.mxu1  ;;  %6488 = vmatmul.mubr.f32.gmra.mxu1 %v13054_v50 }
 0x40b   :  { %v4885_v56 = vadd.f32 %v4884_v39, %v10629_v7  ;;  %6046 = vmatprep.mubr.f32.mxu0 %v13047_v63  ;;  %6493 = vmatprep.mubr.f32.mxu1 %v13055_v20 }
 0x40c   :  { %v4886_v11 = vpop.f32.mrf.mxu0  ;;  %v5449_v9 = vpop.f32.mrf.mxu1 }
 0x40d   :  { %v11109_v33 = vadd.f32 %v5403_v36, %v4885_v56  ;;  %v13060_v11 = vld [vmem:[#allocation70_spill] sm:$0xff]  ;;  %v13061_v9 = vld [vmem:[#allocation71_spill] sm:$0xff] }
 0x40e   :  { %v4893_v16 = vpop.f32.mrf.mxu0  ;;  %6048 = vmatmul.mubr.f32.gmra.mxu0 %v13048_v54  ;;  %v5458_v38 = vpop.f32.mrf.mxu1  ;;  %6495 = vmatmul.mubr.f32.gmra.mxu1 %v13056_v41 }
 0x40f   :  { %v4894_v0 = vadd.f32 %v4893_v16, %v10637_v14  ;;  %6053 = vmatprep.mubr.f32.mxu0 %v13049_v29  ;;  %6500 = vmatprep.mubr.f32.mxu1 %v13057_v62 }
 0x410   :  { %v4895_v7 = vpop.f32.mrf.mxu0  ;;  %v5460_v63 = vpop.f32.mrf.mxu1 }
 0x411   :  { %v11116_v37 = vadd.f32 %v5414_v23, %v4894_v0  ;;  %v13062_v7 = vld [vmem:[#allocation111_spill] sm:$0xff]  ;;  %v13063_v63 = vld [vmem:[#allocation72_spill] sm:$0xff] }
 0x412   :  { %v4902_v27 = vpop.f32.mrf.mxu0  ;;  %6055 = vmatmul.mubr.f32.gmra.mxu0 %v13050_v12  ;;  %v5469_v36 = vpop.f32.mrf.mxu1  ;;  %6502 = vmatmul.mubr.f32.gmra.mxu1 %v13058_v35 }
 0x413   :  { %v4903_v54 = vadd.f32 %v4902_v27, %v10651_v28  ;;  %6060 = vmatprep.mubr.f32.mxu0 %v13051_v18  ;;  %6507 = vmatprep.mubr.f32.mxu1 %v13059_v2 }
 0x414   :  { %v4904_v14 = vpop.f32.mrf.mxu0  ;;  %v5471_v29 = vpop.f32.mrf.mxu1 }
 0x415   :  { %v11123_v39 = vadd.f32 %v5425_v25, %v4903_v54  ;;  %v13064_v14 = vld [vmem:[#allocation114_spill] sm:$0xff]  ;;  %v13065_v29 = vld [vmem:[#allocation123_spill] sm:$0xff] }
 0x416   :  { %v4911_v56 = vpop.f32.mrf.mxu0  ;;  %6062 = vmatmul.mubr.f32.gmra.mxu0 %v13052_v26  ;;  %v5480_v23 = vpop.f32.mrf.mxu1  ;;  %6509 = vmatmul.mubr.f32.gmra.mxu1 %v13060_v11 }
 0x417   :  { %v4912_v12 = vadd.f32 %v4911_v56, %v10665_v40  ;;  %6067 = vmatprep.mubr.f32.mxu0 %v13053_v8  ;;  %6514 = vmatprep.mubr.f32.mxu1 %v13061_v9 }
 0x418   :  { %v4913_v28 = vpop.f32.mrf.mxu0  ;;  %v5482_v18 = vpop.f32.mrf.mxu1 }
 0x419   :  { %v11130_v16 = vadd.f32 %v5436_v21, %v4912_v12  ;;  %v13066_v28 = vld [vmem:[#allocation116_spill] sm:$0xff]  ;;  %v13067_v18 = vld [vmem:[#allocation127_spill] sm:$0xff] }
 0x41a   :  { %v4920_v0 = vpop.f32.mrf.mxu0  ;;  %6069 = vmatmul.mubr.f32.gmra.mxu0 %v13054_v50  ;;  %v5491_v25 = vpop.f32.mrf.mxu1  ;;  %6516 = vmatmul.mubr.f32.gmra.mxu1 %v13062_v7 }
 0x41b   :  { %v4921_v26 = vadd.f32 %v4920_v0, %v10678_v24  ;;  %6074 = vmatprep.mubr.f32.mxu0 %v13055_v20  ;;  %6521 = vmatprep.mubr.f32.mxu1 %v13063_v63 }
 0x41c   :  { %v4922_v40 = vpop.f32.mrf.mxu0  ;;  %v5493_v8 = vpop.f32.mrf.mxu1 }
 0x41d   :  { %v11137_v27 = vadd.f32 %v5447_v61, %v4921_v26  ;;  %v13068_v40 = vld [vmem:[#allocation124_spill] sm:$0xff]  ;;  %v13069_v8 = vld [vmem:[#allocation130_spill] sm:$0xff] }
 0x41e   :  { %v4929_v54 = vpop.f32.mrf.mxu0  ;;  %6076 = vmatmul.mubr.f32.gmra.mxu0 %v13056_v41  ;;  %v5502_v21 = vpop.f32.mrf.mxu1  ;;  %6523 = vmatmul.mubr.f32.gmra.mxu1 %v13064_v14 }
 0x41f   :  { %v4930_v50 = vadd.f32 %v4929_v54, %v10694_v15  ;;  %6081 = vmatprep.mubr.f32.mxu0 %v13057_v62  ;;  %6528 = vmatprep.mubr.f32.mxu1 %v13065_v29 }
 0x420   :  { %v4931_v24 = vpop.f32.mrf.mxu0  ;;  %v5504_v20 = vpop.f32.mrf.mxu1 }
 0x421   :  { %v11144_v56 = vadd.f32 %v5458_v38, %v4930_v50  ;;  %v13070_v24 = vld [vmem:[#allocation128_spill] sm:$0xff]  ;;  %v13071_v20 = vld [vmem:[#allocation19_spill] sm:$0xff] }
 0x422   :  { %v4938_v12 = vpop.f32.mrf.mxu0  ;;  %6083 = vmatmul.mubr.f32.gmra.mxu0 %v13058_v35  ;;  %v5513_v61 = vpop.f32.mrf.mxu1  ;;  %6530 = vmatmul.mubr.f32.gmra.mxu1 %v13066_v28 }
 0x423   :  { %v4939_v41 = vadd.f32 %v4938_v12, %v10713_v6  ;;  %6088 = vmatprep.mubr.f32.mxu0 %v13059_v2  ;;  %6535 = vmatprep.mubr.f32.mxu1 %v13067_v18 }
 0x424   :  { %v4940_v15 = vpop.f32.mrf.mxu0  ;;  %v5515_v62 = vpop.f32.mrf.mxu1 }
 0x425   :  { %v11151_v0 = vadd.f32 %v5469_v36, %v4939_v41  ;;  %v13072_v15 = vld [vmem:[#allocation132_spill] sm:$0xff]  ;;  %v13073_v62 = vld [vmem:[#allocation137_spill] sm:$0xff] }
 0x426   :  { %v4947_v26 = vpop.f32.mrf.mxu0  ;;  %6090 = vmatmul.mubr.f32.gmra.mxu0 %v13060_v11  ;;  %v5524_v38 = vpop.f32.mrf.mxu1  ;;  %6537 = vmatmul.mubr.f32.gmra.mxu1 %v13068_v40 }
 0x427   :  { %v4948_v35 = vadd.f32 %v4947_v26, %v10726_v51  ;;  %6095 = vmatprep.mubr.f32.mxu0 %v13061_v9  ;;  %6542 = vmatprep.mubr.f32.mxu1 %v13069_v8 }
 0x428   :  { %v4949_v6 = vpop.f32.mrf.mxu0  ;;  %v5526_v2 = vpop.f32.mrf.mxu1 }
 0x429   :  { %v11158_v54 = vadd.f32 %v5480_v23, %v4948_v35  ;;  %v13074_v6 = vld [vmem:[#allocation135_spill] sm:$0xff] }
 0x42a   :  { %v4956_v50 = vpop.f32.mrf.mxu0  ;;  %6097 = vmatmul.mubr.f32.gmra.mxu0 %v13062_v7  ;;  %v5535_v36 = vpop.f32.mrf.mxu1  ;;  %6544 = vmatmul.mubr.f32.gmra.mxu1 %v13070_v24  ;;  %v13075_v2 = vld [vmem:[#allocation139_spill] sm:$0xff] }
 0x42b   :  { %v4957_v11 = vadd.f32 %v4956_v50, %v10739_v43  ;;  %6102 = vmatprep.mubr.f32.mxu0 %v13063_v63  ;;  %6549 = vmatprep.mubr.f32.mxu1 %v13071_v20 }
 0x42c   :  { %v4958_v51 = vpop.f32.mrf.mxu0  ;;  %v5537_v9 = vpop.f32.mrf.mxu1 }
 0x42d   :  { %v11165_v12 = vadd.f32 %v5491_v25, %v4957_v11  ;;  %v13076_v51 = vld [vmem:[#allocation138_spill] sm:$0xff]  ;;  %v13077_v9 = vld [vmem:[#allocation141_spill] sm:$0xff] }
 0x42e   :  { %v4965_v41 = vpop.f32.mrf.mxu0  ;;  %6104 = vmatmul.mubr.f32.gmra.mxu0 %v13064_v14  ;;  %v5546_v23 = vpop.f32.mrf.mxu1  ;;  %6551 = vmatmul.mubr.f32.gmra.mxu1 %v13072_v15 }
 0x42f   :  { %v4966_v7 = vadd.f32 %v4965_v41, %v10755_v5  ;;  %6109 = vmatprep.mubr.f32.mxu0 %v13065_v29  ;;  %6556 = vmatprep.mubr.f32.mxu1 %v13073_v62 }
 0x430   :  { %v4967_v43 = vpop.f32.mrf.mxu0  ;;  %v5548_v63 = vpop.f32.mrf.mxu1 }
 0x431   :  { %v11172_v26 = vadd.f32 %v5502_v21, %v4966_v7  ;;  %v13078_v43 = vld [vmem:[#allocation24_spill] sm:$0xff]  ;;  %v13079_v63 = vld [vmem:[#allocation143_spill] sm:$0xff] }
 0x432   :  { %v4974_v35 = vpop.f32.mrf.mxu0  ;;  %6111 = vmatmul.mubr.f32.gmra.mxu0 %v13066_v28  ;;  %v5557_v25 = vpop.f32.mrf.mxu1  ;;  %6558 = vmatmul.mubr.f32.gmra.mxu1 %v13074_v6 }
 0x433   :  { %v4975_v14 = vadd.f32 %v4974_v35, %v10768_v58  ;;  %6116 = vmatprep.mubr.f32.mxu0 %v13067_v18  ;;  %6563 = vmatprep.mubr.f32.mxu1 %v13075_v2 }
 0x434   :  { %v4976_v5 = vpop.f32.mrf.mxu0  ;;  %v5559_v29 = vpop.f32.mrf.mxu1 }
 0x435   :  { %v11179_v50 = vadd.f32 %v5513_v61, %v4975_v14  ;;  %v13080_v5 = vld [vmem:[#allocation23_spill] sm:$0xff]  ;;  %v13081_v29 = vld [vmem:[#allocation144_spill] sm:$0xff] }
 0x436   :  { %v4983_v11 = vpop.f32.mrf.mxu0  ;;  %6118 = vmatmul.mubr.f32.gmra.mxu0 %v13068_v40  ;;  %v5568_v21 = vpop.f32.mrf.mxu1  ;;  %6565 = vmatmul.mubr.f32.gmra.mxu1 %v13076_v51 }
 0x437   :  { %v4984_v28 = vadd.f32 %v4983_v11, %v10783_v32  ;;  %6123 = vmatprep.mubr.f32.mxu0 %v13069_v8  ;;  %6570 = vmatprep.mubr.f32.mxu1 %v13077_v9 }
 0x438   :  { %v4985_v58 = vpop.f32.mrf.mxu0  ;;  %v5570_v18 = vpop.f32.mrf.mxu1 }
 0x439   :  { %v11186_v41 = vadd.f32 %v5524_v38, %v4984_v28  ;;  %v13082_v58 = vld [vmem:[#allocation28_spill] sm:$0xff]  ;;  %v13083_v18 = vld [vmem:[#allocation147_spill] sm:$0xff] }
 0x43a   :  { %v4992_v7 = vpop.f32.mrf.mxu0  ;;  %6125 = vmatmul.mubr.f32.gmra.mxu0 %v13070_v24  ;;  %v5579_v61 = vpop.f32.mrf.mxu1  ;;  %6572 = vmatmul.mubr.f32.gmra.mxu1 %v13078_v43 }
 0x43b   :  { %v4993_v40 = vadd.f32 %v4992_v7, %v10796_v30  ;;  %6130 = vmatprep.mubr.f32.mxu0 %v13071_v20  ;;  %6577 = vmatprep.mubr.f32.mxu1 %v13079_v63 }
 0x43c   :  { %v4994_v32 = vpop.f32.mrf.mxu0  ;;  %v5581_v8 = vpop.f32.mrf.mxu1 }
 0x43d   :  { %v11193_v35 = vadd.f32 %v5535_v36, %v4993_v40  ;;  %v13084_v32 = vld [vmem:[#allocation146_spill] sm:$0xff]  ;;  %v13085_v8 = vld [vmem:[#allocation33_spill] sm:$0xff] }
 0x43e   :  { %v5001_v14 = vpop.f32.mrf.mxu0  ;;  %6132 = vmatmul.mubr.f32.gmra.mxu0 %v13072_v15  ;;  %v5590_v38 = vpop.f32.mrf.mxu1  ;;  %6579 = vmatmul.mubr.f32.gmra.mxu1 %v13080_v5 }
 0x43f   :  { %v5002_v24 = vadd.f32 %v5001_v14, %v10809_v60  ;;  %6137 = vmatprep.mubr.f32.mxu0 %v13073_v62  ;;  %6584 = vmatprep.mubr.f32.mxu1 %v13081_v29 }
 0x440   :  { %v5003_v30 = vpop.f32.mrf.mxu0  ;;  %v5592_v20 = vpop.f32.mrf.mxu1 }
 0x441   :  { %v11200_v11 = vadd.f32 %v5546_v23, %v5002_v24  ;;  %v13086_v30 = vld [vmem:[#allocation148_spill] sm:$0xff]  ;;  %v13087_v20 = vld [vmem:[#allocation29_spill] sm:$0xff] }
 0x442   :  { %v5010_v28 = vpop.f32.mrf.mxu0  ;;  %6139 = vmatmul.mubr.f32.gmra.mxu0 %v13074_v6  ;;  %v5601_v36 = vpop.f32.mrf.mxu1  ;;  %6586 = vmatmul.mubr.f32.gmra.mxu1 %v13082_v58 }
 0x443   :  { %v5011_v15 = vadd.f32 %v5010_v28, %v10822_v13  ;;  %6144 = vmatprep.mubr.f32.mxu0 %v13075_v2  ;;  %6591 = vmatprep.mubr.f32.mxu1 %v13083_v18 }
 0x444   :  { %v5012_v60 = vpop.f32.mrf.mxu0  ;;  %v5603_v62 = vpop.f32.mrf.mxu1 }
 0x445   :  { %v11207_v7 = vadd.f32 %v5557_v25, %v5011_v15  ;;  %v13088_v60 = vld [vmem:[#allocation150_spill] sm:$0xff] }
 0x446   :  { %v5019_v40 = vpop.f32.mrf.mxu0  ;;  %6146 = vmatmul.mubr.f32.gmra.mxu0 %v13076_v51  ;;  %v5612_v23 = vpop.f32.mrf.mxu1  ;;  %6593 = vmatmul.mubr.f32.gmra.mxu1 %v13084_v32 }
 0x447   :  { %v5020_v6 = vadd.f32 %v5019_v40, %v10836_v59  ;;  %6151 = vmatprep.mubr.f32.mxu0 %v13077_v9  ;;  %6598 = vmatprep.mubr.f32.mxu1 %v13085_v8  ;;  %v13090_v40 = vld [vmem:[#allocation34_spill] sm:$0xff] }
 0x448   :  { %v5021_v13 = vpop.f32.mrf.mxu0  ;;  %v5614_v2 = vpop.f32.mrf.mxu1 }
 0x449   :  { %v11214_v14 = vadd.f32 %v5568_v21, %v5020_v6  ;;  %v13091_v2 = vld [vmem:[#allocation151_spill] sm:$0xff] }
 0x44a   :  { %v5028_v24 = vpop.f32.mrf.mxu0  ;;  %6153 = vmatmul.mubr.f32.gmra.mxu0 %v13078_v43  ;;  %v5623_v25 = vpop.f32.mrf.mxu1  ;;  %6600 = vmatmul.mubr.f32.gmra.mxu1 %v13086_v30  ;;  %v13089_v43 = vld [vmem:[#allocation65_spill] sm:$0xff] }
 0x44b   :  { %v5029_v51 = vadd.f32 %v5028_v24, %v10847_v55  ;;  %6158 = vmatprep.mubr.f32.mxu0 %v13079_v63  ;;  %6605 = vmatprep.mubr.f32.mxu1 %v13087_v20 }
 0x44c   :  { %v5030_v59 = vpop.f32.mrf.mxu0  ;;  %v5625_v9 = vpop.f32.mrf.mxu1 }
 0x44d   :  { %v11221_v28 = vadd.f32 %v5579_v61, %v5029_v51  ;;  %v13093_v51 = vld [vmem:[#allocation155_spill] sm:$0xff] }
 0x44e   :  { %v5037_v15 = vpop.f32.mrf.mxu0  ;;  %6160 = vmatmul.mubr.f32.gmra.mxu0 %v13080_v5  ;;  %v5634_v21 = vpop.f32.mrf.mxu1  ;;  %6607 = vmatmul.mubr.f32.gmra.mxu1 %v13088_v60  ;;  %v13092_v5 = vld [vmem:[#allocation100_spill] sm:$0xff] }
 0x44f   :  { %v5038_v62 = vadd.f32 %v5037_v15, %v13089_v43  ;;  %6165 = vmatprep.mubr.f32.mxu0 %v13081_v29  ;;  %6612 = vmatprep.mubr.f32.mxu1 %v13090_v40  ;;  %v13094_v43 = vld [vmem:[#allocation154_spill] sm:$0xff] }
 0x450   :  { %v5039_v55 = vpop.f32.mrf.mxu0  ;;  %v5636_v63 = vpop.f32.mrf.mxu1 }
 0x451   :  { %v11228_v6 = vadd.f32 %v5590_v38, %v5038_v62  ;;  %v13096_v55 = vld [vmem:[#allocation32_spill] sm:$0xff] }
 0x452   :  { %v5046_v13 = vpop.f32.mrf.mxu0  ;;  %6167 = vmatmul.mubr.f32.gmra.mxu0 %v13082_v58  ;;  %v5645_v61 = vpop.f32.mrf.mxu1  ;;  %6614 = vmatmul.mubr.f32.gmra.mxu1 %v13091_v2  ;;  %v13095_v58 = vld [vmem:[#allocation66_spill] sm:$0xff] }
 0x453   :  { %v5047_v24 = vadd.f32 %v5046_v13, %v13092_v5  ;;  %6172 = vmatprep.mubr.f32.mxu0 %v13083_v18  ;;  %6619 = vmatprep.mubr.f32.mxu1 %v13093_v51 }
 0x454   :  { %v5048_v59 = vpop.f32.mrf.mxu0  ;;  %v5647_v29 = vpop.f32.mrf.mxu1 }
 0x455   :  { %v11235_v9 = vadd.f32 %v5601_v36, %v5047_v24  ;;  %v13098_v24 = vld [vmem:[#allocation36_spill] sm:$0xff]  ;;  %v13100_v29 = vld [vmem:[#allocation159_spill] sm:$0xff] }
 0x456   :  { %v5055_v15 = vpop.f32.mrf.mxu0  ;;  %6174 = vmatmul.mubr.f32.gmra.mxu0 %v13084_v32  ;;  %v5656_v38 = vpop.f32.mrf.mxu1  ;;  %6621 = vmatmul.mubr.f32.gmra.mxu1 %v13094_v43  ;;  %v13099_v32 = vld [vmem:[#allocation95_spill] sm:$0xff] }
 0x457   :  { %v5056_v62 = vadd.f32 %v5055_v15, %v13095_v58  ;;  %6179 = vmatprep.mubr.f32.mxu0 %v13085_v8  ;;  %6626 = vmatprep.mubr.f32.mxu1 %v13096_v55 }
 0x458   :  { %v5057_v63 = vpop.f32.mrf.mxu0  ;;  %v5658_v18 = vpop.f32.mrf.mxu1 }
 0x459   :  { %v11242_v13 = vadd.f32 %v5612_v23, %v5056_v62  ;;  %v13102_v62 = vld [vmem:[#allocation158_spill] sm:$0xff] }
 0x45a   :  { %v5064_v5 = vpop.f32.mrf.mxu0  ;;  %6181 = vmatmul.mubr.f32.gmra.mxu0 %v13086_v30  ;;  %v5667_v36 = vpop.f32.mrf.mxu1  ;;  %6628 = vmatmul.mubr.f32.gmra.mxu1 %v13098_v24  ;;  %v13103_v30 = vld [vmem:[#allocation102_spill] sm:$0xff] }
 0x45b   :  { %13097 = vst [vmem:[#allocation115_spill] sm:$0xff] %v11242_v13  ;;  %v5065_v59 = vadd.f32 %v5064_v5, %v13099_v32  ;;  %6186 = vmatprep.mubr.f32.mxu0 %v13087_v20  ;;  %6633 = vmatprep.mubr.f32.mxu1 %v13100_v29  ;;  %v13104_v13 = vld [vmem:[#allocation79_spill] sm:$0xff] }
 0x45c   :  { %v5066_v15 = vpop.f32.mrf.mxu0  ;;  %v5669_v8 = vpop.f32.mrf.mxu1 }
 0x45d   :  { %v11249_v58 = vadd.f32 %v5623_v25, %v5065_v59  ;;  %v13106_v59 = vld [vmem:[#allocation160_spill] sm:$0xff] }
 0x45e   :  { %v5073_v63 = vpop.f32.mrf.mxu0  ;;  %6188 = vmatmul.mubr.f32.gmra.mxu0 %v13088_v60  ;;  %v5678_v23 = vpop.f32.mrf.mxu1  ;;  %6635 = vmatmul.mubr.f32.gmra.mxu1 %v13102_v62  ;;  %v13107_v60 = vld [vmem:[#allocation105_spill] sm:$0xff] }
 0x45f   :  { %13101 = vst [vmem:[#allocation112_spill] sm:$0xff] %v11249_v58  ;;  %v5074_v18 = vadd.f32 %v5073_v63, %v13103_v30  ;;  %6193 = vmatprep.mubr.f32.mxu0 %v13090_v40  ;;  %6640 = vmatprep.mubr.f32.mxu1 %v13104_v13  ;;  %v13108_v58 = vld [vmem:[#allocation163_spill] sm:$0xff] }
 0x460   :  { %v5075_v5 = vpop.f32.mrf.mxu0  ;;  %v5680_v20 = vpop.f32.mrf.mxu1 }
 0x461   :  { %v11256_v32 = vadd.f32 %v5634_v21, %v5074_v18  ;;  %v13110_v18 = vld [vmem:[#allocation40_spill] sm:$0xff] }
 0x462   :  { %v5082_v15 = vpop.f32.mrf.mxu0  ;;  %6195 = vmatmul.mubr.f32.gmra.mxu0 %v13091_v2  ;;  %v5689_v25 = vpop.f32.mrf.mxu1  ;;  %6642 = vmatmul.mubr.f32.gmra.mxu1 %v13106_v59  ;;  %v13111_v2 = vld [vmem:[#allocation108_spill] sm:$0xff] }
 0x463   :  { %13105 = vst [vmem:[#allocation2_spill] sm:$0xff] %v11256_v32  ;;  %v5083_v8 = vadd.f32 %v5082_v15, %v13107_v60  ;;  %6200 = vmatprep.mubr.f32.mxu0 %v13093_v51  ;;  %6647 = vmatprep.mubr.f32.mxu1 %v13108_v58  ;;  %v13112_v32 = vld [vmem:[#allocation43_spill] sm:$0xff] }
 0x464   :  { %v5084_v63 = vpop.f32.mrf.mxu0  ;;  %v5691_v40 = vpop.f32.mrf.mxu1 }
 0x465   :  { %v11263_v30 = vadd.f32 %v5645_v61, %v5083_v8  ;;  %v13114_v8 = vld [vmem:[#allocation80_spill] sm:$0xff] }
 0x466   :  { %v5091_v5 = vpop.f32.mrf.mxu0  ;;  %6202 = vmatmul.mubr.f32.gmra.mxu0 %v13094_v43  ;;  %v5700_v21 = vpop.f32.mrf.mxu1  ;;  %6649 = vmatmul.mubr.f32.gmra.mxu1 %v13110_v18  ;;  %v13115_v43 = vld [vmem:[#allocation97_spill] sm:$0xff] }
 0x467   :  { %13109 = vst [vmem:[#allocation4_spill] sm:$0xff] %v11263_v30  ;;  %v5092_v20 = vadd.f32 %v5091_v5, %v13111_v2  ;;  %6207 = vmatprep.mubr.f32.mxu0 %v13096_v55  ;;  %6654 = vmatprep.mubr.f32.mxu1 %v13112_v32  ;;  %v13116_v30 = vld [vmem:[#allocation167_spill] sm:$0xff] }
 0x468   :  { %v5093_v15 = vpop.f32.mrf.mxu0  ;;  %v5702_v51 = vpop.f32.mrf.mxu1 }
 0x469   :  { %v11270_v60 = vadd.f32 %v5656_v38, %v5092_v20  ;;  %v13118_v20 = vld [vmem:[#allocation166_spill] sm:$0xff] }
 0x46a   :  { %v5100_v63 = vpop.f32.mrf.mxu0  ;;  %6209 = vmatmul.mubr.f32.gmra.mxu0 %v13098_v24  ;;  %v5711_v61 = vpop.f32.mrf.mxu1  ;;  %6656 = vmatmul.mubr.f32.gmra.mxu1 %v13114_v8  ;;  %v13119_v24 = vld [vmem:[#allocation104_spill] sm:$0xff] }
 0x46b   :  { %13113 = vst [vmem:[#allocation118_spill] sm:$0xff] %v11270_v60  ;;  %v5101_v40 = vadd.f32 %v5100_v63, %v13115_v43  ;;  %6214 = vmatprep.mubr.f32.mxu0 %v13100_v29  ;;  %6661 = vmatprep.mubr.f32.mxu1 %v13116_v30  ;;  %v13120_v60 = vld [vmem:[#allocation41_spill] sm:$0xff] }
 0x46c   :  { %v5102_v5 = vpop.f32.mrf.mxu0  ;;  %v5713_v55 = vpop.f32.mrf.mxu1 }
 0x46d   :  { %v11277_v2 = vadd.f32 %v5667_v36, %v5101_v40  ;;  %v13121_v40 = vld [vmem:[#allocation168_spill] sm:$0xff] }
 0x46e   :  { %v5109_v15 = vpop.f32.mrf.mxu0  ;;  %6216 = vmatmul.mubr.f32.gmra.mxu0 %v13102_v62  ;;  %v5722_v38 = vpop.f32.mrf.mxu1  ;;  %6663 = vmatmul.mubr.f32.gmra.mxu1 %v13118_v20  ;;  %v13122_v62 = vld [vmem:[#allocation107_spill] sm:$0xff] }
 0x46f   :  { %13117 = vst [vmem:[#allocation3_spill] sm:$0xff] %v11277_v2  ;;  %v5110_v51 = vadd.f32 %v5109_v15, %v13119_v24  ;;  %6221 = vmatprep.mubr.f32.mxu0 %v13104_v13  ;;  %6668 = vmatprep.mubr.f32.mxu1 %v13120_v60  ;;  %v13123_v2 = vld [vmem:[#allocation171_spill] sm:$0xff] }
 0x470   :  { %v5111_v63 = vpop.f32.mrf.mxu0  ;;  %v5724_v29 = vpop.f32.mrf.mxu1 }
 0x471   :  { %v11284_v43 = vadd.f32 %v5678_v23, %v5110_v51  ;;  %v13125_v51 = vld [vmem:[#allocation82_spill] sm:$0xff]  ;;  %v13126_v29 = vld [vmem:[#allocation83_spill] sm:$0xff] }
 0x472   :  { %v5118_v5 = vpop.f32.mrf.mxu0  ;;  %6223 = vmatmul.mubr.f32.gmra.mxu0 %v13106_v59  ;;  %v5733_v36 = vpop.f32.mrf.mxu1  ;;  %6670 = vmatmul.mubr.f32.gmra.mxu1 %v13121_v40 }
 0x473   :  { %v5119_v55 = vadd.f32 %v5118_v5, %v13122_v62  ;;  %6228 = vmatprep.mubr.f32.mxu0 %v13108_v58  ;;  %6675 = vmatprep.mubr.f32.mxu1 %v13123_v2 }
 0x474   :  { %v5120_v15 = vpop.f32.mrf.mxu0  ;;  %v5735_v13 = vpop.f32.mrf.mxu1 }
 0x475   :  { %v11291_v24 = vadd.f32 %v5689_v25, %v5119_v55  ;;  %v13128_v55 = vld [vmem:[#allocation42_spill] sm:$0xff] }
 0x476   :  { %v5127_v63 = vpop.f32.mrf.mxu0  ;;  %6230 = vmatmul.mubr.f32.gmra.mxu0 %v13110_v18  ;;  %v5744_v23 = vpop.f32.mrf.mxu1  ;;  %6677 = vmatmul.mubr.f32.gmra.mxu1 %v13125_v51  ;;  %v13129_v18 = vld [vmem:[#allocation113_spill] sm:$0xff] }
 0x477   :  { %13124 = vst [vmem:[#allocation125_spill] sm:$0xff] %v11291_v24  ;;  %v5128_v59 = vadd.f32 %v5127_v63, %v10946_v46  ;;  %6235 = vmatprep.mubr.f32.mxu0 %v13112_v32  ;;  %6682 = vmatprep.mubr.f32.mxu1 %v13126_v29  ;;  %v13130_v24 = vld [vmem:[#allocation175_spill] sm:$0xff] }
 0x478   :  { %v5129_v5 = vpop.f32.mrf.mxu0  ;;  %v5746_v58 = vpop.f32.mrf.mxu1 }
 0x479   :  { %v11298_v62 = vadd.f32 %v5700_v21, %v5128_v59  ;;  %v13131_v59 = vld [vmem:[#allocation174_spill] sm:$0xff] }
 0x47a   :  { %v5136_v15 = vpop.f32.mrf.mxu0  ;;  %6237 = vmatmul.mubr.f32.gmra.mxu0 %v13114_v8  ;;  %v5755_v25 = vpop.f32.mrf.mxu1  ;;  %6684 = vmatmul.mubr.f32.gmra.mxu1 %v13128_v55  ;;  %v13132_v8 = vld [vmem:[#allocation110_spill] sm:$0xff] }
 0x47b   :  { %13127 = vst [vmem:[#allocation5_spill] sm:$0xff] %v11298_v62  ;;  %v5137_v13 = vadd.f32 %v5136_v15, %v13129_v18  ;;  %6242 = vmatprep.mubr.f32.mxu0 %v13116_v30  ;;  %6689 = vmatprep.mubr.f32.mxu1 %v13130_v24  ;;  %v13133_v62 = vld [vmem:[#allocation50_spill] sm:$0xff] }
 0x47c   :  { %v5138_v46 = vpop.f32.mrf.mxu0  ;;  %v5757_v32 = vpop.f32.mrf.mxu1 }
 0x47d   :  { %v11305_v63 = vadd.f32 %v5711_v61, %v5137_v13  ;;  %v13134_v13 = vld [vmem:[#allocation176_spill] sm:$0xff]  ;;  %v13135_v32 = vld [vmem:[#allocation179_spill] sm:$0xff] }
 0x47e   :  { %v5145_v5 = vpop.f32.mrf.mxu0  ;;  %6244 = vmatmul.mubr.f32.gmra.mxu0 %v13118_v20  ;;  %v5766_v21 = vpop.f32.mrf.mxu1  ;;  %6691 = vmatmul.mubr.f32.gmra.mxu1 %v13131_v59 }
 0x47f   :  { %v5146_v58 = vadd.f32 %v5145_v5, %v13132_v8  ;;  %6249 = vmatprep.mubr.f32.mxu0 %v13120_v60  ;;  %6696 = vmatprep.mubr.f32.mxu1 %v13133_v62 }
 0x480   :  { %v5147_v15 = vpop.f32.mrf.mxu0  ;;  %v5768_v30 = vpop.f32.mrf.mxu1 }
 0x481   :  { %v11312_v18 = vadd.f32 %v5722_v38, %v5146_v58  ;;  %v13136_v58 = vld [vmem:[#allocation46_spill] sm:$0xff]  ;;  %v13137_v30 = vld [vmem:[#allocation48_spill] sm:$0xff] }
 0x482   :  { %v5154_v46 = vpop.f32.mrf.mxu0  ;;  %6251 = vmatmul.mubr.f32.gmra.mxu0 %v13121_v40  ;;  %v5777_v61 = vpop.f32.mrf.mxu1  ;;  %6698 = vmatmul.mubr.f32.gmra.mxu1 %v13134_v13 }
 0x483   :  { %v5155_v20 = vadd.f32 %v5154_v46, %v10970_v3  ;;  %6256 = vmatprep.mubr.f32.mxu0 %v13123_v2  ;;  %6703 = vmatprep.mubr.f32.mxu1 %v13135_v32 }
 0x484   :  { %v5156_v5 = vpop.f32.mrf.mxu0  ;;  %v5779_v60 = vpop.f32.mrf.mxu1 }
 0x485   :  { %v11319_v8 = vadd.f32 %v5733_v36, %v5155_v20  ;;  %v13138_v20 = vld [vmem:[#allocation52_spill] sm:$0xff]  ;;  %v13139_v60 = vld [vmem:[#allocation182_spill] sm:$0xff] }
 0x486   :  { %v5163_v15 = vpop.f32.mrf.mxu0  ;;  %6258 = vmatmul.mubr.f32.gmra.mxu0 %v13125_v51  ;;  %v5788_v38 = vpop.f32.mrf.mxu1  ;;  %6705 = vmatmul.mubr.f32.gmra.mxu1 %v13136_v58 }
 0x487   :  { %v5164_v40 = vadd.f32 %v5163_v15, %v10978_v52  ;;  %6263 = vmatprep.mubr.f32.mxu0 %v13126_v29  ;;  %6710 = vmatprep.mubr.f32.mxu1 %v13137_v30 }
 0x488   :  { %v5165_v3 = vpop.f32.mrf.mxu0  ;;  %v5790_v2 = vpop.f32.mrf.mxu1 }
 0x489   :  { %v11326_v46 = vadd.f32 %v5744_v23, %v5164_v40  ;;  %v13140_v40 = vld [vmem:[#allocation181_spill] sm:$0xff]  ;;  %v13141_v2 = vld [vmem:[#allocation51_spill] sm:$0xff] }
 0x48a   :  { %v5172_v5 = vpop.f32.mrf.mxu0  ;;  %6265 = vmatmul.mubr.f32.gmra.mxu0 %v13128_v55  ;;  %v5799_v36 = vpop.f32.mrf.mxu1  ;;  %6712 = vmatmul.mubr.f32.gmra.mxu1 %v13138_v20 }
 0x48b   :  { %v5173_v51 = vadd.f32 %v5172_v5, %v10986_v31  ;;  %6270 = vmatprep.mubr.f32.mxu0 %v13130_v24  ;;  %6717 = vmatprep.mubr.f32.mxu1 %v13139_v60 }
 0x48c   :  { %v5174_v52 = vpop.f32.mrf.mxu0  ;;  %v5801_v29 = vpop.f32.mrf.mxu1 }
 0x48d   :  { %v11333_v15 = vadd.f32 %v5755_v25, %v5173_v51  ;;  %v13142_v51 = vld [vmem:[#allocation183_spill] sm:$0xff]  ;;  %v13143_v29 = vld [vmem:[#allocation53_spill] sm:$0xff] }
 0x48e   :  { %v5181_v3 = vpop.f32.mrf.mxu0  ;;  %6272 = vmatmul.mubr.f32.gmra.mxu0 %v13131_v59  ;;  %v5810_v23 = vpop.f32.mrf.mxu1  ;;  %6719 = vmatmul.mubr.f32.gmra.mxu1 %v13140_v40 }
 0x48f   :  { %v5182_v55 = vadd.f32 %v5181_v3, %v10994_v57  ;;  %6277 = vmatprep.mubr.f32.mxu0 %v13133_v62  ;;  %6724 = vmatprep.mubr.f32.mxu1 %v13141_v2 }
 0x490   :  { %v5183_v31 = vpop.f32.mrf.mxu0  ;;  %v5812_v24 = vpop.f32.mrf.mxu1 }
 0x491   :  { %v11340_v5 = vadd.f32 %v5766_v21, %v5182_v55  ;;  %v13144_v55 = vld [vmem:[#allocation87_spill] sm:$0xff]  ;;  %v13145_v24 = vld [vmem:[#allocation184_spill] sm:$0xff] }
 0x492   :  { %v5190_v52 = vpop.f32.mrf.mxu0  ;;  %6279 = vmatmul.mubr.f32.gmra.mxu0 %v13134_v13  ;;  %v5821_v25 = vpop.f32.mrf.mxu1  ;;  %6726 = vmatmul.mubr.f32.gmra.mxu1 %v13142_v51 }
 0x493   :  { %v5191_v59 = vadd.f32 %v5190_v52, %v11002_v48  ;;  %6284 = vmatprep.mubr.f32.mxu0 %v13135_v32  ;;  %6731 = vmatprep.mubr.f32.mxu1 %v13143_v29 }
 0x494   :  { %v5192_v57 = vpop.f32.mrf.mxu0  ;;  %v5823_v62 = vpop.f32.mrf.mxu1 }
 0x495   :  { %v11347_v3 = vadd.f32 %v5777_v61, %v5191_v59  ;;  %v13146_v59 = vld [vmem:[#allocation88_spill] sm:$0xff]  ;;  %v13147_v62 = vld [vmem:[#allocation55_spill] sm:$0xff] }
 0x496   :  { %v5199_v31 = vpop.f32.mrf.mxu0  ;;  %6286 = vmatmul.mubr.f32.gmra.mxu0 %v13136_v58  ;;  %v5832_v21 = vpop.f32.mrf.mxu1  ;;  %6733 = vmatmul.mubr.f32.gmra.mxu1 %v13144_v55 }
 0x497   :  { %v5200_v13 = vadd.f32 %v5199_v31, %v11010_v49  ;;  %6291 = vmatprep.mubr.f32.mxu0 %v13137_v30  ;;  %6738 = vmatprep.mubr.f32.mxu1 %v13145_v24 }
 0x498   :  { %v5201_v48 = vpop.f32.mrf.mxu0  ;;  %v5834_v32 = vpop.f32.mrf.mxu1 }
 0x499   :  { %v11354_v52 = vadd.f32 %v5788_v38, %v5200_v13  ;;  %v13148_v13 = vld [vmem:[#allocation59_spill] sm:$0xff]  ;;  %v13149_v32 = vld [vmem:[#allocation61_spill] sm:$0xff] }
 0x49a   :  { %v5208_v57 = vpop.f32.mrf.mxu0  ;;  %6293 = vmatmul.mubr.f32.gmra.mxu0 %v13138_v20  ;;  %v5843_v61 = vpop.f32.mrf.mxu1  ;;  %6740 = vmatmul.mubr.f32.gmra.mxu1 %v13146_v59 }
 0x49b   :  { %v5209_v58 = vadd.f32 %v5208_v57, %v11018_v19  ;;  %6298 = vmatprep.mubr.f32.mxu0 %v13139_v60  ;;  %6745 = vmatprep.mubr.f32.mxu1 %v13147_v62 }
 0x49c   :  { %v5210_v49 = vpop.f32.mrf.mxu0  ;;  %v5845_v30 = vpop.f32.mrf.mxu1 }
 0x49d   :  { %v11361_v31 = vadd.f32 %v5799_v36, %v5209_v58  ;;  %v13150_v58 = vld [vmem:[#allocation89_spill] sm:$0xff]  ;;  %v13151_v30 = vld [vmem:[#allocation90_spill] sm:$0xff] }
 0x49e   :  { %v5217_v48 = vpop.f32.mrf.mxu0  ;;  %6300 = vmatmul.mubr.f32.gmra.mxu0 %v13140_v40  ;;  %v5854_v38 = vpop.f32.mrf.mxu1  ;;  %6747 = vmatmul.mubr.f32.gmra.mxu1 %v13148_v13 }
 0x49f   :  { %v5218_v20 = vadd.f32 %v5217_v48, %v11026_v45  ;;  %6305 = vmatprep.mubr.f32.mxu0 %v13141_v2  ;;  %6752 = vmatprep.mubr.f32.mxu1 %v13149_v32 }
 0x4a0   :  { %v5219_v19 = vpop.f32.mrf.mxu0  ;;  %v5856_v60 = vpop.f32.mrf.mxu1 }
 0x4a1   :  { %v11368_v57 = vadd.f32 %v5810_v23, %v5218_v20  ;;  %v13152_v20 = vld [vmem:[#allocation57_spill] sm:$0xff]  ;;  %v13153_v60 = vld [vmem:[#allocation58_spill] sm:$0xff] }
 0x4a2   :  { %v5226_v49 = vpop.f32.mrf.mxu0  ;;  %6307 = vmatmul.mubr.f32.gmra.mxu0 %v13142_v51  ;;  %v5865_v36 = vpop.f32.mrf.mxu1  ;;  %6754 = vmatmul.mubr.f32.gmra.mxu1 %v13150_v58 }
 0x4a3   :  { %v5227_v40 = vadd.f32 %v5226_v49, %v11034_v42  ;;  %6312 = vmatprep.mubr.f32.mxu0 %v13143_v29  ;;  %6759 = vmatprep.mubr.f32.mxu1 %v13151_v30 }
 0x4a4   :  { %v5228_v45 = vpop.f32.mrf.mxu0  ;;  %v5867_v2 = vpop.f32.mrf.mxu1 }
 0x4a5   :  { %v11375_v48 = vadd.f32 %v5821_v25, %v5227_v40  ;;  %v13154_v40 = vld [vmem:[#allocation63_spill] sm:$0xff]  ;;  %v13155_v2 = vld [vmem:[#allocation186_spill] sm:$0xff] }
 0x4a6   :  { %v5235_v19 = vpop.f32.mrf.mxu0  ;;  %6314 = vmatmul.mubr.f32.gmra.mxu0 %v13144_v55  ;;  %v5876_v23 = vpop.f32.mrf.mxu1  ;;  %6761 = vmatmul.mubr.f32.gmra.mxu1 %v13152_v20 }
 0x4a7   :  { %v5236_v51 = vadd.f32 %v5235_v19, %v11045_v4  ;;  %6319 = vmatprep.mubr.f32.mxu0 %v13145_v24  ;;  %6766 = vmatprep.mubr.f32.mxu1 %v13153_v60 }
 0x4a8   :  { %v5237_v42 = vpop.f32.mrf.mxu0  ;;  %v5878_v29 = vpop.f32.mrf.mxu1 }
 0x4a9   :  { %v11382_v49 = vadd.f32 %v5832_v21, %v5236_v51  ;;  %v13156_v51 = vld [vmem:[#allocation185_spill] sm:$0xff]  ;;  %v13157_v29 = vld [vmem:[#allocation187_spill] sm:$0xff] }
 0x4aa   :  { %v5244_v45 = vpop.f32.mrf.mxu0  ;;  %6321 = vmatmul.mubr.f32.gmra.mxu0 %v13146_v59  ;;  %v5887_v25 = vpop.f32.mrf.mxu1  ;;  %6768 = vmatmul.mubr.f32.gmra.mxu1 %v13154_v40 }
 0x4ab   :  { %v5245_v55 = vadd.f32 %v5244_v45, %v11053_v17  ;;  %6326 = vmatprep.mubr.f32.mxu0 %v13147_v62  ;;  %6773 = vmatprep.mubr.f32.mxu1 %v13155_v2 }
 0x4ac   :  { %v5246_v4 = vpop.f32.mrf.mxu0  ;;  %v5889_v24 = vpop.f32.mrf.mxu1 }
 0x4ad   :  { %v11389_v19 = vadd.f32 %v5843_v61, %v5245_v55  ;;  %v13159_v55 = vld [vmem:[#allocation188_spill] sm:$0xff] }
 0x4ae   :  { %v5253_v42 = vpop.f32.mrf.mxu0  ;;  %6328 = vmatmul.mubr.f32.gmra.mxu0 %v13148_v13  ;;  %v5898_v21 = vpop.f32.mrf.mxu1  ;;  %6775 = vmatmul.mubr.f32.gmra.mxu1 %v13156_v51 }
 0x4af   :  { %v5254_v59 = vadd.f32 %v5253_v42, %v11061_v47  ;;  %6333 = vmatprep.mubr.f32.mxu0 %v13149_v32  ;;  %6780 = vmatprep.mubr.f32.mxu1 %v13157_v29 }
 0x4b0   :  { %v5255_v17 = vpop.f32.mrf.mxu0  ;;  %v5900_v62 = vpop.f32.mrf.mxu1 }
 0x4b1   :  { %v11396_v45 = vadd.f32 %v5854_v38, %v5254_v59 }
 0x4b2   :  { %v5262_v4 = vpop.f32.mrf.mxu0  ;;  %6335 = vmatmul.mubr.f32.gmra.mxu0 %v13150_v58  ;;  %v5909_v61 = vpop.f32.mrf.mxu1  ;;  %6782 = vmatmul.mubr.f32.gmra.mxu1 %v13159_v55 }
 0x4b3   :  { %13158 = vst [vmem:[#allocation119_spill] sm:$0xff] %v11396_v45  ;;  %v5263_v13 = vadd.f32 %v5262_v4, %v11069_v34  ;;  %6340 = vmatprep.mubr.f32.mxu0 %v13151_v30 }
 0x4b4   :  { %v5264_v24 = vpop.f32.mrf.mxu0  ;;  %v5911_v47 = vpop.f32.mrf.mxu1 }
 0x4b5   :  { %v11402_v42 = vadd.f32 %v5865_v36, %v5263_v13 }
 0x4b6   :  { %v5271_v32 = vpop.f32.mrf.mxu0  ;;  %6342 = vmatmul.mubr.f32.gmra.mxu0 %v13152_v20  ;;  %v6454_v17 = vpop.f32.mrf.mxu1 }
 0x4b7   :  { %v5272_v38 = vadd.f32 %v5271_v32, %v11075_v53  ;;  %6347 = vmatprep.mubr.f32.mxu0 %v13153_v60 }
 0x4b8   :  { %v5273_v58 = vpop.f32.mrf.mxu0  ;;  %v6456_v59 = vpop.f32.mrf.mxu1 }
 0x4b9   :  { %v11407_v62 = vadd.f32 %v5876_v23, %v5272_v38 }
 0x4ba   :  { %v5280_v45 = vpop.f32.mrf.mxu0  ;;  %6349 = vmatmul.mubr.f32.gmra.mxu0 %v13154_v40  ;;  %v6461_v34 = vpop.f32.mrf.mxu1 }
 0x4bb   :  { %v5281_v30 = vadd.f32 %v5280_v45, %v11081_v1  ;;  %6354 = vmatprep.mubr.f32.mxu0 %v13155_v2 }
 0x4bc   :  { %v5282_v36 = vpop.f32.mrf.mxu0  ;;  %v6463_v4 = vpop.f32.mrf.mxu1 }
 0x4bd   :  { %v11412_v20 = vadd.f32 %v5887_v25, %v5281_v30 }
 0x4be   :  { %v5289_v13 = vpop.f32.mrf.mxu0  ;;  %6356 = vmatmul.mubr.f32.gmra.mxu0 %v13156_v51  ;;  %v6468_v53 = vpop.f32.mrf.mxu1 }
 0x4bf   :  { %v5290_v60 = vadd.f32 %v5289_v13, %v11087_v10  ;;  %6361 = vmatprep.mubr.f32.mxu0 %v13157_v29 }
 0x4c0   :  { %v5291_v23 = vpop.f32.mrf.mxu0  ;;  %v6470_v24 = vpop.f32.mrf.mxu1 }
 0x4c1   :  { %v11417_v40 = vadd.f32 %v5898_v21, %v5290_v60 }
 0x4c2   :  { %v5298_v47 = vpop.f32.mrf.mxu0  ;;  %6363 = vmatmul.mubr.f32.gmra.mxu0 %v13159_v55  ;;  %v6475_v1 = vpop.f32.mrf.mxu1 }
 0x4c3   :  { %v5299_v2 = vadd.f32 %v5298_v47, %v11093_v44 }
 0x4c4   :  { %v5300_v25 = vpop.f32.mrf.mxu0  ;;  %v6477_v45 = vpop.f32.mrf.mxu1 }
 0x4c5   :  { %v11421_v32 = vadd.f32 %v5909_v61, %v5299_v2 }
 0x4c6   :  { %v6035_v51 = vpop.f32.mrf.mxu0  ;;  %v6482_v38 = vpop.f32.mrf.mxu1 }
 0x4c7   :  { %v6036_v10 = vadd.f32 %v6035_v51, %v11102_v22 }
 0x4c8   :  { %v6037_v58 = vpop.f32.mrf.mxu0  ;;  %v6484_v29 = vpop.f32.mrf.mxu1 }
 0x4c9   :  { %v6455_v59 = vadd.f32 %v6454_v17, %v6036_v10 }
 0x4ca   :  { %v6042_v30 = vpop.f32.mrf.mxu0  ;;  %v6489_v21 = vpop.f32.mrf.mxu1 }
 0x4cb   :  { %v6043_v36 = vadd.f32 %v6042_v30, %v11109_v33  ;;  %6787 = vxpose.xlu0.b32.start [1/16] (narrow) %v6455_v59, 8 }
 0x4cc   :  { %v6044_v55 = vpop.f32.mrf.mxu0  ;;  %v6491_v4 = vpop.f32.mrf.mxu1 }
 0x4cd   :  { %v6462_v13 = vadd.f32 %v6461_v34, %v6043_v36 }
 0x4ce   :  { %v6049_v44 = vpop.f32.mrf.mxu0  ;;  %v6496_v60 = vpop.f32.mrf.mxu1 }
 0x4cf   :  { %v6050_v61 = vadd.f32 %v6049_v44, %v11116_v37  ;;  %6788 = vxpose.xlu0.b32.cont [2/16] (narrow) %v6462_v13, 8 }
 0x4d0   :  { %v6051_v23 = vpop.f32.mrf.mxu0  ;;  %v6498_v24 = vpop.f32.mrf.mxu1 }
 0x4d1   :  { %v6469_v47 = vadd.f32 %v6468_v53, %v6050_v61 }
 0x4d2   :  { %v6056_v22 = vpop.f32.mrf.mxu0  ;;  %v6503_v2 = vpop.f32.mrf.mxu1 }
 0x4d3   :  { %v6057_v17 = vadd.f32 %v6056_v22, %v11123_v39  ;;  %6789 = vxpose.xlu0.b32.cont [3/16] (narrow) %v6469_v47, 8 }
 0x4d4   :  { %v6058_v25 = vpop.f32.mrf.mxu0  ;;  %v6505_v45 = vpop.f32.mrf.mxu1 }
 0x4d5   :  { %v6476_v33 = vadd.f32 %v6475_v1, %v6057_v17 }
 0x4d6   :  { %v6063_v51 = vpop.f32.mrf.mxu0  ;;  %v6510_v10 = vpop.f32.mrf.mxu1 }
 0x4d7   :  { %v6064_v34 = vadd.f32 %v6063_v51, %v11130_v16  ;;  %6790 = vxpose.xlu0.b32.cont [4/16] (narrow) %v6476_v33, 8 }
 0x4d8   :  { %v6065_v58 = vpop.f32.mrf.mxu0  ;;  %v6512_v29 = vpop.f32.mrf.mxu1 }
 0x4d9   :  { %v6483_v37 = vadd.f32 %v6482_v38, %v6064_v34 }
 0x4da   :  { %v6070_v59 = vpop.f32.mrf.mxu0  ;;  %v6517_v30 = vpop.f32.mrf.mxu1 }
 0x4db   :  { %v6071_v53 = vadd.f32 %v6070_v59, %v11137_v27  ;;  %6791 = vxpose.xlu0.b32.cont [5/16] (narrow) %v6483_v37, 8 }
 0x4dc   :  { %v6072_v36 = vpop.f32.mrf.mxu0  ;;  %v6519_v55 = vpop.f32.mrf.mxu1 }
 0x4dd   :  { %v6490_v39 = vadd.f32 %v6489_v21, %v6071_v53 }
 0x4de   :  { %v6077_v4 = vpop.f32.mrf.mxu0  ;;  %v6524_v13 = vpop.f32.mrf.mxu1 }
 0x4df   :  { %v6078_v1 = vadd.f32 %v6077_v4, %v11144_v56  ;;  %6792 = vxpose.xlu0.b32.cont [6/16] (narrow) %v6490_v39, 8 }
 0x4e0   :  { %v6079_v44 = vpop.f32.mrf.mxu0  ;;  %v6526_v61 = vpop.f32.mrf.mxu1 }
 0x4e1   :  { %v6497_v16 = vadd.f32 %v6496_v60, %v6078_v1 }
 0x4e2   :  { %v6084_v23 = vpop.f32.mrf.mxu0  ;;  %v6531_v24 = vpop.f32.mrf.mxu1 }
 0x4e3   :  { %v6085_v38 = vadd.f32 %v6084_v23, %v11151_v0  ;;  %6793 = vxpose.xlu0.b32.cont [7/16] (narrow) %v6497_v16, 8 }
 0x4e4   :  { %v6086_v47 = vpop.f32.mrf.mxu0  ;;  %v6533_v22 = vpop.f32.mrf.mxu1 }
 0x4e5   :  { %v6504_v27 = vadd.f32 %v6503_v2, %v6085_v38 }
 0x4e6   :  { %v6091_v17 = vpop.f32.mrf.mxu0  ;;  %v6538_v25 = vpop.f32.mrf.mxu1 }
 0x4e7   :  { %v6092_v21 = vadd.f32 %v6091_v17, %v11158_v54  ;;  %6794 = vxpose.xlu0.b32.cont [8/16] (narrow) %v6504_v27, 8 }
 0x4e8   :  { %v6093_v45 = vpop.f32.mrf.mxu0  ;;  %v6540_v33 = vpop.f32.mrf.mxu1 }
 0x4e9   :  { %v6511_v56 = vadd.f32 %v6510_v10, %v6092_v21 }
 0x4ea   :  { %v6098_v51 = vpop.f32.mrf.mxu0  ;;  %v6545_v34 = vpop.f32.mrf.mxu1 }
 0x4eb   :  { %v6099_v60 = vadd.f32 %v6098_v51, %v11165_v12  ;;  %6795 = vxpose.xlu0.b32.cont [9/16] (narrow) %v6511_v56, 8 }
 0x4ec   :  { %v6100_v58 = vpop.f32.mrf.mxu0  ;;  %v6547_v29 = vpop.f32.mrf.mxu1 }
 0x4ed   :  { %v6518_v0 = vadd.f32 %v6517_v30, %v6099_v60 }
 0x4ee   :  { %v6105_v37 = vpop.f32.mrf.mxu0  ;;  %v6552_v59 = vpop.f32.mrf.mxu1 }
 0x4ef   :  { %v6106_v2 = vadd.f32 %v6105_v37, %v11172_v26  ;;  %6796 = vxpose.xlu0.b32.cont [10/16] (narrow) %v6518_v0, 8 }
 0x4f0   :  { %v6107_v53 = vpop.f32.mrf.mxu0  ;;  %v6554_v36 = vpop.f32.mrf.mxu1 }
 0x4f1   :  { %v6525_v54 = vadd.f32 %v6524_v13, %v6106_v2 }
 0x4f2   :  { %v6112_v55 = vpop.f32.mrf.mxu0  ;;  %v6559_v39 = vpop.f32.mrf.mxu1 }
 0x4f3   :  { %v6113_v10 = vadd.f32 %v6112_v55, %v11179_v50  ;;  %6797 = vxpose.xlu0.b32.cont [11/16] (narrow) %v6525_v54, 8 }
 0x4f4   :  { %v6114_v4 = vpop.f32.mrf.mxu0  ;;  %v6561_v1 = vpop.f32.mrf.mxu1 }
 0x4f5   :  { %v6532_v12 = vadd.f32 %v6531_v24, %v6113_v10 }
 0x4f6   :  { %v6119_v44 = vpop.f32.mrf.mxu0  ;;  %v6566_v61 = vpop.f32.mrf.mxu1 }
 0x4f7   :  { %v6120_v30 = vadd.f32 %v6119_v44, %v11186_v41  ;;  %6798 = vxpose.xlu0.b32.cont [12/16] (narrow) %v6532_v12, 8 }
 0x4f8   :  { %v6121_v16 = vpop.f32.mrf.mxu0  ;;  %v6568_v23 = vpop.f32.mrf.mxu1 }
 0x4f9   :  { %v6539_v26 = vadd.f32 %v6538_v25, %v6120_v30 }
 0x4fa   :  { %v6126_v38 = vpop.f32.mrf.mxu0  ;;  %v6573_v47 = vpop.f32.mrf.mxu1 }
 0x4fb   :  { %v6127_v13 = vadd.f32 %v6126_v38, %v11193_v35  ;;  %6799 = vxpose.xlu0.b32.cont [13/16] (narrow) %v6539_v26, 8 }
 0x4fc   :  { %v6128_v22 = vpop.f32.mrf.mxu0  ;;  %v6575_v27 = vpop.f32.mrf.mxu1 }
 0x4fd   :  { %v6546_v50 = vadd.f32 %v6545_v34, %v6127_v13  ;;  %v13160_v13 = vld [vmem:[#allocation115_spill] sm:$0xff] }
 0x4fe   :  { %v6133_v17 = vpop.f32.mrf.mxu0  ;;  %v6580_v21 = vpop.f32.mrf.mxu1 }
 0x4ff   :  { %v6134_v24 = vadd.f32 %v6133_v17, %v11200_v11  ;;  %6800 = vxpose.xlu0.b32.cont [14/16] (narrow) %v6546_v50, 8 }
 0x500   :  { %v6135_v45 = vpop.f32.mrf.mxu0  ;;  %v6582_v33 = vpop.f32.mrf.mxu1 }
 0x501   :  { %v6553_v41 = vadd.f32 %v6552_v59, %v6134_v24  ;;  %v13161_v24 = vld [vmem:[#allocation112_spill] sm:$0xff] }
 0x502   :  { %v6140_v56 = vpop.f32.mrf.mxu0  ;;  %v6587_v51 = vpop.f32.mrf.mxu1 }
 0x503   :  { %v6141_v25 = vadd.f32 %v6140_v56, %v11207_v7  ;;  %6801 = vxpose.xlu0.b32.cont [15/16] (narrow) %v6553_v41, 8 }
 0x504   :  { %v6142_v60 = vpop.f32.mrf.mxu0  ;;  %v6589_v58 = vpop.f32.mrf.mxu1 }
 0x505   :  { %v6560_v35 = vadd.f32 %v6559_v39, %v6141_v25  ;;  %v13162_v25 = vld [vmem:[#allocation2_spill] sm:$0xff] }
 0x506   :  { %v6147_v29 = vpop.f32.mrf.mxu0  ;;  %v6594_v0 = vpop.f32.mrf.mxu1 }
 0x507   :  { %v6148_v34 = vadd.f32 %v6147_v29, %v11214_v14  ;;  %6802 = vxpose.xlu0.b32.end [16/16] (narrow) %v6560_v35, 8 }
 0x508   :  { %v6149_v37 = vpop.f32.mrf.mxu0  ;;  %v6596_v2 = vpop.f32.mrf.mxu1 }
 0x509   :  { %v6567_v11 = vadd.f32 %v6566_v61, %v6148_v34  ;;  %v13163_v37 = vld [vmem:[#allocation4_spill] sm:$0xff] }
 0x50a   :  { %v6154_v53 = vpop.f32.mrf.mxu0  ;;  %v6601_v36 = vpop.f32.mrf.mxu1 }
 0x50b   :  { %v6155_v59 = vadd.f32 %v6154_v53, %v11221_v28  ;;  %6819 = vxpose.xlu1.b32.start [1/16] (narrow) %v6567_v11, 8 }
 0x50c   :  { %v6156_v54 = vpop.f32.mrf.mxu0  ;;  %v6603_v55 = vpop.f32.mrf.mxu1 }
 0x50d   :  { %v6574_v7 = vadd.f32 %v6573_v47, %v6155_v59  ;;  %v13164_v55 = vld [vmem:[#allocation118_spill] sm:$0xff] }
 0x50e   :  { %v6161_v10 = vpop.f32.mrf.mxu0  ;;  %v6608_v4 = vpop.f32.mrf.mxu1 }
 0x50f   :  { %v6162_v39 = vadd.f32 %v6161_v10, %v11228_v6  ;;  %6820 = vxpose.xlu1.b32.cont [2/16] (narrow) %v6574_v7, 8 }
 0x510   :  { %v6163_v1 = vpop.f32.mrf.mxu0  ;;  %v6610_v12 = vpop.f32.mrf.mxu1 }
 0x511   :  { %v6581_v14 = vadd.f32 %v6580_v21, %v6162_v39 }
 0x512   :  { %v6168_v44 = vpop.f32.mrf.mxu0  ;;  %v6615_v30 = vpop.f32.mrf.mxu1 }
 0x513   :  { %v6169_v61 = vadd.f32 %v6168_v44, %v11235_v9  ;;  %6821 = vxpose.xlu1.b32.cont [3/16] (narrow) %v6581_v14, 8  ;;  %v13165_v14 = vld [vmem:[#allocation3_spill] sm:$0xff] }
 0x514   :  { %v6170_v16 = vpop.f32.mrf.mxu0  ;;  %v6617_v23 = vpop.f32.mrf.mxu1 }
 0x515   :  { %v6588_v28 = vadd.f32 %v6587_v51, %v6169_v61 }
 0x516   :  { %v6175_v26 = vpop.f32.mrf.mxu0  ;;  %v6622_v38 = vpop.f32.mrf.mxu1 }
 0x517   :  { %v6176_v47 = vadd.f32 %v6175_v26, %v13160_v13  ;;  %6822 = vxpose.xlu1.b32.cont [4/16] (narrow) %v6588_v28, 8 }
 0x518   :  { %v6177_v22 = vpop.f32.mrf.mxu0  ;;  %v6624_v27 = vpop.f32.mrf.mxu1 }
 0x519   :  { %v6595_v6 = vadd.f32 %v6594_v0, %v6176_v47 }
 0x51a   :  { %v6182_v50 = vpop.f32.mrf.mxu0  ;;  %v6629_v17 = vpop.f32.mrf.mxu1 }
 0x51b   :  { %v6183_v21 = vadd.f32 %v6182_v50, %v13161_v24  ;;  %6823 = vxpose.xlu1.b32.cont [5/16] (narrow) %v6595_v6, 8  ;;  %v13166_v6 = vld [vmem:[#allocation125_spill] sm:$0xff] }
 0x51c   :  { %v6184_v45 = vpop.f32.mrf.mxu0  ;;  %v6631_v33 = vpop.f32.mrf.mxu1 }
 0x51d   :  { %v6602_v9 = vadd.f32 %v6601_v36, %v6183_v21 }
 0x51e   :  { %v6189_v41 = vpop.f32.mrf.mxu0  ;;  %v6636_v56 = vpop.f32.mrf.mxu1 }
 0x51f   :  { %v6190_v51 = vadd.f32 %v6189_v41, %v13162_v25  ;;  %6824 = vxpose.xlu1.b32.cont [6/16] (narrow) %v6602_v9, 8  ;;  %v13167_v9 = vld [vmem:[#allocation5_spill] sm:$0xff] }
 0x520   :  { %v6191_v60 = vpop.f32.mrf.mxu0  ;;  %v6638_v58 = vpop.f32.mrf.mxu1 }
 0x521   :  { %v6609_v35 = vadd.f32 %v6608_v4, %v6190_v51 }
 0x522   :  { %v6196_v29 = vpop.f32.mrf.mxu0  ;;  %v6643_v34 = vpop.f32.mrf.mxu1 }
 0x523   :  { %v6197_v0 = vadd.f32 %v6196_v29, %v13163_v37  ;;  %6825 = vxpose.xlu1.b32.cont [7/16] (narrow) %v6609_v35, 8 }
 0x524   :  { %v6198_v2 = vpop.f32.mrf.mxu0  ;;  %v6645_v11 = vpop.f32.mrf.mxu1 }
 0x525   :  { %v6616_v53 = vadd.f32 %v6615_v30, %v6197_v0 }
 0x526   :  { %v6203_v59 = vpop.f32.mrf.mxu0  ;;  %v6650_v54 = vpop.f32.mrf.mxu1 }
 0x527   :  { %v6204_v36 = vadd.f32 %v6203_v59, %v13164_v55  ;;  %6826 = vxpose.xlu1.b32.cont [8/16] (narrow) %v6616_v53, 8 }
 0x528   :  { %v6205_v7 = vpop.f32.mrf.mxu0  ;;  %v6652_v10 = vpop.f32.mrf.mxu1 }
 0x529   :  { %v6623_v39 = vadd.f32 %v6622_v38, %v6204_v36 }
 0x52a   :  { %v6210_v1 = vpop.f32.mrf.mxu0  ;;  %v6657_v12 = vpop.f32.mrf.mxu1 }
 0x52b   :  { %v6211_v4 = vadd.f32 %v6210_v1, %v13165_v14  ;;  %6827 = vxpose.xlu1.b32.cont [9/16] (narrow) %v6623_v39, 8 }
 0x52c   :  { %v6212_v44 = vpop.f32.mrf.mxu0  ;;  %v6659_v61 = vpop.f32.mrf.mxu1 }
 0x52d   :  { %v6630_v16 = vadd.f32 %v6629_v17, %v6211_v4 }
 0x52e   :  { %v6217_v23 = vpop.f32.mrf.mxu0  ;;  %v6664_v28 = vpop.f32.mrf.mxu1 }
 0x52f   :  { %v6218_v30 = vadd.f32 %v6217_v23, %v11284_v43  ;;  %6828 = vxpose.xlu1.b32.cont [10/16] (narrow) %v6630_v16, 8 }
 0x530   :  { %v6219_v26 = vpop.f32.mrf.mxu0  ;;  %v6666_v13 = vpop.f32.mrf.mxu1 }
 0x531   :  { %v6637_v47 = vadd.f32 %v6636_v56, %v6218_v30 }
 0x532   :  { %v6224_v22 = vpop.f32.mrf.mxu0  ;;  %v6671_v27 = vpop.f32.mrf.mxu1 }
 0x533   :  { %v6225_v38 = vadd.f32 %v6224_v22, %v13166_v6  ;;  %6829 = vxpose.xlu1.b32.cont [11/16] (narrow) %v6637_v47, 8 }
 0x534   :  { %v6226_v50 = vpop.f32.mrf.mxu0  ;;  %v6673_v24 = vpop.f32.mrf.mxu1 }
 0x535   :  { %v6644_v21 = vadd.f32 %v6643_v34, %v6225_v38 }
 0x536   :  { %v6231_v45 = vpop.f32.mrf.mxu0  ;;  %v6678_v33 = vpop.f32.mrf.mxu1 }
 0x537   :  { %v6232_v17 = vadd.f32 %v6231_v45, %v13167_v9  ;;  %6830 = vxpose.xlu1.b32.cont [12/16] (narrow) %v6644_v21, 8 }
 0x538   :  { %v6233_v41 = vpop.f32.mrf.mxu0  ;;  %v6680_v25 = vpop.f32.mrf.mxu1 }
 0x539   :  { %v6651_v43 = vadd.f32 %v6650_v54, %v6232_v17 }
 0x53a   :  { %v6238_v51 = vpop.f32.mrf.mxu0  ;;  %v6685_v60 = vpop.f32.mrf.mxu1 }
 0x53b   :  { %v6239_v56 = vadd.f32 %v6238_v51, %v11305_v63  ;;  %6831 = vxpose.xlu1.b32.cont [13/16] (narrow) %v6651_v43, 8 }
 0x53c   :  { %v6240_v58 = vpop.f32.mrf.mxu0  ;;  %v6687_v35 = vpop.f32.mrf.mxu1 }
 0x53d   :  { %v6658_v29 = vadd.f32 %v6657_v12, %v6239_v56 }
 0x53e   :  { %v6245_v37 = vpop.f32.mrf.mxu0  ;;  %v6692_v0 = vpop.f32.mrf.mxu1 }
 0x53f   :  { %v6246_v34 = vadd.f32 %v6245_v37, %v11312_v18  ;;  %6832 = vxpose.xlu1.b32.cont [14/16] (narrow) %v6658_v29, 8 }
 0x540   :  { %v6247_v2 = vpop.f32.mrf.mxu0  ;;  %v6694_v11 = vpop.f32.mrf.mxu1 }
 0x541   :  { %v6665_v53 = vadd.f32 %v6664_v28, %v6246_v34 }
 0x542   :  { %v6252_v59 = vpop.f32.mrf.mxu0  ;;  %v6699_v55 = vpop.f32.mrf.mxu1 }
 0x543   :  { %v6253_v54 = vadd.f32 %v6252_v59, %v11319_v8  ;;  %6833 = vxpose.xlu1.b32.cont [15/16] (narrow) %v6665_v53, 8 }
 0x544   :  { %v6254_v36 = vpop.f32.mrf.mxu0  ;;  %v6701_v7 = vpop.f32.mrf.mxu1 }
 0x545   :  { %v6672_v63 = vadd.f32 %v6671_v27, %v6253_v54 }
 0x546   :  { %v6259_v10 = vpop.f32.mrf.mxu0  ;;  %v6706_v39 = vpop.f32.mrf.mxu1 }
 0x547   :  { %v6260_v1 = vadd.f32 %v6259_v10, %v11326_v46  ;;  %6834 = vxpose.xlu1.b32.end [16/16] (narrow) %v6672_v63, 8 }
 0x548   :  { %v6261_v12 = vpop.f32.mrf.mxu0  ;;  %v6708_v14 = vpop.f32.mrf.mxu1 }
 0x549   :  { %v6679_v18 = vadd.f32 %v6678_v33, %v6260_v1 }
 0x54a   :  { %v6266_v4 = vpop.f32.mrf.mxu0  ;;  %v6713_v44 = vpop.f32.mrf.mxu1 }
 0x54b   :  { %v6267_v61 = vadd.f32 %v6266_v4, %v11333_v15  ;;  %6851 = vxpose.xlu0.b32.start [1/16] (narrow) %v6679_v18, 8  ;;  %v13168_v18 = vld [vmem:[#allocation119_spill] sm:$0xff] }
 0x54c   :  { %v6268_v16 = vpop.f32.mrf.mxu0  ;;  %v6715_v23 = vpop.f32.mrf.mxu1 }
 0x54d   :  { %v6686_v8 = vadd.f32 %v6685_v60, %v6267_v61 }
 0x54e   :  { %v6273_v28 = vpop.f32.mrf.mxu0  ;;  %v6720_v30 = vpop.f32.mrf.mxu1 }
 0x54f   :  { %v6274_v26 = vadd.f32 %v6273_v28, %v11340_v5  ;;  %6852 = vxpose.xlu0.b32.cont [2/16] (narrow) %v6686_v8, 8  ;;  %v6803_v28 = vpop.trf.xlu0 }
 0x550   :  { %v6275_v13 = vpop.f32.mrf.mxu0  ;;  %v6722_v47 = vpop.f32.mrf.mxu1 }
 0x551   :  { %v6693_v46 = vadd.f32 %v6692_v0, %v6274_v26  ;;  %v6883_v47 = vmax.f32 %v6803_v28, 0.0 }
 0x552   :  { %v6280_v22 = vpop.f32.mrf.mxu0  ;;  %v6727_v27 = vpop.f32.mrf.mxu1 }
 0x553   :  { %v6281_v6 = vadd.f32 %v6280_v22, %v11347_v3  ;;  %6853 = vxpose.xlu0.b32.cont [3/16] (narrow) %v6693_v46, 8 }
 0x554   :  { %v6282_v38 = vpop.f32.mrf.mxu0  ;;  %v6729_v50 = vpop.f32.mrf.mxu1 }
 0x555   :  { %v6700_v15 = vadd.f32 %v6699_v55, %v6281_v6  ;;  %v6886_v38 = vmin.f32 %v6883_v47, 1.0 }
 0x556   :  { %v6287_v24 = vpop.f32.mrf.mxu0  ;;  %v6734_v21 = vpop.f32.mrf.mxu1 }
 0x557   :  { %v6288_v45 = vadd.f32 %v6287_v24, %v11354_v52  ;;  %6854 = vxpose.xlu0.b32.cont [4/16] (narrow) %v6700_v15, 8  ;;  %vm6907_vm2 = vcmp.gt.f32.partialorder %v6886_v38, 0.0 }
 0x558   :  { %v6289_v33 = vpop.f32.mrf.mxu0  ;;  %v6736_v9 = vpop.f32.mrf.mxu1 }
 0x559   :  { %v6707_v5 = vadd.f32 %v6706_v39, %v6288_v45 }
 0x55a   :  { %v6294_v17 = vpop.f32.mrf.mxu0  ;;  %v6741_v41 = vpop.f32.mrf.mxu1 }
 0x55b   :  { %v6295_v25 = vadd.f32 %v6294_v17, %v11361_v31  ;;  %6855 = vxpose.xlu0.b32.cont [5/16] (narrow) %v6707_v5, 8 }
 0x55c   :  { %v6296_v43 = vpop.f32.mrf.mxu0  ;;  %v6743_v51 = vpop.f32.mrf.mxu1 }
 0x55d   :  { %v6714_v3 = vadd.f32 %v6713_v44, %v6295_v25 }
 0x55e   :  { %v6301_v60 = vpop.f32.mrf.mxu0  ;;  %v6748_v56 = vpop.f32.mrf.mxu1 }
 0x55f   :  { %v6302_v58 = vadd.f32 %v6301_v60, %v11368_v57  ;;  %6856 = vxpose.xlu0.b32.cont [6/16] (narrow) %v6714_v3, 8 }
 0x560   :  { %v6303_v35 = vpop.f32.mrf.mxu0  ;;  %v6750_v29 = vpop.f32.mrf.mxu1 }
 0x561   :  { %v6721_v52 = vadd.f32 %v6720_v30, %v6302_v58 }
 0x562   :  { %v6308_v37 = vpop.f32.mrf.mxu0  ;;  %v6755_v0 = vpop.f32.mrf.mxu1 }
 0x563   :  { %v6309_v34 = vadd.f32 %v6308_v37, %v11375_v48  ;;  %6857 = vxpose.xlu0.b32.cont [7/16] (narrow) %v6721_v52, 8 }
 0x564   :  { %v6310_v2 = vpop.f32.mrf.mxu0  ;;  %v6757_v11 = vpop.f32.mrf.mxu1 }
 0x565   :  { %v6728_v31 = vadd.f32 %v6727_v27, %v6309_v34 }
 0x566   :  { %v6315_v53 = vpop.f32.mrf.mxu0  ;;  %v6762_v59 = vpop.f32.mrf.mxu1 }
 0x567   :  { %v6316_v55 = vadd.f32 %v6315_v53, %v11382_v49  ;;  %6858 = vxpose.xlu0.b32.cont [8/16] (narrow) %v6728_v31, 8 }
 0x568   :  { %v6317_v54 = vpop.f32.mrf.mxu0  ;;  %v6764_v36 = vpop.f32.mrf.mxu1 }
 0x569   :  { %v6735_v57 = vadd.f32 %v6734_v21, %v6316_v55  ;;  %v6889_v21 = vmax.f32 %v6886_v38, 1e-30 }
 0x56a   :  { %v6322_v7 = vpop.f32.mrf.mxu0  ;;  %v6769_v63 = vpop.f32.mrf.mxu1 }
 0x56b   :  { %v6323_v10 = vadd.f32 %v6322_v7, %v11389_v19  ;;  %6859 = vxpose.xlu0.b32.cont [9/16] (narrow) %v6735_v57, 8  ;;  %6924 = vlog2.f32 %v6889_v21 }
 0x56c   :  { %v6324_v39 = vpop.f32.mrf.mxu0  ;;  %v6771_v1 = vpop.f32.mrf.mxu1 }
 0x56d   :  { %v6742_v48 = vadd.f32 %v6741_v41, %v6323_v10 }
 0x56e   :  { %v6329_v12 = vpop.f32.mrf.mxu0  ;;  %v6776_v14 = vpop.f32.mrf.mxu1 }
 0x56f   :  { %v6330_v4 = vadd.f32 %v6329_v12, %v13168_v18  ;;  %6860 = vxpose.xlu0.b32.cont [10/16] (narrow) %v6742_v48, 8 }
 0x570   :  { %v6331_v44 = vpop.f32.mrf.mxu0  ;;  %v6778_v61 = vpop.f32.mrf.mxu1 }
 0x571   :  { %v6749_v49 = vadd.f32 %v6748_v56, %v6330_v4 }
 0x572   :  { %v6336_v16 = vpop.f32.mrf.mxu0  ;;  %v6783_v23 = vpop.f32.mrf.mxu1 }
 0x573   :  { %v6337_v8 = vadd.f32 %v6336_v16, %v11402_v42  ;;  %6861 = vxpose.xlu0.b32.cont [11/16] (narrow) %v6749_v49, 8 }
 0x574   :  { %v6338_v30 = vpop.f32.mrf.mxu0  ;;  %v6785_v19 = vpop.f32.mrf.mxu1 }
 0x575   :  { %v6756_v26 = vadd.f32 %v6755_v0, %v6337_v8 }
 0x576   :  { %v6343_v13 = vpop.f32.mrf.mxu0 }
 0x577   :  { %v6344_v46 = vadd.f32 %v6343_v13, %v11407_v62  ;;  %6862 = vxpose.xlu0.b32.cont [12/16] (narrow) %v6756_v26, 8 }
 0x578   :  { %v6345_v22 = vpop.f32.mrf.mxu0  ;;  %v6925_v3 = vpop.eup %6924 }
 0x579   :  { %v6763_v27 = vadd.f32 %v6762_v59, %v6344_v46  ;;  %v6893_v60 = vmul.f32 0.6931472, %v6925_v3 }
 0x57a   :  { %v6350_v6 = vpop.f32.mrf.mxu0 }
 0x57b   :  { %v6351_v50 = vadd.f32 %v6350_v6, %v11412_v20  ;;  %6863 = vxpose.xlu0.b32.cont [13/16] (narrow) %v6763_v27, 8  ;;  %v6898_v56 = vmul.f32 0.45454547, %v6893_v60 }
 0x57c   :  { %v6352_v15 = vpop.f32.mrf.mxu0 }
 0x57d   :  { %v6770_v24 = vadd.f32 %v6769_v63, %v6351_v50 }
 0x57e   :  { %v6357_v42 = vpop.f32.mrf.mxu0 }
 0x57f   :  { %v6358_v45 = vadd.f32 %v6357_v42, %v11417_v40  ;;  %6864 = vxpose.xlu0.b32.cont [14/16] (narrow) %v6770_v24, 8  ;;  %v6901_v40 = vmul.f32 1.442695, %v6898_v56 }
 0x580   :  { %v6359_v33 = vpop.f32.mrf.mxu0 }
 0x581   :  { %v6777_v9 = vadd.f32 %v6776_v14, %v6358_v45 }
 0x582   :  { %v6364_v5 = vpop.f32.mrf.mxu0 }
 0x583   :  { %v6365_v62 = vadd.f32 %v6364_v5, %v11421_v32  ;;  %6865 = vxpose.xlu0.b32.cont [15/16] (narrow) %v6777_v9, 8 }
 0x584   :  { %v6366_v17 = vpop.f32.mrf.mxu0 }
 0x585   :  { %v6784_v41 = vadd.f32 %v6783_v23, %v6365_v62 }
 0x587   :  { %6866 = vxpose.xlu0.b32.end [16/16] (narrow) %v6784_v41, 8  ;;  %v6835_v25 = vpop.trf.xlu1 }
 0x588   :  { %v6884_v20 = vmax.f32 %v6835_v25, 0.0 }
 0x58a   :  { %v6887_v43 = vmin.f32 %v6884_v20, 1.0 }
 0x58c   :  { %v6890_v51 = vmax.f32 %v6887_v43, 1e-30  ;;  %vm6908_vm3 = vcmp.gt.f32.partialorder %v6887_v43, 0.0 }
 0x58e   :  { %6926 = vlog2.f32 %v6890_v51 }
 0x58f   :  { %6928 = vpow2.f32 %v6901_v40 }
 0x59b   :  { %v6927_v58 = vpop.eup %6926 }
 0x59c   :  { %v6895_v35 = vmul.f32 0.6931472, %v6927_v58  ;;  %v6929_v32 = vpop.eup %6928 }
 0x59d   :  { %v6910_v37 = vsel %vm6907_vm2, %v6929_v32, 0.0 }
 0x59e   :  { %v6899_v29 = vmul.f32 0.45454547, %v6895_v35 }
 0x5a0   :  { %v6903_v52 = vmul.f32 1.442695, %v6899_v29 }
 0x5a2   :  { %6930 = vpow2.f32 %v6903_v52 }
 0x5af   :  { %v6931_v0 = vpop.eup %6930 }
 0x5b0   :  { %v6911_v34 = vsel %vm6908_vm3, %v6931_v0, 0.0 }
 0x5b1   :  { %v6915_v2 = vcombine.low %v6910_v37, %v6911_v34 }
 0x5b3   :  { %6917 = vst [vmem:[%s11481_s4] sm:$0x77] %v6915_v2 }
 0x5c7   :  { %v6867_v11 = vpop.trf.xlu0 }
 0x5c8   :  { %v6885_v31 = vmax.f32 %v6867_v11, 0.0 }
 0x5ca   :  { %v6888_v53 = vmin.f32 %v6885_v31, 1.0 }
 0x5cc   :  { %v6891_v59 = vmax.f32 %v6888_v53, 1e-30  ;;  %vm6909_vm4 = vcmp.gt.f32.partialorder %v6888_v53, 0.0 }
 0x5ce   :  { %6932 = vlog2.f32 %v6891_v59 }
 0x5db   :  { %v6933_v55 = vpop.eup %6932 }
 0x5dc   :  { %v6897_v54 = vmul.f32 0.6931472, %v6933_v55 }
 0x5de   :  { %v6900_v36 = vmul.f32 0.45454547, %v6897_v54 }
 0x5e0   :  { %v6905_v57 = vmul.f32 1.442695, %v6900_v36 }
 0x5e2   :  { %6934 = vpow2.f32 %v6905_v57 }
 0x5ef   :  { %v6935_v7 = vpop.eup %6934 }
 0x5f0   :  { %v6912_v63 = vsel %vm6909_vm4, %v6935_v7, 0.0 }
 0x5f1   :  { %6918 = vst [vmem:[%s11481_s4 + $0x8] sm:$0x7] %v6912_v63 }

</bundles_post_ra>
